<compile_context>
chip_gen: v7x
topology: tpu7x:2x2x1
jax: 0.10.0
libtpu: 0.0.40
codegen_flags: <defaults>
</compile_context>

<pallas_src>
import jax
import jax.numpy as jnp
from jax.experimental import pallas as pl
from jax.experimental.pallas import tpu as pltpu


# ----------------------------- kernel helpers -----------------------------


def _zero_border(pad_ref):
    """Zero the 1-pixel border of a padded VMEM scratch.

    The interior is fully overwritten every grid step, so only the border
    needs stores.  Re-done every step (cheap) so it is megacore-safe.
    """
    Hp, Wp, C = pad_ref.shape
    zrow = jnp.zeros((1, Wp, C), jnp.float32)
    pad_ref[0:1, :, :] = zrow
    pad_ref[Hp - 1:Hp, :, :] = zrow
    zcol = jnp.zeros((Hp, 1, C), jnp.float32)
    pad_ref[:, 0:1, :] = zcol
    pad_ref[:, Wp - 1:Wp, :] = zcol


def _conv3x3_relu(pad_ref, col_ref, w_ref, b_ref):
    """3x3 same-conv + bias + ReLU for one image.

    pad_ref: (H+2, W+2, Cin)  padded input (border already zero)
    col_ref: (H, W, 9*Cin)    im2col scratch
    w_ref  : (9*Cin, Cout)    tap-major weights (k = dy*3+dx, then cin)
    b_ref  : (1, 1, Cout)     bias
    returns (H, W, Cout) float32 value.
    """
    Hp, Wp, Cin = pad_ref.shape
    H, W = Hp - 2, Wp - 2
    # Assemble im2col patches: 9 static shifted windows written at channel
    # (lane) offsets -> one fat-K matmul instead of 9 skinny ones.
    for k in range(9):
        dy, dx = k // 3, k % 3
        col_ref[:, :, k * Cin:(k + 1) * Cin] = pad_ref[dy:dy + H, dx:dx + W, :]
    acc = jax.lax.dot_general(
        col_ref[...], w_ref[...],
        dimension_numbers=(((2,), (0,)), ((), ())),
        preferred_element_type=jnp.float32)
    return jnp.maximum(acc + b_ref[...], 0.0)


def _maxpool2_into(x, dst_ref, row0, col0):
    """2x2 / stride-2 max-pool of x (H, W, C) written into
    dst_ref[row0:row0+H//2, col0:col0+W//2, :] (all static slices)."""
    H, W, C = x.shape
    Ho, Wo = H // 2, W // 2
    # Pool along H: split only the leading (untiled) dim -> layout-safe.
    xh = jnp.max(x.reshape(Ho, 2, W, C), axis=1)            # (Ho, W, C)
    # Pool along W: pairwise max of adjacent column slices, stored column by
    # column (fully unrolled, Wo <= 16); avoids strided / sublane-splitting
    # ops entirely.
    for j in range(Wo):
        a = xh[:, 2 * j:2 * j + 1, :]
        b = xh[:, 2 * j + 1:2 * j + 2, :]
        dst_ref[row0:row0 + Ho, col0 + j:col0 + j + 1, :] = jnp.maximum(a, b)


# ------------------------------- main kernel -------------------------------


def lenet5_2_kernel(x_ref, w1_ref, b1_ref, w2_ref, b2_ref, w3_ref, b3_ref,
                    fc1w_ref, fc1b_ref, fc2w_ref, fc2b_ref, o_ref,
                    pad1_ref, col1_ref, pad2_ref, col2_ref, pad3_ref,
                    col3_ref, feat_ref):
    H, W, _ = x_ref.shape

    # ---- stage 1: conv(3->6) + ReLU + maxpool2 -> pad2 interior ----
    _zero_border(pad1_ref)
    pad1_ref[1:1 + H, 1:1 + W, :] = x_ref[...].astype(jnp.float32)
    a1 = _conv3x3_relu(pad1_ref, col1_ref, w1_ref, b1_ref)     # (H, W, 6)
    _zero_border(pad2_ref)
    _maxpool2_into(a1, pad2_ref, 1, 1)

    # ---- stage 2: conv(6->16) + ReLU + maxpool2 -> pad3 interior ----
    a2 = _conv3x3_relu(pad2_ref, col2_ref, w2_ref, b2_ref)     # (H/2, W/2, 16)
    _zero_border(pad3_ref)
    _maxpool2_into(a2, pad3_ref, 1, 1)

    # ---- stage 3: conv(16->60) + ReLU + maxpool2 -> feat ----
    a3 = _conv3x3_relu(pad3_ref, col3_ref, w3_ref, b3_ref)     # (H/4, W/4, 60)
    _maxpool2_into(a3, feat_ref, 0, 0)                         # (H/8, W/8, 60)

    # ---- classifier: Linear(480->84)+ReLU, Linear(84->nc)+ReLU ----
    Hf, Wf, _ = feat_ref.shape
    feat = feat_ref[...]                                       # (Hf, Wf, 60)
    acc = fc1b_ref[...]                                        # (1, 84)
    # FC1 as a sum of per-position (1, C3) @ (C3, 84) dots; avoids any
    # lane-merging flatten inside the kernel (the (h, w, c) -> column
    # permutation is folded into the weights in the wrapper).
    for p in range(Hf * Wf):
        hy, hx = p // Wf, p % Wf
        vec = feat[hy, hx:hx + 1, :]                           # (1, C3)
        acc = acc + jnp.dot(vec, fc1w_ref[p],
                            preferred_element_type=jnp.float32)
    h1 = jnp.maximum(acc, 0.0)                                 # (1, 84)

    logits = jnp.dot(h1, fc2w_ref[...],
                     preferred_element_type=jnp.float32) + fc2b_ref[...]
    o_ref[...] = jnp.maximum(logits, 0.0).astype(o_ref.dtype)  # (1, n_classes)


# --------------------------------- wrapper ---------------------------------


def lenet5_2_pallas(x_nchw, params):
    """x_nchw: (N, 3, H, W) float32, PyTorch layout.  params: PyTorch-layout
    weights/biases of LeNet5_2."""
    (w1, b1, w2, b2, w3, b3, fc1_w, fc1_b, fc2_w, fc2_b) = params

    N, Cin, H, W = x_nchw.shape
    C1, C2, C3 = w1.shape[0], w2.shape[0], w3.shape[0]
    FC_HID = fc1_w.shape[0]
    NC = fc2_w.shape[0]

    assert H % 8 == 0 and W % 8 == 0, "three maxpool2 stages need /8 spatial"
    Hf, Wf = H // 8, W // 8
    assert Hf * Wf * C3 == fc1_w.shape[1], "classifier in_features mismatch"
    H2, W2, H3, W3 = H // 2, W // 2, H // 4, W // 4

    # NCHW -> NHWC: channels-last so channels sit on the lane dim in-kernel.
    x = jnp.transpose(x_nchw, (0, 2, 3, 1))

    def pack_conv(w):  # (Cout, Cin, 3, 3) -> (9*Cin, Cout), tap-major
        cout, cin = w.shape[0], w.shape[1]
        return jnp.transpose(w, (2, 3, 1, 0)).reshape(9 * cin, cout)

    w1k, w2k, w3k = pack_conv(w1), pack_conv(w2), pack_conv(w3)
    b1k = b1.reshape(1, 1, C1)
    b2k = b2.reshape(1, 1, C2)
    b3k = b3.reshape(1, 1, C3)

    # PyTorch flattens NCHW as (c, h, w); the kernel's features are (h, w, c),
    # so permute fc1's columns to (p = h*Wf + w, c) and transpose.
    fc1k = jnp.transpose(fc1_w.reshape(FC_HID, C3, Hf, Wf),
                         (2, 3, 1, 0)).reshape(Hf * Wf, C3, FC_HID)
    fc1bk = fc1_b.reshape(1, FC_HID)
    fc2k = jnp.transpose(fc2_w, (1, 0))        # (84, NC)
    fc2bk = fc2_b.reshape(1, NC)

    cost = pl.CostEstimate(
        flops=int(2 * N * (H * W * 9 * Cin * C1
                           + H2 * W2 * 9 * C1 * C2
                           + H3 * W3 * 9 * C2 * C3
                           + Hf * Wf * C3 * FC_HID + FC_HID * NC)),
        transcendentals=0,
        bytes_accessed=int(4 * (x.size + N * NC
                                + w1k.size + w2k.size + w3k.size
                                + fc1k.size + fc2k.size
                                + C1 + C2 + C3 + FC_HID + NC)))

    out = pl.pallas_call(
        lenet5_2_kernel,
        out_shape=jax.ShapeDtypeStruct((N, 1, NC), jnp.float32),
        grid=(N,),
        in_specs=[
            pl.BlockSpec((pl.Squeezed(), H, W, Cin), lambda n: (n, 0, 0, 0)),
            pl.BlockSpec((9 * Cin, C1), lambda n: (0, 0)),
            pl.BlockSpec((1, 1, C1), lambda n: (0, 0, 0)),
            pl.BlockSpec((9 * C1, C2), lambda n: (0, 0)),
            pl.BlockSpec((1, 1, C2), lambda n: (0, 0, 0)),
            pl.BlockSpec((9 * C2, C3), lambda n: (0, 0)),
            pl.BlockSpec((1, 1, C3), lambda n: (0, 0, 0)),
            pl.BlockSpec((Hf * Wf, C3, FC_HID), lambda n: (0, 0, 0)),
            pl.BlockSpec((1, FC_HID), lambda n: (0, 0)),
            pl.BlockSpec((FC_HID, NC), lambda n: (0, 0)),
            pl.BlockSpec((1, NC), lambda n: (0, 0)),
        ],
        out_specs=pl.BlockSpec((pl.Squeezed(), 1, NC), lambda n: (n, 0, 0)),
        scratch_shapes=[
            pltpu.VMEM((H + 2, W + 2, Cin), jnp.float32),    # pad1
            pltpu.VMEM((H, W, 9 * Cin), jnp.float32),        # col1 (im2col)
            pltpu.VMEM((H2 + 2, W2 + 2, C1), jnp.float32),   # pad2
            pltpu.VMEM((H2, W2, 9 * C1), jnp.float32),       # col2
            pltpu.VMEM((H3 + 2, W3 + 2, C2), jnp.float32),   # pad3
            pltpu.VMEM((H3, W3, 9 * C2), jnp.float32),       # col3
            pltpu.VMEM((Hf, Wf, C3), jnp.float32),           # pooled features
        ],
        compiler_params=pltpu.CompilerParams(
            dimension_semantics=("parallel",)),
        cost_estimate=cost,
    )(x, w1k, b1k, w2k, b2k, w3k, b3k, fc1k, fc1bk, fc2k, fc2bk)

    return out.reshape(N, NC)


# ---------------------------- pure-JAX reference ----------------------------


def lenet5_2_reference(x_nchw, params):
    (w1, b1, w2, b2, w3, b3, fc1_w, fc1_b, fc2_w, fc2_b) = params

    def conv(x, w, b):
        y = jax.lax.conv_general_dilated(
            x, w, window_strides=(1, 1), padding=((1, 1), (1, 1)),
            dimension_numbers=("NCHW", "OIHW", "NCHW"))
        return y + b.reshape(1, -1, 1, 1)

    def pool(x):
        return jax.lax.reduce_window(
            x, -jnp.inf, jax.lax.max, (1, 1, 2, 2), (1, 1, 2, 2), "VALID")

    h = pool(jax.nn.relu(conv(x_nchw, w1, b1)))
    h = pool(jax.nn.relu(conv(h, w2, b2)))
    h = pool(jax.nn.relu(conv(h, w3, b3)))
    h = h.reshape(h.shape[0], -1)          # NCHW flatten, same as torch
    h = jax.nn.relu(h @ fc1_w.T + fc1_b)
    return jax.nn.relu(h @ fc2_w.T + fc2_b)


# ----------------------------------- main -----------------------------------


if __name__ == "__main__":
    key = jax.random.PRNGKey(0)
    ks = jax.random.split(key, 6)

    # (H//8)*(W//8)*60 must equal 480 (the classifier's in_features):
    # 16x32 inputs (the half-image shape this model is used with) give 2*4*60.
    N, C, H, W = 2, 3, 16, 32
    n_classes = 2

    x = jax.random.normal(ks[0], (N, C, H, W), jnp.float32)

    def init_conv(k, cout, cin):
        kw, kb = jax.random.split(k)
        bound = 1.0 / jnp.sqrt(cin * 9.0)
        w = jax.random.uniform(kw, (cout, cin, 3, 3), jnp.float32,
                               -bound, bound)
        b = jax.random.uniform(kb, (cout,), jnp.float32, -bound, bound)
        return w, b

    def init_fc(k, cout, cin):
        kw, kb = jax.random.split(k)
        bound = 1.0 / jnp.sqrt(float(cin))
        w = jax.random.uniform(kw, (cout, cin), jnp.float32, -bound, bound)
        b = jax.random.uniform(kb, (cout,), jnp.float32, -bound, bound)
        return w, b

    w1, b1 = init_conv(ks[1], 6, 3)
    w2, b2 = init_conv(ks[2], 16, 6)
    w3, b3 = init_conv(ks[3], 60, 16)
    fc1_w, fc1_b = init_fc(ks[4], 84, 480)
    fc2_w, fc2_b = init_fc(ks[5], n_classes, 84)

    params = (w1, b1, w2, b2, w3, b3, fc1_w, fc1_b, fc2_w, fc2_b)

    out = lenet5_2_pallas(x, params)
    out = jax.block_until_ready(out)

    ref = lenet5_2_reference(x, params)
    ref = jax.block_until_ready(ref)

    assert out.shape == (N, n_classes), out.shape
    max_err = float(jnp.max(jnp.abs(out - ref)))
    assert jnp.allclose(out, ref, atol=1e-3, rtol=1e-3), max_err

    print("KERNEL_OK")
</pallas_src>

<mosaic_0001>
module attributes {stable_mosaic.version = 11 : i64} {
  func.func @lenet5_2_kernel(%arg0: i32, %arg1: memref<1x16x32x3xf32, #tpu.memory_space<vmem>>, %arg2: memref<27x6xf32, #tpu.memory_space<vmem>>, %arg3: memref<1x1x6xf32, #tpu.memory_space<vmem>>, %arg4: memref<54x16xf32, #tpu.memory_space<vmem>>, %arg5: memref<1x1x16xf32, #tpu.memory_space<vmem>>, %arg6: memref<144x60xf32, #tpu.memory_space<vmem>>, %arg7: memref<1x1x60xf32, #tpu.memory_space<vmem>>, %arg8: memref<8x60x84xf32, #tpu.memory_space<vmem>>, %arg9: memref<1x84xf32, #tpu.memory_space<vmem>>, %arg10: memref<84x2xf32, #tpu.memory_space<vmem>>, %arg11: memref<1x2xf32, #tpu.memory_space<vmem>>, %arg12: memref<1x1x2xf32, #tpu.memory_space<vmem>>, %arg13: memref<18x34x3xf32, #tpu.memory_space<vmem>>, %arg14: memref<16x32x27xf32, #tpu.memory_space<vmem>>, %arg15: memref<10x18x6xf32, #tpu.memory_space<vmem>>, %arg16: memref<8x16x54xf32, #tpu.memory_space<vmem>>, %arg17: memref<6x10x16xf32, #tpu.memory_space<vmem>>, %arg18: memref<4x8x144xf32, #tpu.memory_space<vmem>>, %arg19: memref<2x4x60xf32, #tpu.memory_space<vmem>>) attributes {dimension_semantics = [#tpu.dimension_semantics<parallel>], iteration_bounds = array<i64: 2>, scalar_prefetch = 0 : i64, scratch_operands = 7 : i64, tpu.core_type = #tpu.core_type<tc>, window_params = [{transform_indices = @transform_0, window_bounds = array<i64: 1, 16, 32, 3>}, {pipeline_mode = #tpu.pipeline_mode<synchronous>, transform_indices = @transform_1, window_bounds = array<i64: 27, 6>}, {pipeline_mode = #tpu.pipeline_mode<synchronous>, transform_indices = @transform_2, window_bounds = array<i64: 1, 1, 6>}, {pipeline_mode = #tpu.pipeline_mode<synchronous>, transform_indices = @transform_3, window_bounds = array<i64: 54, 16>}, {pipeline_mode = #tpu.pipeline_mode<synchronous>, transform_indices = @transform_4, window_bounds = array<i64: 1, 1, 16>}, {pipeline_mode = #tpu.pipeline_mode<synchronous>, transform_indices = @transform_5, window_bounds = array<i64: 144, 60>}, {pipeline_mode = #tpu.pipeline_mode<synchronous>, transform_indices = @transform_6, window_bounds = array<i64: 1, 1, 60>}, {pipeline_mode = #tpu.pipeline_mode<synchronous>, transform_indices = @transform_7, window_bounds = array<i64: 8, 60, 84>}, {pipeline_mode = #tpu.pipeline_mode<synchronous>, transform_indices = @transform_8, window_bounds = array<i64: 1, 84>}, {pipeline_mode = #tpu.pipeline_mode<synchronous>, transform_indices = @transform_9, window_bounds = array<i64: 84, 2>}, {pipeline_mode = #tpu.pipeline_mode<synchronous>, transform_indices = @transform_10, window_bounds = array<i64: 1, 2>}, {transform_indices = @transform_11, window_bounds = array<i64: 1, 1, 2>}]} {
    %cst = arith.constant 0.000000e+00 : f32
    %0 = vector.broadcast %cst : f32 to vector<1x34x3xf32>
    %c0 = arith.constant 0 : index
    %c0_0 = arith.constant 0 : index
    %c0_1 = arith.constant 0 : index
    %1 = vector.load %arg13[%c0, %c0_0, %c0_1] : memref<18x34x3xf32, #tpu.memory_space<vmem>>, vector<1x34x3xf32>
    tpu.vector_store %arg13[%c0, %c0_0, %c0_1], %0 {strides = array<i32>} : memref<18x34x3xf32, #tpu.memory_space<vmem>>, vector<1x34x3xf32>,
    %c17 = arith.constant 17 : index
    %c0_2 = arith.constant 0 : index
    %c0_3 = arith.constant 0 : index
    %2 = vector.load %arg13[%c17, %c0_2, %c0_3] : memref<18x34x3xf32, #tpu.memory_space<vmem>>, vector<1x34x3xf32>
    tpu.vector_store %arg13[%c17, %c0_2, %c0_3], %0 {strides = array<i32>} : memref<18x34x3xf32, #tpu.memory_space<vmem>>, vector<1x34x3xf32>,
    %cst_4 = arith.constant 0.000000e+00 : f32
    %3 = vector.broadcast %cst_4 : f32 to vector<18x1x3xf32>
    %c0_5 = arith.constant 0 : index
    %c0_6 = arith.constant 0 : index
    %c0_7 = arith.constant 0 : index
    %4 = vector.load %arg13[%c0_5, %c0_6, %c0_7] : memref<18x34x3xf32, #tpu.memory_space<vmem>>, vector<18x1x3xf32>
    tpu.vector_store %arg13[%c0_5, %c0_6, %c0_7], %3 {strides = array<i32>} : memref<18x34x3xf32, #tpu.memory_space<vmem>>, vector<18x1x3xf32>,
    %c0_8 = arith.constant 0 : index
    %c33 = arith.constant 33 : index
    %c0_9 = arith.constant 0 : index
    %5 = vector.load %arg13[%c0_8, %c33, %c0_9] : memref<18x34x3xf32, #tpu.memory_space<vmem>>, vector<18x1x3xf32>
    tpu.vector_store %arg13[%c0_8, %c33, %c0_9], %3 {strides = array<i32>} : memref<18x34x3xf32, #tpu.memory_space<vmem>>, vector<18x1x3xf32>,
    %c0_10 = arith.constant 0 : index
    %c0_11 = arith.constant 0 : index
    %c0_12 = arith.constant 0 : index
    %c0_13 = arith.constant 0 : index
    %6 = vector.load %arg1[%c0_10, %c0_11, %c0_12, %c0_13] : memref<1x16x32x3xf32, #tpu.memory_space<vmem>>, vector<1x16x32x3xf32>
    %7 = vector.shape_cast %6 : vector<1x16x32x3xf32> to vector<16x32x3xf32>
    %c1 = arith.constant 1 : index
    %c1_14 = arith.constant 1 : index
    %c0_15 = arith.constant 0 : index
    %8 = vector.load %arg13[%c1, %c1_14, %c0_15] : memref<18x34x3xf32, #tpu.memory_space<vmem>>, vector<16x32x3xf32>
    tpu.vector_store %arg13[%c1, %c1_14, %c0_15], %7 {strides = array<i32>} : memref<18x34x3xf32, #tpu.memory_space<vmem>>, vector<16x32x3xf32>,
    %c0_16 = arith.constant 0 : index
    %c0_17 = arith.constant 0 : index
    %c0_18 = arith.constant 0 : index
    %9 = vector.load %arg13[%c0_16, %c0_17, %c0_18] : memref<18x34x3xf32, #tpu.memory_space<vmem>>, vector<16x32x3xf32>
    %c0_19 = arith.constant 0 : index
    %c0_20 = arith.constant 0 : index
    %c0_21 = arith.constant 0 : index
    %10 = vector.load %arg14[%c0_19, %c0_20, %c0_21] : memref<16x32x27xf32, #tpu.memory_space<vmem>>, vector<16x32x3xf32>
    tpu.vector_store %arg14[%c0_19, %c0_20, %c0_21], %9 {strides = array<i32>} : memref<16x32x27xf32, #tpu.memory_space<vmem>>, vector<16x32x3xf32>,
    %c0_22 = arith.constant 0 : index
    %c1_23 = arith.constant 1 : index
    %c0_24 = arith.constant 0 : index
    %11 = vector.load %arg13[%c0_22, %c1_23, %c0_24] : memref<18x34x3xf32, #tpu.memory_space<vmem>>, vector<16x32x3xf32>
    %c0_25 = arith.constant 0 : index
    %c0_26 = arith.constant 0 : index
    %c3 = arith.constant 3 : index
    %12 = vector.load %arg14[%c0_25, %c0_26, %c3] : memref<16x32x27xf32, #tpu.memory_space<vmem>>, vector<16x32x3xf32>
    tpu.vector_store %arg14[%c0_25, %c0_26, %c3], %11 {strides = array<i32>} : memref<16x32x27xf32, #tpu.memory_space<vmem>>, vector<16x32x3xf32>,
    %c0_27 = arith.constant 0 : index
    %c2 = arith.constant 2 : index
    %c0_28 = arith.constant 0 : index
    %13 = vector.load %arg13[%c0_27, %c2, %c0_28] : memref<18x34x3xf32, #tpu.memory_space<vmem>>, vector<16x32x3xf32>
    %c0_29 = arith.constant 0 : index
    %c0_30 = arith.constant 0 : index
    %c6 = arith.constant 6 : index
    %14 = vector.load %arg14[%c0_29, %c0_30, %c6] : memref<16x32x27xf32, #tpu.memory_space<vmem>>, vector<16x32x3xf32>
    tpu.vector_store %arg14[%c0_29, %c0_30, %c6], %13 {strides = array<i32>} : memref<16x32x27xf32, #tpu.memory_space<vmem>>, vector<16x32x3xf32>,
    %c1_31 = arith.constant 1 : index
    %c0_32 = arith.constant 0 : index
    %c0_33 = arith.constant 0 : index
    %15 = vector.load %arg13[%c1_31, %c0_32, %c0_33] : memref<18x34x3xf32, #tpu.memory_space<vmem>>, vector<16x32x3xf32>
    %c0_34 = arith.constant 0 : index
    %c0_35 = arith.constant 0 : index
    %c9 = arith.constant 9 : index
    %16 = vector.load %arg14[%c0_34, %c0_35, %c9] : memref<16x32x27xf32, #tpu.memory_space<vmem>>, vector<16x32x3xf32>
    tpu.vector_store %arg14[%c0_34, %c0_35, %c9], %15 {strides = array<i32>} : memref<16x32x27xf32, #tpu.memory_space<vmem>>, vector<16x32x3xf32>,
    %c1_36 = arith.constant 1 : index
    %c1_37 = arith.constant 1 : index
    %c0_38 = arith.constant 0 : index
    %17 = vector.load %arg13[%c1_36, %c1_37, %c0_38] : memref<18x34x3xf32, #tpu.memory_space<vmem>>, vector<16x32x3xf32>
    %c0_39 = arith.constant 0 : index
    %c0_40 = arith.constant 0 : index
    %c12 = arith.constant 12 : index
    %18 = vector.load %arg14[%c0_39, %c0_40, %c12] : memref<16x32x27xf32, #tpu.memory_space<vmem>>, vector<16x32x3xf32>
    tpu.vector_store %arg14[%c0_39, %c0_40, %c12], %17 {strides = array<i32>} : memref<16x32x27xf32, #tpu.memory_space<vmem>>, vector<16x32x3xf32>,
    %c1_41 = arith.constant 1 : index
    %c2_42 = arith.constant 2 : index
    %c0_43 = arith.constant 0 : index
    %19 = vector.load %arg13[%c1_41, %c2_42, %c0_43] : memref<18x34x3xf32, #tpu.memory_space<vmem>>, vector<16x32x3xf32>
    %c0_44 = arith.constant 0 : index
    %c0_45 = arith.constant 0 : index
    %c15 = arith.constant 15 : index
    %20 = vector.load %arg14[%c0_44, %c0_45, %c15] : memref<16x32x27xf32, #tpu.memory_space<vmem>>, vector<16x32x3xf32>
    tpu.vector_store %arg14[%c0_44, %c0_45, %c15], %19 {strides = array<i32>} : memref<16x32x27xf32, #tpu.memory_space<vmem>>, vector<16x32x3xf32>,
    %c2_46 = arith.constant 2 : index
    %c0_47 = arith.constant 0 : index
    %c0_48 = arith.constant 0 : index
    %21 = vector.load %arg13[%c2_46, %c0_47, %c0_48] : memref<18x34x3xf32, #tpu.memory_space<vmem>>, vector<16x32x3xf32>
    %c0_49 = arith.constant 0 : index
    %c0_50 = arith.constant 0 : index
    %c18 = arith.constant 18 : index
    %22 = vector.load %arg14[%c0_49, %c0_50, %c18] : memref<16x32x27xf32, #tpu.memory_space<vmem>>, vector<16x32x3xf32>
    tpu.vector_store %arg14[%c0_49, %c0_50, %c18], %21 {strides = array<i32>} : memref<16x32x27xf32, #tpu.memory_space<vmem>>, vector<16x32x3xf32>,
    %c2_51 = arith.constant 2 : index
    %c1_52 = arith.constant 1 : index
    %c0_53 = arith.constant 0 : index
    %23 = vector.load %arg13[%c2_51, %c1_52, %c0_53] : memref<18x34x3xf32, #tpu.memory_space<vmem>>, vector<16x32x3xf32>
    %c0_54 = arith.constant 0 : index
    %c0_55 = arith.constant 0 : index
    %c21 = arith.constant 21 : index
    %24 = vector.load %arg14[%c0_54, %c0_55, %c21] : memref<16x32x27xf32, #tpu.memory_space<vmem>>, vector<16x32x3xf32>
    tpu.vector_store %arg14[%c0_54, %c0_55, %c21], %23 {strides = array<i32>} : memref<16x32x27xf32, #tpu.memory_space<vmem>>, vector<16x32x3xf32>,
    %c2_56 = arith.constant 2 : index
    %c2_57 = arith.constant 2 : index
    %c0_58 = arith.constant 0 : index
    %25 = vector.load %arg13[%c2_56, %c2_57, %c0_58] : memref<18x34x3xf32, #tpu.memory_space<vmem>>, vector<16x32x3xf32>
    %c0_59 = arith.constant 0 : index
    %c0_60 = arith.constant 0 : index
    %c24 = arith.constant 24 : index
    %26 = vector.load %arg14[%c0_59, %c0_60, %c24] : memref<16x32x27xf32, #tpu.memory_space<vmem>>, vector<16x32x3xf32>
    tpu.vector_store %arg14[%c0_59, %c0_60, %c24], %25 {strides = array<i32>} : memref<16x32x27xf32, #tpu.memory_space<vmem>>, vector<16x32x3xf32>,
    %c0_61 = arith.constant 0 : index
    %c0_62 = arith.constant 0 : index
    %c0_63 = arith.constant 0 : index
    %27 = vector.load %arg14[%c0_61, %c0_62, %c0_63] : memref<16x32x27xf32, #tpu.memory_space<vmem>>, vector<16x32x27xf32>
    %c0_64 = arith.constant 0 : index
    %c0_65 = arith.constant 0 : index
    %28 = vector.load %arg2[%c0_64, %c0_65] : memref<27x6xf32, #tpu.memory_space<vmem>>, vector<27x6xf32>
    %cst_66 = arith.constant dense<0.000000e+00> : vector<16x32x6xf32>
    %29 = tpu.matmul %27, %28, %cst_66 {dimension_numbers = #tpu.dot_dimension_numbers<[2], [0], [0, 1], [1], [0, 0, 0, 1, 1, 1], [], []>} : vector<16x32x27xf32>, vector<27x6xf32>, vector<16x32x6xf32> -> vector<16x32x6xf32>
    %c0_67 = arith.constant 0 : index
    %c0_68 = arith.constant 0 : index
    %c0_69 = arith.constant 0 : index
    %30 = vector.load %arg3[%c0_67, %c0_68, %c0_69] : memref<1x1x6xf32, #tpu.memory_space<vmem>>, vector<1x1x6xf32>
    %31 = vector.broadcast %30 : vector<1x1x6xf32> to vector<16x32x6xf32>
    %32 = arith.addf %29, %31 : vector<16x32x6xf32>
    %cst_70 = arith.constant 0.000000e+00 : f32
    %33 = vector.broadcast %cst_70 : f32 to vector<16x32x6xf32>
    %34 = arith.maximumf %32, %33 : vector<16x32x6xf32>
    %cst_71 = arith.constant 0.000000e+00 : f32
    %35 = vector.broadcast %cst_71 : f32 to vector<1x18x6xf32>
    %c0_72 = arith.constant 0 : index
    %c0_73 = arith.constant 0 : index
    %c0_74 = arith.constant 0 : index
    %36 = vector.load %arg15[%c0_72, %c0_73, %c0_74] : memref<10x18x6xf32, #tpu.memory_space<vmem>>, vector<1x18x6xf32>
    tpu.vector_store %arg15[%c0_72, %c0_73, %c0_74], %35 {strides = array<i32>} : memref<10x18x6xf32, #tpu.memory_space<vmem>>, vector<1x18x6xf32>,
    %c9_75 = arith.constant 9 : index
    %c0_76 = arith.constant 0 : index
    %c0_77 = arith.constant 0 : index
    %37 = vector.load %arg15[%c9_75, %c0_76, %c0_77] : memref<10x18x6xf32, #tpu.memory_space<vmem>>, vector<1x18x6xf32>
    tpu.vector_store %arg15[%c9_75, %c0_76, %c0_77], %35 {strides = array<i32>} : memref<10x18x6xf32, #tpu.memory_space<vmem>>, vector<1x18x6xf32>,
    %cst_78 = arith.constant 0.000000e+00 : f32
    %38 = vector.broadcast %cst_78 : f32 to vector<10x1x6xf32>
    %c0_79 = arith.constant 0 : index
    %c0_80 = arith.constant 0 : index
    %c0_81 = arith.constant 0 : index
    %39 = vector.load %arg15[%c0_79, %c0_80, %c0_81] : memref<10x18x6xf32, #tpu.memory_space<vmem>>, vector<10x1x6xf32>
    tpu.vector_store %arg15[%c0_79, %c0_80, %c0_81], %38 {strides = array<i32>} : memref<10x18x6xf32, #tpu.memory_space<vmem>>, vector<10x1x6xf32>,
    %c0_82 = arith.constant 0 : index
    %c17_83 = arith.constant 17 : index
    %c0_84 = arith.constant 0 : index
    %40 = vector.load %arg15[%c0_82, %c17_83, %c0_84] : memref<10x18x6xf32, #tpu.memory_space<vmem>>, vector<10x1x6xf32>
    tpu.vector_store %arg15[%c0_82, %c17_83, %c0_84], %38 {strides = array<i32>} : memref<10x18x6xf32, #tpu.memory_space<vmem>>, vector<10x1x6xf32>,
    %41 = vector.shape_cast %34 : vector<16x32x6xf32> to vector<8x2x32x6xf32>
    %cst_85 = arith.constant dense<0xFF800000> : vector<8x32x6xf32>
    %42 = vector.multi_reduction <maximumf>, %41, %cst_85 [1] : vector<8x2x32x6xf32> to vector<8x32x6xf32>
    %43 = vector.extract_strided_slice %42 {offsets = [0, 0, 0], sizes = [8, 1, 6], strides = [1, 1, 1]} : vector<8x32x6xf32> to vector<8x1x6xf32>
    %44 = vector.extract_strided_slice %42 {offsets = [0, 1, 0], sizes = [8, 1, 6], strides = [1, 1, 1]} : vector<8x32x6xf32> to vector<8x1x6xf32>
    %45 = arith.maximumf %43, %44 : vector<8x1x6xf32>
    %c1_86 = arith.constant 1 : index
    %c1_87 = arith.constant 1 : index
    %c0_88 = arith.constant 0 : index
    %46 = vector.load %arg15[%c1_86, %c1_87, %c0_88] : memref<10x18x6xf32, #tpu.memory_space<vmem>>, vector<8x1x6xf32>
    tpu.vector_store %arg15[%c1_86, %c1_87, %c0_88], %45 {strides = array<i32>} : memref<10x18x6xf32, #tpu.memory_space<vmem>>, vector<8x1x6xf32>,
    %47 = vector.extract_strided_slice %42 {offsets = [0, 2, 0], sizes = [8, 1, 6], strides = [1, 1, 1]} : vector<8x32x6xf32> to vector<8x1x6xf32>
    %48 = vector.extract_strided_slice %42 {offsets = [0, 3, 0], sizes = [8, 1, 6], strides = [1, 1, 1]} : vector<8x32x6xf32> to vector<8x1x6xf32>
    %49 = arith.maximumf %47, %48 : vector<8x1x6xf32>
    %c1_89 = arith.constant 1 : index
    %c2_90 = arith.constant 2 : index
    %c0_91 = arith.constant 0 : index
    %50 = vector.load %arg15[%c1_89, %c2_90, %c0_91] : memref<10x18x6xf32, #tpu.memory_space<vmem>>, vector<8x1x6xf32>
    tpu.vector_store %arg15[%c1_89, %c2_90, %c0_91], %49 {strides = array<i32>} : memref<10x18x6xf32, #tpu.memory_space<vmem>>, vector<8x1x6xf32>,
    %51 = vector.extract_strided_slice %42 {offsets = [0, 4, 0], sizes = [8, 1, 6], strides = [1, 1, 1]} : vector<8x32x6xf32> to vector<8x1x6xf32>
    %52 = vector.extract_strided_slice %42 {offsets = [0, 5, 0], sizes = [8, 1, 6], strides = [1, 1, 1]} : vector<8x32x6xf32> to vector<8x1x6xf32>
    %53 = arith.maximumf %51, %52 : vector<8x1x6xf32>
    %c1_92 = arith.constant 1 : index
    %c3_93 = arith.constant 3 : index
    %c0_94 = arith.constant 0 : index
    %54 = vector.load %arg15[%c1_92, %c3_93, %c0_94] : memref<10x18x6xf32, #tpu.memory_space<vmem>>, vector<8x1x6xf32>
    tpu.vector_store %arg15[%c1_92, %c3_93, %c0_94], %53 {strides = array<i32>} : memref<10x18x6xf32, #tpu.memory_space<vmem>>, vector<8x1x6xf32>,
    %55 = vector.extract_strided_slice %42 {offsets = [0, 6, 0], sizes = [8, 1, 6], strides = [1, 1, 1]} : vector<8x32x6xf32> to vector<8x1x6xf32>
    %56 = vector.extract_strided_slice %42 {offsets = [0, 7, 0], sizes = [8, 1, 6], strides = [1, 1, 1]} : vector<8x32x6xf32> to vector<8x1x6xf32>
    %57 = arith.maximumf %55, %56 : vector<8x1x6xf32>
    %c1_95 = arith.constant 1 : index
    %c4 = arith.constant 4 : index
    %c0_96 = arith.constant 0 : index
    %58 = vector.load %arg15[%c1_95, %c4, %c0_96] : memref<10x18x6xf32, #tpu.memory_space<vmem>>, vector<8x1x6xf32>
    tpu.vector_store %arg15[%c1_95, %c4, %c0_96], %57 {strides = array<i32>} : memref<10x18x6xf32, #tpu.memory_space<vmem>>, vector<8x1x6xf32>,
    %59 = vector.extract_strided_slice %42 {offsets = [0, 8, 0], sizes = [8, 1, 6], strides = [1, 1, 1]} : vector<8x32x6xf32> to vector<8x1x6xf32>
    %60 = vector.extract_strided_slice %42 {offsets = [0, 9, 0], sizes = [8, 1, 6], strides = [1, 1, 1]} : vector<8x32x6xf32> to vector<8x1x6xf32>
    %61 = arith.maximumf %59, %60 : vector<8x1x6xf32>
    %c1_97 = arith.constant 1 : index
    %c5 = arith.constant 5 : index
    %c0_98 = arith.constant 0 : index
    %62 = vector.load %arg15[%c1_97, %c5, %c0_98] : memref<10x18x6xf32, #tpu.memory_space<vmem>>, vector<8x1x6xf32>
    tpu.vector_store %arg15[%c1_97, %c5, %c0_98], %61 {strides = array<i32>} : memref<10x18x6xf32, #tpu.memory_space<vmem>>, vector<8x1x6xf32>,
    %63 = vector.extract_strided_slice %42 {offsets = [0, 10, 0], sizes = [8, 1, 6], strides = [1, 1, 1]} : vector<8x32x6xf32> to vector<8x1x6xf32>
    %64 = vector.extract_strided_slice %42 {offsets = [0, 11, 0], sizes = [8, 1, 6], strides = [1, 1, 1]} : vector<8x32x6xf32> to vector<8x1x6xf32>
    %65 = arith.maximumf %63, %64 : vector<8x1x6xf32>
    %c1_99 = arith.constant 1 : index
    %c6_100 = arith.constant 6 : index
    %c0_101 = arith.constant 0 : index
    %66 = vector.load %arg15[%c1_99, %c6_100, %c0_101] : memref<10x18x6xf32, #tpu.memory_space<vmem>>, vector<8x1x6xf32>
    tpu.vector_store %arg15[%c1_99, %c6_100, %c0_101], %65 {strides = array<i32>} : memref<10x18x6xf32, #tpu.memory_space<vmem>>, vector<8x1x6xf32>,
    %67 = vector.extract_strided_slice %42 {offsets = [0, 12, 0], sizes = [8, 1, 6], strides = [1, 1, 1]} : vector<8x32x6xf32> to vector<8x1x6xf32>
    %68 = vector.extract_strided_slice %42 {offsets = [0, 13, 0], sizes = [8, 1, 6], strides = [1, 1, 1]} : vector<8x32x6xf32> to vector<8x1x6xf32>
    %69 = arith.maximumf %67, %68 : vector<8x1x6xf32>
    %c1_102 = arith.constant 1 : index
    %c7 = arith.constant 7 : index
    %c0_103 = arith.constant 0 : index
    %70 = vector.load %arg15[%c1_102, %c7, %c0_103] : memref<10x18x6xf32, #tpu.memory_space<vmem>>, vector<8x1x6xf32>
    tpu.vector_store %arg15[%c1_102, %c7, %c0_103], %69 {strides = array<i32>} : memref<10x18x6xf32, #tpu.memory_space<vmem>>, vector<8x1x6xf32>,
    %71 = vector.extract_strided_slice %42 {offsets = [0, 14, 0], sizes = [8, 1, 6], strides = [1, 1, 1]} : vector<8x32x6xf32> to vector<8x1x6xf32>
    %72 = vector.extract_strided_slice %42 {offsets = [0, 15, 0], sizes = [8, 1, 6], strides = [1, 1, 1]} : vector<8x32x6xf32> to vector<8x1x6xf32>
    %73 = arith.maximumf %71, %72 : vector<8x1x6xf32>
    %c1_104 = arith.constant 1 : index
    %c8 = arith.constant 8 : index
    %c0_105 = arith.constant 0 : index
    %74 = vector.load %arg15[%c1_104, %c8, %c0_105] : memref<10x18x6xf32, #tpu.memory_space<vmem>>, vector<8x1x6xf32>
    tpu.vector_store %arg15[%c1_104, %c8, %c0_105], %73 {strides = array<i32>} : memref<10x18x6xf32, #tpu.memory_space<vmem>>, vector<8x1x6xf32>,
    %75 = vector.extract_strided_slice %42 {offsets = [0, 16, 0], sizes = [8, 1, 6], strides = [1, 1, 1]} : vector<8x32x6xf32> to vector<8x1x6xf32>
    %76 = vector.extract_strided_slice %42 {offsets = [0, 17, 0], sizes = [8, 1, 6], strides = [1, 1, 1]} : vector<8x32x6xf32> to vector<8x1x6xf32>
    %77 = arith.maximumf %75, %76 : vector<8x1x6xf32>
    %c1_106 = arith.constant 1 : index
    %c9_107 = arith.constant 9 : index
    %c0_108 = arith.constant 0 : index
    %78 = vector.load %arg15[%c1_106, %c9_107, %c0_108] : memref<10x18x6xf32, #tpu.memory_space<vmem>>, vector<8x1x6xf32>
    tpu.vector_store %arg15[%c1_106, %c9_107, %c0_108], %77 {strides = array<i32>} : memref<10x18x6xf32, #tpu.memory_space<vmem>>, vector<8x1x6xf32>,
    %79 = vector.extract_strided_slice %42 {offsets = [0, 18, 0], sizes = [8, 1, 6], strides = [1, 1, 1]} : vector<8x32x6xf32> to vector<8x1x6xf32>
    %80 = vector.extract_strided_slice %42 {offsets = [0, 19, 0], sizes = [8, 1, 6], strides = [1, 1, 1]} : vector<8x32x6xf32> to vector<8x1x6xf32>
    %81 = arith.maximumf %79, %80 : vector<8x1x6xf32>
    %c1_109 = arith.constant 1 : index
    %c10 = arith.constant 10 : index
    %c0_110 = arith.constant 0 : index
    %82 = vector.load %arg15[%c1_109, %c10, %c0_110] : memref<10x18x6xf32, #tpu.memory_space<vmem>>, vector<8x1x6xf32>
    tpu.vector_store %arg15[%c1_109, %c10, %c0_110], %81 {strides = array<i32>} : memref<10x18x6xf32, #tpu.memory_space<vmem>>, vector<8x1x6xf32>,
    %83 = vector.extract_strided_slice %42 {offsets = [0, 20, 0], sizes = [8, 1, 6], strides = [1, 1, 1]} : vector<8x32x6xf32> to vector<8x1x6xf32>
    %84 = vector.extract_strided_slice %42 {offsets = [0, 21, 0], sizes = [8, 1, 6], strides = [1, 1, 1]} : vector<8x32x6xf32> to vector<8x1x6xf32>
    %85 = arith.maximumf %83, %84 : vector<8x1x6xf32>
    %c1_111 = arith.constant 1 : index
    %c11 = arith.constant 11 : index
    %c0_112 = arith.constant 0 : index
    %86 = vector.load %arg15[%c1_111, %c11, %c0_112] : memref<10x18x6xf32, #tpu.memory_space<vmem>>, vector<8x1x6xf32>
    tpu.vector_store %arg15[%c1_111, %c11, %c0_112], %85 {strides = array<i32>} : memref<10x18x6xf32, #tpu.memory_space<vmem>>, vector<8x1x6xf32>,
    %87 = vector.extract_strided_slice %42 {offsets = [0, 22, 0], sizes = [8, 1, 6], strides = [1, 1, 1]} : vector<8x32x6xf32> to vector<8x1x6xf32>
    %88 = vector.extract_strided_slice %42 {offsets = [0, 23, 0], sizes = [8, 1, 6], strides = [1, 1, 1]} : vector<8x32x6xf32> to vector<8x1x6xf32>
    %89 = arith.maximumf %87, %88 : vector<8x1x6xf32>
    %c1_113 = arith.constant 1 : index
    %c12_114 = arith.constant 12 : index
    %c0_115 = arith.constant 0 : index
    %90 = vector.load %arg15[%c1_113, %c12_114, %c0_115] : memref<10x18x6xf32, #tpu.memory_space<vmem>>, vector<8x1x6xf32>
    tpu.vector_store %arg15[%c1_113, %c12_114, %c0_115], %89 {strides = array<i32>} : memref<10x18x6xf32, #tpu.memory_space<vmem>>, vector<8x1x6xf32>,
    %91 = vector.extract_strided_slice %42 {offsets = [0, 24, 0], sizes = [8, 1, 6], strides = [1, 1, 1]} : vector<8x32x6xf32> to vector<8x1x6xf32>
    %92 = vector.extract_strided_slice %42 {offsets = [0, 25, 0], sizes = [8, 1, 6], strides = [1, 1, 1]} : vector<8x32x6xf32> to vector<8x1x6xf32>
    %93 = arith.maximumf %91, %92 : vector<8x1x6xf32>
    %c1_116 = arith.constant 1 : index
    %c13 = arith.constant 13 : index
    %c0_117 = arith.constant 0 : index
    %94 = vector.load %arg15[%c1_116, %c13, %c0_117] : memref<10x18x6xf32, #tpu.memory_space<vmem>>, vector<8x1x6xf32>
    tpu.vector_store %arg15[%c1_116, %c13, %c0_117], %93 {strides = array<i32>} : memref<10x18x6xf32, #tpu.memory_space<vmem>>, vector<8x1x6xf32>,
    %95 = vector.extract_strided_slice %42 {offsets = [0, 26, 0], sizes = [8, 1, 6], strides = [1, 1, 1]} : vector<8x32x6xf32> to vector<8x1x6xf32>
    %96 = vector.extract_strided_slice %42 {offsets = [0, 27, 0], sizes = [8, 1, 6], strides = [1, 1, 1]} : vector<8x32x6xf32> to vector<8x1x6xf32>
    %97 = arith.maximumf %95, %96 : vector<8x1x6xf32>
    %c1_118 = arith.constant 1 : index
    %c14 = arith.constant 14 : index
    %c0_119 = arith.constant 0 : index
    %98 = vector.load %arg15[%c1_118, %c14, %c0_119] : memref<10x18x6xf32, #tpu.memory_space<vmem>>, vector<8x1x6xf32>
    tpu.vector_store %arg15[%c1_118, %c14, %c0_119], %97 {strides = array<i32>} : memref<10x18x6xf32, #tpu.memory_space<vmem>>, vector<8x1x6xf32>,
    %99 = vector.extract_strided_slice %42 {offsets = [0, 28, 0], sizes = [8, 1, 6], strides = [1, 1, 1]} : vector<8x32x6xf32> to vector<8x1x6xf32>
    %100 = vector.extract_strided_slice %42 {offsets = [0, 29, 0], sizes = [8, 1, 6], strides = [1, 1, 1]} : vector<8x32x6xf32> to vector<8x1x6xf32>
    %101 = arith.maximumf %99, %100 : vector<8x1x6xf32>
    %c1_120 = arith.constant 1 : index
    %c15_121 = arith.constant 15 : index
    %c0_122 = arith.constant 0 : index
    %102 = vector.load %arg15[%c1_120, %c15_121, %c0_122] : memref<10x18x6xf32, #tpu.memory_space<vmem>>, vector<8x1x6xf32>
    tpu.vector_store %arg15[%c1_120, %c15_121, %c0_122], %101 {strides = array<i32>} : memref<10x18x6xf32, #tpu.memory_space<vmem>>, vector<8x1x6xf32>,
    %103 = vector.extract_strided_slice %42 {offsets = [0, 30, 0], sizes = [8, 1, 6], strides = [1, 1, 1]} : vector<8x32x6xf32> to vector<8x1x6xf32>
    %104 = vector.extract_strided_slice %42 {offsets = [0, 31, 0], sizes = [8, 1, 6], strides = [1, 1, 1]} : vector<8x32x6xf32> to vector<8x1x6xf32>
    %105 = arith.maximumf %103, %104 : vector<8x1x6xf32>
    %c1_123 = arith.constant 1 : index
    %c16 = arith.constant 16 : index
    %c0_124 = arith.constant 0 : index
    %106 = vector.load %arg15[%c1_123, %c16, %c0_124] : memref<10x18x6xf32, #tpu.memory_space<vmem>>, vector<8x1x6xf32>
    tpu.vector_store %arg15[%c1_123, %c16, %c0_124], %105 {strides = array<i32>} : memref<10x18x6xf32, #tpu.memory_space<vmem>>, vector<8x1x6xf32>,
    %c0_125 = arith.constant 0 : index
    %c0_126 = arith.constant 0 : index
    %c0_127 = arith.constant 0 : index
    %107 = vector.load %arg15[%c0_125, %c0_126, %c0_127] : memref<10x18x6xf32, #tpu.memory_space<vmem>>, vector<8x16x6xf32>
    %c0_128 = arith.constant 0 : index
    %c0_129 = arith.constant 0 : index
    %c0_130 = arith.constant 0 : index
    %108 = vector.load %arg16[%c0_128, %c0_129, %c0_130] : memref<8x16x54xf32, #tpu.memory_space<vmem>>, vector<8x16x6xf32>
    tpu.vector_store %arg16[%c0_128, %c0_129, %c0_130], %107 {strides = array<i32>} : memref<8x16x54xf32, #tpu.memory_space<vmem>>, vector<8x16x6xf32>,
    %c0_131 = arith.constant 0 : index
    %c1_132 = arith.constant 1 : index
    %c0_133 = arith.constant 0 : index
    %109 = vector.load %arg15[%c0_131, %c1_132, %c0_133] : memref<10x18x6xf32, #tpu.memory_space<vmem>>, vector<8x16x6xf32>
    %c0_134 = arith.constant 0 : index
    %c0_135 = arith.constant 0 : index
    %c6_136 = arith.constant 6 : index
    %110 = vector.load %arg16[%c0_134, %c0_135, %c6_136] : memref<8x16x54xf32, #tpu.memory_space<vmem>>, vector<8x16x6xf32>
    tpu.vector_store %arg16[%c0_134, %c0_135, %c6_136], %109 {strides = array<i32>} : memref<8x16x54xf32, #tpu.memory_space<vmem>>, vector<8x16x6xf32>,
    %c0_137 = arith.constant 0 : index
    %c2_138 = arith.constant 2 : index
    %c0_139 = arith.constant 0 : index
    %111 = vector.load %arg15[%c0_137, %c2_138, %c0_139] : memref<10x18x6xf32, #tpu.memory_space<vmem>>, vector<8x16x6xf32>
    %c0_140 = arith.constant 0 : index
    %c0_141 = arith.constant 0 : index
    %c12_142 = arith.constant 12 : index
    %112 = vector.load %arg16[%c0_140, %c0_141, %c12_142] : memref<8x16x54xf32, #tpu.memory_space<vmem>>, vector<8x16x6xf32>
    tpu.vector_store %arg16[%c0_140, %c0_141, %c12_142], %111 {strides = array<i32>} : memref<8x16x54xf32, #tpu.memory_space<vmem>>, vector<8x16x6xf32>,
    %c1_143 = arith.constant 1 : index
    %c0_144 = arith.constant 0 : index
    %c0_145 = arith.constant 0 : index
    %113 = vector.load %arg15[%c1_143, %c0_144, %c0_145] : memref<10x18x6xf32, #tpu.memory_space<vmem>>, vector<8x16x6xf32>
    %c0_146 = arith.constant 0 : index
    %c0_147 = arith.constant 0 : index
    %c18_148 = arith.constant 18 : index
    %114 = vector.load %arg16[%c0_146, %c0_147, %c18_148] : memref<8x16x54xf32, #tpu.memory_space<vmem>>, vector<8x16x6xf32>
    tpu.vector_store %arg16[%c0_146, %c0_147, %c18_148], %113 {strides = array<i32>} : memref<8x16x54xf32, #tpu.memory_space<vmem>>, vector<8x16x6xf32>,
    %c1_149 = arith.constant 1 : index
    %c1_150 = arith.constant 1 : index
    %c0_151 = arith.constant 0 : index
    %115 = vector.load %arg15[%c1_149, %c1_150, %c0_151] : memref<10x18x6xf32, #tpu.memory_space<vmem>>, vector<8x16x6xf32>
    %c0_152 = arith.constant 0 : index
    %c0_153 = arith.constant 0 : index
    %c24_154 = arith.constant 24 : index
    %116 = vector.load %arg16[%c0_152, %c0_153, %c24_154] : memref<8x16x54xf32, #tpu.memory_space<vmem>>, vector<8x16x6xf32>
    tpu.vector_store %arg16[%c0_152, %c0_153, %c24_154], %115 {strides = array<i32>} : memref<8x16x54xf32, #tpu.memory_space<vmem>>, vector<8x16x6xf32>,
    %c1_155 = arith.constant 1 : index
    %c2_156 = arith.constant 2 : index
    %c0_157 = arith.constant 0 : index
    %117 = vector.load %arg15[%c1_155, %c2_156, %c0_157] : memref<10x18x6xf32, #tpu.memory_space<vmem>>, vector<8x16x6xf32>
    %c0_158 = arith.constant 0 : index
    %c0_159 = arith.constant 0 : index
    %c30 = arith.constant 30 : index
    %118 = vector.load %arg16[%c0_158, %c0_159, %c30] : memref<8x16x54xf32, #tpu.memory_space<vmem>>, vector<8x16x6xf32>
    tpu.vector_store %arg16[%c0_158, %c0_159, %c30], %117 {strides = array<i32>} : memref<8x16x54xf32, #tpu.memory_space<vmem>>, vector<8x16x6xf32>,
    %c2_160 = arith.constant 2 : index
    %c0_161 = arith.constant 0 : index
    %c0_162 = arith.constant 0 : index
    %119 = vector.load %arg15[%c2_160, %c0_161, %c0_162] : memref<10x18x6xf32, #tpu.memory_space<vmem>>, vector<8x16x6xf32>
    %c0_163 = arith.constant 0 : index
    %c0_164 = arith.constant 0 : index
    %c36 = arith.constant 36 : index
    %120 = vector.load %arg16[%c0_163, %c0_164, %c36] : memref<8x16x54xf32, #tpu.memory_space<vmem>>, vector<8x16x6xf32>
    tpu.vector_store %arg16[%c0_163, %c0_164, %c36], %119 {strides = array<i32>} : memref<8x16x54xf32, #tpu.memory_space<vmem>>, vector<8x16x6xf32>,
    %c2_165 = arith.constant 2 : index
    %c1_166 = arith.constant 1 : index
    %c0_167 = arith.constant 0 : index
    %121 = vector.load %arg15[%c2_165, %c1_166, %c0_167] : memref<10x18x6xf32, #tpu.memory_space<vmem>>, vector<8x16x6xf32>
    %c0_168 = arith.constant 0 : index
    %c0_169 = arith.constant 0 : index
    %c42 = arith.constant 42 : index
    %122 = vector.load %arg16[%c0_168, %c0_169, %c42] : memref<8x16x54xf32, #tpu.memory_space<vmem>>, vector<8x16x6xf32>
    tpu.vector_store %arg16[%c0_168, %c0_169, %c42], %121 {strides = array<i32>} : memref<8x16x54xf32, #tpu.memory_space<vmem>>, vector<8x16x6xf32>,
    %c2_170 = arith.constant 2 : index
    %c2_171 = arith.constant 2 : index
    %c0_172 = arith.constant 0 : index
    %123 = vector.load %arg15[%c2_170, %c2_171, %c0_172] : memref<10x18x6xf32, #tpu.memory_space<vmem>>, vector<8x16x6xf32>
    %c0_173 = arith.constant 0 : index
    %c0_174 = arith.constant 0 : index
    %c48 = arith.constant 48 : index
    %124 = vector.load %arg16[%c0_173, %c0_174, %c48] : memref<8x16x54xf32, #tpu.memory_space<vmem>>, vector<8x16x6xf32>
    tpu.vector_store %arg16[%c0_173, %c0_174, %c48], %123 {strides = array<i32>} : memref<8x16x54xf32, #tpu.memory_space<vmem>>, vector<8x16x6xf32>,
    %c0_175 = arith.constant 0 : index
    %c0_176 = arith.constant 0 : index
    %c0_177 = arith.constant 0 : index
    %125 = vector.load %arg16[%c0_175, %c0_176, %c0_177] : memref<8x16x54xf32, #tpu.memory_space<vmem>>, vector<8x16x54xf32>
    %c0_178 = arith.constant 0 : index
    %c0_179 = arith.constant 0 : index
    %126 = vector.load %arg4[%c0_178, %c0_179] : memref<54x16xf32, #tpu.memory_space<vmem>>, vector<54x16xf32>
    %cst_180 = arith.constant dense<0.000000e+00> : vector<8x16x16xf32>
    %127 = tpu.matmul %125, %126, %cst_180 {dimension_numbers = #tpu.dot_dimension_numbers<[2], [0], [0, 1], [1], [0, 0, 0, 1, 1, 1], [], []>} : vector<8x16x54xf32>, vector<54x16xf32>, vector<8x16x16xf32> -> vector<8x16x16xf32>
    %c0_181 = arith.constant 0 : index
    %c0_182 = arith.constant 0 : index
    %c0_183 = arith.constant 0 : index
    %128 = vector.load %arg5[%c0_181, %c0_182, %c0_183] : memref<1x1x16xf32, #tpu.memory_space<vmem>>, vector<1x1x16xf32>
    %129 = vector.broadcast %128 : vector<1x1x16xf32> to vector<8x16x16xf32>
    %130 = arith.addf %127, %129 : vector<8x16x16xf32>
    %cst_184 = arith.constant 0.000000e+00 : f32
    %131 = vector.broadcast %cst_184 : f32 to vector<8x16x16xf32>
    %132 = arith.maximumf %130, %131 : vector<8x16x16xf32>
    %cst_185 = arith.constant 0.000000e+00 : f32
    %133 = vector.broadcast %cst_185 : f32 to vector<1x10x16xf32>
    %c0_186 = arith.constant 0 : index
    %c0_187 = arith.constant 0 : index
    %c0_188 = arith.constant 0 : index
    %134 = vector.load %arg17[%c0_186, %c0_187, %c0_188] : memref<6x10x16xf32, #tpu.memory_space<vmem>>, vector<1x10x16xf32>
    tpu.vector_store %arg17[%c0_186, %c0_187, %c0_188], %133 {strides = array<i32>} : memref<6x10x16xf32, #tpu.memory_space<vmem>>, vector<1x10x16xf32>,
    %c5_189 = arith.constant 5 : index
    %c0_190 = arith.constant 0 : index
    %c0_191 = arith.constant 0 : index
    %135 = vector.load %arg17[%c5_189, %c0_190, %c0_191] : memref<6x10x16xf32, #tpu.memory_space<vmem>>, vector<1x10x16xf32>
    tpu.vector_store %arg17[%c5_189, %c0_190, %c0_191], %133 {strides = array<i32>} : memref<6x10x16xf32, #tpu.memory_space<vmem>>, vector<1x10x16xf32>,
    %cst_192 = arith.constant 0.000000e+00 : f32
    %136 = vector.broadcast %cst_192 : f32 to vector<6x1x16xf32>
    %c0_193 = arith.constant 0 : index
    %c0_194 = arith.constant 0 : index
    %c0_195 = arith.constant 0 : index
    %137 = vector.load %arg17[%c0_193, %c0_194, %c0_195] : memref<6x10x16xf32, #tpu.memory_space<vmem>>, vector<6x1x16xf32>
    tpu.vector_store %arg17[%c0_193, %c0_194, %c0_195], %136 {strides = array<i32>} : memref<6x10x16xf32, #tpu.memory_space<vmem>>, vector<6x1x16xf32>,
    %c0_196 = arith.constant 0 : index
    %c9_197 = arith.constant 9 : index
    %c0_198 = arith.constant 0 : index
    %138 = vector.load %arg17[%c0_196, %c9_197, %c0_198] : memref<6x10x16xf32, #tpu.memory_space<vmem>>, vector<6x1x16xf32>
    tpu.vector_store %arg17[%c0_196, %c9_197, %c0_198], %136 {strides = array<i32>} : memref<6x10x16xf32, #tpu.memory_space<vmem>>, vector<6x1x16xf32>,
    %139 = vector.shape_cast %132 : vector<8x16x16xf32> to vector<4x2x16x16xf32>
    %cst_199 = arith.constant dense<0xFF800000> : vector<4x16x16xf32>
    %140 = vector.multi_reduction <maximumf>, %139, %cst_199 [1] : vector<4x2x16x16xf32> to vector<4x16x16xf32>
    %141 = vector.extract_strided_slice %140 {offsets = [0, 0, 0], sizes = [4, 1, 16], strides = [1, 1, 1]} : vector<4x16x16xf32> to vector<4x1x16xf32>
    %142 = vector.extract_strided_slice %140 {offsets = [0, 1, 0], sizes = [4, 1, 16], strides = [1, 1, 1]} : vector<4x16x16xf32> to vector<4x1x16xf32>
    %143 = arith.maximumf %141, %142 : vector<4x1x16xf32>
    %c1_200 = arith.constant 1 : index
    %c1_201 = arith.constant 1 : index
    %c0_202 = arith.constant 0 : index
    %144 = vector.load %arg17[%c1_200, %c1_201, %c0_202] : memref<6x10x16xf32, #tpu.memory_space<vmem>>, vector<4x1x16xf32>
    tpu.vector_store %arg17[%c1_200, %c1_201, %c0_202], %143 {strides = array<i32>} : memref<6x10x16xf32, #tpu.memory_space<vmem>>, vector<4x1x16xf32>,
    %145 = vector.extract_strided_slice %140 {offsets = [0, 2, 0], sizes = [4, 1, 16], strides = [1, 1, 1]} : vector<4x16x16xf32> to vector<4x1x16xf32>
    %146 = vector.extract_strided_slice %140 {offsets = [0, 3, 0], sizes = [4, 1, 16], strides = [1, 1, 1]} : vector<4x16x16xf32> to vector<4x1x16xf32>
    %147 = arith.maximumf %145, %146 : vector<4x1x16xf32>
    %c1_203 = arith.constant 1 : index
    %c2_204 = arith.constant 2 : index
    %c0_205 = arith.constant 0 : index
    %148 = vector.load %arg17[%c1_203, %c2_204, %c0_205] : memref<6x10x16xf32, #tpu.memory_space<vmem>>, vector<4x1x16xf32>
    tpu.vector_store %arg17[%c1_203, %c2_204, %c0_205], %147 {strides = array<i32>} : memref<6x10x16xf32, #tpu.memory_space<vmem>>, vector<4x1x16xf32>,
    %149 = vector.extract_strided_slice %140 {offsets = [0, 4, 0], sizes = [4, 1, 16], strides = [1, 1, 1]} : vector<4x16x16xf32> to vector<4x1x16xf32>
    %150 = vector.extract_strided_slice %140 {offsets = [0, 5, 0], sizes = [4, 1, 16], strides = [1, 1, 1]} : vector<4x16x16xf32> to vector<4x1x16xf32>
    %151 = arith.maximumf %149, %150 : vector<4x1x16xf32>
    %c1_206 = arith.constant 1 : index
    %c3_207 = arith.constant 3 : index
    %c0_208 = arith.constant 0 : index
    %152 = vector.load %arg17[%c1_206, %c3_207, %c0_208] : memref<6x10x16xf32, #tpu.memory_space<vmem>>, vector<4x1x16xf32>
    tpu.vector_store %arg17[%c1_206, %c3_207, %c0_208], %151 {strides = array<i32>} : memref<6x10x16xf32, #tpu.memory_space<vmem>>, vector<4x1x16xf32>,
    %153 = vector.extract_strided_slice %140 {offsets = [0, 6, 0], sizes = [4, 1, 16], strides = [1, 1, 1]} : vector<4x16x16xf32> to vector<4x1x16xf32>
    %154 = vector.extract_strided_slice %140 {offsets = [0, 7, 0], sizes = [4, 1, 16], strides = [1, 1, 1]} : vector<4x16x16xf32> to vector<4x1x16xf32>
    %155 = arith.maximumf %153, %154 : vector<4x1x16xf32>
    %c1_209 = arith.constant 1 : index
    %c4_210 = arith.constant 4 : index
    %c0_211 = arith.constant 0 : index
    %156 = vector.load %arg17[%c1_209, %c4_210, %c0_211] : memref<6x10x16xf32, #tpu.memory_space<vmem>>, vector<4x1x16xf32>
    tpu.vector_store %arg17[%c1_209, %c4_210, %c0_211], %155 {strides = array<i32>} : memref<6x10x16xf32, #tpu.memory_space<vmem>>, vector<4x1x16xf32>,
    %157 = vector.extract_strided_slice %140 {offsets = [0, 8, 0], sizes = [4, 1, 16], strides = [1, 1, 1]} : vector<4x16x16xf32> to vector<4x1x16xf32>
    %158 = vector.extract_strided_slice %140 {offsets = [0, 9, 0], sizes = [4, 1, 16], strides = [1, 1, 1]} : vector<4x16x16xf32> to vector<4x1x16xf32>
    %159 = arith.maximumf %157, %158 : vector<4x1x16xf32>
    %c1_212 = arith.constant 1 : index
    %c5_213 = arith.constant 5 : index
    %c0_214 = arith.constant 0 : index
    %160 = vector.load %arg17[%c1_212, %c5_213, %c0_214] : memref<6x10x16xf32, #tpu.memory_space<vmem>>, vector<4x1x16xf32>
    tpu.vector_store %arg17[%c1_212, %c5_213, %c0_214], %159 {strides = array<i32>} : memref<6x10x16xf32, #tpu.memory_space<vmem>>, vector<4x1x16xf32>,
    %161 = vector.extract_strided_slice %140 {offsets = [0, 10, 0], sizes = [4, 1, 16], strides = [1, 1, 1]} : vector<4x16x16xf32> to vector<4x1x16xf32>
    %162 = vector.extract_strided_slice %140 {offsets = [0, 11, 0], sizes = [4, 1, 16], strides = [1, 1, 1]} : vector<4x16x16xf32> to vector<4x1x16xf32>
    %163 = arith.maximumf %161, %162 : vector<4x1x16xf32>
    %c1_215 = arith.constant 1 : index
    %c6_216 = arith.constant 6 : index
    %c0_217 = arith.constant 0 : index
    %164 = vector.load %arg17[%c1_215, %c6_216, %c0_217] : memref<6x10x16xf32, #tpu.memory_space<vmem>>, vector<4x1x16xf32>
    tpu.vector_store %arg17[%c1_215, %c6_216, %c0_217], %163 {strides = array<i32>} : memref<6x10x16xf32, #tpu.memory_space<vmem>>, vector<4x1x16xf32>,
    %165 = vector.extract_strided_slice %140 {offsets = [0, 12, 0], sizes = [4, 1, 16], strides = [1, 1, 1]} : vector<4x16x16xf32> to vector<4x1x16xf32>
    %166 = vector.extract_strided_slice %140 {offsets = [0, 13, 0], sizes = [4, 1, 16], strides = [1, 1, 1]} : vector<4x16x16xf32> to vector<4x1x16xf32>
    %167 = arith.maximumf %165, %166 : vector<4x1x16xf32>
    %c1_218 = arith.constant 1 : index
    %c7_219 = arith.constant 7 : index
    %c0_220 = arith.constant 0 : index
    %168 = vector.load %arg17[%c1_218, %c7_219, %c0_220] : memref<6x10x16xf32, #tpu.memory_space<vmem>>, vector<4x1x16xf32>
    tpu.vector_store %arg17[%c1_218, %c7_219, %c0_220], %167 {strides = array<i32>} : memref<6x10x16xf32, #tpu.memory_space<vmem>>, vector<4x1x16xf32>,
    %169 = vector.extract_strided_slice %140 {offsets = [0, 14, 0], sizes = [4, 1, 16], strides = [1, 1, 1]} : vector<4x16x16xf32> to vector<4x1x16xf32>
    %170 = vector.extract_strided_slice %140 {offsets = [0, 15, 0], sizes = [4, 1, 16], strides = [1, 1, 1]} : vector<4x16x16xf32> to vector<4x1x16xf32>
    %171 = arith.maximumf %169, %170 : vector<4x1x16xf32>
    %c1_221 = arith.constant 1 : index
    %c8_222 = arith.constant 8 : index
    %c0_223 = arith.constant 0 : index
    %172 = vector.load %arg17[%c1_221, %c8_222, %c0_223] : memref<6x10x16xf32, #tpu.memory_space<vmem>>, vector<4x1x16xf32>
    tpu.vector_store %arg17[%c1_221, %c8_222, %c0_223], %171 {strides = array<i32>} : memref<6x10x16xf32, #tpu.memory_space<vmem>>, vector<4x1x16xf32>,
    %c0_224 = arith.constant 0 : index
    %c0_225 = arith.constant 0 : index
    %c0_226 = arith.constant 0 : index
    %173 = vector.load %arg17[%c0_224, %c0_225, %c0_226] : memref<6x10x16xf32, #tpu.memory_space<vmem>>, vector<4x8x16xf32>
    %c0_227 = arith.constant 0 : index
    %c0_228 = arith.constant 0 : index
    %c0_229 = arith.constant 0 : index
    %174 = vector.load %arg18[%c0_227, %c0_228, %c0_229] : memref<4x8x144xf32, #tpu.memory_space<vmem>>, vector<4x8x16xf32>
    tpu.vector_store %arg18[%c0_227, %c0_228, %c0_229], %173 {strides = array<i32>} : memref<4x8x144xf32, #tpu.memory_space<vmem>>, vector<4x8x16xf32>,
    %c0_230 = arith.constant 0 : index
    %c1_231 = arith.constant 1 : index
    %c0_232 = arith.constant 0 : index
    %175 = vector.load %arg17[%c0_230, %c1_231, %c0_232] : memref<6x10x16xf32, #tpu.memory_space<vmem>>, vector<4x8x16xf32>
    %c0_233 = arith.constant 0 : index
    %c0_234 = arith.constant 0 : index
    %c16_235 = arith.constant 16 : index
    %176 = vector.load %arg18[%c0_233, %c0_234, %c16_235] : memref<4x8x144xf32, #tpu.memory_space<vmem>>, vector<4x8x16xf32>
    tpu.vector_store %arg18[%c0_233, %c0_234, %c16_235], %175 {strides = array<i32>} : memref<4x8x144xf32, #tpu.memory_space<vmem>>, vector<4x8x16xf32>,
    %c0_236 = arith.constant 0 : index
    %c2_237 = arith.constant 2 : index
    %c0_238 = arith.constant 0 : index
    %177 = vector.load %arg17[%c0_236, %c2_237, %c0_238] : memref<6x10x16xf32, #tpu.memory_space<vmem>>, vector<4x8x16xf32>
    %c0_239 = arith.constant 0 : index
    %c0_240 = arith.constant 0 : index
    %c32 = arith.constant 32 : index
    %178 = vector.load %arg18[%c0_239, %c0_240, %c32] : memref<4x8x144xf32, #tpu.memory_space<vmem>>, vector<4x8x16xf32>
    tpu.vector_store %arg18[%c0_239, %c0_240, %c32], %177 {strides = array<i32>} : memref<4x8x144xf32, #tpu.memory_space<vmem>>, vector<4x8x16xf32>,
    %c1_241 = arith.constant 1 : index
    %c0_242 = arith.constant 0 : index
    %c0_243 = arith.constant 0 : index
    %179 = vector.load %arg17[%c1_241, %c0_242, %c0_243] : memref<6x10x16xf32, #tpu.memory_space<vmem>>, vector<4x8x16xf32>
    %c0_244 = arith.constant 0 : index
    %c0_245 = arith.constant 0 : index
    %c48_246 = arith.constant 48 : index
    %180 = vector.load %arg18[%c0_244, %c0_245, %c48_246] : memref<4x8x144xf32, #tpu.memory_space<vmem>>, vector<4x8x16xf32>
    tpu.vector_store %arg18[%c0_244, %c0_245, %c48_246], %179 {strides = array<i32>} : memref<4x8x144xf32, #tpu.memory_space<vmem>>, vector<4x8x16xf32>,
    %c1_247 = arith.constant 1 : index
    %c1_248 = arith.constant 1 : index
    %c0_249 = arith.constant 0 : index
    %181 = vector.load %arg17[%c1_247, %c1_248, %c0_249] : memref<6x10x16xf32, #tpu.memory_space<vmem>>, vector<4x8x16xf32>
    %c0_250 = arith.constant 0 : index
    %c0_251 = arith.constant 0 : index
    %c64 = arith.constant 64 : index
    %182 = vector.load %arg18[%c0_250, %c0_251, %c64] : memref<4x8x144xf32, #tpu.memory_space<vmem>>, vector<4x8x16xf32>
    tpu.vector_store %arg18[%c0_250, %c0_251, %c64], %181 {strides = array<i32>} : memref<4x8x144xf32, #tpu.memory_space<vmem>>, vector<4x8x16xf32>,
    %c1_252 = arith.constant 1 : index
    %c2_253 = arith.constant 2 : index
    %c0_254 = arith.constant 0 : index
    %183 = vector.load %arg17[%c1_252, %c2_253, %c0_254] : memref<6x10x16xf32, #tpu.memory_space<vmem>>, vector<4x8x16xf32>
    %c0_255 = arith.constant 0 : index
    %c0_256 = arith.constant 0 : index
    %c80 = arith.constant 80 : index
    %184 = vector.load %arg18[%c0_255, %c0_256, %c80] : memref<4x8x144xf32, #tpu.memory_space<vmem>>, vector<4x8x16xf32>
    tpu.vector_store %arg18[%c0_255, %c0_256, %c80], %183 {strides = array<i32>} : memref<4x8x144xf32, #tpu.memory_space<vmem>>, vector<4x8x16xf32>,
    %c2_257 = arith.constant 2 : index
    %c0_258 = arith.constant 0 : index
    %c0_259 = arith.constant 0 : index
    %185 = vector.load %arg17[%c2_257, %c0_258, %c0_259] : memref<6x10x16xf32, #tpu.memory_space<vmem>>, vector<4x8x16xf32>
    %c0_260 = arith.constant 0 : index
    %c0_261 = arith.constant 0 : index
    %c96 = arith.constant 96 : index
    %186 = vector.load %arg18[%c0_260, %c0_261, %c96] : memref<4x8x144xf32, #tpu.memory_space<vmem>>, vector<4x8x16xf32>
    tpu.vector_store %arg18[%c0_260, %c0_261, %c96], %185 {strides = array<i32>} : memref<4x8x144xf32, #tpu.memory_space<vmem>>, vector<4x8x16xf32>,
    %c2_262 = arith.constant 2 : index
    %c1_263 = arith.constant 1 : index
    %c0_264 = arith.constant 0 : index
    %187 = vector.load %arg17[%c2_262, %c1_263, %c0_264] : memref<6x10x16xf32, #tpu.memory_space<vmem>>, vector<4x8x16xf32>
    %c0_265 = arith.constant 0 : index
    %c0_266 = arith.constant 0 : index
    %c112 = arith.constant 112 : index
    %188 = vector.load %arg18[%c0_265, %c0_266, %c112] : memref<4x8x144xf32, #tpu.memory_space<vmem>>, vector<4x8x16xf32>
    tpu.vector_store %arg18[%c0_265, %c0_266, %c112], %187 {strides = array<i32>} : memref<4x8x144xf32, #tpu.memory_space<vmem>>, vector<4x8x16xf32>,
    %c2_267 = arith.constant 2 : index
    %c2_268 = arith.constant 2 : index
    %c0_269 = arith.constant 0 : index
    %189 = vector.load %arg17[%c2_267, %c2_268, %c0_269] : memref<6x10x16xf32, #tpu.memory_space<vmem>>, vector<4x8x16xf32>
    %c0_270 = arith.constant 0 : index
    %c0_271 = arith.constant 0 : index
    %c128 = arith.constant 128 : index
    %190 = vector.load %arg18[%c0_270, %c0_271, %c128] : memref<4x8x144xf32, #tpu.memory_space<vmem>>, vector<4x8x16xf32>
    tpu.vector_store %arg18[%c0_270, %c0_271, %c128], %189 {strides = array<i32>} : memref<4x8x144xf32, #tpu.memory_space<vmem>>, vector<4x8x16xf32>,
    %c0_272 = arith.constant 0 : index
    %c0_273 = arith.constant 0 : index
    %c0_274 = arith.constant 0 : index
    %191 = vector.load %arg18[%c0_272, %c0_273, %c0_274] : memref<4x8x144xf32, #tpu.memory_space<vmem>>, vector<4x8x144xf32>
    %c0_275 = arith.constant 0 : index
    %c0_276 = arith.constant 0 : index
    %192 = vector.load %arg6[%c0_275, %c0_276] : memref<144x60xf32, #tpu.memory_space<vmem>>, vector<144x60xf32>
    %cst_277 = arith.constant dense<0.000000e+00> : vector<4x8x60xf32>
    %193 = tpu.matmul %191, %192, %cst_277 {dimension_numbers = #tpu.dot_dimension_numbers<[2], [0], [0, 1], [1], [0, 0, 0, 1, 1, 1], [], []>} : vector<4x8x144xf32>, vector<144x60xf32>, vector<4x8x60xf32> -> vector<4x8x60xf32>
    %c0_278 = arith.constant 0 : index
    %c0_279 = arith.constant 0 : index
    %c0_280 = arith.constant 0 : index
    %194 = vector.load %arg7[%c0_278, %c0_279, %c0_280] : memref<1x1x60xf32, #tpu.memory_space<vmem>>, vector<1x1x60xf32>
    %195 = vector.broadcast %194 : vector<1x1x60xf32> to vector<4x8x60xf32>
    %196 = arith.addf %193, %195 : vector<4x8x60xf32>
    %cst_281 = arith.constant 0.000000e+00 : f32
    %197 = vector.broadcast %cst_281 : f32 to vector<4x8x60xf32>
    %198 = arith.maximumf %196, %197 : vector<4x8x60xf32>
    %199 = vector.shape_cast %198 : vector<4x8x60xf32> to vector<2x2x8x60xf32>
    %cst_282 = arith.constant dense<0xFF800000> : vector<2x8x60xf32>
    %200 = vector.multi_reduction <maximumf>, %199, %cst_282 [1] : vector<2x2x8x60xf32> to vector<2x8x60xf32>
    %201 = vector.extract_strided_slice %200 {offsets = [0, 0, 0], sizes = [2, 1, 60], strides = [1, 1, 1]} : vector<2x8x60xf32> to vector<2x1x60xf32>
    %202 = vector.extract_strided_slice %200 {offsets = [0, 1, 0], sizes = [2, 1, 60], strides = [1, 1, 1]} : vector<2x8x60xf32> to vector<2x1x60xf32>
    %203 = arith.maximumf %201, %202 : vector<2x1x60xf32>
    %c0_283 = arith.constant 0 : index
    %c0_284 = arith.constant 0 : index
    %c0_285 = arith.constant 0 : index
    %204 = vector.load %arg19[%c0_283, %c0_284, %c0_285] : memref<2x4x60xf32, #tpu.memory_space<vmem>>, vector<2x1x60xf32>
    tpu.vector_store %arg19[%c0_283, %c0_284, %c0_285], %203 {strides = array<i32>} : memref<2x4x60xf32, #tpu.memory_space<vmem>>, vector<2x1x60xf32>,
    %205 = vector.extract_strided_slice %200 {offsets = [0, 2, 0], sizes = [2, 1, 60], strides = [1, 1, 1]} : vector<2x8x60xf32> to vector<2x1x60xf32>
    %206 = vector.extract_strided_slice %200 {offsets = [0, 3, 0], sizes = [2, 1, 60], strides = [1, 1, 1]} : vector<2x8x60xf32> to vector<2x1x60xf32>
    %207 = arith.maximumf %205, %206 : vector<2x1x60xf32>
    %c0_286 = arith.constant 0 : index
    %c1_287 = arith.constant 1 : index
    %c0_288 = arith.constant 0 : index
    %208 = vector.load %arg19[%c0_286, %c1_287, %c0_288] : memref<2x4x60xf32, #tpu.memory_space<vmem>>, vector<2x1x60xf32>
    tpu.vector_store %arg19[%c0_286, %c1_287, %c0_288], %207 {strides = array<i32>} : memref<2x4x60xf32, #tpu.memory_space<vmem>>, vector<2x1x60xf32>,
    %209 = vector.extract_strided_slice %200 {offsets = [0, 4, 0], sizes = [2, 1, 60], strides = [1, 1, 1]} : vector<2x8x60xf32> to vector<2x1x60xf32>
    %210 = vector.extract_strided_slice %200 {offsets = [0, 5, 0], sizes = [2, 1, 60], strides = [1, 1, 1]} : vector<2x8x60xf32> to vector<2x1x60xf32>
    %211 = arith.maximumf %209, %210 : vector<2x1x60xf32>
    %c0_289 = arith.constant 0 : index
    %c2_290 = arith.constant 2 : index
    %c0_291 = arith.constant 0 : index
    %212 = vector.load %arg19[%c0_289, %c2_290, %c0_291] : memref<2x4x60xf32, #tpu.memory_space<vmem>>, vector<2x1x60xf32>
    tpu.vector_store %arg19[%c0_289, %c2_290, %c0_291], %211 {strides = array<i32>} : memref<2x4x60xf32, #tpu.memory_space<vmem>>, vector<2x1x60xf32>,
    %213 = vector.extract_strided_slice %200 {offsets = [0, 6, 0], sizes = [2, 1, 60], strides = [1, 1, 1]} : vector<2x8x60xf32> to vector<2x1x60xf32>
    %214 = vector.extract_strided_slice %200 {offsets = [0, 7, 0], sizes = [2, 1, 60], strides = [1, 1, 1]} : vector<2x8x60xf32> to vector<2x1x60xf32>
    %215 = arith.maximumf %213, %214 : vector<2x1x60xf32>
    %c0_292 = arith.constant 0 : index
    %c3_293 = arith.constant 3 : index
    %c0_294 = arith.constant 0 : index
    %216 = vector.load %arg19[%c0_292, %c3_293, %c0_294] : memref<2x4x60xf32, #tpu.memory_space<vmem>>, vector<2x1x60xf32>
    tpu.vector_store %arg19[%c0_292, %c3_293, %c0_294], %215 {strides = array<i32>} : memref<2x4x60xf32, #tpu.memory_space<vmem>>, vector<2x1x60xf32>,
    %c0_295 = arith.constant 0 : index
    %c0_296 = arith.constant 0 : index
    %c0_297 = arith.constant 0 : index
    %217 = vector.load %arg19[%c0_295, %c0_296, %c0_297] : memref<2x4x60xf32, #tpu.memory_space<vmem>>, vector<2x4x60xf32>
    %c0_298 = arith.constant 0 : index
    %c0_299 = arith.constant 0 : index
    %218 = vector.load %arg9[%c0_298, %c0_299] : memref<1x84xf32, #tpu.memory_space<vmem>>, vector<1x84xf32>
    %219 = vector.extract_strided_slice %217 {offsets = [0, 0, 0], sizes = [1, 1, 60], strides = [1, 1, 1]} : vector<2x4x60xf32> to vector<1x1x60xf32>
    %220 = vector.shape_cast %219 : vector<1x1x60xf32> to vector<1x60xf32>
    %c0_300 = arith.constant 0 : index
    %c0_301 = arith.constant 0 : index
    %c0_302 = arith.constant 0 : index
    %221 = vector.load %arg8[%c0_300, %c0_301, %c0_302] : memref<8x60x84xf32, #tpu.memory_space<vmem>>, vector<1x60x84xf32>
    %222 = vector.shape_cast %221 : vector<1x60x84xf32> to vector<60x84xf32>
    %cst_303 = arith.constant dense<0.000000e+00> : vector<1x84xf32>
    %223 = tpu.matmul %220, %222, %cst_303 {dimension_numbers = #tpu.dot_dimension_numbers<[1], [0], [0], [1], [0, 0, 1, 1], [], []>} : vector<1x60xf32>, vector<60x84xf32>, vector<1x84xf32> -> vector<1x84xf32>
    %224 = arith.addf %218, %223 : vector<1x84xf32>
    %225 = vector.extract_strided_slice %217 {offsets = [0, 1, 0], sizes = [1, 1, 60], strides = [1, 1, 1]} : vector<2x4x60xf32> to vector<1x1x60xf32>
    %226 = vector.shape_cast %225 : vector<1x1x60xf32> to vector<1x60xf32>
    %c1_304 = arith.constant 1 : index
    %c0_305 = arith.constant 0 : index
    %c0_306 = arith.constant 0 : index
    %227 = vector.load %arg8[%c1_304, %c0_305, %c0_306] : memref<8x60x84xf32, #tpu.memory_space<vmem>>, vector<1x60x84xf32>
    %228 = vector.shape_cast %227 : vector<1x60x84xf32> to vector<60x84xf32>
    %cst_307 = arith.constant dense<0.000000e+00> : vector<1x84xf32>
    %229 = tpu.matmul %226, %228, %cst_307 {dimension_numbers = #tpu.dot_dimension_numbers<[1], [0], [0], [1], [0, 0, 1, 1], [], []>} : vector<1x60xf32>, vector<60x84xf32>, vector<1x84xf32> -> vector<1x84xf32>
    %230 = arith.addf %224, %229 : vector<1x84xf32>
    %231 = vector.extract_strided_slice %217 {offsets = [0, 2, 0], sizes = [1, 1, 60], strides = [1, 1, 1]} : vector<2x4x60xf32> to vector<1x1x60xf32>
    %232 = vector.shape_cast %231 : vector<1x1x60xf32> to vector<1x60xf32>
    %c2_308 = arith.constant 2 : index
    %c0_309 = arith.constant 0 : index
    %c0_310 = arith.constant 0 : index
    %233 = vector.load %arg8[%c2_308, %c0_309, %c0_310] : memref<8x60x84xf32, #tpu.memory_space<vmem>>, vector<1x60x84xf32>
    %234 = vector.shape_cast %233 : vector<1x60x84xf32> to vector<60x84xf32>
    %cst_311 = arith.constant dense<0.000000e+00> : vector<1x84xf32>
    %235 = tpu.matmul %232, %234, %cst_311 {dimension_numbers = #tpu.dot_dimension_numbers<[1], [0], [0], [1], [0, 0, 1, 1], [], []>} : vector<1x60xf32>, vector<60x84xf32>, vector<1x84xf32> -> vector<1x84xf32>
    %236 = arith.addf %230, %235 : vector<1x84xf32>
    %237 = vector.extract_strided_slice %217 {offsets = [0, 3, 0], sizes = [1, 1, 60], strides = [1, 1, 1]} : vector<2x4x60xf32> to vector<1x1x60xf32>
    %238 = vector.shape_cast %237 : vector<1x1x60xf32> to vector<1x60xf32>
    %c3_312 = arith.constant 3 : index
    %c0_313 = arith.constant 0 : index
    %c0_314 = arith.constant 0 : index
    %239 = vector.load %arg8[%c3_312, %c0_313, %c0_314] : memref<8x60x84xf32, #tpu.memory_space<vmem>>, vector<1x60x84xf32>
    %240 = vector.shape_cast %239 : vector<1x60x84xf32> to vector<60x84xf32>
    %cst_315 = arith.constant dense<0.000000e+00> : vector<1x84xf32>
    %241 = tpu.matmul %238, %240, %cst_315 {dimension_numbers = #tpu.dot_dimension_numbers<[1], [0], [0], [1], [0, 0, 1, 1], [], []>} : vector<1x60xf32>, vector<60x84xf32>, vector<1x84xf32> -> vector<1x84xf32>
    %242 = arith.addf %236, %241 : vector<1x84xf32>
    %243 = vector.extract_strided_slice %217 {offsets = [1, 0, 0], sizes = [1, 1, 60], strides = [1, 1, 1]} : vector<2x4x60xf32> to vector<1x1x60xf32>
    %244 = vector.shape_cast %243 : vector<1x1x60xf32> to vector<1x60xf32>
    %c4_316 = arith.constant 4 : index
    %c0_317 = arith.constant 0 : index
    %c0_318 = arith.constant 0 : index
    %245 = vector.load %arg8[%c4_316, %c0_317, %c0_318] : memref<8x60x84xf32, #tpu.memory_space<vmem>>, vector<1x60x84xf32>
    %246 = vector.shape_cast %245 : vector<1x60x84xf32> to vector<60x84xf32>
    %cst_319 = arith.constant dense<0.000000e+00> : vector<1x84xf32>
    %247 = tpu.matmul %244, %246, %cst_319 {dimension_numbers = #tpu.dot_dimension_numbers<[1], [0], [0], [1], [0, 0, 1, 1], [], []>} : vector<1x60xf32>, vector<60x84xf32>, vector<1x84xf32> -> vector<1x84xf32>
    %248 = arith.addf %242, %247 : vector<1x84xf32>
    %249 = vector.extract_strided_slice %217 {offsets = [1, 1, 0], sizes = [1, 1, 60], strides = [1, 1, 1]} : vector<2x4x60xf32> to vector<1x1x60xf32>
    %250 = vector.shape_cast %249 : vector<1x1x60xf32> to vector<1x60xf32>
    %c5_320 = arith.constant 5 : index
    %c0_321 = arith.constant 0 : index
    %c0_322 = arith.constant 0 : index
    %251 = vector.load %arg8[%c5_320, %c0_321, %c0_322] : memref<8x60x84xf32, #tpu.memory_space<vmem>>, vector<1x60x84xf32>
    %252 = vector.shape_cast %251 : vector<1x60x84xf32> to vector<60x84xf32>
    %cst_323 = arith.constant dense<0.000000e+00> : vector<1x84xf32>
    %253 = tpu.matmul %250, %252, %cst_323 {dimension_numbers = #tpu.dot_dimension_numbers<[1], [0], [0], [1], [0, 0, 1, 1], [], []>} : vector<1x60xf32>, vector<60x84xf32>, vector<1x84xf32> -> vector<1x84xf32>
    %254 = arith.addf %248, %253 : vector<1x84xf32>
    %255 = vector.extract_strided_slice %217 {offsets = [1, 2, 0], sizes = [1, 1, 60], strides = [1, 1, 1]} : vector<2x4x60xf32> to vector<1x1x60xf32>
    %256 = vector.shape_cast %255 : vector<1x1x60xf32> to vector<1x60xf32>
    %c6_324 = arith.constant 6 : index
    %c0_325 = arith.constant 0 : index
    %c0_326 = arith.constant 0 : index
    %257 = vector.load %arg8[%c6_324, %c0_325, %c0_326] : memref<8x60x84xf32, #tpu.memory_space<vmem>>, vector<1x60x84xf32>
    %258 = vector.shape_cast %257 : vector<1x60x84xf32> to vector<60x84xf32>
    %cst_327 = arith.constant dense<0.000000e+00> : vector<1x84xf32>
    %259 = tpu.matmul %256, %258, %cst_327 {dimension_numbers = #tpu.dot_dimension_numbers<[1], [0], [0], [1], [0, 0, 1, 1], [], []>} : vector<1x60xf32>, vector<60x84xf32>, vector<1x84xf32> -> vector<1x84xf32>
    %260 = arith.addf %254, %259 : vector<1x84xf32>
    %261 = vector.extract_strided_slice %217 {offsets = [1, 3, 0], sizes = [1, 1, 60], strides = [1, 1, 1]} : vector<2x4x60xf32> to vector<1x1x60xf32>
    %262 = vector.shape_cast %261 : vector<1x1x60xf32> to vector<1x60xf32>
    %c7_328 = arith.constant 7 : index
    %c0_329 = arith.constant 0 : index
    %c0_330 = arith.constant 0 : index
    %263 = vector.load %arg8[%c7_328, %c0_329, %c0_330] : memref<8x60x84xf32, #tpu.memory_space<vmem>>, vector<1x60x84xf32>
    %264 = vector.shape_cast %263 : vector<1x60x84xf32> to vector<60x84xf32>
    %cst_331 = arith.constant dense<0.000000e+00> : vector<1x84xf32>
    %265 = tpu.matmul %262, %264, %cst_331 {dimension_numbers = #tpu.dot_dimension_numbers<[1], [0], [0], [1], [0, 0, 1, 1], [], []>} : vector<1x60xf32>, vector<60x84xf32>, vector<1x84xf32> -> vector<1x84xf32>
    %266 = arith.addf %260, %265 : vector<1x84xf32>
    %cst_332 = arith.constant 0.000000e+00 : f32
    %267 = vector.broadcast %cst_332 : f32 to vector<1x84xf32>
    %268 = arith.maximumf %266, %267 : vector<1x84xf32>
    %c0_333 = arith.constant 0 : index
    %c0_334 = arith.constant 0 : index
    %269 = vector.load %arg10[%c0_333, %c0_334] : memref<84x2xf32, #tpu.memory_space<vmem>>, vector<84x2xf32>
    %cst_335 = arith.constant dense<0.000000e+00> : vector<1x2xf32>
    %270 = tpu.matmul %268, %269, %cst_335 {dimension_numbers = #tpu.dot_dimension_numbers<[1], [0], [0], [1], [0, 0, 1, 1], [], []>} : vector<1x84xf32>, vector<84x2xf32>, vector<1x2xf32> -> vector<1x2xf32>
    %c0_336 = arith.constant 0 : index
    %c0_337 = arith.constant 0 : index
    %271 = vector.load %arg11[%c0_336, %c0_337] : memref<1x2xf32, #tpu.memory_space<vmem>>, vector<1x2xf32>
    %272 = arith.addf %270, %271 : vector<1x2xf32>
    %cst_338 = arith.constant 0.000000e+00 : f32
    %273 = vector.broadcast %cst_338 : f32 to vector<1x2xf32>
    %274 = arith.maximumf %272, %273 : vector<1x2xf32>
    %c0_339 = arith.constant 0 : index
    %c0_340 = arith.constant 0 : index
    %c0_341 = arith.constant 0 : index
    %275 = vector.load %arg12[%c0_339, %c0_340, %c0_341] : memref<1x1x2xf32, #tpu.memory_space<vmem>>, vector<1x1x2xf32>
    %276 = vector.shape_cast %275 : vector<1x1x2xf32> to vector<1x2xf32>
    %277 = vector.shape_cast %274 : vector<1x2xf32> to vector<1x1x2xf32>
    tpu.vector_store %arg12[%c0_339, %c0_340, %c0_341], %277 {strides = array<i32>} : memref<1x1x2xf32, #tpu.memory_space<vmem>>, vector<1x1x2xf32>,
    return
  }
  func.func @transform_0(%arg0: i32) -> (i32, i32, i32, i32) {
    %c0_i32 = arith.constant 0 : i32
    %c0_i32_0 = arith.constant 0 : i32
    %c0_i32_1 = arith.constant 0 : i32
    %c0_i32_2 = arith.constant 0 : i32
    return %arg0, %c0_i32, %c0_i32_0, %c0_i32_1 : i32, i32, i32, i32
  }
  func.func @transform_1(%arg0: i32) -> (i32, i32) {
    %c0_i32 = arith.constant 0 : i32
    %c0_i32_0 = arith.constant 0 : i32
    %c0_i32_1 = arith.constant 0 : i32
    return %c0_i32, %c0_i32_0 : i32, i32
  }
  func.func @transform_2(%arg0: i32) -> (i32, i32, i32) {
    %c0_i32 = arith.constant 0 : i32
    %c0_i32_0 = arith.constant 0 : i32
    %c0_i32_1 = arith.constant 0 : i32
    %c0_i32_2 = arith.constant 0 : i32
    return %c0_i32, %c0_i32_0, %c0_i32_1 : i32, i32, i32
  }
  func.func @transform_3(%arg0: i32) -> (i32, i32) {
    %c0_i32 = arith.constant 0 : i32
    %c0_i32_0 = arith.constant 0 : i32
    %c0_i32_1 = arith.constant 0 : i32
    return %c0_i32, %c0_i32_0 : i32, i32
  }
  func.func @transform_4(%arg0: i32) -> (i32, i32, i32) {
    %c0_i32 = arith.constant 0 : i32
    %c0_i32_0 = arith.constant 0 : i32
    %c0_i32_1 = arith.constant 0 : i32
    %c0_i32_2 = arith.constant 0 : i32
    return %c0_i32, %c0_i32_0, %c0_i32_1 : i32, i32, i32
  }
  func.func @transform_5(%arg0: i32) -> (i32, i32) {
    %c0_i32 = arith.constant 0 : i32
    %c0_i32_0 = arith.constant 0 : i32
    %c0_i32_1 = arith.constant 0 : i32
    return %c0_i32, %c0_i32_0 : i32, i32
  }
  func.func @transform_6(%arg0: i32) -> (i32, i32, i32) {
    %c0_i32 = arith.constant 0 : i32
    %c0_i32_0 = arith.constant 0 : i32
    %c0_i32_1 = arith.constant 0 : i32
    %c0_i32_2 = arith.constant 0 : i32
    return %c0_i32, %c0_i32_0, %c0_i32_1 : i32, i32, i32
  }
  func.func @transform_7(%arg0: i32) -> (i32, i32, i32) {
    %c0_i32 = arith.constant 0 : i32
    %c0_i32_0 = arith.constant 0 : i32
    %c0_i32_1 = arith.constant 0 : i32
    %c0_i32_2 = arith.constant 0 : i32
    return %c0_i32, %c0_i32_0, %c0_i32_1 : i32, i32, i32
  }
  func.func @transform_8(%arg0: i32) -> (i32, i32) {
    %c0_i32 = arith.constant 0 : i32
    %c0_i32_0 = arith.constant 0 : i32
    %c0_i32_1 = arith.constant 0 : i32
    return %c0_i32, %c0_i32_0 : i32, i32
  }
  func.func @transform_9(%arg0: i32) -> (i32, i32) {
    %c0_i32 = arith.constant 0 : i32
    %c0_i32_0 = arith.constant 0 : i32
    %c0_i32_1 = arith.constant 0 : i32
    return %c0_i32, %c0_i32_0 : i32, i32
  }
  func.func @transform_10(%arg0: i32) -> (i32, i32) {
    %c0_i32 = arith.constant 0 : i32
    %c0_i32_0 = arith.constant 0 : i32
    %c0_i32_1 = arith.constant 0 : i32
    return %c0_i32, %c0_i32_0 : i32, i32
  }
  func.func @transform_11(%arg0: i32) -> (i32, i32, i32) {
    %c0_i32 = arith.constant 0 : i32
    %c0_i32_0 = arith.constant 0 : i32
    %c0_i32_1 = arith.constant 0 : i32
    return %arg0, %c0_i32, %c0_i32_0 : i32, i32, i32
  }
}

</mosaic_0001>

<bundles_post_ra>
// kernel: tpu_custom_call.1
= control target key start
LH: loop header
LB: loop body
LE: loop exit
PB: predicated region body
PF: predicated region fallthrough
CT: control target
= control target key end

     0   :  { %s12050_s0 = inlined_call_operand.vmem [shape: f32[2,16,32,3], index: 0, kind: input, shape index: {}]   ;;  %s12051_s1 = inlined_call_operand.vmem [shape: f32[27,6], index: 1, kind: input, shape index: {}]   ;;  %s12052_s2 = inlined_call_operand.vmem [shape: f32[1,1,6], index: 2, kind: input, shape index: {}]   ;;  %s12053_s3 = inlined_call_operand.vmem [shape: f32[54,16], index: 3, kind: input, shape index: {}]   ;;  %s12054_s4 = inlined_call_operand.vmem [shape: f32[1,1,16], index: 4, kind: input, shape index: {}]   ;;  %s12055_s5 = inlined_call_operand.vmem [shape: f32[144,60], index: 5, kind: input, shape index: {}]   ;;  %s12056_s6 = inlined_call_operand.vmem [shape: f32[1,1,60], index: 6, kind: input, shape index: {}]   ;;  %s12057_s7 = inlined_call_operand.vmem [shape: f32[8,60,84], index: 7, kind: input, shape index: {}]   ;;  %s12058_s8 = inlined_call_operand.vmem [shape: f32[1,84], index: 8, kind: input, shape index: {}]   ;;  %s12059_s9 = inlined_call_operand.vmem [shape: f32[84,2], index: 9, kind: input, shape index: {}]   ;;  %s12060_s10 = inlined_call_operand.vmem [shape: f32[1,2], index: 10, kind: input, shape index: {}]   ;;  %s12061_s11 = inlined_call_operand.hbm [shape: f32[2,1,2], index: 11, kind: output, shape index: {}]  }
   0x1   :  { %12084 = sst [smem:[#allocation12_spill]] %s12050_s0 }
   0x2   :  { %16 = vsyncpa [#allocation10], 0 }
   0x3   :  { %18 = vsyncpa [#allocation10 + $0x1], 0  ;;  %s8310_s17 = smov 0   ;;  %s8312_s18 = smov 0  }
   0x4   :  { %s8314_s19 = smov 0   ;;  %s8316_s20 = smov 0  }
   0x5 LB: > { %s8331_s21 = sadd.s32 4294967295, %s8225_s20   ;;  %s7249_s22 = sadd.s32 4294967294, %s8225_s20   ;;  %s8225_s20 = sphi %s8316_s20, %s12129_s20   ;;  %s8221_s19 = sphi %s8314_s19, %s12128_s19   ;;  %s8217_s18 = sphi %s8312_s18, %s12127_s18   ;;  %s8213_s17 = sphi %s8310_s17, %s12126_s17  }
   0x6   : > { %s8335_s23 = sadd.s32 1, %s8225_s20   ;;  %s267_s24 = sadd.s32 1, %s8221_s19 }
   0x7   : > { %s264_s25 = ssub.s32 %s8225_s20, %s8335_s23  ;;  %p277_p0 = scmp.ne.s32.totalorder %s8221_s19, %s8217_s18 }
   0x8   : > { %p265_p1 = scmp.eq.s32.totalorder %s264_s25, 0  ;;  %p278_p2 = scmp.eq.s32.totalorder %s8331_s21, 1 }
   0x9   : > { %p283_p3 = scmp.ne.s32.totalorder %s8217_s18, %s8213_s17  ;;  %p284_p4 = scmp.eq.s32.totalorder %s7249_s22, 1 }
   0xa   : > { %s8346_s26 = scalar_select %p265_p1, %s8221_s19, %s267_s24  }
   0xb   : > { %p8348_p5 = por %p278_p2, %p277_p0  ;;  %p8352_p6 = por %p284_p4, %p283_p3 }
   0xc   : > { %p7252_p7 = scmp.ge.s32.totalorder %s8225_s20, 1  ;;  %p340_p8 = scmp.lt.s32.totalorder %s8225_s20, 3 }
   0xe   : > { %p341_p9 = pnand %p7252_p7, %p340_p8 }
   0xf   : > { %vm384_vm0 = vcmask (!%p341_p9), 23552   ;;  %vm397_vm1 = vcmask (!%p341_p9), 16384   ;;  %vm389_vm2 = vcmask (!%p341_p9), 17408   ;;  %v8227_v0 = vmov (!%p341_p9), 0.0   ;;  %p379_p10 = scmp.lt.s32.totalorder (!%p341_p9), %s8331_s21, 1  ;;  %s12087_s0 = sld [smem:[#allocation12_spill]] (!%p341_p9) }
  0x10   : > { %344 = sbr.rel (%p341_p9) target bundleno = 2670 (0xa6e), region = 64  ;;  %385 = vst.msk [vmem:[#allocation2] sm:$0xff] (!%p341_p9), %vm384_vm0, %v8227_v0  ;;  %386 = vst.msk [vmem:[#allocation2 + $0x8] sm:$0xff] (!%p341_p9), %vm384_vm0, %v8227_v0  ;;  %s12068_s15 = smov (!%p341_p9), 6   ;;  %v3836_v46 = vld [vmem:[%s12051_s1] sm:$0xff] (!%p341_p9)  ;;  %v3837_v47 = vld [vmem:[%s12051_s1 + $0x8] sm:$0xff] (!%p341_p9) }
  0x11   : > { %387 = vst.msk [vmem:[#allocation2 + $0x10] sm:$0xff] (!%p341_p9), %vm384_vm0, %v8227_v0  ;;  %388 = vst.msk [vmem:[#allocation2 + $0x18] sm:$0xff] (!%p341_p9), %vm384_vm0, %v8227_v0  ;;  %s12064_s16 = smov (!%p341_p9), 3   ;;  %s8230_s22 = smov (!%p341_p9), 9   ;;  %v7916_v49 = vpack.c.bf16 (!%p341_p9), %v3837_v47, %v3836_v46  ;;  %v3838_v50 = vld [vmem:[%s12051_s1 + $0x10] sm:$0xff] (!%p341_p9)  ;;  %vm4040_vm3 = vcmask (!%p341_p9), 1042432  }
  0x12   : > { %392 = vst.msk [vmem:[#allocation2 + $0x2a8] sm:$0xff] (!%p341_p9), %vm384_vm0, %v8227_v0  ;;  %393 = vst.msk [vmem:[#allocation2 + $0x2b0] sm:$0xff] (!%p341_p9), %vm384_vm0, %v8227_v0  ;;  %s12072_s24 = smov (!%p341_p9), 12   ;;  %s12062_s25 = smov (!%p341_p9), 15   ;;  %v3839_v51 = vld [vmem:[%s12051_s1 + $0x18] sm:$0x7] (!%p341_p9) }
  0x13   : > { %394 = vst.msk [vmem:[#allocation2 + $0x2b8] sm:$0xff] (!%p341_p9), %vm384_vm0, %v8227_v0  ;;  %395 = vst.msk [vmem:[#allocation2 + $0x2c0] sm:$0xff] (!%p341_p9), %vm384_vm0, %v8227_v0  ;;  %7917 = vmatprep.subr.bf16.mxu0 (!%p341_p9), %v7916_v49  ;;  %v7920_v54 = vpack.c.bf16 (!%p341_p9), %v3839_v51, %v3838_v50  ;;  %vm12074_vm4 = vmmov (!%p341_p9), 1   ;;  %s12091_s12 = smov (!%p341_p9), 18   ;;  %vm1011_vm6 = vcmask (!%p341_p9), 48152   ;;  %vm1396_vm7 = vcmask (!%p341_p9), 72752  }
  0x14   : > { %399 = vst.msk [vmem:[#allocation2 + $0x28] sm:$0x1] (!%p341_p9), %vm397_vm1, %v8227_v0  ;;  %400 = vst.msk [vmem:[#allocation2 + $0x50] sm:$0x1] (!%p341_p9), %vm397_vm1, %v8227_v0  ;;  %7919 = vmatpush3.bf16.msra.mxu0 (!%p341_p9), %v7916_v49  ;;  %vm1781_vm8 = vcmask (!%p341_p9), 97352   ;;  %vm2166_vm9 = vcmask (!%p341_p9), 121952  }
  0x15   : > { %401 = vst.msk [vmem:[#allocation2 + $0x78] sm:$0x1] (!%p341_p9), %vm397_vm1, %v8227_v0  ;;  %402 = vst.msk [vmem:[#allocation2 + $0xa0] sm:$0x1] (!%p341_p9), %vm397_vm1, %v8227_v0  ;;  %vm2551_vm10 = vcmask (!%p341_p9), 146552   ;;  %vm2937_vm11 = vcmask (!%p341_p9), 171152  }
  0x16   : > { %403 = vst.msk [vmem:[#allocation2 + $0xc8] sm:$0x1] (!%p341_p9), %vm397_vm1, %v8227_v0  ;;  %404 = vst.msk [vmem:[#allocation2 + $0xf0] sm:$0x1] (!%p341_p9), %vm397_vm1, %v8227_v0  ;;  %vm3322_vm12 = vcmask (!%p341_p9), 195752   ;;  %vm3707_vm13 = vcmask (!%p341_p9), 220352  }
  0x17   : > { %405 = vst.msk [vmem:[#allocation2 + $0x118] sm:$0x1] %vm397_vm1, %v8227_v0  ;;  %406 = vst.msk [vmem:[#allocation2 + $0x140] sm:$0x1] %vm397_vm1, %v8227_v0  ;;  %s380_s29 = scalar_select %p379_p10, %s8331_s21, 1  ;;  %v1076_v4 = vld [vmem:[#allocation2 + $0x2] sm:$0xff] }
  0x18   : > { %407 = vst.msk [vmem:[#allocation2 + $0x168] sm:$0x1] %vm397_vm1, %v8227_v0  ;;  %408 = vst.msk [vmem:[#allocation2 + $0x190] sm:$0x1] %vm397_vm1, %v8227_v0  ;;  %v691_v5 = vld [vmem:[#allocation2 + $0x1] sm:$0xff]  ;;  %1204 = vrot.lane.b32.xlu1 %v1076_v4, %s12068_s15  ;;  %v1077_v6 = vld [vmem:[#allocation2 + $0xa] sm:$0xff] }
  0x19   : > { %409 = vst.msk [vmem:[#allocation2 + $0x1b8] sm:$0x1] %vm397_vm1, %v8227_v0  ;;  %410 = vst.msk [vmem:[#allocation2 + $0x1e0] sm:$0x1] %vm397_vm1, %v8227_v0  ;;  %s7421_s30 = sshll.u32 %s380_s29, 9  ;;  %819 = vrot.lane.b32.xlu0 %v691_v5, %s12064_s16  ;;  %v692_v7 = vld [vmem:[#allocation2 + $0x9] sm:$0xff] }
  0x1a   : > { %411 = vst.msk [vmem:[#allocation2 + $0x208] sm:$0x1] %vm397_vm1, %v8227_v0  ;;  %412 = vst.msk [vmem:[#allocation2 + $0x230] sm:$0x1] %vm397_vm1, %v8227_v0  ;;  %s8455_s14 = scalar_lea.vmem %s12087_s0, %s7421_s30  ;;  %v693_v12 = vld [vmem:[#allocation2 + $0x11] sm:$0xff]  ;;  %v564_v18 = vld [vmem:[#allocation2 + $0x8] sm:$0xff] }
  0x1b   : > { %413 = vst.msk [vmem:[#allocation2 + $0x258] sm:$0x1] %vm397_vm1, %v8227_v0  ;;  %414 = vst.msk [vmem:[#allocation2 + $0x280] sm:$0x1] %vm397_vm1, %v8227_v0  ;;  %v434_v1 = vld [vmem:[%s8455_s14] sm:$0xff]  ;;  %v435_v2 = vld [vmem:[%s8455_s14 + $0x8] sm:$0xff] }
  0x1c   : > { %417 = vst.msk [vmem:[#allocation2 + $0x49] sm:$0x1] %vm397_vm1, %v8227_v0  ;;  %418 = vst.msk [vmem:[#allocation2 + $0x71] sm:$0x1] %vm397_vm1, %v8227_v0  ;;  %v438_v3 = vld [vmem:[%s8455_s14 + $0x20] sm:$0xff]  ;;  %v436_v8 = vld [vmem:[%s8455_s14 + $0x10] sm:$0xff]  ;;  %1206 = vrot.lane.b32.xlu1 %v1077_v6, %s12068_s15 }
  0x1d   : > { %419 = vst.msk [vmem:[#allocation2 + $0x99] sm:$0x1] %vm397_vm1, %v8227_v0  ;;  %420 = vst.msk [vmem:[#allocation2 + $0xc1] sm:$0x1] %vm397_vm1, %v8227_v0  ;;  %v439_v9 = vld [vmem:[%s8455_s14 + $0x28] sm:$0xff]  ;;  %v437_v10 = vld [vmem:[%s8455_s14 + $0x18] sm:$0xff]  ;;  %821 = vrot.lane.b32.xlu0 %v692_v7, %s12064_s16 }
  0x1e   : > { %421 = vst.msk [vmem:[#allocation2 + $0xe9] sm:$0x1] %vm397_vm1, %v8227_v0  ;;  %422 = vst.msk [vmem:[#allocation2 + $0x111] sm:$0x1] %vm397_vm1, %v8227_v0  ;;  %v440_v11 = vld [vmem:[%s8455_s14 + $0x30] sm:$0xff]  ;;  %v441_v13 = vld [vmem:[%s8455_s14 + $0x38] sm:$0xff] }
  0x1f   : > { %423 = vst.msk [vmem:[#allocation2 + $0x139] sm:$0x1] %vm397_vm1, %v8227_v0  ;;  %424 = vst.msk [vmem:[#allocation2 + $0x161] sm:$0x1] %vm397_vm1, %v8227_v0  ;;  %v442_v14 = vld [vmem:[%s8455_s14 + $0x40] sm:$0xff]  ;;  %v443_v15 = vld [vmem:[%s8455_s14 + $0x48] sm:$0xff] }
  0x20   : > { %425 = vst.msk [vmem:[#allocation2 + $0x189] sm:$0x1] %vm397_vm1, %v8227_v0  ;;  %426 = vst.msk [vmem:[#allocation2 + $0x1b1] sm:$0x1] %vm397_vm1, %v8227_v0  ;;  %v444_v16 = vld [vmem:[%s8455_s14 + $0x50] sm:$0xff]  ;;  %v445_v20 = vld [vmem:[%s8455_s14 + $0x58] sm:$0xff]  ;;  %823 = vrot.lane.b32.xlu1 %v693_v12, %s12064_s16 }
  0x21   : > { %427 = vst.msk [vmem:[#allocation2 + $0x1d9] sm:$0x1] %vm397_vm1, %v8227_v0  ;;  %428 = vst.msk [vmem:[#allocation2 + $0x201] sm:$0x1] %vm397_vm1, %v8227_v0  ;;  %v565_v19 = vld [vmem:[#allocation2 + $0x10] sm:$0xff]  ;;  %v566_v21 = vld [vmem:[#allocation2 + $0x18] sm:$0xff] }
  0x22   : > { %429 = vst.msk [vmem:[#allocation2 + $0x229] sm:$0x1] %vm397_vm1, %v8227_v0  ;;  %430 = vst.msk [vmem:[#allocation2 + $0x251] sm:$0x1] %vm397_vm1, %v8227_v0  ;;  %v1078_v36 = vld [vmem:[#allocation2 + $0x12] sm:$0xff]  ;;  %v446_v39 = vld [vmem:[%s8455_s14 + $0x60] sm:$0xff] }
  0x23   : > { %431 = vst.msk [vmem:[#allocation2 + $0x279] sm:$0x1] %vm397_vm1, %v8227_v0  ;;  %432 = vst.msk [vmem:[#allocation2 + $0x2a1] sm:$0x1] %vm397_vm1, %v8227_v0  ;;  %v447_v41 = vld [vmem:[%s8455_s14 + $0x68] sm:$0xff]  ;;  %s12066_s29 = smov 18  }
  0x24   : > { %390 = vst.msk [vmem:[#allocation2 + $0x20] sm:$0x3] %vm389_vm2, %v8227_v0  ;;  %396 = vst.msk [vmem:[#allocation2 + $0x2c8] sm:$0x3] %vm389_vm2, %v8227_v0  ;;  %s8234_s30 = smov 21   ;;  %v448_v55 = vld [vmem:[%s8455_s14 + $0x70] sm:$0xff] }
  0x25   : > { %398 = vst.msk [vmem:[#allocation2] sm:$0x1] %vm397_vm1, %v8227_v0  ;;  %415 = vst.msk [vmem:[#allocation2 + $0x2a8] sm:$0x1] %vm397_vm1, %v8227_v0  ;;  %v449_v61 = vld [vmem:[%s8455_s14 + $0x78] sm:$0xff]  ;;  %v450_v4 = vld [vmem:[%s8455_s14 + $0x80] sm:$0xff] }
  0x26   : > { %416 = vst.msk [vmem:[#allocation2 + $0x21] sm:$0x1] %vm397_vm1, %v8227_v0  ;;  %433 = vst.msk [vmem:[#allocation2 + $0x2c9] sm:$0x1] %vm397_vm1, %v8227_v0  ;;  %v451_v6 = vld [vmem:[%s8455_s14 + $0x88] sm:$0xff]  ;;  %vm3847_vm14 = vcmask 220160  }
  0x27   : > { %499 = vst.msk [vmem:[#allocation2 + $0x29] sm:$0xff] %vm384_vm0, %v434_v1  ;;  %500 = vst.msk [vmem:[#allocation2 + $0x31] sm:$0xff] %vm384_vm0, %v435_v2  ;;  %vm4493_vm15 = vcmask 48128   ;;  %vm4502_vm1 = vcmask 40960   ;;  %vm4660_vm2 = vcmask 43010   ;;  %s12094_s13 = smov 30  }
  0x28   : > { %503 = vst.msk [vmem:[#allocation2 + $0x51] sm:$0xff] %vm384_vm0, %v438_v3  ;;  %501 = vst.msk [vmem:[#allocation2 + $0x39] sm:$0xff] %vm384_vm0, %v436_v8 }
  0x29   : > { %504 = vst.msk [vmem:[#allocation2 + $0x59] sm:$0xff] %vm384_vm0, %v439_v9  ;;  %502 = vst.msk [vmem:[#allocation2 + $0x41] sm:$0xff] %vm384_vm0, %v437_v10 }
  0x2a   : > { %505 = vst.msk [vmem:[#allocation2 + $0x61] sm:$0xff] %vm384_vm0, %v440_v11  ;;  %506 = vst.msk [vmem:[#allocation2 + $0x69] sm:$0xff] %vm384_vm0, %v441_v13  ;;  %v452_v11 = vld [vmem:[%s8455_s14 + $0x90] sm:$0xff] }
  0x2b   : > { %507 = vst.msk [vmem:[#allocation2 + $0x79] sm:$0xff] %vm384_vm0, %v442_v14  ;;  %508 = vst.msk [vmem:[#allocation2 + $0x81] sm:$0xff] %vm384_vm0, %v443_v15  ;;  %v694_v37 = vld [vmem:[#allocation2 + $0x19] sm:$0xff] }
  0x2c   : > { %v563_v17 = vld [vmem:[#allocation2] sm:$0xff]  ;;  %509 = vst.msk [vmem:[#allocation2 + $0x89] sm:$0xff] %vm384_vm0, %v444_v16  ;;  %628 = vst.msk [vmem:[#allocation3 + $0x8] sm:$0xff] %vm384_vm0, %v564_v18  ;;  %v453_v18 = vld [vmem:[%s8455_s14 + $0x98] sm:$0xff] }
  0x2d   : > { %627 = vst.msk [vmem:[#allocation3] sm:$0xff] %vm384_vm0, %v563_v17  ;;  %629 = vst.msk [vmem:[#allocation3 + $0x10] sm:$0xff] %vm384_vm0, %v565_v19  ;;  %v1079_v42 = vld [vmem:[#allocation2 + $0x1a] sm:$0xff] }
  0x2e   : > { %v1461_v22 = vld [vmem:[#allocation2 + $0x28] sm:$0xff]  ;;  %v1462_v23 = vld [vmem:[#allocation2 + $0x30] sm:$0xff]  ;;  %510 = vst.msk [vmem:[#allocation2 + $0x91] sm:$0xff] %vm384_vm0, %v445_v20  ;;  %630 = vst.msk [vmem:[#allocation3 + $0x18] sm:$0xff] %vm384_vm0, %v566_v21 }
  0x2f   : > { %v8489_v24 = vld [vmem:[#allocation2 + $0x50] sm:$0xff]  ;;  %631 = vst.msk [vmem:[#allocation3 + $0x20] sm:$0xff] %vm384_vm0, %v1461_v22  ;;  %632 = vst.msk [vmem:[#allocation3 + $0x28] sm:$0xff] %vm384_vm0, %v1462_v23  ;;  %1589 = vrot.lane.b32.xlu0 %v1461_v22, %s8230_s22  ;;  %v1463_v26 = vld [vmem:[#allocation2 + $0x38] sm:$0xff]  ;;  %1591 = vrot.lane.b32.xlu1 %v1462_v23, %s8230_s22 }
  0x30   : > { %635 = vst.msk [vmem:[#allocation3 + $0x40] sm:$0xff] %vm384_vm0, %v8489_v24  ;;  %v8497_v25 = vld [vmem:[#allocation2 + $0x29] sm:$0xff]  ;;  %v8499_v27 = vld [vmem:[#allocation2 + $0x58] sm:$0xff]  ;;  %v1464_v28 = vld [vmem:[#allocation2 + $0x40] sm:$0xff] }
  0x31   : > { %633 = vst.msk [vmem:[#allocation3 + $0x30] sm:$0xff] %vm384_vm0, %v1463_v26  ;;  %634 = vst.msk [vmem:[#allocation3 + $0x38] sm:$0xff] %vm384_vm0, %v1464_v28  ;;  %v8508_v29 = vld [vmem:[#allocation2 + $0x60] sm:$0xff]  ;;  %v8510_v30 = vld [vmem:[#allocation2 + $0x2a] sm:$0xff] }
  0x32   : > { %636 = vst.msk [vmem:[#allocation3 + $0x48] sm:$0xff] %vm384_vm0, %v8499_v27  ;;  %v8512_v31 = vld [vmem:[#allocation2 + $0x31] sm:$0xff]  ;;  %v8514_v32 = vld [vmem:[#allocation2 + $0x68] sm:$0xff]  ;;  %637 = vst.msk [vmem:[#allocation3 + $0x50] sm:$0xff] %vm384_vm0, %v8508_v29 }
  0x33   : > { %1974 = vrot.lane.b32.xlu0 %v8497_v25, %s12072_s24  ;;  %v8518_v33 = vld [vmem:[#allocation2 + $0x78] sm:$0xff]  ;;  %638 = vst.msk [vmem:[#allocation3 + $0x58] sm:$0xff] %vm384_vm0, %v8514_v32  ;;  %v8522_v34 = vld [vmem:[#allocation2 + $0x80] sm:$0xff]  ;;  %2359 = vrot.lane.b32.xlu1 %v8510_v30, %s12062_s25  ;;  %v8530_v35 = vld [vmem:[#allocation2 + $0x88] sm:$0xff] }
  0x34   : > { %639 = vst.msk [vmem:[#allocation3 + $0x60] sm:$0xff] %vm384_vm0, %v8518_v33  ;;  %640 = vst.msk [vmem:[#allocation3 + $0x68] sm:$0xff] %vm384_vm0, %v8522_v34  ;;  %v2232_v40 = vld [vmem:[#allocation2 + $0x32] sm:$0xff]  ;;  %v1849_v56 = vld [vmem:[#allocation2 + $0x41] sm:$0xff] }
  0x35   : > { %v8534_v38 = vld [vmem:[#allocation2 + $0x90] sm:$0xff]  ;;  %641 = vst.msk [vmem:[#allocation3 + $0x70] sm:$0xff] %vm384_vm0, %v8530_v35  ;;  %511 = vst.msk [vmem:[#allocation2 + $0xa1] sm:$0xff] %vm384_vm0, %v446_v39  ;;  %v1848_v48 = vld [vmem:[#allocation2 + $0x39] sm:$0xff] }
  0x36   : > { %642 = vst.msk [vmem:[#allocation3 + $0x78] sm:$0xff] %vm384_vm0, %v8534_v38  ;;  %512 = vst.msk [vmem:[#allocation2 + $0xa9] sm:$0xff] %vm384_vm0, %v447_v41  ;;  %v8555_v44 = vld [vmem:[#allocation2 + $0x51] sm:$0xff]  ;;  %v8581_v53 = vld [vmem:[#allocation2 + $0x59] sm:$0xff] }
  0x37   : > { %1976 = vrot.lane.b32.xlu0 %v8512_v31, %s12072_s24  ;;  %1208 = vrot.lane.b32.xlu1 %v1078_v36, %s12068_s15  ;;  %v8579_v52 = vld [vmem:[#allocation2 + $0x52] sm:$0xff]  ;;  %vm7921_vm5 = vmpackc.low %vm4040_vm3, %vm12074_vm4  ;;  %513 = vst.msk [vmem:[#allocation2 + $0xb1] sm:$0xff] %vm384_vm0, %v448_v55  ;;  %v8593_v57 = vld [vmem:[#allocation2 + $0x5a] sm:$0xff]  ;;  %vm4669_vm3 = vcmask 45060   ;;  %vm4496_vm4 = vcmask 41984  }
  0x38   : > { %7922 = vmatprep.subr.msk.bf16.mxu0 %vm7921_vm5, %v7920_v54  ;;  %v2233_v58 = vld [vmem:[#allocation2 + $0x3a] sm:$0xff]  ;;  %v2234_v59 = vld [vmem:[#allocation2 + $0x42] sm:$0xff]  ;;  %514 = vst.msk [vmem:[#allocation2 + $0xb9] sm:$0xff] %vm384_vm0, %v449_v61  ;;  %v8639_v3 = vld [vmem:[#allocation2 + $0x6a] sm:$0xff] }
  0x39   : > { %7925 = vmatpush3.bf16.msk.msra.mxu0 %vm7921_vm5, %v7920_v54  ;;  %v8614_v62 = vld [vmem:[#allocation2 + $0x61] sm:$0xff]  ;;  %v8630_v2 = vld [vmem:[#allocation2 + $0x69] sm:$0xff]  ;;  %515 = vst.msk [vmem:[#allocation2 + $0xc9] sm:$0xff] %vm384_vm0, %v450_v4  ;;  %516 = vst.msk [vmem:[#allocation2 + $0xd1] sm:$0xff] %vm384_vm0, %v451_v6  ;;  %vm4678_vm5 = vcmask 47110  }
  0x3a   : > { %v8628_v1 = vld [vmem:[#allocation2 + $0x62] sm:$0xff]  ;;  %v8662_v7 = vld [vmem:[#allocation2 + $0x79] sm:$0xff]  ;;  %517 = vst.msk [vmem:[#allocation2 + $0xd9] sm:$0xff] %vm384_vm0, %v452_v11  ;;  %518 = vst.msk [vmem:[#allocation2 + $0xe1] sm:$0xff] %vm384_vm0, %v453_v18 }
  0x3b   : > { %825 = vrot.lane.b32.xlu0 %v694_v37, %s12064_s16  ;;  %2745 = vrot.lane.b32.xlu1 %v8489_v24, %s12066_s29  ;;  %s12070_s16 = smov 24   ;;  %v8676_v9 = vld [vmem:[#allocation2 + $0x7a] sm:$0xff]  ;;  %v8690_v12 = vld [vmem:[#allocation2 + $0x82] sm:$0xff]  ;;  %4494 = vst.msk [vmem:[#allocation4] sm:$0xff] %vm4493_vm15, %v8227_v0  ;;  %4495 = vst.msk [vmem:[#allocation4 + $0x8] sm:$0xff] %vm4493_vm15, %v8227_v0 }
  0x3c   : > { %v8549_v43 = vld [vmem:[#allocation2 + $0xa0] sm:$0xff]  ;;  %v8720_v21 = vld [vmem:[#allocation2 + $0x89] sm:$0xff]  ;;  %v457_v6 = vld [vmem:[%s8455_s14 + $0xb8] sm:$0xff]  ;;  %4499 = vst.msk [vmem:[#allocation4 + $0xd8] sm:$0xff] %vm4493_vm15, %v8227_v0 }
  0x3d   : > { %643 = vst.msk [vmem:[#allocation3 + $0x80] sm:$0xff] %vm384_vm0, %v8549_v43  ;;  %v8557_v45 = vld [vmem:[#allocation2 + $0xa8] sm:$0xff]  ;;  %v454_v36 = vld [vmem:[%s8455_s14 + $0xa0] sm:$0xff]  ;;  %522 = vst.msk [vmem:[#allocation2 + $0x109] sm:$0xff] %vm384_vm0, %v457_v6 }
  0x3e   : > { %644 = vst.msk [vmem:[#allocation3 + $0x88] sm:$0xff] %vm384_vm0, %v8557_v45  ;;  %v8602_v60 = vld [vmem:[#allocation2 + $0xb0] sm:$0xff]  ;;  %v8678_v10 = vld [vmem:[#allocation2 + $0x81] sm:$0xff]  ;;  %519 = vst.msk [vmem:[#allocation2 + $0xf1] sm:$0xff] %vm384_vm0, %v454_v36 }
  0x3f   : > { %2361 = vrot.lane.b32.xlu0 %v2232_v40, %s12062_s25  ;;  %1593 = vrot.lane.b32.xlu1 %v1463_v26, %s8230_s22  ;;  %s12089_s25 = smov 15   ;;  %645 = vst.msk [vmem:[#allocation3 + $0x90] sm:$0xff] %vm384_vm0, %v8602_v60  ;;  %v8616_v63 = vld [vmem:[#allocation2 + $0xb8] sm:$0xff]  ;;  %v8734_v26 = vld [vmem:[#allocation2 + $0x8a] sm:$0xff]  ;;  %v8780_v47 = vld [vmem:[#allocation2 + $0xa1] sm:$0xff] }
  0x40   : > { %646 = vst.msk [vmem:[#allocation3 + $0x98] sm:$0xff] %vm384_vm0, %v8616_v63  ;;  %v8649_v5 = vld [vmem:[#allocation2 + $0xc8] sm:$0xff]  ;;  %v8664_v8 = vld [vmem:[#allocation2 + $0xd0] sm:$0xff] }
  0x41   : > { %647 = vst.msk [vmem:[#allocation3 + $0xa0] sm:$0xff] %vm384_vm0, %v8649_v5  ;;  %648 = vst.msk [vmem:[#allocation3 + $0xa8] sm:$0xff] %vm384_vm0, %v8664_v8  ;;  %v8703_v17 = vld [vmem:[#allocation2 + $0xd8] sm:$0xff] }
  0x42   : > { %649 = vst.msk [vmem:[#allocation3 + $0xb0] sm:$0xff] %vm384_vm0, %v8703_v17 }
  0x43   : > { %1210 = vrot.lane.b32.xlu0 %v1079_v42, %s12068_s15  ;;  %3130 = vrot.lane.b32.xlu1 %v8555_v44, %s8234_s30  ;;  %s12088_s15 = smov 3   ;;  %v455_v42 = vld [vmem:[%s8455_s14 + $0xa8] sm:$0xff]  ;;  %4500 = vst.msk [vmem:[#allocation4 + $0xe0] sm:$0xff] %vm4493_vm15, %v8227_v0 }
  0x44   : > { %520 = vst.msk [vmem:[#allocation2 + $0xf9] sm:$0xff] %vm384_vm0, %v455_v42 }
  0x45   : > { %4503 = vst.msk [vmem:[#allocation4] sm:$0x1] %vm4502_vm1, %v8227_v0  ;;  %4504 = vst.msk [vmem:[#allocation4 + $0x18] sm:$0x1] %vm4502_vm1, %v8227_v0 }
  0x46   : > { %4505 = vst.msk [vmem:[#allocation4 + $0x30] sm:$0x1] %vm4502_vm1, %v8227_v0  ;;  %4506 = vst.msk [vmem:[#allocation4 + $0x48] sm:$0x1] %vm4502_vm1, %v8227_v0 }
  0x47   : > { %2747 = vrot.lane.b32.xlu0 %v8499_v27, %s12066_s29  ;;  %1978 = vrot.lane.b32.xlu1 %v1848_v48, %s12072_s24  ;;  %s12090_s29 = smov 6   ;;  %4507 = vst.msk [vmem:[#allocation4 + $0x60] sm:$0x1] %vm4502_vm1, %v8227_v0  ;;  %4508 = vst.msk [vmem:[#allocation4 + $0x78] sm:$0x1] %vm4502_vm1, %v8227_v0 }
  0x48   : > { %4509 = vst.msk [vmem:[#allocation4 + $0x90] sm:$0x1] %vm4502_vm1, %v8227_v0  ;;  %4510 = vst.msk [vmem:[#allocation4 + $0xa8] sm:$0x1] %vm4502_vm1, %v8227_v0 }
  0x49   : > { %4511 = vst.msk [vmem:[#allocation4 + $0xc0] sm:$0x1] %vm4502_vm1, %v8227_v0  ;;  %4512 = vst.msk [vmem:[#allocation4 + $0xd8] sm:$0x1] %vm4502_vm1, %v8227_v0 }
  0x4a   : > { %4514 = vst.msk [vmem:[#allocation4 + $0x29] sm:$0x1] %vm4502_vm1, %v8227_v0  ;;  %4515 = vst.msk [vmem:[#allocation4 + $0x41] sm:$0x1] %vm4502_vm1, %v8227_v0 }
  0x4b   : > { %1595 = vrot.lane.b32.xlu0 %v1464_v28, %s8230_s22  ;;  %3515 = vrot.lane.b32.xlu1 %v8579_v52, %s12070_s16  ;;  %4516 = vst.msk [vmem:[#allocation4 + $0x59] sm:$0x1] %vm4502_vm1, %v8227_v0  ;;  %4517 = vst.msk [vmem:[#allocation4 + $0x71] sm:$0x1] %vm4502_vm1, %v8227_v0 }
  0x4c   : > { %4518 = vst.msk [vmem:[#allocation4 + $0x89] sm:$0x1] %vm4502_vm1, %v8227_v0  ;;  %4519 = vst.msk [vmem:[#allocation4 + $0xa1] sm:$0x1] %vm4502_vm1, %v8227_v0 }
  0x4d   : > { %4520 = vst.msk [vmem:[#allocation4 + $0xb9] sm:$0x1] %vm4502_vm1, %v8227_v0  ;;  %4521 = vst.msk [vmem:[#allocation4 + $0xd1] sm:$0x1] %vm4502_vm1, %v8227_v0 }
  0x4e   : > { %4497 = vst.msk [vmem:[#allocation4 + $0x10] sm:$0x3] %vm4496_vm4, %v8227_v0  ;;  %4501 = vst.msk [vmem:[#allocation4 + $0xe8] sm:$0x3] %vm4496_vm4, %v8227_v0  ;;  %vm4991_vm4 = vcmask 97328  }
  0x4f   : > { %3132 = vrot.lane.b32.xlu0 %v8581_v53, %s8234_s30  ;;  %1980 = vrot.lane.b32.xlu1 %v1849_v56, %s12072_s24  ;;  %4513 = vst.msk [vmem:[#allocation4 + $0x11] sm:$0x1] %vm4502_vm1, %v8227_v0  ;;  %4522 = vst.msk [vmem:[#allocation4 + $0xe9] sm:$0x1] %vm4502_vm1, %v8227_v0 }
  0x53   : > { %827 = vrot.lane.b32.xlu0 %v8497_v25, %s12088_s15  ;;  %3517 = vrot.lane.b32.xlu1 %v8593_v57, %s12070_s16 }
  0x57   : > { %2363 = vrot.lane.b32.xlu0 %v2233_v58, %s12089_s25  ;;  %1212 = vrot.lane.b32.xlu1 %v8510_v30, %s12090_s29 }
  0x5b   : > { %829 = vrot.lane.b32.xlu0 %v8512_v31, %s12088_s15  ;;  %2749 = vrot.lane.b32.xlu1 %v8508_v29, %s12091_s12 }
  0x5f   : > { %2365 = vrot.lane.b32.xlu0 %v2234_v59, %s12089_s25  ;;  %1597 = vrot.lane.b32.xlu1 %v8489_v24, %s8230_s22 }
  0x63   : > { %1214 = vrot.lane.b32.xlu0 %v2232_v40, %s12090_s29  ;;  %3134 = vrot.lane.b32.xlu1 %v8614_v62, %s8234_s30 }
  0x67   : > { %2751 = vrot.lane.b32.xlu0 %v8514_v32, %s12091_s12  ;;  %1982 = vrot.lane.b32.xlu1 %v8555_v44, %s12072_s24 }
  0x6b   : > { %1599 = vrot.lane.b32.xlu0 %v8499_v27, %s8230_s22  ;;  %3519 = vrot.lane.b32.xlu1 %v8628_v1, %s12070_s16  ;;  %v8736_v27 = vld [vmem:[#allocation2 + $0x91] sm:$0xff] }
  0x6f   : > { %3136 = vrot.lane.b32.xlu0 %v8630_v2, %s8234_s30  ;;  %1984 = vrot.lane.b32.xlu1 %v8581_v53, %s12072_s24 }
  0x73   : > { %831 = vrot.lane.b32.xlu0 %v1848_v48, %s12088_s15  ;;  %3521 = vrot.lane.b32.xlu1 %v8639_v3, %s12070_s16 }
  0x77   : > { %2367 = vrot.lane.b32.xlu0 %v8579_v52, %s12089_s25  ;;  %1216 = vrot.lane.b32.xlu1 %v2233_v58, %s12090_s29 }
  0x7b   : > { %833 = vrot.lane.b32.xlu0 %v1849_v56, %s12088_s15  ;;  %2753 = vrot.lane.b32.xlu1 %v8518_v33, %s12091_s12  ;;  %v456_v56 = vld [vmem:[%s8455_s14 + $0xb0] sm:$0xff] }
  0x7c   : > { %521 = vst.msk [vmem:[#allocation2 + $0x101] sm:$0xff] %vm384_vm0, %v456_v56 }
  0x7f   : > { %2369 = vrot.lane.b32.xlu0 %v8593_v57, %s12089_s25  ;;  %1601 = vrot.lane.b32.xlu1 %v8508_v29, %s8230_s22 }
  0x83   : > { %1218 = vrot.lane.b32.xlu0 %v2234_v59, %s12090_s29  ;;  %3138 = vrot.lane.b32.xlu1 %v8662_v7, %s8234_s30  ;;  %v8814_v59 = vld [vmem:[#allocation2 + $0xaa] sm:$0xff] }
  0x87   : > { %2755 = vrot.lane.b32.xlu0 %v8522_v34, %s12091_s12  ;;  %1986 = vrot.lane.b32.xlu1 %v8614_v62, %s12072_s24 }
  0x8a   : > { %v1205_v13 = vpop.permute.xlu1 %1204 }
  0x8b   : > { %1603 = vrot.lane.b32.xlu0 %v8514_v32, %s8230_s22  ;;  %3523 = vrot.lane.b32.xlu1 %v8676_v9, %s12070_s16  ;;  %v820_v14 = vpop.permute.xlu0 %819  ;;  %v8750_v32 = vld [vmem:[#allocation2 + $0x92] sm:$0xff] }
  0x8c   : > { %1012 = vst.msk [vmem:[#allocation3] sm:$0xff] %vm1011_vm6, %v820_v14 }
  0x8d   : > { %1397 = vst.msk [vmem:[#allocation3] sm:$0xff] %vm1396_vm7, %v1205_v13 }
  0x8e   : > { %v1207_v15 = vpop.permute.xlu1 %1206 }
  0x8f   : > { %3140 = vrot.lane.b32.xlu0 %v8678_v10, %s8234_s30  ;;  %1988 = vrot.lane.b32.xlu1 %v8630_v2, %s12072_s24  ;;  %v822_v16 = vpop.permute.xlu0 %821 }
  0x90   : > { %1013 = vst.msk [vmem:[#allocation3 + $0x8] sm:$0xff] %vm1011_vm6, %v822_v16  ;;  %v8859_v16 = vld [vmem:[#allocation2 + $0xb9] sm:$0xff] }
  0x91   : > { %1398 = vst.msk [vmem:[#allocation3 + $0x8] sm:$0xff] %vm1396_vm7, %v1207_v15 }
  0x92   : > { %v824_v19 = vpop.permute.xlu1 %823 }
  0x93   : > { %835 = vrot.lane.b32.xlu0 %v8555_v44, %s12088_s15  ;;  %3525 = vrot.lane.b32.xlu1 %v8690_v12, %s12070_s16  ;;  %1014 = vst.msk [vmem:[#allocation3 + $0x10] sm:$0xff] %vm1011_vm6, %v824_v19 }
  0x97   : > { %2371 = vrot.lane.b32.xlu0 %v8628_v1, %s12089_s25  ;;  %1220 = vrot.lane.b32.xlu1 %v8579_v52, %s12090_s29  ;;  %v8795_v52 = vld [vmem:[#allocation2 + $0xa2] sm:$0xff] }
  0x9b   : > { %837 = vrot.lane.b32.xlu0 %v8581_v53, %s12088_s15  ;;  %2757 = vrot.lane.b32.xlu1 %v8530_v35, %s12091_s12  ;;  %v8797_v53 = vld [vmem:[#allocation2 + $0xa9] sm:$0xff] }
  0x9f   : > { %2373 = vrot.lane.b32.xlu0 %v8639_v3, %s12089_s25  ;;  %1605 = vrot.lane.b32.xlu1 %v8518_v33, %s8230_s22 }
  0xa1   : > { %v1590_v20 = vpop.permute.xlu0 %1589  ;;  %v1592_v22 = vpop.permute.xlu1 %1591 }
  0xa2   : > { %1782 = vst.msk [vmem:[#allocation3] sm:$0xff] %vm1781_vm8, %v1590_v20  ;;  %1783 = vst.msk [vmem:[#allocation3 + $0x8] sm:$0xff] %vm1781_vm8, %v1592_v22 }
  0xa3   : > { %1222 = vrot.lane.b32.xlu0 %v8593_v57, %s12090_s29  ;;  %3142 = vrot.lane.b32.xlu1 %v8720_v21, %s8234_s30 }
  0xa5   : > { %v1975_v23 = vpop.permute.xlu0 %1974  ;;  %v2360_v24 = vpop.permute.xlu1 %2359 }
  0xa6   : > { %2167 = vst.msk [vmem:[#allocation3] sm:$0xff] %vm2166_vm9, %v1975_v23  ;;  %v8874_v23 = vld [vmem:[#allocation2 + $0xba] sm:$0xff] }
  0xa7   : > { %2759 = vrot.lane.b32.xlu0 %v8534_v38, %s12091_s12  ;;  %2552 = vst.msk [vmem:[#allocation3] sm:$0xff] %vm2551_vm10, %v2360_v24  ;;  %1990 = vrot.lane.b32.xlu1 %v8662_v7, %s12072_s24 }
  0xa9   : > { %v1977_v25 = vpop.permute.xlu0 %1976  ;;  %v1209_v28 = vpop.permute.xlu1 %1208 }
  0xaa   : > { %2168 = vst.msk [vmem:[#allocation3 + $0x8] sm:$0xff] %vm2166_vm9, %v1977_v25 }
  0xab   : > { %1607 = vrot.lane.b32.xlu0 %v8522_v34, %s8230_s22  ;;  %1399 = vst.msk [vmem:[#allocation3 + $0x10] sm:$0xff] %vm1396_vm7, %v1209_v28  ;;  %3527 = vrot.lane.b32.xlu1 %v8734_v26, %s12070_s16  ;;  %v458_v28 = vld [vmem:[%s8455_s14 + $0xc0] sm:$0xff] }
  0xac   : > { %523 = vst.msk [vmem:[#allocation2 + $0x119] sm:$0xff] %vm384_vm0, %v458_v28 }
  0xad   : > { %v826_v29 = vpop.permute.xlu0 %825  ;;  %v2746_v30 = vpop.permute.xlu1 %2745 }
  0xae   : > { %1015 = vst.msk [vmem:[#allocation3 + $0x18] sm:$0xff] %vm1011_vm6, %v826_v29 }
  0xaf   : > { %3144 = vrot.lane.b32.xlu0 %v8736_v27, %s8234_s30  ;;  %2938 = vst.msk [vmem:[#allocation3] sm:$0xff] %vm2937_vm11, %v2746_v30  ;;  %1992 = vrot.lane.b32.xlu1 %v8678_v10, %s12072_s24 }
  0xb1   : > { %v2362_v31 = vpop.permute.xlu0 %2361  ;;  %v1594_v33 = vpop.permute.xlu1 %1593 }
  0xb2   : > { %2553 = vst.msk [vmem:[#allocation3 + $0x8] sm:$0xff] %vm2551_vm10, %v2362_v31 }
  0xb3   : > { %839 = vrot.lane.b32.xlu0 %v8614_v62, %s12088_s15  ;;  %1784 = vst.msk [vmem:[#allocation3 + $0x10] sm:$0xff] %vm1781_vm8, %v1594_v33  ;;  %3529 = vrot.lane.b32.xlu1 %v8750_v32, %s12070_s16  ;;  %v459_v33 = vld [vmem:[%s8455_s14 + $0xc8] sm:$0xff] }
  0xb4   : > { %524 = vst.msk [vmem:[#allocation2 + $0x121] sm:$0xff] %vm384_vm0, %v459_v33 }
  0xb5   : > { %v1211_v34 = vpop.permute.xlu0 %1210  ;;  %v3131_v37 = vpop.permute.xlu1 %3130 }
  0xb6   : > { %1400 = vst.msk [vmem:[#allocation3 + $0x18] sm:$0xff] %vm1396_vm7, %v1211_v34 }
  0xb7   : > { %2375 = vrot.lane.b32.xlu0 %v8676_v9, %s12089_s25  ;;  %3323 = vst.msk [vmem:[#allocation3] sm:$0xff] %vm3322_vm12, %v3131_v37  ;;  %1224 = vrot.lane.b32.xlu1 %v8628_v1, %s12090_s29 }
  0xb9   : > { %v2748_v39 = vpop.permute.xlu0 %2747  ;;  %v1979_v40 = vpop.permute.xlu1 %1978 }
  0xba   : > { %2939 = vst.msk [vmem:[#allocation3 + $0x8] sm:$0xff] %vm2937_vm11, %v2748_v39 }
  0xbb   : > { %841 = vrot.lane.b32.xlu0 %v8630_v2, %s12088_s15  ;;  %2169 = vst.msk [vmem:[#allocation3 + $0x10] sm:$0xff] %vm2166_vm9, %v1979_v40  ;;  %2761 = vrot.lane.b32.xlu1 %v8549_v43, %s12091_s12 }
  0xbd   : > { %v1596_v41 = vpop.permute.xlu0 %1595  ;;  %v3516_v44 = vpop.permute.xlu1 %3515 }
  0xbe   : > { %1785 = vst.msk [vmem:[#allocation3 + $0x18] sm:$0xff] %vm1781_vm8, %v1596_v41  ;;  %v8921_v41 = vld [vmem:[#allocation2 + $0xd1] sm:$0xff] }
  0xbf   : > { %2377 = vrot.lane.b32.xlu0 %v8690_v12, %s12089_s25  ;;  %3708 = vst.msk [vmem:[#allocation3] sm:$0xff] %vm3707_vm13, %v3516_v44  ;;  %1609 = vrot.lane.b32.xlu1 %v8530_v35, %s8230_s22 }
  0xc1   : > { %v3133_v46 = vpop.permute.xlu0 %3132  ;;  %v1981_v48 = vpop.permute.xlu1 %1980 }
  0xc2   : > { %3324 = vst.msk [vmem:[#allocation3 + $0x8] sm:$0xff] %vm3322_vm12, %v3133_v46  ;;  %v460_v46 = vld [vmem:[%s8455_s14 + $0xd0] sm:$0xff] }
  0xc3   : > { %1226 = vrot.lane.b32.xlu0 %v8639_v3, %s12090_s29  ;;  %2170 = vst.msk [vmem:[#allocation3 + $0x18] sm:$0xff] %vm2166_vm9, %v1981_v48  ;;  %3146 = vrot.lane.b32.xlu1 %v8780_v47, %s8234_s30 }
  0xc4   : > { %525 = vst.msk [vmem:[#allocation2 + $0x129] sm:$0xff] %vm384_vm0, %v460_v46 }
  0xc5   : > { %v828_v49 = vpop.permute.xlu0 %827  ;;  %v3518_v35 = vpop.permute.xlu1 %3517 }
  0xc6   : > { %1016 = vst.msk [vmem:[#allocation3 + $0x20] sm:$0xff] %vm1011_vm6, %v828_v49  ;;  %v3772_v51 = vld [vmem:[#allocation3] sm:$0xff] }
  0xc7   : > { %2763 = vrot.lane.b32.xlu0 %v8557_v45, %s12091_s12  ;;  %3709 = vst.msk [vmem:[#allocation3 + $0x8] sm:$0xff] %vm3707_vm13, %v3518_v35  ;;  %7605 = vmatprep.mubr.msk.f32.mxu0 %vm3847_vm14, %v3772_v51  ;;  %v8938_v35 = vld [vmem:[#allocation2 + $0xd2] sm:$0xff] }
  0xc8   : > { %1994 = vrot.lane.b32.xlu1 %v8720_v21, %s12072_s24 }
  0xc9   : > { %v2364_v50 = vpop.permute.xlu0 %2363  ;;  %v1213_v54 = vpop.permute.xlu1 %1212 }
  0xca   : > { %2554 = vst.msk [vmem:[#allocation3 + $0x10] sm:$0xff] %vm2551_vm10, %v2364_v50 }
  0xcb   : > { %1611 = vrot.lane.b32.xlu0 %v8534_v38, %s8230_s22  ;;  %1401 = vst.msk [vmem:[#allocation3 + $0x20] sm:$0xff] %vm1396_vm7, %v1213_v54 }
  0xcc   : > { %3531 = vrot.lane.b32.xlu1 %v8795_v52, %s12070_s16 }
  0xcd   : > { %v830_v55 = vpop.permute.xlu0 %829  ;;  %v2750_v38 = vpop.permute.xlu1 %2749 }
  0xce   : > { %1017 = vst.msk [vmem:[#allocation3 + $0x28] sm:$0xff] %vm1011_vm6, %v830_v55  ;;  %v3773_v58 = vld [vmem:[#allocation3 + $0x8] sm:$0xff] }
  0xcf   : > { %3148 = vrot.lane.b32.xlu0 %v8797_v53, %s8234_s30  ;;  %2940 = vst.msk [vmem:[#allocation3 + $0x10] sm:$0xff] %vm2937_vm11, %v2750_v38  ;;  %7606 = vmatmul.mubr.msk.f32.vlgmr.msra.gmra.mrb[0].mxu0 %vm3847_vm14, %v3773_v58  ;;  %v461_v38 = vld [vmem:[%s8455_s14 + $0xd8] sm:$0xff]  ;;  %v8968_v58 = vld [vmem:[#allocation2 + $0xe0] sm:$0xff] }
  0xd0   : > { %1996 = vrot.lane.b32.xlu1 %v8736_v27, %s12072_s24  ;;  %526 = vst.msk [vmem:[#allocation2 + $0x131] sm:$0xff] %vm384_vm0, %v461_v38  ;;  %v9161_v38 = vld [vmem:[#allocation2 + $0x109] sm:$0xff] }
  0xd1   : > { %v2366_v57 = vpop.permute.xlu0 %2365  ;;  %v1598_v61 = vpop.permute.xlu1 %1597 }
  0xd2   : > { %2555 = vst.msk [vmem:[#allocation3 + $0x18] sm:$0xff] %vm2551_vm10, %v2366_v57 }
  0xd3   : > { %843 = vrot.lane.b32.xlu0 %v8662_v7, %s12088_s15  ;;  %1786 = vst.msk [vmem:[#allocation3 + $0x20] sm:$0xff] %vm1781_vm8, %v1598_v61 }
  0xd4   : > { %3533 = vrot.lane.b32.xlu1 %v8814_v59, %s12070_s16 }
  0xd5   : > { %v1215_v62 = vpop.permute.xlu0 %1214  ;;  %v3135_v1 = vpop.permute.xlu1 %3134 }
  0xd6   : > { %1402 = vst.msk [vmem:[#allocation3 + $0x28] sm:$0xff] %vm1396_vm7, %v1215_v62 }
  0xd7   : > { %2379 = vrot.lane.b32.xlu0 %v8734_v26, %s12089_s25  ;;  %3325 = vst.msk [vmem:[#allocation3 + $0x10] sm:$0xff] %vm3322_vm12, %v3135_v1 }
  0xd8   : > { %1228 = vrot.lane.b32.xlu1 %v8676_v9, %s12090_s29 }
  0xd9   : > { %v2752_v2 = vpop.permute.xlu0 %2751  ;;  %v1983_v3 = vpop.permute.xlu1 %1982 }
  0xda   : > { %2941 = vst.msk [vmem:[#allocation3 + $0x18] sm:$0xff] %vm2937_vm11, %v2752_v2  ;;  %v8991_v2 = vld [vmem:[#allocation2 + $0xda] sm:$0xff] }
  0xdb   : > { %845 = vrot.lane.b32.xlu0 %v8678_v10, %s12088_s15  ;;  %2171 = vst.msk [vmem:[#allocation3 + $0x20] sm:$0xff] %vm2166_vm9, %v1983_v3  ;;  %v8842_v10 = vld [vmem:[#allocation2 + $0xb1] sm:$0xff]  ;;  %v8993_v3 = vld [vmem:[#allocation2 + $0xe1] sm:$0xff] }
  0xdc   : > { %2765 = vrot.lane.b32.xlu1 %v8602_v60, %s12091_s12 }
  0xdd   : > { %v1600_v4 = vpop.permute.xlu0 %1599  ;;  %v3520_v7 = vpop.permute.xlu1 %3519 }
  0xde   : > { %1787 = vst.msk [vmem:[#allocation3 + $0x28] sm:$0xff] %vm1781_vm8, %v1600_v4 }
  0xdf   : > { %2381 = vrot.lane.b32.xlu0 %v8750_v32, %s12089_s25  ;;  %3710 = vst.msk [vmem:[#allocation3 + $0x10] sm:$0xff] %vm3707_vm13, %v3520_v7 }
  0xe0   : > { %1613 = vrot.lane.b32.xlu1 %v8549_v43, %s8230_s22 }
  0xe1   : > { %v3137_v9 = vpop.permute.xlu0 %3136  ;;  %v1985_v11 = vpop.permute.xlu1 %1984 }
  0xe2   : > { %3326 = vst.msk [vmem:[#allocation3 + $0x18] sm:$0xff] %vm3322_vm12, %v3137_v9 }
  0xe3   : > { %1230 = vrot.lane.b32.xlu0 %v8690_v12, %s12090_s29  ;;  %2172 = vst.msk [vmem:[#allocation3 + $0x28] sm:$0xff] %vm2166_vm9, %v1985_v11  ;;  %v8857_v12 = vld [vmem:[#allocation2 + $0xb2] sm:$0xff]  ;;  %v9008_v11 = vld [vmem:[#allocation2 + $0xe2] sm:$0xff] }
  0xe4   : > { %3150 = vrot.lane.b32.xlu1 %v8842_v10, %s8234_s30 }
  0xe5   : > { %v832_v13 = vpop.permute.xlu0 %831  ;;  %v3522_v14 = vpop.permute.xlu1 %3521 }
  0xe6   : > { %1018 = vst.msk [vmem:[#allocation3 + $0x30] sm:$0xff] %vm1011_vm6, %v832_v13  ;;  %v3774_v43 = vld [vmem:[#allocation3 + $0x10] sm:$0xff] }
  0xe7   : > { %2767 = vrot.lane.b32.xlu0 %v8616_v63, %s12091_s12  ;;  %3711 = vst.msk [vmem:[#allocation3 + $0x18] sm:$0xff] %vm3707_vm13, %v3522_v14  ;;  %7608 = vmatprep.mubr.msk.f32.mxu0 %vm3847_vm14, %v3774_v43 }
  0xe8   : > { %1998 = vrot.lane.b32.xlu1 %v8780_v47, %s12072_s24 }
  0xe9   : > { %v2368_v15 = vpop.permute.xlu0 %2367  ;;  %v1217_v18 = vpop.permute.xlu1 %1216 }
  0xea   : > { %2556 = vst.msk [vmem:[#allocation3 + $0x20] sm:$0xff] %vm2551_vm10, %v2368_v15  ;;  %v462_v15 = vld [vmem:[%s8455_s14 + $0xe0] sm:$0xff] }
  0xeb   : > { %1615 = vrot.lane.b32.xlu0 %v8557_v45, %s8230_s22  ;;  %1403 = vst.msk [vmem:[#allocation3 + $0x30] sm:$0xff] %vm1396_vm7, %v1217_v18  ;;  %v9024_v18 = vld [vmem:[#allocation2 + $0xf0] sm:$0xff] }
  0xec   : > { %3535 = vrot.lane.b32.xlu1 %v8857_v12, %s12070_s16  ;;  %527 = vst.msk [vmem:[#allocation2 + $0x141] sm:$0xff] %vm384_vm0, %v462_v15 }
  0xed   : > { %v834_v19 = vpop.permute.xlu0 %833  ;;  %v2754_v20 = vpop.permute.xlu1 %2753 }
  0xee   : > { %1019 = vst.msk [vmem:[#allocation3 + $0x38] sm:$0xff] %vm1011_vm6, %v834_v19  ;;  %v3775_v45 = vld [vmem:[#allocation3 + $0x18] sm:$0xff] }
  0xef   : > { %3152 = vrot.lane.b32.xlu0 %v8859_v16, %s8234_s30  ;;  %2942 = vst.msk [vmem:[#allocation3 + $0x20] sm:$0xff] %vm2937_vm11, %v2754_v20  ;;  %7609 = vmatmul.mubr.msk.f32.gmra.mrb[2].mxu0 %vm3847_vm14, %v3775_v45 }
  0xf0   : > { %2000 = vrot.lane.b32.xlu1 %v8797_v53, %s12072_s24 }
  0xf1   : > { %v2370_v22 = vpop.permute.xlu0 %2369  ;;  %v1602_v24 = vpop.permute.xlu1 %1601 }
  0xf2   : > { %2557 = vst.msk [vmem:[#allocation3 + $0x28] sm:$0xff] %vm2551_vm10, %v2370_v22  ;;  %v463_v22 = vld [vmem:[%s8455_s14 + $0xe8] sm:$0xff] }
  0xf3   : > { %847 = vrot.lane.b32.xlu0 %v8720_v21, %s12088_s15  ;;  %1788 = vst.msk [vmem:[#allocation3 + $0x30] sm:$0xff] %vm1781_vm8, %v1602_v24  ;;  %v9042_v24 = vld [vmem:[#allocation2 + $0xf8] sm:$0xff] }
  0xf4   : > { %3537 = vrot.lane.b32.xlu1 %v8874_v23, %s12070_s16  ;;  %528 = vst.msk [vmem:[#allocation2 + $0x149] sm:$0xff] %vm384_vm0, %v463_v22 }
  0xf5   : > { %v1219_v25 = vpop.permute.xlu0 %1218  ;;  %v3139_v29 = vpop.permute.xlu1 %3138 }
  0xf6   : > { %1404 = vst.msk [vmem:[#allocation3 + $0x38] sm:$0xff] %vm1396_vm7, %v1219_v25 }
  0xf7   : > { %2383 = vrot.lane.b32.xlu0 %v8795_v52, %s12089_s25  ;;  %3327 = vst.msk [vmem:[#allocation3 + $0x20] sm:$0xff] %vm3322_vm12, %v3139_v29 }
  0xf8   : > { %1232 = vrot.lane.b32.xlu1 %v8734_v26, %s12090_s29 }
  0xf9   : > { %v2756_v21 = vpop.permute.xlu0 %2755  ;;  %v1987_v30 = vpop.permute.xlu1 %1986 }
  0xfa   : > { %2943 = vst.msk [vmem:[#allocation3 + $0x28] sm:$0xff] %vm2937_vm11, %v2756_v21  ;;  %v9057_v21 = vld [vmem:[#allocation2 + $0xf2] sm:$0xff] }
  0xfb   : > { %849 = vrot.lane.b32.xlu0 %v8736_v27, %s12088_s15  ;;  %2173 = vst.msk [vmem:[#allocation3 + $0x30] sm:$0xff] %vm2166_vm9, %v1987_v30  ;;  %v8904_v27 = vld [vmem:[#allocation2 + $0xc9] sm:$0xff]  ;;  %v9059_v30 = vld [vmem:[#allocation2 + $0xf9] sm:$0xff] }
  0xfc   : > { %2769 = vrot.lane.b32.xlu1 %v8649_v5, %s12091_s12 }
  0xfd   : > { %v1604_v31 = vpop.permute.xlu0 %1603  ;;  %v3524_v34 = vpop.permute.xlu1 %3523 }
  0xfe   : > { %1789 = vst.msk [vmem:[#allocation3 + $0x38] sm:$0xff] %vm1781_vm8, %v1604_v31 }
  0xff   : > { %2385 = vrot.lane.b32.xlu0 %v8814_v59, %s12089_s25  ;;  %3712 = vst.msk [vmem:[#allocation3 + $0x20] sm:$0xff] %vm3707_vm13, %v3524_v34  ;;  %v464_v34 = vld [vmem:[%s8455_s14 + $0xf0] sm:$0xff] }
 0x100   : > { %1617 = vrot.lane.b32.xlu1 %v8602_v60, %s8230_s22  ;;  %529 = vst.msk [vmem:[#allocation2 + $0x151] sm:$0xff] %vm384_vm0, %v464_v34 }
 0x101   : > { %v3141_v26 = vpop.permute.xlu0 %3140  ;;  %v1989_v36 = vpop.permute.xlu1 %1988 }
 0x102   : > { %3328 = vst.msk [vmem:[#allocation3 + $0x28] sm:$0xff] %vm3322_vm12, %v3141_v26 }
 0x103   : > { %1234 = vrot.lane.b32.xlu0 %v8750_v32, %s12090_s29  ;;  %2174 = vst.msk [vmem:[#allocation3 + $0x38] sm:$0xff] %vm2166_vm9, %v1989_v36  ;;  %v8919_v32 = vld [vmem:[#allocation2 + $0xca] sm:$0xff] }
 0x104   : > { %3154 = vrot.lane.b32.xlu1 %v8904_v27, %s8234_s30 }
 0x105   : > { %v836_v37 = vpop.permute.xlu0 %835  ;;  %v3526_v39 = vpop.permute.xlu1 %3525 }
 0x106   : > { %1020 = vst.msk [vmem:[#allocation3 + $0x40] sm:$0xff] %vm1011_vm6, %v836_v37  ;;  %v3776_v40 = vld [vmem:[#allocation3 + $0x20] sm:$0xff] }
 0x107   : > { %2771 = vrot.lane.b32.xlu0 %v8664_v8, %s12091_s12  ;;  %3713 = vst.msk [vmem:[#allocation3 + $0x28] sm:$0xff] %vm3707_vm13, %v3526_v39  ;;  %7611 = vmatprep.mubr.msk.f32.mxu0 %vm3847_vm14, %v3776_v40  ;;  %v9076_v39 = vld [vmem:[#allocation2 + $0xfa] sm:$0xff] }
 0x108   : > { %2002 = vrot.lane.b32.xlu1 %v8842_v10, %s12072_s24 }
 0x109   : > { %v2372_v60 = vpop.permute.xlu0 %2371  ;;  %v1221_v42 = vpop.permute.xlu1 %1220 }
 0x10a   : > { %2558 = vst.msk [vmem:[#allocation3 + $0x30] sm:$0xff] %vm2551_vm10, %v2372_v60 }
 0x10b   : > { %1619 = vrot.lane.b32.xlu0 %v8616_v63, %s8230_s22  ;;  %1405 = vst.msk [vmem:[#allocation3 + $0x40] sm:$0xff] %vm1396_vm7, %v1221_v42 }
 0x10c   : > { %3539 = vrot.lane.b32.xlu1 %v8919_v32, %s12070_s16 }
 0x10d   : > { %v838_v44 = vpop.permute.xlu0 %837  ;;  %v2758_v63 = vpop.permute.xlu1 %2757 }
 0x10e   : > { %1021 = vst.msk [vmem:[#allocation3 + $0x48] sm:$0xff] %vm1011_vm6, %v838_v44  ;;  %v3777_v49 = vld [vmem:[#allocation3 + $0x28] sm:$0xff] }
 0x10f   : > { %3156 = vrot.lane.b32.xlu0 %v8921_v41, %s8234_s30  ;;  %2944 = vst.msk [vmem:[#allocation3 + $0x30] sm:$0xff] %vm2937_vm11, %v2758_v63  ;;  %7612 = vmatmul.mubr.msk.f32.gmra.mrb[4].mxu0 %vm3847_vm14, %v3777_v49 }
 0x110   : > { %2004 = vrot.lane.b32.xlu1 %v8859_v16, %s12072_s24 }
 0x111   : > { %v2374_v48 = vpop.permute.xlu0 %2373  ;;  %v1606_v50 = vpop.permute.xlu1 %1605 }
 0x112   : > { %2559 = vst.msk [vmem:[#allocation3 + $0x38] sm:$0xff] %vm2551_vm10, %v2374_v48  ;;  %v465_v48 = vld [vmem:[%s8455_s14 + $0xf8] sm:$0xff] }
 0x113   : > { %851 = vrot.lane.b32.xlu0 %v8780_v47, %s12088_s15  ;;  %1790 = vst.msk [vmem:[#allocation3 + $0x40] sm:$0xff] %vm1781_vm8, %v1606_v50  ;;  %v9108_v50 = vld [vmem:[#allocation2 + $0x108] sm:$0xff] }
 0x114   : > { %3541 = vrot.lane.b32.xlu1 %v8938_v35, %s12070_s16  ;;  %530 = vst.msk [vmem:[#allocation2 + $0x159] sm:$0xff] %vm384_vm0, %v465_v48  ;;  %v589_v48 = vld [vmem:[#allocation2 + $0x100] sm:$0xff] }
 0x115   : > { %v1223_v51 = vpop.permute.xlu0 %1222  ;;  %v3143_v54 = vpop.permute.xlu1 %3142  ;;  %653 = vst.msk [vmem:[#allocation3 + $0xd0] sm:$0xff] %vm384_vm0, %v589_v48 }
 0x116   : > { %1406 = vst.msk [vmem:[#allocation3 + $0x48] sm:$0xff] %vm1396_vm7, %v1223_v51 }
 0x117   : > { %2387 = vrot.lane.b32.xlu0 %v8857_v12, %s12089_s25  ;;  %3329 = vst.msk [vmem:[#allocation3 + $0x30] sm:$0xff] %vm3322_vm12, %v3143_v54 }
 0x118   : > { %1236 = vrot.lane.b32.xlu1 %v8795_v52, %s12090_s29 }
 0x119   : > { %v2760_v55 = vpop.permute.xlu0 %2759  ;;  %v1991_v47 = vpop.permute.xlu1 %1990 }
 0x11a   : > { %2945 = vst.msk [vmem:[#allocation3 + $0x38] sm:$0xff] %vm2937_vm11, %v2760_v55 }
 0x11b   : > { %853 = vrot.lane.b32.xlu0 %v8797_v53, %s12088_s15  ;;  %2175 = vst.msk [vmem:[#allocation3 + $0x40] sm:$0xff] %vm2166_vm9, %v1991_v47  ;;  %v8966_v53 = vld [vmem:[#allocation2 + $0xd9] sm:$0xff] }
 0x11c   : > { %2773 = vrot.lane.b32.xlu1 %v8703_v17, %s12091_s12  ;;  %v9432_v48 = vld [vmem:[#allocation2 + $0x158] sm:$0xff] }
 0x11d   : > { %v1608_v56 = vpop.permute.xlu0 %1607  ;;  %v3528_v57 = vpop.permute.xlu1 %3527 }
 0x11e   : > { %1791 = vst.msk [vmem:[#allocation3 + $0x48] sm:$0xff] %vm1781_vm8, %v1608_v56  ;;  %v9159_v56 = vld [vmem:[#allocation2 + $0x102] sm:$0xff] }
 0x11f   : > { %2389 = vrot.lane.b32.xlu0 %v8874_v23, %s12089_s25  ;;  %3714 = vst.msk [vmem:[#allocation3 + $0x30] sm:$0xff] %vm3707_vm13, %v3528_v57 }
 0x120   : > { %1621 = vrot.lane.b32.xlu1 %v8649_v5, %s8230_s22 }
 0x121   : > { %v3145_v52 = vpop.permute.xlu0 %3144  ;;  %v1993_v61 = vpop.permute.xlu1 %1992 }
 0x122   : > { %3330 = vst.msk [vmem:[#allocation3 + $0x38] sm:$0xff] %vm3322_vm12, %v3145_v52 }
 0x123   : > { %1238 = vrot.lane.b32.xlu0 %v8814_v59, %s12090_s29  ;;  %2176 = vst.msk [vmem:[#allocation3 + $0x48] sm:$0xff] %vm2166_vm9, %v1993_v61 }
 0x124   : > { %3158 = vrot.lane.b32.xlu1 %v8966_v53, %s8234_s30 }
 0x125   : > { %v840_v62 = vpop.permute.xlu0 %839  ;;  %v3530_v5 = vpop.permute.xlu1 %3529 }
 0x126   : > { %1022 = vst.msk [vmem:[#allocation3 + $0x50] sm:$0xff] %vm1011_vm6, %v840_v62  ;;  %v3778_v59 = vld [vmem:[#allocation3 + $0x30] sm:$0xff] }
 0x127   : > { %2775 = vrot.lane.b32.xlu0 %v8968_v58, %s12091_s12  ;;  %3715 = vst.msk [vmem:[#allocation3 + $0x38] sm:$0xff] %vm3707_vm13, %v3530_v5  ;;  %7614 = vmatprep.mubr.msk.f32.mxu0 %vm3847_vm14, %v3778_v59 }
 0x128   : > { %2006 = vrot.lane.b32.xlu1 %v8904_v27, %s12072_s24 }
 0x129   : > { %v2376_v1 = vpop.permute.xlu0 %2375  ;;  %v1225_v4 = vpop.permute.xlu1 %1224 }
 0x12a   : > { %2560 = vst.msk [vmem:[#allocation3 + $0x40] sm:$0xff] %vm2551_vm10, %v2376_v1  ;;  %v9177_v1 = vld [vmem:[#allocation2 + $0x10a] sm:$0xff] }
 0x12b   : > { %1623 = vrot.lane.b32.xlu0 %v8664_v8, %s8230_s22  ;;  %1407 = vst.msk [vmem:[#allocation3 + $0x50] sm:$0xff] %vm1396_vm7, %v1225_v4 }
 0x12c   : > { %3543 = vrot.lane.b32.xlu1 %v8991_v2, %s12070_s16 }
 0x12d   : > { %v842_v6 = vpop.permute.xlu0 %841  ;;  %v2762_v7 = vpop.permute.xlu1 %2761 }
 0x12e   : > { %1023 = vst.msk [vmem:[#allocation3 + $0x58] sm:$0xff] %vm1011_vm6, %v842_v6  ;;  %v3779_v8 = vld [vmem:[#allocation3 + $0x38] sm:$0xff]  ;;  %v466_v6 = vld [vmem:[%s8455_s14 + $0x100] sm:$0xff] }
 0x12f   : > { %3160 = vrot.lane.b32.xlu0 %v8993_v3, %s8234_s30  ;;  %2946 = vst.msk [vmem:[#allocation3 + $0x40] sm:$0xff] %vm2937_vm11, %v2762_v7  ;;  %7615 = vmatmul.mubr.msk.f32.gmra.mrb[6].mxu0 %vm3847_vm14, %v3779_v8 }
 0x130   : > { %2008 = vrot.lane.b32.xlu1 %v8921_v41, %s12072_s24  ;;  %531 = vst.msk [vmem:[#allocation2 + $0x169] sm:$0xff] %vm384_vm0, %v466_v6 }
 0x131   : > { %v2378_v9 = vpop.permute.xlu0 %2377  ;;  %v1610_v13 = vpop.permute.xlu1 %1609 }
 0x132   : > { %2561 = vst.msk [vmem:[#allocation3 + $0x48] sm:$0xff] %vm2551_vm10, %v2378_v9  ;;  %v9193_v9 = vld [vmem:[#allocation2 + $0x118] sm:$0xff] }
 0x133   : > { %855 = vrot.lane.b32.xlu0 %v8842_v10, %s12088_s15  ;;  %1792 = vst.msk [vmem:[#allocation3 + $0x50] sm:$0xff] %vm1781_vm8, %v1610_v13 }
 0x134   : > { %3545 = vrot.lane.b32.xlu1 %v9008_v11, %s12070_s16 }
 0x135   : > { %v1227_v14 = vpop.permute.xlu0 %1226  ;;  %v3147_v43 = vpop.permute.xlu1 %3146 }
 0x136   : > { %1408 = vst.msk [vmem:[#allocation3 + $0x58] sm:$0xff] %vm1396_vm7, %v1227_v14  ;;  %v467_v14 = vld [vmem:[%s8455_s14 + $0x108] sm:$0xff] }
 0x137   : > { %2391 = vrot.lane.b32.xlu0 %v8919_v32, %s12089_s25  ;;  %3331 = vst.msk [vmem:[#allocation3 + $0x40] sm:$0xff] %vm3322_vm12, %v3147_v43  ;;  %v9211_v43 = vld [vmem:[#allocation2 + $0x120] sm:$0xff] }
 0x138   : > { %1240 = vrot.lane.b32.xlu1 %v8857_v12, %s12090_s29  ;;  %532 = vst.msk [vmem:[#allocation2 + $0x171] sm:$0xff] %vm384_vm0, %v467_v14  ;;  %v9351_v14 = vld [vmem:[#allocation2 + $0x148] sm:$0xff] }
 0x139   : > { %v2764_v10 = vpop.permute.xlu0 %2763 }
 0x13a   : > { %2947 = vst.msk [vmem:[#allocation3 + $0x48] sm:$0xff] %vm2937_vm11, %v2764_v10  ;;  %v1995_v19 = vpop.permute.xlu1 %1994 }
 0x13b   : > { %857 = vrot.lane.b32.xlu0 %v8859_v16, %s12088_s15  ;;  %2177 = vst.msk [vmem:[#allocation3 + $0x50] sm:$0xff] %vm2166_vm9, %v1995_v19  ;;  %v9040_v16 = vld [vmem:[#allocation2 + $0xf1] sm:$0xff] }
 0x13c   : > { %2777 = vrot.lane.b32.xlu1 %v9024_v18, %s12091_s12  ;;  %v587_v19 = vld [vmem:[#allocation2 + $0xf0] sm:$0xff] }
 0x13d   : > { %v1612_v20 = vpop.permute.xlu0 %1611  ;;  %651 = vst.msk [vmem:[#allocation3 + $0xc0] sm:$0xff] %vm384_vm0, %v587_v19 }
 0x13e   : > { %1793 = vst.msk [vmem:[#allocation3 + $0x58] sm:$0xff] %vm1781_vm8, %v1612_v20  ;;  %v3532_v12 = vpop.permute.xlu1 %3531 }
 0x13f   : > { %2393 = vrot.lane.b32.xlu0 %v8938_v35, %s12089_s25  ;;  %3716 = vst.msk [vmem:[#allocation3 + $0x40] sm:$0xff] %vm3707_vm13, %v3532_v12  ;;  %v9227_v12 = vld [vmem:[#allocation2 + $0x11a] sm:$0xff] }
 0x140   : > { %1625 = vrot.lane.b32.xlu1 %v8703_v17, %s8230_s22 }
 0x141   : > { %v3149_v45 = vpop.permute.xlu0 %3148 }
 0x142   : > { %3332 = vst.msk [vmem:[#allocation3 + $0x48] sm:$0xff] %vm3322_vm12, %v3149_v45  ;;  %v1997_v25 = vpop.permute.xlu1 %1996  ;;  %v9229_v45 = vld [vmem:[#allocation2 + $0x121] sm:$0xff] }
 0x143   : > { %1242 = vrot.lane.b32.xlu0 %v8874_v23, %s12090_s29  ;;  %2178 = vst.msk [vmem:[#allocation3 + $0x58] sm:$0xff] %vm2166_vm9, %v1997_v25 }
 0x144   : > { %3162 = vrot.lane.b32.xlu1 %v9040_v16, %s8234_s30 }
 0x145   : > { %v844_v28 = vpop.permute.xlu0 %843 }
 0x146   : > { %1024 = vst.msk [vmem:[#allocation3 + $0x60] sm:$0xff] %vm1011_vm6, %v844_v28  ;;  %v3534_v17 = vpop.permute.xlu1 %3533  ;;  %v3780_v23 = vld [vmem:[#allocation3 + $0x40] sm:$0xff]  ;;  %v588_v28 = vld [vmem:[#allocation2 + $0xf8] sm:$0xff] }
 0x147   : > { %2779 = vrot.lane.b32.xlu0 %v9042_v24, %s12091_s12  ;;  %3717 = vst.msk [vmem:[#allocation3 + $0x48] sm:$0xff] %vm3707_vm13, %v3534_v17  ;;  %7617 = vmatprep.mubr.msk.f32.mxu0 %vm3847_vm14, %v3780_v23  ;;  %v468_v17 = vld [vmem:[%s8455_s14 + $0x110] sm:$0xff] }
 0x148   : > { %2010 = vrot.lane.b32.xlu1 %v8966_v53, %s12072_s24  ;;  %652 = vst.msk [vmem:[#allocation3 + $0xc8] sm:$0xff] %vm384_vm0, %v588_v28  ;;  %533 = vst.msk [vmem:[#allocation2 + $0x179] sm:$0xff] %vm384_vm0, %v468_v17  ;;  %v472_v17 = vld [vmem:[%s8455_s14 + $0x130] sm:$0xff] }
 0x149   : > { %v2380_v29 = vpop.permute.xlu0 %2379  ;;  %537 = vst.msk [vmem:[#allocation2 + $0x1a1] sm:$0xff] %vm384_vm0, %v472_v17 }
 0x14a   : > { %2562 = vst.msk [vmem:[#allocation3 + $0x50] sm:$0xff] %vm2551_vm10, %v2380_v29  ;;  %v1229_v31 = vpop.permute.xlu1 %1228 }
 0x14b   : > { %1627 = vrot.lane.b32.xlu0 %v8968_v58, %s8230_s22  ;;  %1409 = vst.msk [vmem:[#allocation3 + $0x60] sm:$0xff] %vm1396_vm7, %v1229_v31  ;;  %v586_v58 = vld [vmem:[#allocation2 + $0xe0] sm:$0xff] }
 0x14c   : > { %3547 = vrot.lane.b32.xlu1 %v9057_v21, %s12070_s16  ;;  %650 = vst.msk [vmem:[#allocation3 + $0xb8] sm:$0xff] %vm384_vm0, %v586_v58 }
 0x14d   : > { %v846_v33 = vpop.permute.xlu0 %845 }
 0x14e   : > { %1025 = vst.msk [vmem:[#allocation3 + $0x68] sm:$0xff] %vm1011_vm6, %v846_v33  ;;  %v2766_v26 = vpop.permute.xlu1 %2765  ;;  %v3781_v37 = vld [vmem:[#allocation3 + $0x48] sm:$0xff]  ;;  %v9247_v33 = vld [vmem:[#allocation2 + $0x122] sm:$0xff] }
 0x14f   : > { %3164 = vrot.lane.b32.xlu0 %v9059_v30, %s8234_s30  ;;  %2948 = vst.msk [vmem:[#allocation3 + $0x50] sm:$0xff] %vm2937_vm11, %v2766_v26  ;;  %7618 = vmatmul.mubr.msk.f32.gmra.mrb[8].mxu0 %vm3847_vm14, %v3781_v37 }
 0x150   : > { %2012 = vrot.lane.b32.xlu1 %v8993_v3, %s12072_s24 }
 0x151   : > { %v2382_v36 = vpop.permute.xlu0 %2381 }
 0x152   : > { %2563 = vst.msk [vmem:[#allocation3 + $0x58] sm:$0xff] %vm2551_vm10, %v2382_v36  ;;  %v1614_v60 = vpop.permute.xlu1 %1613 }
 0x153   : > { %859 = vrot.lane.b32.xlu0 %v8904_v27, %s12088_s15  ;;  %1794 = vst.msk [vmem:[#allocation3 + $0x60] sm:$0xff] %vm1781_vm8, %v1614_v60  ;;  %v9090_v27 = vld [vmem:[#allocation2 + $0x100] sm:$0xff] }
 0x154   : > { %3549 = vrot.lane.b32.xlu1 %v9076_v39, %s12070_s16 }
 0x155   : > { %v1231_v40 = vpop.permute.xlu0 %1230 }
 0x156   : > { %1410 = vst.msk [vmem:[#allocation3 + $0x68] sm:$0xff] %vm1396_vm7, %v1231_v40  ;;  %v3151_v42 = vpop.permute.xlu1 %3150 }
 0x157   : > { %2395 = vrot.lane.b32.xlu0 %v8991_v2, %s12089_s25  ;;  %3333 = vst.msk [vmem:[#allocation3 + $0x50] sm:$0xff] %vm3322_vm12, %v3151_v42  ;;  %v469_v42 = vld [vmem:[%s8455_s14 + $0x118] sm:$0xff] }
 0x158   : > { %1244 = vrot.lane.b32.xlu1 %v8919_v32, %s12090_s29  ;;  %534 = vst.msk [vmem:[#allocation2 + $0x181] sm:$0xff] %vm384_vm0, %v469_v42  ;;  %v9411_v42 = vld [vmem:[%s12052_s2] ss:$0 sm:$0xff] }
 0x159   : > { %v2768_v44 = vpop.permute.xlu0 %2767 }
 0x15a   : > { %2949 = vst.msk [vmem:[#allocation3 + $0x58] sm:$0xff] %vm2937_vm11, %v2768_v44  ;;  %v1999_v46 = vpop.permute.xlu1 %1998 }
 0x15b   : > { %861 = vrot.lane.b32.xlu0 %v8921_v41, %s12088_s15  ;;  %2179 = vst.msk [vmem:[#allocation3 + $0x60] sm:$0xff] %vm2166_vm9, %v1999_v46  ;;  %v9106_v41 = vld [vmem:[#allocation2 + $0x101] sm:$0xff] }
 0x15c   : > { %2781 = vrot.lane.b32.xlu1 %v9090_v27, %s12091_s12 }
 0x15d   : > { %v1616_v63 = vpop.permute.xlu0 %1615 }
 0x15e   : > { %1795 = vst.msk [vmem:[#allocation3 + $0x68] sm:$0xff] %vm1781_vm8, %v1616_v63  ;;  %v3536_v32 = vpop.permute.xlu1 %3535 }
 0x15f   : > { %2397 = vrot.lane.b32.xlu0 %v9008_v11, %s12089_s25  ;;  %3718 = vst.msk [vmem:[#allocation3 + $0x50] sm:$0xff] %vm3707_vm13, %v3536_v32 }
 0x160   : > { %1629 = vrot.lane.b32.xlu1 %v9024_v18, %s8230_s22 }
 0x161   : > { %v3153_v49 = vpop.permute.xlu0 %3152 }
 0x162   : > { %3334 = vst.msk [vmem:[#allocation3 + $0x58] sm:$0xff] %vm3322_vm12, %v3153_v49  ;;  %v2001_v51 = vpop.permute.xlu1 %2000 }
 0x163   : > { %1246 = vrot.lane.b32.xlu0 %v8938_v35, %s12090_s29  ;;  %2180 = vst.msk [vmem:[#allocation3 + $0x68] sm:$0xff] %vm2166_vm9, %v2001_v51 }
 0x164   : > { %3166 = vrot.lane.b32.xlu1 %v9106_v41, %s8234_s30 }
 0x165   : > { %v848_v54 = vpop.permute.xlu0 %847 }
 0x166   : > { %1026 = vst.msk [vmem:[#allocation3 + $0x70] sm:$0xff] %vm1011_vm6, %v848_v54  ;;  %v3538_v55 = vpop.permute.xlu1 %3537  ;;  %v3782_v35 = vld [vmem:[#allocation3 + $0x50] sm:$0xff]  ;;  %v9299_v54 = vld [vmem:[#allocation2 + $0x12a] sm:$0xff] }
 0x167   : > { %2783 = vrot.lane.b32.xlu0 %v9108_v50, %s12091_s12  ;;  %3719 = vst.msk [vmem:[#allocation3 + $0x58] sm:$0xff] %vm3707_vm13, %v3538_v55  ;;  %7620 = vmatprep.mubr.msk.f32.mxu0 %vm3847_vm14, %v3782_v35  ;;  %v9301_v55 = vld [vmem:[#allocation2 + $0x131] sm:$0xff]  ;;  %v590_v35 = vld [vmem:[#allocation2 + $0x108] sm:$0xff] }
 0x168   : > { %2014 = vrot.lane.b32.xlu1 %v9040_v16, %s12072_s24  ;;  %654 = vst.msk [vmem:[#allocation3 + $0xd8] sm:$0xff] %vm384_vm0, %v590_v35 }
 0x169   : > { %v2384_v47 = vpop.permute.xlu0 %2383 }
 0x16a   : > { %2564 = vst.msk [vmem:[#allocation3 + $0x60] sm:$0xff] %vm2551_vm10, %v2384_v47  ;;  %v1233_v57 = vpop.permute.xlu1 %1232 }
 0x16b   : > { %1631 = vrot.lane.b32.xlu0 %v9042_v24, %s8230_s22  ;;  %1411 = vst.msk [vmem:[#allocation3 + $0x70] sm:$0xff] %vm1396_vm7, %v1233_v57 }
 0x16c   : > { %3551 = vrot.lane.b32.xlu1 %v9159_v56, %s12070_s16 }
 0x16d   : > { %v850_v52 = vpop.permute.xlu0 %849 }
 0x16e   : > { %1027 = vst.msk [vmem:[#allocation3 + $0x78] sm:$0xff] %vm1011_vm6, %v850_v52  ;;  %v2770_v61 = vpop.permute.xlu1 %2769  ;;  %v3783_v5 = vld [vmem:[#allocation3 + $0x58] sm:$0xff] }
 0x16f   : > { %3168 = vrot.lane.b32.xlu0 %v9161_v38, %s8234_s30  ;;  %2950 = vst.msk [vmem:[#allocation3 + $0x60] sm:$0xff] %vm2937_vm11, %v2770_v61  ;;  %7621 = vmatmul.mubr.msk.f32.gmra.mrb[10].mxu0 %vm3847_vm14, %v3783_v5 }
 0x170   : > { %2016 = vrot.lane.b32.xlu1 %v9059_v30, %s12072_s24 }
 0x171   : > { %v2386_v62 = vpop.permute.xlu0 %2385 }
 0x172   : > { %2565 = vst.msk [vmem:[#allocation3 + $0x68] sm:$0xff] %vm2551_vm10, %v2386_v62  ;;  %v1618_v59 = vpop.permute.xlu1 %1617  ;;  %v9317_v62 = vld [vmem:[#allocation2 + $0x132] sm:$0xff] }
 0x173   : > { %863 = vrot.lane.b32.xlu0 %v8966_v53, %s12088_s15  ;;  %1796 = vst.msk [vmem:[#allocation3 + $0x70] sm:$0xff] %vm1781_vm8, %v1618_v59 }
 0x174   : > { %3553 = vrot.lane.b32.xlu1 %v9177_v1, %s12070_s16 }
 0x175   : > { %v1235_v4 = vpop.permute.xlu0 %1234 }
 0x176   : > { %1412 = vst.msk [vmem:[#allocation3 + $0x78] sm:$0xff] %vm1396_vm7, %v1235_v4  ;;  %v3155_v7 = vpop.permute.xlu1 %3154  ;;  %v470_v4 = vld [vmem:[%s8455_s14 + $0x120] sm:$0xff] }
 0x177   : > { %2399 = vrot.lane.b32.xlu0 %v9057_v21, %s12089_s25  ;;  %3335 = vst.msk [vmem:[#allocation3 + $0x60] sm:$0xff] %vm3322_vm12, %v3155_v7  ;;  %v9333_v7 = vld [vmem:[#allocation2 + $0x140] sm:$0xff] }
 0x178   : > { %1248 = vrot.lane.b32.xlu1 %v8991_v2, %s12090_s29  ;;  %535 = vst.msk [vmem:[#allocation2 + $0x191] sm:$0xff] %vm384_vm0, %v470_v4 }
 0x179   : > { %v2772_v53 = vpop.permute.xlu0 %2771 }
 0x17a   : > { %2951 = vst.msk [vmem:[#allocation3 + $0x68] sm:$0xff] %vm2937_vm11, %v2772_v53  ;;  %v2003_v8 = vpop.permute.xlu1 %2002 }
 0x17b   : > { %865 = vrot.lane.b32.xlu0 %v8993_v3, %s12088_s15  ;;  %2181 = vst.msk [vmem:[#allocation3 + $0x70] sm:$0xff] %vm2166_vm9, %v2003_v8  ;;  %v9209_v3 = vld [vmem:[#allocation2 + $0x119] sm:$0xff]  ;;  %v471_v8 = vld [vmem:[%s8455_s14 + $0x128] sm:$0xff] }
 0x17c   : > { %2785 = vrot.lane.b32.xlu1 %v9193_v9, %s12091_s12  ;;  %536 = vst.msk [vmem:[#allocation2 + $0x199] sm:$0xff] %vm384_vm0, %v471_v8  ;;  %v9456_v8 = vld [vmem:[#allocation2 + $0x159] sm:$0xff] }
 0x17d   : > { %v1620_v13 = vpop.permute.xlu0 %1619 }
 0x17e   : > { %1797 = vst.msk [vmem:[#allocation3 + $0x78] sm:$0xff] %vm1781_vm8, %v1620_v13  ;;  %v3540_v2 = vpop.permute.xlu1 %3539  ;;  %v9349_v13 = vld [vmem:[#allocation2 + $0x141] sm:$0xff] }
 0x17f   : > { %2401 = vrot.lane.b32.xlu0 %v9076_v39, %s12089_s25  ;;  %3720 = vst.msk [vmem:[#allocation3 + $0x60] sm:$0xff] %vm3707_vm13, %v3540_v2 }
 0x180   : > { %1633 = vrot.lane.b32.xlu1 %v9090_v27, %s8230_s22  ;;  %v9279_v27 = vld [vmem:[#allocation2 + $0x130] sm:$0xff] }
 0x181   : > { %v3157_v15 = vpop.permute.xlu0 %3156 }
 0x182   : > { %3336 = vst.msk [vmem:[#allocation3 + $0x68] sm:$0xff] %vm3322_vm12, %v3157_v15  ;;  %v2005_v10 = vpop.permute.xlu1 %2004 }
 0x183   : > { %1250 = vrot.lane.b32.xlu0 %v9008_v11, %s12090_s29  ;;  %2182 = vst.msk [vmem:[#allocation3 + $0x78] sm:$0xff] %vm2166_vm9, %v2005_v10 }
 0x184   : > { %3170 = vrot.lane.b32.xlu1 %v9209_v3, %s8234_s30 }
 0x185   : > { %v852_v18 = vpop.permute.xlu0 %851 }
 0x186   : > { %1028 = vst.msk [vmem:[#allocation3 + $0x80] sm:$0xff] %vm1011_vm6, %v852_v18  ;;  %v3542_v11 = vpop.permute.xlu1 %3541  ;;  %v3784_v22 = vld [vmem:[#allocation3 + $0x60] sm:$0xff] }
 0x187   : > { %2787 = vrot.lane.b32.xlu0 %v9211_v43, %s12091_s12  ;;  %3721 = vst.msk [vmem:[#allocation3 + $0x68] sm:$0xff] %vm3707_vm13, %v3542_v11  ;;  %7623 = vmatprep.mubr.msk.f32.mxu0 %vm3847_vm14, %v3784_v22  ;;  %v9373_v22 = vld [vmem:[#allocation2 + $0x149] sm:$0xff] }
 0x188   : > { %2018 = vrot.lane.b32.xlu1 %v9106_v41, %s12072_s24 }
 0x189   : > { %v2388_v20 = vpop.permute.xlu0 %2387 }
 0x18a   : > { %2566 = vst.msk [vmem:[#allocation3 + $0x70] sm:$0xff] %vm2551_vm10, %v2388_v20  ;;  %v1237_v24 = vpop.permute.xlu1 %1236  ;;  %v9371_v20 = vld [vmem:[#allocation2 + $0x142] sm:$0xff] }
 0x18b   : > { %1635 = vrot.lane.b32.xlu0 %v9108_v50, %s8230_s22  ;;  %1413 = vst.msk [vmem:[#allocation3 + $0x80] sm:$0xff] %vm1396_vm7, %v1237_v24 }
 0x18c   : > { %3555 = vrot.lane.b32.xlu1 %v9227_v12, %s12070_s16 }
 0x18d   : > { %v854_v25 = vpop.permute.xlu0 %853 }
 0x18e   : > { %1029 = vst.msk [vmem:[#allocation3 + $0x88] sm:$0xff] %vm1011_vm6, %v854_v25  ;;  %v2774_v29 = vpop.permute.xlu1 %2773  ;;  %v3785_v31 = vld [vmem:[#allocation3 + $0x68] sm:$0xff]  ;;  %v592_v25 = vld [vmem:[#allocation2 + $0x120] sm:$0xff] }
 0x18f   : > { %3172 = vrot.lane.b32.xlu0 %v9229_v45, %s8234_s30  ;;  %2952 = vst.msk [vmem:[#allocation3 + $0x70] sm:$0xff] %vm2937_vm11, %v2774_v29  ;;  %7624 = vmatmul.mubr.msk.f32.gmra.mrb[12].mxu0 %vm3847_vm14, %v3785_v31 }
 0x190   : > { %2020 = vrot.lane.b32.xlu1 %v9161_v38, %s12072_s24  ;;  %656 = vst.msk [vmem:[#allocation3 + $0xe8] sm:$0xff] %vm384_vm0, %v592_v25  ;;  %v9480_v25 = vld [vmem:[#allocation2 + $0x15a] sm:$0xff] }
 0x191   : > { %v2390_v23 = vpop.permute.xlu0 %2389 }
 0x192   : > { %2567 = vst.msk [vmem:[#allocation3 + $0x78] sm:$0xff] %vm2551_vm10, %v2390_v23  ;;  %v1622_v34 = vpop.permute.xlu1 %1621 }
 0x193   : > { %867 = vrot.lane.b32.xlu0 %v9040_v16, %s12088_s15  ;;  %1798 = vst.msk [vmem:[#allocation3 + $0x80] sm:$0xff] %vm1781_vm8, %v1622_v34  ;;  %v9261_v16 = vld [vmem:[#allocation2 + $0x128] sm:$0xff] }
 0x194   : > { %3557 = vrot.lane.b32.xlu1 %v9247_v33, %s12070_s16  ;;  %v9391_v34 = vld [vmem:[#allocation2 + $0x14a] sm:$0xff] }
 0x195   : > { %v1239_v26 = vpop.permute.xlu0 %1238 }
 0x196   : > { %1414 = vst.msk [vmem:[#allocation3 + $0x88] sm:$0xff] %vm1396_vm7, %v1239_v26  ;;  %v3159_v36 = vpop.permute.xlu1 %3158 }
 0x197   : > { %2403 = vrot.lane.b32.xlu0 %v9159_v56, %s12089_s25  ;;  %3337 = vst.msk [vmem:[#allocation3 + $0x70] sm:$0xff] %vm3322_vm12, %v3159_v36 }
 0x198   : > { %1252 = vrot.lane.b32.xlu1 %v9057_v21, %s12090_s29 }
 0x199   : > { %v2776_v37 = vpop.permute.xlu0 %2775 }
 0x19a   : > { %2953 = vst.msk [vmem:[#allocation3 + $0x78] sm:$0xff] %vm2937_vm11, %v2776_v37  ;;  %v2007_v60 = vpop.permute.xlu1 %2006 }
 0x19b   : > { %869 = vrot.lane.b32.xlu0 %v9059_v30, %s12088_s15  ;;  %2183 = vst.msk [vmem:[#allocation3 + $0x80] sm:$0xff] %vm2166_vm9, %v2007_v60  ;;  %v9277_v30 = vld [vmem:[#allocation2 + $0x129] sm:$0xff] }
 0x19c   : > { %2789 = vrot.lane.b32.xlu1 %v9261_v16, %s12091_s12 }
 0x19d   : > { %v1624_v40 = vpop.permute.xlu0 %1623 }
 0x19e   : > { %1799 = vst.msk [vmem:[#allocation3 + $0x88] sm:$0xff] %vm1781_vm8, %v1624_v40  ;;  %v3544_v21 = vpop.permute.xlu1 %3543 }
 0x19f   : > { %2405 = vrot.lane.b32.xlu0 %v9177_v1, %s12089_s25  ;;  %3722 = vst.msk [vmem:[#allocation3 + $0x70] sm:$0xff] %vm3707_vm13, %v3544_v21 }
 0x1a0   : > { %1637 = vrot.lane.b32.xlu1 %v9193_v9, %s8230_s22 }
 0x1a1   : > { %v3161_v44 = vpop.permute.xlu0 %3160 }
 0x1a2   : > { %3338 = vst.msk [vmem:[#allocation3 + $0x78] sm:$0xff] %vm3322_vm12, %v3161_v44  ;;  %v9281_v46 = vpop.f32.mrb[0].mxu0  ;;  %v2009_v63 = vpop.permute.xlu1 %2008 }
 0x1a3   : > { %1254 = vrot.lane.b32.xlu0 %v9076_v39, %s12090_s29  ;;  %2184 = vst.msk [vmem:[#allocation3 + $0x88] sm:$0xff] %vm2166_vm9, %v2009_v63  ;;  %v9284_v49 = vpop.f32.mrb[1].mxu0  ;;  %v4116_v21 = vadd.f32 %v9281_v46, %v9411_v42  ;;  %v9430_v63 = vld [vmem:[#allocation2 + $0x151] sm:$0xff] }
 0x1a4   : > { %3174 = vrot.lane.b32.xlu1 %v9277_v30, %s8234_s30 }
 0x1a5   : > { %v856_v32 = vpop.permute.xlu0 %855 }
 0x1a6   : > { %1030 = vst.msk [vmem:[#allocation3 + $0x90] sm:$0xff] %vm1011_vm6, %v856_v32  ;;  %v3546_v39 = vpop.permute.xlu1 %3545  ;;  %v3786_v50 = vld [vmem:[#allocation3 + $0x70] sm:$0xff] }
 0x1a7   : > { %2791 = vrot.lane.b32.xlu0 %v9279_v27, %s12091_s12  ;;  %3723 = vst.msk [vmem:[#allocation3 + $0x78] sm:$0xff] %vm3707_vm13, %v3546_v39  ;;  %7626 = vmatprep.mubr.msk.f32.mxu0 %vm3847_vm14, %v3786_v50  ;;  %v593_v39 = vld [vmem:[#allocation2 + $0x128] sm:$0xff]  ;;  %v4430_v50 = vmax.f32 %v4116_v21, 0.0 }
 0x1a8   : > { %2022 = vrot.lane.b32.xlu1 %v9209_v3, %s12072_s24  ;;  %657 = vst.msk [vmem:[#allocation3 + $0xf0] sm:$0xff] %vm384_vm0, %v593_v39 }
 0x1a9   : > { %v2392_v51 = vpop.permute.xlu0 %2391 }
 0x1aa   : > { %2568 = vst.msk [vmem:[#allocation3 + $0x80] sm:$0xff] %vm2551_vm10, %v2392_v51  ;;  %v1241_v47 = vpop.permute.xlu1 %1240 }
 0x1ab   : > { %1639 = vrot.lane.b32.xlu0 %v9211_v43, %s8230_s22  ;;  %1415 = vst.msk [vmem:[#allocation3 + $0x90] sm:$0xff] %vm1396_vm7, %v1241_v47  ;;  %v591_v43 = vld [vmem:[#allocation2 + $0x118] sm:$0xff] }
 0x1ac   : > { %3559 = vrot.lane.b32.xlu1 %v9299_v54, %s12070_s16  ;;  %655 = vst.msk [vmem:[#allocation3 + $0xe0] sm:$0xff] %vm384_vm0, %v591_v43 }
 0x1ad   : > { %v858_v57 = vpop.permute.xlu0 %857 }
 0x1ae   : > { %1031 = vst.msk [vmem:[#allocation3 + $0x98] sm:$0xff] %vm1011_vm6, %v858_v57  ;;  %v2778_v52 = vpop.permute.xlu1 %2777  ;;  %v3787_v58 = vld [vmem:[#allocation3 + $0x78] sm:$0xff] }
 0x1af   : > { %3176 = vrot.lane.b32.xlu0 %v9301_v55, %s8234_s30  ;;  %2954 = vst.msk [vmem:[#allocation3 + $0x80] sm:$0xff] %vm2937_vm11, %v2778_v52  ;;  %7627 = vmatmul.mubr.msk.f32.gmra.mrb[14].mxu0 %vm3847_vm14, %v3787_v58 }
 0x1b0   : > { %2024 = vrot.lane.b32.xlu1 %v9229_v45, %s12072_s24 }
 0x1b1   : > { %v2394_v61 = vpop.permute.xlu0 %2393 }
 0x1b2   : > { %2569 = vst.msk [vmem:[#allocation3 + $0x88] sm:$0xff] %vm2551_vm10, %v2394_v61  ;;  %v1626_v5 = vpop.permute.xlu1 %1625 }
 0x1b3   : > { %871 = vrot.lane.b32.xlu0 %v9106_v41, %s12088_s15  ;;  %1800 = vst.msk [vmem:[#allocation3 + $0x90] sm:$0xff] %vm1781_vm8, %v1626_v5  ;;  %v4526_v5 = vsel %vm4493_vm15, %v4430_v50, -inf }
 0x1b4   : > { %3561 = vrot.lane.b32.xlu1 %v9317_v62, %s12070_s16 }
 0x1b5   : > { %v1243_v59 = vpop.permute.xlu0 %1242 }
 0x1b6   : > { %1416 = vst.msk [vmem:[#allocation3 + $0x98] sm:$0xff] %vm1396_vm7, %v1243_v59  ;;  %v3163_v6 = vpop.permute.xlu1 %3162 }
 0x1b7   : > { %2407 = vrot.lane.b32.xlu0 %v9227_v12, %s12089_s25  ;;  %3339 = vst.msk [vmem:[#allocation3 + $0x80] sm:$0xff] %vm3322_vm12, %v3163_v6 }
 0x1b8   : > { %1256 = vrot.lane.b32.xlu1 %v9159_v56, %s12090_s29 }
 0x1b9   : > { %v2780_v41 = vpop.permute.xlu0 %2779 }
 0x1ba   : > { %2955 = vst.msk [vmem:[#allocation3 + $0x88] sm:$0xff] %vm2937_vm11, %v2780_v41  ;;  %v2011_v53 = vpop.permute.xlu1 %2010 }
 0x1bb   : > { %873 = vrot.lane.b32.xlu0 %v9161_v38, %s12088_s15  ;;  %2185 = vst.msk [vmem:[#allocation3 + $0x90] sm:$0xff] %vm2166_vm9, %v2011_v53 }
 0x1bc   : > { %2793 = vrot.lane.b32.xlu1 %v9333_v7, %s12091_s12 }
 0x1bd   : > { %v1628_v9 = vpop.permute.xlu0 %1627 }
 0x1be   : > { %1801 = vst.msk [vmem:[#allocation3 + $0x98] sm:$0xff] %vm1781_vm8, %v1628_v9  ;;  %v3548_v56 = vpop.permute.xlu1 %3547  ;;  %v9454_v9 = vld [vmem:[#allocation2 + $0x152] sm:$0xff] }
 0x1bf   : > { %2409 = vrot.lane.b32.xlu0 %v9247_v33, %s12089_s25  ;;  %3724 = vst.msk [vmem:[#allocation3 + $0x80] sm:$0xff] %vm3707_vm13, %v3548_v56 }
 0x1c0   : > { %1641 = vrot.lane.b32.xlu1 %v9261_v16, %s8230_s22 }
 0x1c1   : > { %v3165_v38 = vpop.permute.xlu0 %3164 }
 0x1c2   : > { %3340 = vst.msk [vmem:[#allocation3 + $0x88] sm:$0xff] %vm3322_vm12, %v3165_v38  ;;  %v2013_v2 = vpop.permute.xlu1 %2012  ;;  %v9353_v15 = vpop.f32.mrb[2].mxu0 }
 0x1c3   : > { %1258 = vrot.lane.b32.xlu0 %v9177_v1, %s12090_s29  ;;  %2186 = vst.msk [vmem:[#allocation3 + $0x98] sm:$0xff] %vm2166_vm9, %v2013_v2  ;;  %v9356_v18 = vpop.f32.mrb[3].mxu0  ;;  %v594_v2 = vld [vmem:[#allocation2 + $0x130] sm:$0xff] }
 0x1c4   : > { %3178 = vrot.lane.b32.xlu1 %v9349_v13, %s8234_s30  ;;  %658 = vst.msk [vmem:[#allocation3 + $0xf8] sm:$0xff] %vm384_vm0, %v594_v2 }
 0x1c5   : > { %v860_v10 = vpop.permute.xlu0 %859 }
 0x1c6   : > { %1032 = vst.msk [vmem:[#allocation3 + $0xa0] sm:$0xff] %vm1011_vm6, %v860_v10  ;;  %v3550_v1 = vpop.permute.xlu1 %3549  ;;  %v3788_v19 = vld [vmem:[#allocation3 + $0x80] sm:$0xff] }
 0x1c7   : > { %2795 = vrot.lane.b32.xlu0 %v9351_v14, %s12091_s12  ;;  %3725 = vst.msk [vmem:[#allocation3 + $0x88] sm:$0xff] %vm3707_vm13, %v3550_v1  ;;  %7629 = vmatprep.mubr.msk.f32.mxu0 %vm3847_vm14, %v3788_v19 }
 0x1c8   : > { %2026 = vrot.lane.b32.xlu1 %v9277_v30, %s12072_s24 }
 0x1c9   : > { %v2396_v11 = vpop.permute.xlu0 %2395 }
 0x1ca   : > { %2570 = vst.msk [vmem:[#allocation3 + $0x90] sm:$0xff] %vm2551_vm10, %v2396_v11  ;;  %v1245_v24 = vpop.permute.xlu1 %1244 }
 0x1cb   : > { %1643 = vrot.lane.b32.xlu0 %v9279_v27, %s8230_s22  ;;  %1417 = vst.msk [vmem:[#allocation3 + $0xa0] sm:$0xff] %vm1396_vm7, %v1245_v24  ;;  %v4111_v27 = vadd.f32 %v9411_v42, %v9284_v49 }
 0x1cc   : > { %3563 = vrot.lane.b32.xlu1 %v9371_v20, %s12070_s16 }
 0x1cd   : > { %v862_v28 = vpop.permute.xlu0 %861  ;;  %v4429_v35 = vmax.f32 %v4111_v27, 0.0 }
 0x1ce   : > { %1033 = vst.msk [vmem:[#allocation3 + $0xa8] sm:$0xff] %vm1011_vm6, %v862_v28  ;;  %v2782_v29 = vpop.permute.xlu1 %2781  ;;  %v3789_v23 = vld [vmem:[#allocation3 + $0x88] sm:$0xff] }
 0x1cf   : > { %3180 = vrot.lane.b32.xlu0 %v9373_v22, %s8234_s30  ;;  %2956 = vst.msk [vmem:[#allocation3 + $0x90] sm:$0xff] %vm2937_vm11, %v2782_v29  ;;  %7630 = vmatmul.mubr.msk.f32.gmra.mrb[16].mxu0 %vm3847_vm14, %v3789_v23  ;;  %v4523_v6 = vsel %vm4493_vm15, %v4429_v35, -inf  ;;  %v474_v29 = vld [vmem:[%s8455_s14 + $0x140] sm:$0xff] }
 0x1d0   : > { %2028 = vrot.lane.b32.xlu1 %v9301_v55, %s12072_s24  ;;  %539 = vst.msk [vmem:[#allocation2 + $0x1b9] sm:$0xff] %vm384_vm0, %v474_v29 }
 0x1d1   : > { %v2398_v31 = vpop.permute.xlu0 %2397 }
 0x1d2   : > { %2571 = vst.msk [vmem:[#allocation3 + $0x98] sm:$0xff] %vm2551_vm10, %v2398_v31  ;;  %v1630_v26 = vpop.permute.xlu1 %1629 }
 0x1d3   : > { %875 = vrot.lane.b32.xlu0 %v9209_v3, %s12088_s15  ;;  %1802 = vst.msk [vmem:[#allocation3 + $0xa0] sm:$0xff] %vm1781_vm8, %v1630_v26  ;;  %v9405_v3 = vld [vmem:[#allocation2 + $0x150] sm:$0xff]  ;;  %v9500_v26 = vld [vmem:[#allocation2 + $0x168] sm:$0xff] }
 0x1d4   : > { %3565 = vrot.lane.b32.xlu1 %v9391_v34, %s12070_s16  ;;  %s12092_s16 = smov 24  }
 0x1d5   : > { %v1247_v36 = vpop.permute.xlu0 %1246 }
 0x1d6   : > { %1418 = vst.msk [vmem:[#allocation3 + $0xa8] sm:$0xff] %vm1396_vm7, %v1247_v36  ;;  %v3167_v37 = vpop.permute.xlu1 %3166 }
 0x1d7   : > { %2411 = vrot.lane.b32.xlu0 %v9299_v54, %s12089_s25  ;;  %3341 = vst.msk [vmem:[#allocation3 + $0x90] sm:$0xff] %vm3322_vm12, %v3167_v37 }
 0x1d8   : > { %1260 = vrot.lane.b32.xlu1 %v9227_v12, %s12090_s29  ;;  %v473_v12 = vld [vmem:[%s8455_s14 + $0x138] sm:$0xff] }
 0x1d9   : > { %v2784_v16 = vpop.permute.xlu0 %2783  ;;  %538 = vst.msk [vmem:[#allocation2 + $0x1a9] sm:$0xff] %vm384_vm0, %v473_v12  ;;  %v9520_v12 = vld [vmem:[#allocation2 + $0x169] sm:$0xff] }
 0x1da   : > { %2957 = vst.msk [vmem:[#allocation3 + $0x98] sm:$0xff] %vm2937_vm11, %v2784_v16  ;;  %v2015_v60 = vpop.permute.xlu1 %2014  ;;  %v475_v16 = vld [vmem:[%s8455_s14 + $0x148] sm:$0xff] }
 0x1db   : > { %877 = vrot.lane.b32.xlu0 %v9229_v45, %s12088_s15  ;;  %2187 = vst.msk [vmem:[#allocation3 + $0xa0] sm:$0xff] %vm2166_vm9, %v2015_v60 }
 0x1dc   : > { %2797 = vrot.lane.b32.xlu1 %v9405_v3, %s12091_s12  ;;  %540 = vst.msk [vmem:[#allocation2 + $0x1c1] sm:$0xff] %vm384_vm0, %v475_v16 }
 0x1dd   : > { %v1632_v40 = vpop.permute.xlu0 %1631 }
 0x1de   : > { %1803 = vst.msk [vmem:[#allocation3 + $0xa8] sm:$0xff] %vm1781_vm8, %v1632_v40  ;;  %v3552_v45 = vpop.permute.xlu1 %3551  ;;  %v4121_v40 = vadd.f32 %v9411_v42, %v9356_v18 }
 0x1df   : > { %2413 = vrot.lane.b32.xlu0 %v9317_v62, %s12089_s25  ;;  %3726 = vst.msk [vmem:[#allocation3 + $0x90] sm:$0xff] %vm3707_vm13, %v3552_v45  ;;  %v9522_v45 = vld [vmem:[#allocation2 + $0x170] sm:$0xff] }
 0x1e0   : > { %1645 = vrot.lane.b32.xlu1 %v9333_v7, %s8230_s22 }
 0x1e1   : > { %v3169_v44 = vpop.permute.xlu0 %3168 }
 0x1e2   : > { %3342 = vst.msk [vmem:[#allocation3 + $0x98] sm:$0xff] %vm3322_vm12, %v3169_v44  ;;  %v2017_v32 = vpop.permute.xlu1 %2016  ;;  %v7613_v46 = vpop.f32.mrb[4].mxu0  ;;  %v595_v44 = vld [vmem:[#allocation2 + $0x140] sm:$0xff] }
 0x1e3   : > { %1262 = vrot.lane.b32.xlu0 %v9247_v33, %s12090_s29  ;;  %2188 = vst.msk [vmem:[#allocation3 + $0xa8] sm:$0xff] %vm2166_vm9, %v2017_v32  ;;  %v4136_v49 = vadd.f32 %v7613_v46, %v9411_v42  ;;  %v4130_v47 = vpop.f32.mrb[5].mxu0 }
 0x1e4   : > { %v4131_v33 = vadd.f32 %v9411_v42, %v4130_v47  ;;  %3182 = vrot.lane.b32.xlu1 %v9430_v63, %s8234_s30  ;;  %659 = vst.msk [vmem:[#allocation3 + $0x100] sm:$0xff] %vm384_vm0, %v595_v44 }
 0x1e5   : > { %v864_v51 = vpop.permute.xlu0 %863  ;;  %v4434_v57 = vmax.f32 %v4136_v49, 0.0 }
 0x1e6   : > { %1034 = vst.msk [vmem:[#allocation3 + $0xb0] sm:$0xff] %vm1011_vm6, %v864_v51  ;;  %v4433_v52 = vmax.f32 %v4131_v33, 0.0  ;;  %v3554_v58 = vpop.permute.xlu1 %3553  ;;  %v3790_v61 = vld [vmem:[#allocation3 + $0x90] sm:$0xff] }
 0x1e7   : > { %2799 = vrot.lane.b32.xlu0 %v9432_v48, %s12091_s12  ;;  %v4527_v59 = vsel %vm4493_vm15, %v4434_v57, -inf  ;;  %3727 = vst.msk [vmem:[#allocation3 + $0x98] sm:$0xff] %vm3707_vm13, %v3554_v58  ;;  %7632 = vmatprep.mubr.msk.f32.mxu0 %vm3847_vm14, %v3790_v61 }
 0x1e8   : > { %v4528_v41 = vmax.f32 %v4526_v5, %v4527_v59  ;;  %v4524_v7 = vsel %vm4493_vm15, %v4433_v52, -inf  ;;  %2030 = vrot.lane.b32.xlu1 %v9349_v13, %s12072_s24  ;;  %v9544_v5 = vld [vmem:[#allocation2 + $0x16a] sm:$0xff] }
 0x1e9   : > { %v2400_v4 = vpop.permute.xlu0 %2399  ;;  %v4525_v53 = vmax.f32 %v4523_v6, %v4524_v7  ;;  %v9546_v59 = vld [vmem:[#allocation2 + $0x171] sm:$0xff] }
 0x1ea   : > { %2572 = vst.msk [vmem:[#allocation3 + $0xa0] sm:$0xff] %vm2551_vm10, %v2400_v4  ;;  %v4695_v56 = vrot.slane %v4528_v41, 1  ;;  %v1249_v38 = vpop.permute.xlu1 %1248 }
 0x1eb   : > { %1647 = vrot.lane.b32.xlu0 %v9351_v14, %s8230_s22  ;;  %v4627_v43 = vrot.slane %v4525_v53, 1  ;;  %1419 = vst.msk [vmem:[#allocation3 + $0xb0] sm:$0xff] %vm1396_vm7, %v1249_v38 }
 0x1ec   : > { %v4711_v1 = vmax.f32 %v4528_v41, %v4695_v56  ;;  %3567 = vrot.lane.b32.xlu1 %v9454_v9, %s12092_s16  ;;  %v596_v41 = vld [vmem:[#allocation2 + $0x148] sm:$0xff] }
 0x1ed   : > { %v866_v10 = vpop.permute.xlu0 %865  ;;  %v4643_v14 = vmax.f32 %v4525_v53, %v4627_v43  ;;  %660 = vst.msk [vmem:[#allocation3 + $0x108] sm:$0xff] %vm384_vm0, %v596_v41 }
 0x1ee   : > { %1035 = vst.msk [vmem:[#allocation3 + $0xb8] sm:$0xff] %vm1011_vm6, %v866_v10  ;;  %v2786_v19 = vpop.permute.xlu1 %2785  ;;  %v3791_v11 = vld [vmem:[#allocation3 + $0x98] sm:$0xff] }
 0x1ef   : > { %3184 = vrot.lane.b32.xlu0 %v9456_v8, %s8234_s30  ;;  %4719 = vst.msk [vmem:[#allocation4 + $0x1d] sm:$0x1] %vm4502_vm1, %v4711_v1  ;;  %4652 = vst.msk [vmem:[#allocation4 + $0x19] sm:$0x1] %vm4502_vm1, %v4643_v14  ;;  %7633 = vmatmul.mubr.msk.f32.gmra.mrb[18].mxu0 %vm3847_vm14, %v3791_v11 }
 0x1f0   : > { %4727 = vst.msk [vmem:[#allocation4 + $0x1c] sm:$0x4] %vm4660_vm2, %v4711_v1  ;;  %4661 = vst.msk [vmem:[#allocation4 + $0x18] sm:$0x4] %vm4660_vm2, %v4643_v14  ;;  %2032 = vrot.lane.b32.xlu1 %v9373_v22, %s12072_s24 }
 0x1f1   : > { %4735 = vst.msk [vmem:[#allocation4 + $0x1b] sm:$0x10] %vm4669_vm3, %v4711_v1  ;;  %4670 = vst.msk [vmem:[#allocation4 + $0x17] sm:$0x10] %vm4669_vm3, %v4643_v14  ;;  %v2402_v24 = vpop.permute.xlu0 %2401 }
 0x1f2   : > { %4743 = vst.msk [vmem:[#allocation4 + $0x1a] sm:$0x40] %vm4678_vm5, %v4711_v1  ;;  %4679 = vst.msk [vmem:[#allocation4 + $0x16] sm:$0x40] %vm4678_vm5, %v4643_v14  ;;  %v1634_v28 = vpop.permute.xlu1 %1633  ;;  %v9572_v1 = vld [vmem:[#allocation2 + $0x172] sm:$0xff] }
 0x1f3   : > { %2958 = vst.msk [vmem:[#allocation3 + $0xa0] sm:$0xff] %vm2937_vm11, %v2786_v19  ;;  %879 = vrot.lane.b32.xlu0 %v9277_v30, %s12088_s15 }
 0x1f4   : > { %2573 = vst.msk [vmem:[#allocation3 + $0xa8] sm:$0xff] %vm2551_vm10, %v2402_v24  ;;  %3569 = vrot.lane.b32.xlu1 %v9480_v25, %s12092_s16 }
 0x1f5   : > { %1804 = vst.msk [vmem:[#allocation3 + $0xb0] sm:$0xff] %vm1781_vm8, %v1634_v28  ;;  %v1251_v17 = vpop.permute.xlu0 %1250  ;;  %v9590_v28 = vld [vmem:[#allocation2 + $0x178] sm:$0xff] }
 0x1f6   : > { %1420 = vst.msk [vmem:[#allocation3 + $0xb8] sm:$0xff] %vm1396_vm7, %v1251_v17  ;;  %v3171_v23 = vpop.permute.xlu1 %3170 }
 0x1f7   : > { %2415 = vrot.lane.b32.xlu0 %v9371_v20, %s12089_s25  ;;  %3343 = vst.msk [vmem:[#allocation3 + $0xa0] sm:$0xff] %vm3322_vm12, %v3171_v23  ;;  %v477_v23 = vld [vmem:[%s8455_s14 + $0x158] sm:$0xff] }
 0x1f8   : > { %1264 = vrot.lane.b32.xlu1 %v9299_v54, %s12090_s29  ;;  %542 = vst.msk [vmem:[#allocation2 + $0x1d1] sm:$0xff] %vm384_vm0, %v477_v23 }
 0x1f9   : > { %v9490_v30 = vld [vmem:[#allocation4 + $0x18] sm:$0xff]  ;;  %v2788_v31 = vpop.permute.xlu0 %2787 }
 0x1fa   : > { %4897 = vst.msk [vmem:[#allocation5 + $0x10] sm:$0xff] %vm4493_vm15, %v9490_v30  ;;  %v2019_v36 = vpop.permute.xlu1 %2018 }
 0x1fb   : > { %2959 = vst.msk [vmem:[#allocation3 + $0xa8] sm:$0xff] %vm2937_vm11, %v2788_v31  ;;  %881 = vrot.lane.b32.xlu0 %v9301_v55, %s12088_s15  ;;  %v4126_v55 = vadd.f32 %v9353_v15, %v9411_v42  ;;  %v9606_v31 = vld [vmem:[#allocation2 + $0x179] sm:$0xff] }
 0x1fc   : > { %2189 = vst.msk [vmem:[#allocation3 + $0xb0] sm:$0xff] %vm2166_vm9, %v2019_v36  ;;  %2801 = vrot.lane.b32.xlu1 %v9500_v26, %s12091_s12  ;;  %v9608_v36 = vld [vmem:[#allocation2 + $0x180] sm:$0xff] }
 0x1fd   : > { %v1636_v37 = vpop.permute.xlu0 %1635  ;;  %v4432_v27 = vmax.f32 %v4126_v55, 0.0 }
 0x1fe   : > { %1805 = vst.msk [vmem:[#allocation3 + $0xb8] sm:$0xff] %vm1781_vm8, %v1636_v37  ;;  %v3556_v54 = vpop.permute.xlu1 %3555 }
 0x1ff   : > { %2417 = vrot.lane.b32.xlu0 %v9391_v34, %s12089_s25  ;;  %3728 = vst.msk [vmem:[#allocation3 + $0xa0] sm:$0xff] %vm3707_vm13, %v3556_v54  ;;  %v4532_v47 = vsel %vm4493_vm15, %v4432_v27, -inf  ;;  %v597_v54 = vld [vmem:[#allocation2 + $0x150] sm:$0xff]  ;;  %v598_v27 = vld [vmem:[#allocation2 + $0x158] sm:$0xff] }
 0x200   : > { %1649 = vrot.lane.b32.xlu1 %v9405_v3, %s8230_s22  ;;  %v4431_v3 = vmax.f32 %v4121_v40, 0.0  ;;  %661 = vst.msk [vmem:[#allocation3 + $0x110] sm:$0xff] %vm384_vm0, %v597_v54  ;;  %662 = vst.msk [vmem:[#allocation3 + $0x118] sm:$0xff] %vm384_vm0, %v598_v27 }
 0x201   : > { %v3173_v60 = vpop.permute.xlu0 %3172 }
 0x202   : > { %3344 = vst.msk [vmem:[#allocation3 + $0xa8] sm:$0xff] %vm3322_vm12, %v3173_v60  ;;  %v2021_v21 = vpop.permute.xlu1 %2020  ;;  %v7616_v15 = vpop.f32.mrb[6].mxu0  ;;  %v4529_v57 = vsel %vm4493_vm15, %v4431_v3, -inf  ;;  %v9646_v3 = vld [vmem:[#allocation2 + $0x182] sm:$0xff] }
 0x203   : > { %1266 = vrot.lane.b32.xlu0 %v9317_v62, %s12090_s29  ;;  %2190 = vst.msk [vmem:[#allocation3 + $0xb8] sm:$0xff] %vm2166_vm9, %v2021_v21  ;;  %v4146_v18 = vadd.f32 %v7616_v15, %v9411_v42  ;;  %v4140_v46 = vpop.f32.mrb[7].mxu0  ;;  %v9628_v21 = vld [vmem:[#allocation2 + $0x17a] sm:$0xff] }
 0x204   : > { %v4141_v62 = vadd.f32 %v9411_v42, %v4140_v46  ;;  %3186 = vrot.lane.b32.xlu1 %v9520_v12, %s8234_s30  ;;  %v9630_v15 = vld [vmem:[#allocation2 + $0x181] sm:$0xff] }
 0x205   : > { %v868_v32 = vpop.permute.xlu0 %867  ;;  %v4436_v39 = vmax.f32 %v4146_v18, 0.0 }
 0x206   : > { %1036 = vst.msk [vmem:[#allocation3 + $0xc0] sm:$0xff] %vm1011_vm6, %v868_v32  ;;  %v4435_v50 = vmax.f32 %v4141_v62, 0.0  ;;  %v3558_v51 = vpop.permute.xlu1 %3557  ;;  %v3792_v49 = vld [vmem:[#allocation3 + $0xa0] sm:$0xff] }
 0x207   : > { %2803 = vrot.lane.b32.xlu0 %v9522_v45, %s12091_s12  ;;  %v4533_v35 = vsel %vm4493_vm15, %v4436_v39, -inf  ;;  %3729 = vst.msk [vmem:[#allocation3 + $0xa8] sm:$0xff] %vm3707_vm13, %v3558_v51  ;;  %7635 = vmatprep.mubr.msk.f32.mxu0 %vm3847_vm14, %v3792_v49  ;;  %v9662_v49 = vld [vmem:[#allocation2 + $0x190] sm:$0xff] }
 0x208   : > { %v4534_v52 = vmax.f32 %v4532_v47, %v4533_v35  ;;  %v4530_v58 = vsel %vm4493_vm15, %v4435_v50, -inf  ;;  %2034 = vrot.lane.b32.xlu1 %v9430_v63, %s12072_s24  ;;  %v478_v50 = vld [vmem:[%s8455_s14 + $0x160] sm:$0xff] }
 0x209   : > { %v2404_v33 = vpop.permute.xlu0 %2403  ;;  %v4531_v61 = vmax.f32 %v4529_v57, %v4530_v58  ;;  %543 = vst.msk [vmem:[#allocation2 + $0x1e1] sm:$0xff] %vm384_vm0, %v478_v50  ;;  %v9678_v57 = vld [vmem:[#allocation2 + $0x191] sm:$0xff] }
 0x20a   : > { %2574 = vst.msk [vmem:[#allocation3 + $0xb0] sm:$0xff] %vm2551_vm10, %v2404_v33  ;;  %v4823_v4 = vrot.slane %v4534_v52, 1  ;;  %v1253_v6 = vpop.permute.xlu1 %1252  ;;  %v479_v33 = vld [vmem:[%s8455_s14 + $0x168] sm:$0xff] }
 0x20b   : > { %1651 = vrot.lane.b32.xlu0 %v9432_v48, %s8230_s22  ;;  %v4759_v7 = vrot.slane %v4531_v61, 1  ;;  %1421 = vst.msk [vmem:[#allocation3 + $0xc0] sm:$0xff] %vm1396_vm7, %v1253_v6  ;;  %v476_v48 = vld [vmem:[%s8455_s14 + $0x150] sm:$0xff] }
 0x20c   : > { %v4839_v56 = vmax.f32 %v4534_v52, %v4823_v4  ;;  %3571 = vrot.lane.b32.xlu1 %v9544_v5, %s12092_s16  ;;  %541 = vst.msk [vmem:[#allocation2 + $0x1c9] sm:$0xff] %vm384_vm0, %v476_v48  ;;  %544 = vst.msk [vmem:[#allocation2 + $0x1e9] sm:$0xff] %vm384_vm0, %v479_v33  ;;  %v9680_v52 = vld [vmem:[#allocation2 + $0x198] sm:$0xff]  ;;  %v599_v4 = vld [vmem:[#allocation2 + $0x168] sm:$0xff] }
 0x20d   : > { %v870_v53 = vpop.permute.xlu0 %869  ;;  %v4775_v38 = vmax.f32 %v4531_v61, %v4759_v7  ;;  %663 = vst.msk [vmem:[#allocation3 + $0x120] sm:$0xff] %vm384_vm0, %v599_v4  ;;  %v9702_v48 = vld [vmem:[#allocation2 + $0x199] sm:$0xff] }
 0x20e   : > { %1037 = vst.msk [vmem:[#allocation3 + $0xc8] sm:$0xff] %vm1011_vm6, %v870_v53  ;;  %v2790_v2 = vpop.permute.xlu1 %2789  ;;  %v3793_v43 = vld [vmem:[#allocation3 + $0xa8] sm:$0xff] }
 0x20f   : > { %3188 = vrot.lane.b32.xlu0 %v9546_v59, %s8234_s30  ;;  %4847 = vst.msk [vmem:[#allocation4 + $0x25] sm:$0x1] %vm4502_vm1, %v4839_v56  ;;  %4783 = vst.msk [vmem:[#allocation4 + $0x21] sm:$0x1] %vm4502_vm1, %v4775_v38  ;;  %7636 = vmatmul.mubr.msk.f32.gmra.mrb[20].mxu0 %vm3847_vm14, %v3793_v43 }
 0x210   : > { %4855 = vst.msk [vmem:[#allocation4 + $0x24] sm:$0x4] %vm4660_vm2, %v4839_v56  ;;  %4791 = vst.msk [vmem:[#allocation4 + $0x20] sm:$0x4] %vm4660_vm2, %v4775_v38  ;;  %2036 = vrot.lane.b32.xlu1 %v9456_v8, %s12072_s24 }
 0x211   : > { %4863 = vst.msk [vmem:[#allocation4 + $0x23] sm:$0x10] %vm4669_vm3, %v4839_v56  ;;  %4799 = vst.msk [vmem:[#allocation4 + $0x1f] sm:$0x10] %vm4669_vm3, %v4775_v38  ;;  %v2406_v10 = vpop.permute.xlu0 %2405 }
 0x212   : > { %4871 = vst.msk [vmem:[#allocation4 + $0x22] sm:$0x40] %vm4678_vm5, %v4839_v56  ;;  %4807 = vst.msk [vmem:[#allocation4 + $0x1e] sm:$0x40] %vm4678_vm5, %v4775_v38  ;;  %v1638_v14 = vpop.permute.xlu1 %1637  ;;  %v9700_v56 = vld [vmem:[#allocation2 + $0x192] sm:$0xff] }
 0x213   : > { %2960 = vst.msk [vmem:[#allocation3 + $0xb0] sm:$0xff] %vm2937_vm11, %v2790_v2  ;;  %883 = vrot.lane.b32.xlu0 %v9349_v13, %s12088_s15  ;;  %v600_v2 = vld [vmem:[#allocation2 + $0x170] sm:$0xff] }
 0x214   : > { %2575 = vst.msk [vmem:[#allocation3 + $0xb8] sm:$0xff] %vm2551_vm10, %v2406_v10  ;;  %3573 = vrot.lane.b32.xlu1 %v9572_v1, %s12092_s16  ;;  %v480_v10 = vld [vmem:[%s8455_s14 + $0x170] sm:$0xff] }
 0x215   : > { %1806 = vst.msk [vmem:[#allocation3 + $0xc0] sm:$0xff] %vm1781_vm8, %v1638_v14  ;;  %v1255_v19 = vpop.permute.xlu0 %1254 }
 0x216   : > { %1422 = vst.msk [vmem:[#allocation3 + $0xc8] sm:$0xff] %vm1396_vm7, %v1255_v19  ;;  %v3175_v11 = vpop.permute.xlu1 %3174 }
 0x217   : > { %2419 = vrot.lane.b32.xlu0 %v9454_v9, %s12089_s25  ;;  %3345 = vst.msk [vmem:[#allocation3 + $0xb0] sm:$0xff] %vm3322_vm12, %v3175_v11 }
 0x218   : > { %1268 = vrot.lane.b32.xlu1 %v9371_v20, %s12090_s29  ;;  %664 = vst.msk [vmem:[#allocation3 + $0x128] sm:$0xff] %vm384_vm0, %v600_v2  ;;  %545 = vst.msk [vmem:[#allocation2 + $0x1f1] sm:$0xff] %vm384_vm0, %v480_v10  ;;  %v9804_v10 = vld [vmem:[#allocation2 + $0x1aa] sm:$0xff] }
 0x219   : > { %v9580_v24 = vld [vmem:[#allocation4 + $0x20] sm:$0xff]  ;;  %v2792_v13 = vpop.permute.xlu0 %2791 }
 0x21a   : > { %4898 = vst.msk [vmem:[#allocation5 + $0x18] sm:$0xff] %vm4493_vm15, %v9580_v24  ;;  %v2023_v17 = vpop.permute.xlu1 %2022 }
 0x21b   : > { %2961 = vst.msk [vmem:[#allocation3 + $0xb8] sm:$0xff] %vm2937_vm11, %v2792_v13  ;;  %885 = vrot.lane.b32.xlu0 %v9373_v22, %s12088_s15  ;;  %v9720_v13 = vld [vmem:[#allocation2 + $0x19a] sm:$0xff] }
 0x21c   : > { %2191 = vst.msk [vmem:[#allocation3 + $0xc0] sm:$0xff] %vm2166_vm9, %v2023_v17  ;;  %2805 = vrot.lane.b32.xlu1 %v9590_v28, %s12091_s12 }
 0x21d   : > { %v1640_v29 = vpop.permute.xlu0 %1639 }
 0x21e   : > { %1807 = vst.msk [vmem:[#allocation3 + $0xc8] sm:$0xff] %vm1781_vm8, %v1640_v29  ;;  %v3560_v20 = vpop.permute.xlu1 %3559 }
 0x21f   : > { %2421 = vrot.lane.b32.xlu0 %v9480_v25, %s12089_s25  ;;  %3730 = vst.msk [vmem:[#allocation3 + $0xb0] sm:$0xff] %vm3707_vm13, %v3560_v20 }
 0x220   : > { %1653 = vrot.lane.b32.xlu1 %v9500_v26, %s8230_s22 }
 0x221   : > { %v3177_v22 = vpop.permute.xlu0 %3176 }
 0x222   : > { %3346 = vst.msk [vmem:[#allocation3 + $0xb8] sm:$0xff] %vm3322_vm12, %v3177_v22  ;;  %v2025_v37 = vpop.permute.xlu1 %2024  ;;  %v9610_v16 = vpop.f32.mrb[8].mxu0 }
 0x223   : > { %1270 = vrot.lane.b32.xlu0 %v9391_v34, %s12090_s29  ;;  %2192 = vst.msk [vmem:[#allocation3 + $0xc8] sm:$0xff] %vm2166_vm9, %v2025_v37  ;;  %v9613_v60 = vpop.f32.mrb[9].mxu0 }
 0x224   : > { %3190 = vrot.lane.b32.xlu1 %v9606_v31, %s8234_s30  ;;  %v4151_v54 = vadd.f32 %v9411_v42, %v9613_v60 }
 0x225   : > { %v872_v55 = vpop.permute.xlu0 %871 }
 0x226   : > { %1038 = vst.msk [vmem:[#allocation3 + $0xd0] sm:$0xff] %vm1011_vm6, %v872_v55  ;;  %v3562_v34 = vpop.permute.xlu1 %3561  ;;  %v3794_v26 = vld [vmem:[#allocation3 + $0xb0] sm:$0xff] }
 0x227   : > { %2807 = vrot.lane.b32.xlu0 %v9608_v36, %s12091_s12  ;;  %3731 = vst.msk [vmem:[#allocation3 + $0xb8] sm:$0xff] %vm3707_vm13, %v3562_v34  ;;  %7638 = vmatprep.mubr.msk.f32.mxu0 %vm3847_vm14, %v3794_v26  ;;  %v9754_v55 = vld [vmem:[#allocation2 + $0x1a1] sm:$0xff] }
 0x228   : > { %2038 = vrot.lane.b32.xlu1 %v9520_v12, %s12072_s24  ;;  %v9756_v34 = vld [vmem:[#allocation2 + $0x1a8] sm:$0xff] }
 0x229   : > { %v2408_v40 = vpop.permute.xlu0 %2407 }
 0x22a   : > { %2576 = vst.msk [vmem:[#allocation3 + $0xc0] sm:$0xff] %vm2551_vm10, %v2408_v40  ;;  %v1257_v44 = vpop.permute.xlu1 %1256  ;;  %v601_v40 = vld [vmem:[#allocation2 + $0x178] sm:$0xff] }
 0x22b   : > { %1655 = vrot.lane.b32.xlu0 %v9522_v45, %s8230_s22  ;;  %1423 = vst.msk [vmem:[#allocation3 + $0xd0] sm:$0xff] %vm1396_vm7, %v1257_v44 }
 0x22c   : > { %3575 = vrot.lane.b32.xlu1 %v9628_v21, %s12092_s16  ;;  %665 = vst.msk [vmem:[#allocation3 + $0x130] sm:$0xff] %vm384_vm0, %v601_v40 }
 0x22d   : > { %v874_v32 = vpop.permute.xlu0 %873 }
 0x22e   : > { %1039 = vst.msk [vmem:[#allocation3 + $0xd8] sm:$0xff] %vm1011_vm6, %v874_v32  ;;  %v2794_v45 = vpop.permute.xlu1 %2793  ;;  %v3795_v18 = vld [vmem:[#allocation3 + $0xb8] sm:$0xff] }
 0x22f   : > { %3192 = vrot.lane.b32.xlu0 %v9630_v15, %s8234_s30  ;;  %2962 = vst.msk [vmem:[#allocation3 + $0xc0] sm:$0xff] %vm2937_vm11, %v2794_v45  ;;  %7639 = vmatmul.mubr.msk.f32.gmra.mrb[22].mxu0 %vm3847_vm14, %v3795_v18  ;;  %v4437_v45 = vmax.f32 %v4151_v54, 0.0 }
 0x230   : > { %2040 = vrot.lane.b32.xlu1 %v9546_v59, %s12072_s24 }
 0x231   : > { %v2410_v46 = vpop.permute.xlu0 %2409 }
 0x232   : > { %2577 = vst.msk [vmem:[#allocation3 + $0xc8] sm:$0xff] %vm2551_vm10, %v2410_v46  ;;  %v1642_v62 = vpop.permute.xlu1 %1641 }
 0x233   : > { %887 = vrot.lane.b32.xlu0 %v9430_v63, %s12088_s15  ;;  %1808 = vst.msk [vmem:[#allocation3 + $0xd0] sm:$0xff] %vm1781_vm8, %v1642_v62 }
 0x234   : > { %3577 = vrot.lane.b32.xlu1 %v9646_v3, %s12092_s16 }
 0x235   : > { %v1259_v39 = vpop.permute.xlu0 %1258 }
 0x236   : > { %1424 = vst.msk [vmem:[#allocation3 + $0xd8] sm:$0xff] %vm1396_vm7, %v1259_v39  ;;  %v3179_v51 = vpop.permute.xlu1 %3178 }
 0x237   : > { %2423 = vrot.lane.b32.xlu0 %v9544_v5, %s12089_s25  ;;  %3347 = vst.msk [vmem:[#allocation3 + $0xc0] sm:$0xff] %vm3322_vm12, %v3179_v51 }
 0x238   : > { %1272 = vrot.lane.b32.xlu1 %v9454_v9, %s12090_s29 }
 0x239   : > { %v2796_v63 = vpop.permute.xlu0 %2795 }
 0x23a   : > { %2963 = vst.msk [vmem:[#allocation3 + $0xc8] sm:$0xff] %vm2937_vm11, %v2796_v63  ;;  %v2027_v47 = vpop.permute.xlu1 %2026 }
 0x23b   : > { %889 = vrot.lane.b32.xlu0 %v9456_v8, %s12088_s15  ;;  %2193 = vst.msk [vmem:[#allocation3 + $0xd0] sm:$0xff] %vm2166_vm9, %v2027_v47 }
 0x23c   : > { %2809 = vrot.lane.b32.xlu1 %v9662_v49, %s12091_s12 }
 0x23d   : > { %v1644_v35 = vpop.permute.xlu0 %1643 }
 0x23e   : > { %1809 = vst.msk [vmem:[#allocation3 + $0xd8] sm:$0xff] %vm1781_vm8, %v1644_v35  ;;  %v3564_v9 = vpop.permute.xlu1 %3563 }
 0x23f   : > { %2425 = vrot.lane.b32.xlu0 %v9572_v1, %s12089_s25  ;;  %3732 = vst.msk [vmem:[#allocation3 + $0xc0] sm:$0xff] %vm3707_vm13, %v3564_v9  ;;  %v9778_v9 = vld [vmem:[#allocation2 + $0x1a2] sm:$0xff] }
 0x240   : > { %1657 = vrot.lane.b32.xlu1 %v9590_v28, %s8230_s22 }
 0x241   : > { %v3181_v8 = vpop.permute.xlu0 %3180 }
 0x242   : > { %3348 = vst.msk [vmem:[#allocation3 + $0xc8] sm:$0xff] %vm3322_vm12, %v3181_v8  ;;  %v2029_v58 = vpop.permute.xlu1 %2028  ;;  %v9682_v61 = vpop.f32.mrb[10].mxu0  ;;  %v9780_v8 = vld [vmem:[#allocation2 + $0x1a9] sm:$0xff] }
 0x243   : > { %1274 = vrot.lane.b32.xlu0 %v9480_v25, %s12090_s29  ;;  %2194 = vst.msk [vmem:[#allocation3 + $0xd8] sm:$0xff] %vm2166_vm9, %v2029_v58  ;;  %v9685_v41 = vpop.f32.mrb[11].mxu0 }
 0x244   : > { %3194 = vrot.lane.b32.xlu1 %v9678_v57, %s8234_s30 }
 0x245   : > { %v876_v6 = vpop.permute.xlu0 %875 }
 0x246   : > { %1040 = vst.msk [vmem:[#allocation3 + $0xe0] sm:$0xff] %vm1011_vm6, %v876_v6  ;;  %v3566_v25 = vpop.permute.xlu1 %3565  ;;  %v3796_v7 = vld [vmem:[#allocation3 + $0xc0] sm:$0xff]  ;;  %v602_v6 = vld [vmem:[#allocation2 + $0x180] sm:$0xff] }
 0x247   : > { %2811 = vrot.lane.b32.xlu0 %v9680_v52, %s12091_s12  ;;  %3733 = vst.msk [vmem:[#allocation3 + $0xc8] sm:$0xff] %vm3707_vm13, %v3566_v25  ;;  %7641 = vmatprep.mubr.msk.f32.mxu0 %vm3847_vm14, %v3796_v7 }
 0x248   : > { %2042 = vrot.lane.b32.xlu1 %v9606_v31, %s12072_s24  ;;  %666 = vst.msk [vmem:[#allocation3 + $0x138] sm:$0xff] %vm384_vm0, %v602_v6 }
 0x249   : > { %v2412_v53 = vpop.permute.xlu0 %2411 }
 0x24a   : > { %2578 = vst.msk [vmem:[#allocation3 + $0xd0] sm:$0xff] %vm2551_vm10, %v2412_v53  ;;  %v1261_v38 = vpop.permute.xlu1 %1260 }
 0x24b   : > { %1659 = vrot.lane.b32.xlu0 %v9608_v36, %s8230_s22  ;;  %1425 = vst.msk [vmem:[#allocation3 + $0xe0] sm:$0xff] %vm1396_vm7, %v1261_v38  ;;  %v481_v36 = vld [vmem:[%s8455_s14 + $0x178] sm:$0xff] }
 0x24c   : > { %3579 = vrot.lane.b32.xlu1 %v9700_v56, %s12092_s16  ;;  %546 = vst.msk [vmem:[#allocation2 + $0x1f9] sm:$0xff] %vm384_vm0, %v481_v36 }
 0x24d   : > { %v878_v43 = vpop.permute.xlu0 %877 }
 0x24e   : > { %1041 = vst.msk [vmem:[#allocation3 + $0xe8] sm:$0xff] %vm1011_vm6, %v878_v43  ;;  %v2798_v14 = vpop.permute.xlu1 %2797  ;;  %v3797_v19 = vld [vmem:[#allocation3 + $0xc8] sm:$0xff] }
 0x24f   : > { %3196 = vrot.lane.b32.xlu0 %v9702_v48, %s8234_s30  ;;  %2964 = vst.msk [vmem:[#allocation3 + $0xd0] sm:$0xff] %vm2937_vm11, %v2798_v14  ;;  %7642 = vmatmul.mubr.msk.f32.gmra.mrb[24].mxu0 %vm3847_vm14, %v3797_v19 }
 0x250   : > { %2044 = vrot.lane.b32.xlu1 %v9630_v15, %s12072_s24 }
 0x251   : > { %v2414_v11 = vpop.permute.xlu0 %2413 }
 0x252   : > { %2579 = vst.msk [vmem:[#allocation3 + $0xd8] sm:$0xff] %vm2551_vm10, %v2414_v11  ;;  %v1646_v28 = vpop.permute.xlu1 %1645  ;;  %v482_v11 = vld [vmem:[%s8455_s14 + $0x180] sm:$0xff] }
 0x253   : > { %891 = vrot.lane.b32.xlu0 %v9520_v12, %s12088_s15  ;;  %1810 = vst.msk [vmem:[#allocation3 + $0xe0] sm:$0xff] %vm1781_vm8, %v1646_v28  ;;  %v9734_v12 = vld [vmem:[#allocation2 + $0x1a0] sm:$0xff] }
 0x254   : > { %3581 = vrot.lane.b32.xlu1 %v9720_v13, %s12092_s16  ;;  %547 = vst.msk [vmem:[#allocation2 + $0x209] sm:$0xff] %vm384_vm0, %v482_v11 }
 0x255   : > { %v1263_v17 = vpop.permute.xlu0 %1262 }
 0x256   : > { %1426 = vst.msk [vmem:[#allocation3 + $0xe8] sm:$0xff] %vm1396_vm7, %v1263_v17  ;;  %v3183_v29 = vpop.permute.xlu1 %3182 }
 0x257   : > { %2427 = vrot.lane.b32.xlu0 %v9628_v21, %s12089_s25  ;;  %3349 = vst.msk [vmem:[#allocation3 + $0xd0] sm:$0xff] %vm3322_vm12, %v3183_v29  ;;  %v9824_v29 = vld [vmem:[#allocation2 + $0x1b8] sm:$0xff] }
 0x258   : > { %1276 = vrot.lane.b32.xlu1 %v9544_v5, %s12090_s29 }
 0x259   : > { %v2800_v23 = vpop.permute.xlu0 %2799 }
 0x25a   : > { %2965 = vst.msk [vmem:[#allocation3 + $0xd8] sm:$0xff] %vm2937_vm11, %v2800_v23  ;;  %v2031_v20 = vpop.permute.xlu1 %2030 }
 0x25b   : > { %893 = vrot.lane.b32.xlu0 %v9546_v59, %s12088_s15  ;;  %2195 = vst.msk [vmem:[#allocation3 + $0xe0] sm:$0xff] %vm2166_vm9, %v2031_v20  ;;  %v4156_v59 = vadd.f32 %v9610_v16, %v9411_v42 }
 0x25c   : > { %2813 = vrot.lane.b32.xlu1 %v9734_v12, %s12091_s12 }
 0x25d   : > { %v1648_v22 = vpop.permute.xlu0 %1647  ;;  %v4438_v44 = vmax.f32 %v4156_v59, 0.0  ;;  %v9844_v59 = vld [vmem:[#allocation2 + $0x1b9] sm:$0xff] }
 0x25e   : > { %1811 = vst.msk [vmem:[#allocation3 + $0xe8] sm:$0xff] %vm1781_vm8, %v1648_v22  ;;  %v3568_v5 = vpop.permute.xlu1 %3567  ;;  %v483_v22 = vld [vmem:[%s8455_s14 + $0x188] sm:$0xff] }
 0x25f   : > { %2429 = vrot.lane.b32.xlu0 %v9646_v3, %s12089_s25  ;;  %3734 = vst.msk [vmem:[#allocation3 + $0xd0] sm:$0xff] %vm3707_vm13, %v3568_v5  ;;  %v4538_v50 = vsel %vm4493_vm15, %v4438_v44, -inf  ;;  %v4161_v5 = vadd.f32 %v9411_v42, %v9685_v41 }
 0x260   : > { %1661 = vrot.lane.b32.xlu1 %v9662_v49, %s8230_s22  ;;  %v4535_v49 = vsel %vm4493_vm15, %v4437_v45, -inf  ;;  %548 = vst.msk [vmem:[#allocation2 + $0x211] sm:$0xff] %vm384_vm0, %v483_v22 }
 0x261   : > { %v3185_v37 = vpop.permute.xlu0 %3184 }
 0x262   : > { %3350 = vst.msk [vmem:[#allocation3 + $0xd8] sm:$0xff] %vm3322_vm12, %v3185_v37  ;;  %v2033_v26 = vpop.permute.xlu1 %2032  ;;  %v7625_v16 = vpop.f32.mrb[12].mxu0  ;;  %v9846_v37 = vld [vmem:[#allocation2 + $0x1c0] sm:$0xff] }
 0x263   : > { %1278 = vrot.lane.b32.xlu0 %v9572_v1, %s12090_s29  ;;  %2196 = vst.msk [vmem:[#allocation3 + $0xe8] sm:$0xff] %vm2166_vm9, %v2033_v26  ;;  %v4176_v60 = vadd.f32 %v7625_v16, %v9411_v42  ;;  %v4170_v32 = vpop.f32.mrb[13].mxu0  ;;  %v603_v26 = vld [vmem:[#allocation2 + $0x190] sm:$0xff] }
 0x264   : > { %v4171_v1 = vadd.f32 %v9411_v42, %v4170_v32  ;;  %3198 = vrot.lane.b32.xlu1 %v9754_v55, %s8234_s30  ;;  %667 = vst.msk [vmem:[#allocation3 + $0x140] sm:$0xff] %vm384_vm0, %v603_v26  ;;  %v9954_v26 = vld [vmem:[#allocation2 + $0x1d1] sm:$0xff] }
 0x265   : > { %v880_v27 = vpop.permute.xlu0 %879  ;;  %v4442_v18 = vmax.f32 %v4176_v60, 0.0 }
 0x266   : > { %1042 = vst.msk [vmem:[#allocation3 + $0xf0] sm:$0xff] %vm1011_vm6, %v880_v27  ;;  %v4441_v46 = vmax.f32 %v4171_v1, 0.0  ;;  %v3570_v62 = vpop.permute.xlu1 %3569  ;;  %v3798_v39 = vld [vmem:[#allocation3 + $0xd0] sm:$0xff] }
 0x267   : > { %2815 = vrot.lane.b32.xlu0 %v9756_v34, %s12091_s12  ;;  %v4539_v51 = vsel %vm4493_vm15, %v4442_v18, -inf  ;;  %3735 = vst.msk [vmem:[#allocation3 + $0xd8] sm:$0xff] %vm3707_vm13, %v3570_v62  ;;  %7644 = vmatprep.mubr.msk.f32.mxu0 %vm3847_vm14, %v3798_v39 }
 0x268   : > { %v4540_v47 = vmax.f32 %v4538_v50, %v4539_v51  ;;  %v4536_v35 = vsel %vm4493_vm15, %v4441_v46, -inf  ;;  %2046 = vrot.lane.b32.xlu1 %v9678_v57, %s12072_s24  ;;  %v9868_v51 = vld [vmem:[#allocation2 + $0x1ba] sm:$0xff] }
 0x269   : > { %v2416_v63 = vpop.permute.xlu0 %2415  ;;  %v4537_v33 = vmax.f32 %v4535_v49, %v4536_v35  ;;  %v604_v35 = vld [vmem:[#allocation2 + $0x198] sm:$0xff] }
 0x26a   : > { %2580 = vst.msk [vmem:[#allocation3 + $0xe0] sm:$0xff] %vm2551_vm10, %v2416_v63  ;;  %v4696_v58 = vrot.slane %v4540_v47, 1  ;;  %v1265_v4 = vpop.permute.xlu1 %1264  ;;  %v9870_v63 = vld [vmem:[#allocation2 + $0x1c1] sm:$0xff] }
 0x26b   : > { %1663 = vrot.lane.b32.xlu0 %v9680_v52, %s8230_s22  ;;  %v4628_v25 = vrot.slane %v4537_v33, 1  ;;  %1427 = vst.msk [vmem:[#allocation3 + $0xf0] sm:$0xff] %vm1396_vm7, %v1265_v4 }
 0x26c   : > { %v4712_v53 = vmax.f32 %v4540_v47, %v4696_v58  ;;  %3583 = vrot.lane.b32.xlu1 %v9778_v9, %s12092_s16  ;;  %668 = vst.msk [vmem:[#allocation3 + $0x148] sm:$0xff] %vm384_vm0, %v604_v35 }
 0x26d   : > { %v882_v7 = vpop.permute.xlu0 %881  ;;  %v4644_v52 = vmax.f32 %v4537_v33, %v4628_v25 }
 0x26e   : > { %1043 = vst.msk [vmem:[#allocation3 + $0xf8] sm:$0xff] %vm1011_vm6, %v882_v7  ;;  %v2802_v38 = vpop.permute.xlu1 %2801  ;;  %v3799_v2 = vld [vmem:[#allocation3 + $0xd8] sm:$0xff] }
 0x26f   : > { %3200 = vrot.lane.b32.xlu0 %v9780_v8, %s8234_s30  ;;  %4720 = vst.msk [vmem:[#allocation4 + $0x35] sm:$0x1] %vm4502_vm1, %v4712_v53  ;;  %4653 = vst.msk [vmem:[#allocation4 + $0x31] sm:$0x1] %vm4502_vm1, %v4644_v52  ;;  %7645 = vmatmul.mubr.msk.f32.gmra.mrb[26].mxu0 %vm3847_vm14, %v3799_v2 }
 0x270   : > { %4728 = vst.msk [vmem:[#allocation4 + $0x34] sm:$0x4] %vm4660_vm2, %v4712_v53  ;;  %4662 = vst.msk [vmem:[#allocation4 + $0x30] sm:$0x4] %vm4660_vm2, %v4644_v52  ;;  %2048 = vrot.lane.b32.xlu1 %v9702_v48, %s12072_s24 }
 0x271   : > { %4736 = vst.msk [vmem:[#allocation4 + $0x33] sm:$0x10] %vm4669_vm3, %v4712_v53  ;;  %4671 = vst.msk [vmem:[#allocation4 + $0x2f] sm:$0x10] %vm4669_vm3, %v4644_v52  ;;  %v2418_v43 = vpop.permute.xlu0 %2417 }
 0x272   : > { %4744 = vst.msk [vmem:[#allocation4 + $0x32] sm:$0x40] %vm4678_vm5, %v4712_v53  ;;  %4680 = vst.msk [vmem:[#allocation4 + $0x2e] sm:$0x40] %vm4678_vm5, %v4644_v52  ;;  %v1650_v14 = vpop.permute.xlu1 %1649  ;;  %v9896_v52 = vld [vmem:[#allocation2 + $0x1c2] sm:$0xff] }
 0x273   : > { %2966 = vst.msk [vmem:[#allocation3 + $0xe0] sm:$0xff] %vm2937_vm11, %v2802_v38  ;;  %895 = vrot.lane.b32.xlu0 %v9606_v31, %s12088_s15 }
 0x274   : > { %2581 = vst.msk [vmem:[#allocation3 + $0xe8] sm:$0xff] %vm2551_vm10, %v2418_v43  ;;  %3585 = vrot.lane.b32.xlu1 %v9804_v10, %s12092_s16 }
 0x275   : > { %1812 = vst.msk [vmem:[#allocation3 + $0xf0] sm:$0xff] %vm1781_vm8, %v1650_v14  ;;  %v1267_v19 = vpop.permute.xlu0 %1266 }
 0x276   : > { %1428 = vst.msk [vmem:[#allocation3 + $0xf8] sm:$0xff] %vm1396_vm7, %v1267_v19  ;;  %v3187_v28 = vpop.permute.xlu1 %3186  ;;  %v9914_v19 = vld [vmem:[#allocation2 + $0x1c8] sm:$0xff] }
 0x277   : > { %2431 = vrot.lane.b32.xlu0 %v9700_v56, %s12089_s25  ;;  %3351 = vst.msk [vmem:[#allocation3 + $0xe0] sm:$0xff] %vm3322_vm12, %v3187_v28 }
 0x278   : > { %1280 = vrot.lane.b32.xlu1 %v9628_v21, %s12090_s29 }
 0x279   : > { %v9814_v31 = vld [vmem:[#allocation4 + $0x30] sm:$0xff]  ;;  %v2804_v17 = vpop.permute.xlu0 %2803 }
 0x27a   : > { %4899 = vst.msk [vmem:[#allocation5 + $0x20] sm:$0xff] %vm4493_vm15, %v9814_v31  ;;  %v2035_v23 = vpop.permute.xlu1 %2034 }
 0x27b   : > { %2967 = vst.msk [vmem:[#allocation3 + $0xe8] sm:$0xff] %vm2937_vm11, %v2804_v17  ;;  %897 = vrot.lane.b32.xlu0 %v9630_v15, %s12088_s15  ;;  %v4166_v15 = vadd.f32 %v9682_v61, %v9411_v42  ;;  %v485_v17 = vld [vmem:[%s8455_s14 + $0x198] sm:$0xff] }
 0x27c   : > { %2197 = vst.msk [vmem:[#allocation3 + $0xf0] sm:$0xff] %vm2166_vm9, %v2035_v23  ;;  %2817 = vrot.lane.b32.xlu1 %v9824_v29, %s12091_s12  ;;  %v9930_v23 = vld [vmem:[#allocation2 + $0x1c9] sm:$0xff] }
 0x27d   : > { %v1652_v20 = vpop.permute.xlu0 %1651  ;;  %v4440_v16 = vmax.f32 %v4166_v15, 0.0  ;;  %550 = vst.msk [vmem:[#allocation2 + $0x221] sm:$0xff] %vm384_vm0, %v485_v17  ;;  %v605_v15 = vld [vmem:[#allocation2 + $0x1a0] sm:$0xff] }
 0x27e   : > { %1813 = vst.msk [vmem:[#allocation3 + $0xf8] sm:$0xff] %vm1781_vm8, %v1652_v20  ;;  %v3572_v21 = vpop.permute.xlu1 %3571  ;;  %v9932_v20 = vld [vmem:[#allocation2 + $0x1d0] sm:$0xff] }
 0x27f   : > { %2433 = vrot.lane.b32.xlu0 %v9720_v13, %s12089_s25  ;;  %3736 = vst.msk [vmem:[#allocation3 + $0xe0] sm:$0xff] %vm3707_vm13, %v3572_v21  ;;  %v4544_v1 = vsel %vm4493_vm15, %v4440_v16, -inf }
 0x280   : > { %1665 = vrot.lane.b32.xlu1 %v9734_v12, %s8230_s22  ;;  %v4439_v12 = vmax.f32 %v4161_v5, 0.0  ;;  %669 = vst.msk [vmem:[#allocation3 + $0x150] sm:$0xff] %vm384_vm0, %v605_v15 }
 0x281   : > { %v3189_v36 = vpop.permute.xlu0 %3188 }
 0x282   : > { %3352 = vst.msk [vmem:[#allocation3 + $0xe8] sm:$0xff] %vm3322_vm12, %v3189_v36  ;;  %v2037_v54 = vpop.permute.xlu1 %2036  ;;  %v7628_v61 = vpop.f32.mrb[14].mxu0 }
 0x283   : > { %1282 = vrot.lane.b32.xlu0 %v9646_v3, %s12090_s29  ;;  %2198 = vst.msk [vmem:[#allocation3 + $0xf8] sm:$0xff] %vm2166_vm9, %v2037_v54  ;;  %v4186_v41 = vadd.f32 %v7628_v61, %v9411_v42  ;;  %v4180_v44 = vpop.f32.mrb[15].mxu0  ;;  %v9952_v61 = vld [vmem:[#allocation2 + $0x1ca] sm:$0xff] }
 0x284   : > { %v4181_v3 = vadd.f32 %v9411_v42, %v4180_v44  ;;  %3202 = vrot.lane.b32.xlu1 %v9844_v59, %s8234_s30  ;;  %v4541_v42 = vsel %vm4493_vm15, %v4439_v12, -inf }
 0x285   : > { %v884_v40 = vpop.permute.xlu0 %883  ;;  %v4444_v27 = vmax.f32 %v4186_v41, 0.0 }
 0x286   : > { %1044 = vst.msk [vmem:[#allocation3 + $0x100] sm:$0xff] %vm1011_vm6, %v884_v40  ;;  %v4443_v60 = vmax.f32 %v4181_v3, 0.0  ;;  %v3574_v32 = vpop.permute.xlu1 %3573  ;;  %v3800_v45 = vld [vmem:[#allocation3 + $0xe0] sm:$0xff]  ;;  %v606_v40 = vld [vmem:[#allocation2 + $0x1a8] sm:$0xff] }
 0x287   : > { %2819 = vrot.lane.b32.xlu0 %v9846_v37, %s12091_s12  ;;  %v4545_v18 = vsel %vm4493_vm15, %v4444_v27, -inf  ;;  %3737 = vst.msk [vmem:[#allocation3 + $0xe8] sm:$0xff] %vm3707_vm13, %v3574_v32  ;;  %7647 = vmatprep.mubr.msk.f32.mxu0 %vm3847_vm14, %v3800_v45  ;;  %v9970_v3 = vld [vmem:[#allocation2 + $0x1d2] sm:$0xff]  ;;  %v486_v32 = vld [vmem:[%s8455_s14 + $0x1a0] sm:$0xff] }
 0x288   : > { %v4546_v62 = vmax.f32 %v4544_v1, %v4545_v18  ;;  %v4542_v39 = vsel %vm4493_vm15, %v4443_v60, -inf  ;;  %2050 = vrot.lane.b32.xlu1 %v9754_v55, %s12072_s24  ;;  %670 = vst.msk [vmem:[#allocation3 + $0x158] sm:$0xff] %vm384_vm0, %v606_v40  ;;  %551 = vst.msk [vmem:[#allocation2 + $0x231] sm:$0xff] %vm384_vm0, %v486_v32  ;;  %v9986_v1 = vld [vmem:[#allocation2 + $0x1e0] sm:$0xff]  ;;  %v609_v40 = vld [vmem:[#allocation2 + $0x1c8] sm:$0xff] }
 0x289   : > { %v2420_v46 = vpop.permute.xlu0 %2419  ;;  %v4543_v50 = vmax.f32 %v4541_v42, %v4542_v39  ;;  %v487_v42 = vld [vmem:[%s8455_s14 + $0x1a8] sm:$0xff]  ;;  %673 = vst.msk [vmem:[#allocation3 + $0x170] sm:$0xff] %vm384_vm0, %v609_v40  ;;  %v611_v40 = vld [vmem:[#allocation2 + $0x1e0] sm:$0xff] }
 0x28a   : > { %2582 = vst.msk [vmem:[#allocation3 + $0xf0] sm:$0xff] %vm2551_vm10, %v2420_v46  ;;  %v4824_v49 = vrot.slane %v4546_v62, 1  ;;  %v1269_v47 = vpop.permute.xlu1 %1268  ;;  %v10004_v39 = vld [vmem:[#allocation2 + $0x1e8] sm:$0xff] }
 0x28b   : > { %1667 = vrot.lane.b32.xlu0 %v9756_v34, %s8230_s22  ;;  %v4760_v33 = vrot.slane %v4543_v50, 1  ;;  %1429 = vst.msk [vmem:[#allocation3 + $0x100] sm:$0xff] %vm1396_vm7, %v1269_v47  ;;  %v484_v34 = vld [vmem:[%s8455_s14 + $0x190] sm:$0xff]  ;;  %v607_v47 = vld [vmem:[#allocation2 + $0x1b8] sm:$0xff] }
 0x28c   : > { %v4840_v4 = vmax.f32 %v4546_v62, %v4824_v49  ;;  %3587 = vrot.lane.b32.xlu1 %v9868_v51, %s12092_s16  ;;  %549 = vst.msk [vmem:[#allocation2 + $0x219] sm:$0xff] %vm384_vm0, %v484_v34  ;;  %552 = vst.msk [vmem:[#allocation2 + $0x239] sm:$0xff] %vm384_vm0, %v487_v42  ;;  %v10002_v62 = vld [vmem:[#allocation2 + $0x1e1] sm:$0xff] }
 0x28d   : > { %v886_v58 = vpop.permute.xlu0 %885  ;;  %v4776_v6 = vmax.f32 %v4543_v50, %v4760_v33  ;;  %671 = vst.msk [vmem:[#allocation3 + $0x160] sm:$0xff] %vm384_vm0, %v607_v47  ;;  %v10024_v34 = vld [vmem:[#allocation2 + $0x1e2] sm:$0xff]  ;;  %v10109_v47 = vld [vmem:[#allocation2 + $0x1f9] sm:$0xff]  ;;  %675 = vst.msk [vmem:[#allocation3 + $0x180] sm:$0xff] %vm384_vm0, %v611_v40 }
 0x28e   : > { %1045 = vst.msk [vmem:[#allocation3 + $0x108] sm:$0xff] %vm1011_vm6, %v886_v58  ;;  %v2806_v25 = vpop.permute.xlu1 %2805  ;;  %v3801_v7 = vld [vmem:[#allocation3 + $0xe8] sm:$0xff] }
 0x28f   : > { %3204 = vrot.lane.b32.xlu0 %v9870_v63, %s8234_s30  ;;  %4848 = vst.msk [vmem:[#allocation4 + $0x3d] sm:$0x1] %vm4502_vm1, %v4840_v4  ;;  %4784 = vst.msk [vmem:[#allocation4 + $0x39] sm:$0x1] %vm4502_vm1, %v4776_v6  ;;  %7648 = vmatmul.mubr.msk.f32.gmra.mrb[28].mxu0 %vm3847_vm14, %v3801_v7  ;;  %v608_v7 = vld [vmem:[#allocation2 + $0x1c0] sm:$0xff] }
 0x290   : > { %4856 = vst.msk [vmem:[#allocation4 + $0x3c] sm:$0x4] %vm4660_vm2, %v4840_v4  ;;  %4792 = vst.msk [vmem:[#allocation4 + $0x38] sm:$0x4] %vm4660_vm2, %v4776_v6  ;;  %2052 = vrot.lane.b32.xlu1 %v9780_v8, %s12072_s24 }
 0x291   : > { %4864 = vst.msk [vmem:[#allocation4 + $0x3b] sm:$0x10] %vm4669_vm3, %v4840_v4  ;;  %4800 = vst.msk [vmem:[#allocation4 + $0x37] sm:$0x10] %vm4669_vm3, %v4776_v6  ;;  %v2422_v53 = vpop.permute.xlu0 %2421 }
 0x292   : > { %4872 = vst.msk [vmem:[#allocation4 + $0x3a] sm:$0x40] %vm4678_vm5, %v4840_v4  ;;  %4808 = vst.msk [vmem:[#allocation4 + $0x36] sm:$0x40] %vm4678_vm5, %v4776_v6  ;;  %v1654_v38 = vpop.permute.xlu1 %1653  ;;  %v10026_v6 = vld [vmem:[#allocation2 + $0x1e9] sm:$0xff] }
 0x293   : > { %2968 = vst.msk [vmem:[#allocation3 + $0xf0] sm:$0xff] %vm2937_vm11, %v2806_v25  ;;  %899 = vrot.lane.b32.xlu0 %v9678_v57, %s12088_s15 }
 0x294   : > { %2583 = vst.msk [vmem:[#allocation3 + $0xf8] sm:$0xff] %vm2551_vm10, %v2422_v53  ;;  %3589 = vrot.lane.b32.xlu1 %v9896_v52, %s12092_s16 }
 0x295   : > { %1814 = vst.msk [vmem:[#allocation3 + $0x100] sm:$0xff] %vm1781_vm8, %v1654_v38  ;;  %v1271_v2 = vpop.permute.xlu0 %1270  ;;  %v488_v38 = vld [vmem:[%s8455_s14 + $0x1b0] sm:$0xff] }
 0x296   : > { %1430 = vst.msk [vmem:[#allocation3 + $0x108] sm:$0xff] %vm1396_vm7, %v1271_v2  ;;  %v3191_v43 = vpop.permute.xlu1 %3190 }
 0x297   : > { %2435 = vrot.lane.b32.xlu0 %v9778_v9, %s12089_s25  ;;  %3353 = vst.msk [vmem:[#allocation3 + $0xf0] sm:$0xff] %vm3322_vm12, %v3191_v43 }
 0x298   : > { %1284 = vrot.lane.b32.xlu1 %v9700_v56, %s12090_s29  ;;  %672 = vst.msk [vmem:[#allocation3 + $0x168] sm:$0xff] %vm384_vm0, %v608_v7  ;;  %553 = vst.msk [vmem:[#allocation2 + $0x241] sm:$0xff] %vm384_vm0, %v488_v38 }
 0x299   : > { %v9904_v14 = vld [vmem:[#allocation4 + $0x38] sm:$0xff]  ;;  %v2808_v57 = vpop.permute.xlu0 %2807 }
 0x29a   : > { %4900 = vst.msk [vmem:[#allocation5 + $0x28] sm:$0xff] %vm4493_vm15, %v9904_v14  ;;  %v2039_v11 = vpop.permute.xlu1 %2038 }
 0x29b   : > { %2969 = vst.msk [vmem:[#allocation3 + $0xf8] sm:$0xff] %vm2937_vm11, %v2808_v57  ;;  %901 = vrot.lane.b32.xlu0 %v9702_v48, %s12088_s15 }
 0x29c   : > { %2199 = vst.msk [vmem:[#allocation3 + $0x100] sm:$0xff] %vm2166_vm9, %v2039_v11  ;;  %2821 = vrot.lane.b32.xlu1 %v9914_v19, %s12091_s12 }
 0x29d   : > { %v1656_v28 = vpop.permute.xlu0 %1655 }
 0x29e   : > { %1815 = vst.msk [vmem:[#allocation3 + $0x108] sm:$0xff] %vm1781_vm8, %v1656_v28  ;;  %v3576_v56 = vpop.permute.xlu1 %3575 }
 0x29f   : > { %2437 = vrot.lane.b32.xlu0 %v9804_v10, %s12089_s25  ;;  %3738 = vst.msk [vmem:[#allocation3 + $0xf0] sm:$0xff] %vm3707_vm13, %v3576_v56 }
 0x2a0   : > { %1669 = vrot.lane.b32.xlu1 %v9824_v29, %s8230_s22 }
 0x2a1   : > { %v3193_v48 = vpop.permute.xlu0 %3192 }
 0x2a2   : > { %3354 = vst.msk [vmem:[#allocation3 + $0xf8] sm:$0xff] %vm3322_vm12, %v3193_v48  ;;  %v2041_v22 = vpop.permute.xlu1 %2040  ;;  %v9934_v21 = vpop.f32.mrb[16].mxu0 }
 0x2a3   : > { %1286 = vrot.lane.b32.xlu0 %v9720_v13, %s12090_s29  ;;  %2200 = vst.msk [vmem:[#allocation3 + $0x108] sm:$0xff] %vm2166_vm9, %v2041_v22  ;;  %v9937_v5 = vpop.f32.mrb[17].mxu0  ;;  %v489_v22 = vld [vmem:[%s8455_s14 + $0x1b8] sm:$0xff] }
 0x2a4   : > { %3206 = vrot.lane.b32.xlu1 %v9930_v23, %s8234_s30  ;;  %554 = vst.msk [vmem:[#allocation2 + $0x249] sm:$0xff] %vm384_vm0, %v489_v22 }
 0x2a5   : > { %v888_v36 = vpop.permute.xlu0 %887 }
 0x2a6   : > { %1046 = vst.msk [vmem:[#allocation3 + $0x110] sm:$0xff] %vm1011_vm6, %v888_v36  ;;  %v3578_v13 = vpop.permute.xlu1 %3577  ;;  %v3802_v29 = vld [vmem:[#allocation3 + $0xf0] sm:$0xff] }
 0x2a7   : > { %2823 = vrot.lane.b32.xlu0 %v9932_v20, %s12091_s12  ;;  %3739 = vst.msk [vmem:[#allocation3 + $0xf8] sm:$0xff] %vm3707_vm13, %v3578_v13  ;;  %7650 = vmatprep.mubr.msk.f32.mxu0 %vm3847_vm14, %v3802_v29  ;;  %v10083_v29 = vld [vmem:[#allocation2 + $0x1f1] sm:$0xff] }
 0x2a8   : > { %2054 = vrot.lane.b32.xlu1 %v9844_v59, %s12072_s24 }
 0x2a9   : > { %v2424_v54 = vpop.permute.xlu0 %2423 }
 0x2aa   : > { %2584 = vst.msk [vmem:[#allocation3 + $0x100] sm:$0xff] %vm2551_vm10, %v2424_v54  ;;  %v1273_v16 = vpop.permute.xlu1 %1272  ;;  %v10085_v54 = vld [vmem:[#allocation2 + $0x1f8] sm:$0xff] }
 0x2ab   : > { %1671 = vrot.lane.b32.xlu0 %v9846_v37, %s8230_s22  ;;  %1431 = vst.msk [vmem:[#allocation3 + $0x110] sm:$0xff] %vm1396_vm7, %v1273_v16 }
 0x2ac   : > { %3591 = vrot.lane.b32.xlu1 %v9952_v61, %s12092_s16 }
 0x2ad   : > { %v890_v41 = vpop.permute.xlu0 %889 }
 0x2ae   : > { %1047 = vst.msk [vmem:[#allocation3 + $0x118] sm:$0xff] %vm1011_vm6, %v890_v41  ;;  %v2810_v37 = vpop.permute.xlu1 %2809  ;;  %v3803_v44 = vld [vmem:[#allocation3 + $0xf8] sm:$0xff] }
 0x2af   : > { %3208 = vrot.lane.b32.xlu0 %v9954_v26, %s8234_s30  ;;  %2970 = vst.msk [vmem:[#allocation3 + $0x100] sm:$0xff] %vm2937_vm11, %v2810_v37  ;;  %7651 = vmatmul.mubr.msk.f32.gmra.mrb[30].mxu0 %vm3847_vm14, %v3803_v44 }
 0x2b0   : > { %2056 = vrot.lane.b32.xlu1 %v9870_v63, %s12072_s24 }
 0x2b1   : > { %v2426_v12 = vpop.permute.xlu0 %2425 }
 0x2b2   : > { %2585 = vst.msk [vmem:[#allocation3 + $0x108] sm:$0xff] %vm2551_vm10, %v2426_v12  ;;  %v1658_v27 = vpop.permute.xlu1 %1657 }
 0x2b3   : > { %903 = vrot.lane.b32.xlu0 %v9754_v55, %s12088_s15  ;;  %1816 = vst.msk [vmem:[#allocation3 + $0x110] sm:$0xff] %vm1781_vm8, %v1658_v27 }
 0x2b4   : > { %3593 = vrot.lane.b32.xlu1 %v9970_v3, %s12092_s16 }
 0x2b5   : > { %v1275_v60 = vpop.permute.xlu0 %1274 }
 0x2b6   : > { %1432 = vst.msk [vmem:[#allocation3 + $0x118] sm:$0xff] %vm1396_vm7, %v1275_v60  ;;  %v3195_v45 = vpop.permute.xlu1 %3194 }
 0x2b7   : > { %2439 = vrot.lane.b32.xlu0 %v9868_v51, %s12089_s25  ;;  %3355 = vst.msk [vmem:[#allocation3 + $0x100] sm:$0xff] %vm3322_vm12, %v3195_v45 }
 0x2b8   : > { %1288 = vrot.lane.b32.xlu1 %v9778_v9, %s12090_s29 }
 0x2b9   : > { %v2812_v55 = vpop.permute.xlu0 %2811 }
 0x2ba   : > { %2971 = vst.msk [vmem:[#allocation3 + $0x108] sm:$0xff] %vm2937_vm11, %v2812_v55  ;;  %v2043_v18 = vpop.permute.xlu1 %2042 }
 0x2bb   : > { %905 = vrot.lane.b32.xlu0 %v9780_v8, %s12088_s15  ;;  %2201 = vst.msk [vmem:[#allocation3 + $0x110] sm:$0xff] %vm2166_vm9, %v2043_v18 }
 0x2bc   : > { %2825 = vrot.lane.b32.xlu1 %v9986_v1, %s12091_s12 }
 0x2bd   : > { %v1660_v46 = vpop.permute.xlu0 %1659 }
 0x2be   : > { %1817 = vst.msk [vmem:[#allocation3 + $0x118] sm:$0xff] %vm1781_vm8, %v1660_v46  ;;  %v3580_v9 = vpop.permute.xlu1 %3579 }
 0x2bf   : > { %2441 = vrot.lane.b32.xlu0 %v9896_v52, %s12089_s25  ;;  %3740 = vst.msk [vmem:[#allocation3 + $0x100] sm:$0xff] %vm3707_vm13, %v3580_v9 }
 0x2c0   : > { %1673 = vrot.lane.b32.xlu1 %v9914_v19, %s8230_s22  ;;  %v10044_v19 = vld [vmem:[#allocation2 + $0x1ea] sm:$0xff] }
 0x2c1   : > { %v3197_v8 = vpop.permute.xlu0 %3196 }
 0x2c2   : > { %3356 = vst.msk [vmem:[#allocation3 + $0x108] sm:$0xff] %vm3322_vm12, %v3197_v8  ;;  %v2045_v50 = vpop.permute.xlu1 %2044  ;;  %v10006_v49 = vpop.f32.mrb[18].mxu0 }
 0x2c3   : > { %1290 = vrot.lane.b32.xlu0 %v9804_v10, %s12090_s29  ;;  %2202 = vst.msk [vmem:[#allocation3 + $0x118] sm:$0xff] %vm2166_vm9, %v2045_v50  ;;  %v10009_v33 = vpop.f32.mrb[19].mxu0  ;;  %v10107_v50 = vld [vmem:[#allocation2 + $0x1f2] sm:$0xff] }
 0x2c4   : > { %3210 = vrot.lane.b32.xlu1 %v10002_v62, %s8234_s30 }
 0x2c5   : > { %v892_v35 = vpop.permute.xlu0 %891 }
 0x2c6   : > { %1048 = vst.msk [vmem:[#allocation3 + $0x120] sm:$0xff] %vm1011_vm6, %v892_v35  ;;  %v3582_v10 = vpop.permute.xlu1 %3581  ;;  %v3804_v58 = vld [vmem:[#allocation3 + $0x100] sm:$0xff] }
 0x2c7   : > { %2827 = vrot.lane.b32.xlu0 %v10004_v39, %s12091_s12  ;;  %3741 = vst.msk [vmem:[#allocation3 + $0x108] sm:$0xff] %vm3707_vm13, %v3582_v10  ;;  %7653 = vmatprep.mubr.msk.f32.mxu0 %vm3847_vm14, %v3804_v58  ;;  %v610_v58 = vld [vmem:[#allocation2 + $0x1d0] sm:$0xff] }
 0x2c8   : > { %2058 = vrot.lane.b32.xlu1 %v9930_v23, %s12072_s24  ;;  %674 = vst.msk [vmem:[#allocation3 + $0x178] sm:$0xff] %vm384_vm0, %v610_v58 }
 0x2c9   : > { %v2428_v4 = vpop.permute.xlu0 %2427 }
 0x2ca   : > { %2586 = vst.msk [vmem:[#allocation3 + $0x110] sm:$0xff] %vm2551_vm10, %v2428_v4  ;;  %v1277_v25 = vpop.permute.xlu1 %1276 }
 0x2cb   : > { %1675 = vrot.lane.b32.xlu0 %v9932_v20, %s8230_s22  ;;  %1433 = vst.msk [vmem:[#allocation3 + $0x120] sm:$0xff] %vm1396_vm7, %v1277_v25 }
 0x2cc   : > { %3595 = vrot.lane.b32.xlu1 %v10024_v34, %s12092_s16 }
 0x2cd   : > { %v894_v53 = vpop.permute.xlu0 %893 }
 0x2ce   : > { %1049 = vst.msk [vmem:[#allocation3 + $0x128] sm:$0xff] %vm1011_vm6, %v894_v53  ;;  %v2814_v2 = vpop.permute.xlu1 %2813  ;;  %v3805_v43 = vld [vmem:[#allocation3 + $0x108] sm:$0xff] }
 0x2cf   : > { %3212 = vrot.lane.b32.xlu0 %v10026_v6, %s8234_s30  ;;  %2972 = vst.msk [vmem:[#allocation3 + $0x110] sm:$0xff] %vm2937_vm11, %v2814_v2  ;;  %7654 = vmatmul.mubr.msk.f32.gmra.mrb[32].mxu0 %vm3847_vm14, %v3805_v43  ;;  %v10133_v43 = vld [vmem:[#allocation2 + $0x1fa] sm:$0xff] }
 0x2d0   : > { %2060 = vrot.lane.b32.xlu1 %v9954_v26, %s12072_s24  ;;  %s12093_s24 = smov 12  }
 0x2d1   : > { %v2430_v57 = vpop.permute.xlu0 %2429 }
 0x2d2   : > { %2587 = vst.msk [vmem:[#allocation3 + $0x118] sm:$0xff] %vm2551_vm10, %v2430_v57  ;;  %v1662_v11 = vpop.permute.xlu1 %1661 }
 0x2d3   : > { %907 = vrot.lane.b32.xlu0 %v9844_v59, %s12088_s15  ;;  %1818 = vst.msk [vmem:[#allocation3 + $0x120] sm:$0xff] %vm1781_vm8, %v1662_v11  ;;  %v10058_v59 = vld [vmem:[#allocation2 + $0x1f0] sm:$0xff] }
 0x2d4   : > { %3597 = vrot.lane.b32.xlu1 %v10044_v19, %s12092_s16 }
 0x2d5   : > { %v1279_v28 = vpop.permute.xlu0 %1278 }
 0x2d6   : > { %1434 = vst.msk [vmem:[#allocation3 + $0x128] sm:$0xff] %vm1396_vm7, %v1279_v28  ;;  %v3199_v17 = vpop.permute.xlu1 %3198  ;;  %v490_v28 = vld [vmem:[%s8455_s14 + $0x1c0] sm:$0xff] }
 0x2d7   : > { %2443 = vrot.lane.b32.xlu0 %v9952_v61, %s12089_s25  ;;  %3357 = vst.msk [vmem:[#allocation3 + $0x110] sm:$0xff] %vm3322_vm12, %v3199_v17 }
 0x2d8   : > { %1292 = vrot.lane.b32.xlu1 %v9868_v51, %s12090_s29  ;;  %555 = vst.msk [vmem:[#allocation2 + $0x259] sm:$0xff] %vm384_vm0, %v490_v28 }
 0x2d9   : > { %v2816_v56 = vpop.permute.xlu0 %2815 }
 0x2da   : > { %2973 = vst.msk [vmem:[#allocation3 + $0x118] sm:$0xff] %vm2937_vm11, %v2816_v56  ;;  %v2047_v48 = vpop.permute.xlu1 %2046 }
 0x2db   : > { %909 = vrot.lane.b32.xlu0 %v9870_v63, %s12088_s15  ;;  %2203 = vst.msk [vmem:[#allocation3 + $0x120] sm:$0xff] %vm2166_vm9, %v2047_v48  ;;  %v10071_v63 = vld [vmem:[%s12052_s2] ss:$0 sm:$0xff]  ;;  %v10153_v48 = vld [vmem:[#allocation2 + $0x208] sm:$0xff] }
 0x2dc   : > { %2829 = vrot.lane.b32.xlu1 %v10058_v59, %s12091_s12  ;;  %v4196_v15 = vadd.f32 %v10071_v63, %v9934_v21  ;;  %v4191_v13 = vadd.f32 %v10071_v63, %v9937_v5 }
 0x2dd   : > { %v1664_v20 = vpop.permute.xlu0 %1663 }
 0x2de   : > { %1819 = vst.msk [vmem:[#allocation3 + $0x128] sm:$0xff] %vm1781_vm8, %v1664_v20  ;;  %v3584_v51 = vpop.permute.xlu1 %3583  ;;  %v4446_v41 = vmax.f32 %v4196_v15, 0.0  ;;  %v4445_v12 = vmax.f32 %v4191_v13, 0.0  ;;  %v10173_v13 = vld [vmem:[#allocation2 + $0x209] sm:$0xff] }
 0x2df   : > { %2445 = vrot.lane.b32.xlu0 %v9970_v3, %s12089_s25  ;;  %3742 = vst.msk [vmem:[#allocation3 + $0x110] sm:$0xff] %vm3707_vm13, %v3584_v51  ;;  %v491_v51 = vld [vmem:[%s8455_s14 + $0x1c8] sm:$0xff] }
 0x2e0   : > { %1677 = vrot.lane.b32.xlu1 %v9986_v1, %s8230_s22  ;;  %v4550_v55 = vsel %vm4493_vm15, %v4446_v41, -inf  ;;  %v4547_v46 = vsel %vm4493_vm15, %v4445_v12, -inf  ;;  %556 = vst.msk [vmem:[#allocation2 + $0x261] sm:$0xff] %vm384_vm0, %v491_v51 }
 0x2e1   : > { %v3201_v36 = vpop.permute.xlu0 %3200 }
 0x2e2   : > { %3358 = vst.msk [vmem:[#allocation3 + $0x118] sm:$0xff] %vm3322_vm12, %v3201_v36  ;;  %v2049_v16 = vpop.permute.xlu1 %2048  ;;  %v7637_v21 = vpop.f32.mrb[20].mxu0  ;;  %v4201_v36 = vadd.f32 %v10071_v63, %v10009_v33 }
 0x2e3   : > { %1294 = vrot.lane.b32.xlu0 %v9896_v52, %s12090_s29  ;;  %2204 = vst.msk [vmem:[#allocation3 + $0x128] sm:$0xff] %vm2166_vm9, %v2049_v16  ;;  %v4216_v5 = vadd.f32 %v10071_v63, %v7637_v21  ;;  %v4210_v44 = vpop.f32.mrb[21].mxu0  ;;  %v10175_v16 = vld [vmem:[#allocation2 + $0x210] sm:$0xff] }
 0x2e4   : > { %v4211_v52 = vadd.f32 %v10071_v63, %v4210_v44  ;;  %3214 = vrot.lane.b32.xlu1 %v10083_v29, %s8234_s30 }
 0x2e5   : > { %v896_v37 = vpop.permute.xlu0 %895  ;;  %v4450_v27 = vmax.f32 %v4216_v5, 0.0 }
 0x2e6   : > { %1050 = vst.msk [vmem:[#allocation3 + $0x130] sm:$0xff] %vm1011_vm6, %v896_v37  ;;  %v4449_v60 = vmax.f32 %v4211_v52, 0.0  ;;  %v3586_v32 = vpop.permute.xlu1 %3585  ;;  %v3806_v45 = vld [vmem:[#allocation3 + $0x110] sm:$0xff] }
 0x2e7   : > { %2831 = vrot.lane.b32.xlu0 %v10085_v54, %s12091_s12  ;;  %v4551_v1 = vsel %vm4493_vm15, %v4450_v27, -inf  ;;  %3743 = vst.msk [vmem:[#allocation3 + $0x118] sm:$0xff] %vm3707_vm13, %v3586_v32  ;;  %7656 = vmatprep.mubr.msk.f32.mxu0 %vm3847_vm14, %v3806_v45 }
 0x2e8   : > { %v4552_v42 = vmax.f32 %v4550_v55, %v4551_v1  ;;  %v4548_v9 = vsel %vm4493_vm15, %v4449_v60, -inf  ;;  %2062 = vrot.lane.b32.xlu1 %v10002_v62, %s12093_s24 }
 0x2e9   : > { %v2432_v18 = vpop.permute.xlu0 %2431  ;;  %v4549_v8 = vmax.f32 %v4547_v46, %v4548_v9  ;;  %v10199_v9 = vld [vmem:[#allocation2 + $0x211] sm:$0xff] }
 0x2ea   : > { %2588 = vst.msk [vmem:[#allocation3 + $0x120] sm:$0xff] %vm2551_vm10, %v2432_v18  ;;  %v4697_v35 = vrot.slane %v4552_v42, 1  ;;  %v1281_v10 = vpop.permute.xlu1 %1280 }
 0x2eb   : > { %1679 = vrot.lane.b32.xlu0 %v10004_v39, %s8230_s22  ;;  %v4629_v4 = vrot.slane %v4549_v8, 1  ;;  %1435 = vst.msk [vmem:[#allocation3 + $0x130] sm:$0xff] %vm1396_vm7, %v1281_v10  ;;  %v612_v10 = vld [vmem:[#allocation2 + $0x1e8] sm:$0xff] }
 0x2ec   : > { %v4713_v7 = vmax.f32 %v4552_v42, %v4697_v35  ;;  %3599 = vrot.lane.b32.xlu1 %v10107_v50, %s12092_s16  ;;  %v10197_v42 = vld [vmem:[#allocation2 + $0x20a] sm:$0xff]  ;;  %676 = vst.msk [vmem:[#allocation3 + $0x188] sm:$0xff] %vm384_vm0, %v612_v10 }
 0x2ed   : > { %v898_v25 = vpop.permute.xlu0 %897  ;;  %v4645_v39 = vmax.f32 %v4549_v8, %v4629_v4 }
 0x2ee   : > { %1051 = vst.msk [vmem:[#allocation3 + $0x138] sm:$0xff] %vm1011_vm6, %v898_v25  ;;  %v2818_v53 = vpop.permute.xlu1 %2817  ;;  %v3807_v38 = vld [vmem:[#allocation3 + $0x118] sm:$0xff] }
 0x2ef   : > { %3216 = vrot.lane.b32.xlu0 %v10109_v47, %s8234_s30  ;;  %4721 = vst.msk [vmem:[#allocation4 + $0x4d] sm:$0x1] %vm4502_vm1, %v4713_v7  ;;  %4654 = vst.msk [vmem:[#allocation4 + $0x49] sm:$0x1] %vm4502_vm1, %v4645_v39  ;;  %7657 = vmatmul.mubr.msk.f32.gmra.mrb[34].mxu0 %vm3847_vm14, %v3807_v38 }
 0x2f0   : > { %4729 = vst.msk [vmem:[#allocation4 + $0x4c] sm:$0x4] %vm4660_vm2, %v4713_v7  ;;  %4663 = vst.msk [vmem:[#allocation4 + $0x48] sm:$0x4] %vm4660_vm2, %v4645_v39  ;;  %2064 = vrot.lane.b32.xlu1 %v10026_v6, %s12093_s24 }
 0x2f1   : > { %4737 = vst.msk [vmem:[#allocation4 + $0x4b] sm:$0x10] %vm4669_vm3, %v4713_v7  ;;  %4672 = vst.msk [vmem:[#allocation4 + $0x47] sm:$0x10] %vm4669_vm3, %v4645_v39  ;;  %v2434_v2 = vpop.permute.xlu0 %2433 }
 0x2f2   : > { %4745 = vst.msk [vmem:[#allocation4 + $0x4a] sm:$0x40] %vm4678_vm5, %v4713_v7  ;;  %4681 = vst.msk [vmem:[#allocation4 + $0x46] sm:$0x40] %vm4678_vm5, %v4645_v39  ;;  %v1666_v57 = vpop.permute.xlu1 %1665 }
 0x2f3   : > { %2974 = vst.msk [vmem:[#allocation3 + $0x120] sm:$0xff] %vm2937_vm11, %v2818_v53  ;;  %911 = vrot.lane.b32.xlu0 %v9930_v23, %s12088_s15 }
 0x2f4   : > { %2589 = vst.msk [vmem:[#allocation3 + $0x128] sm:$0xff] %vm2551_vm10, %v2434_v2  ;;  %3601 = vrot.lane.b32.xlu1 %v10133_v43, %s12092_s16  ;;  %v493_v2 = vld [vmem:[%s8455_s14 + $0x1d8] sm:$0xff] }
 0x2f5   : > { %1820 = vst.msk [vmem:[#allocation3 + $0x130] sm:$0xff] %vm1781_vm8, %v1666_v57  ;;  %v1283_v11 = vpop.permute.xlu0 %1282  ;;  %v10226_v57 = vld [vmem:[#allocation2 + $0x212] sm:$0xff] }
 0x2f6   : > { %1436 = vst.msk [vmem:[#allocation3 + $0x138] sm:$0xff] %vm1396_vm7, %v1283_v11  ;;  %v3203_v17 = vpop.permute.xlu1 %3202 }
 0x2f7   : > { %2447 = vrot.lane.b32.xlu0 %v10024_v34, %s12089_s25  ;;  %3359 = vst.msk [vmem:[#allocation3 + $0x120] sm:$0xff] %vm3322_vm12, %v3203_v17 }
 0x2f8   : > { %1296 = vrot.lane.b32.xlu1 %v9952_v61, %s12090_s29  ;;  %558 = vst.msk [vmem:[#allocation2 + $0x271] sm:$0xff] %vm384_vm0, %v493_v2 }
 0x2f9   : > { %v10143_v23 = vld [vmem:[#allocation4 + $0x48] sm:$0xff]  ;;  %v2820_v56 = vpop.permute.xlu0 %2819 }
 0x2fa   : > { %4901 = vst.msk [vmem:[#allocation5 + $0x30] sm:$0xff] %vm4493_vm15, %v10143_v23  ;;  %v2051_v20 = vpop.permute.xlu1 %2050 }
 0x2fb   : > { %2975 = vst.msk [vmem:[#allocation3 + $0x128] sm:$0xff] %vm2937_vm11, %v2820_v56  ;;  %913 = vrot.lane.b32.xlu0 %v9954_v26, %s12088_s15  ;;  %v4206_v26 = vadd.f32 %v10071_v63, %v10006_v49 }
 0x2fc   : > { %2205 = vst.msk [vmem:[#allocation3 + $0x130] sm:$0xff] %vm2166_vm9, %v2051_v20  ;;  %2833 = vrot.lane.b32.xlu1 %v10153_v48, %s12091_s12  ;;  %v10245_v20 = vld [vmem:[#allocation2 + $0x218] sm:$0xff] }
 0x2fd   : > { %v1668_v22 = vpop.permute.xlu0 %1667  ;;  %v4448_v41 = vmax.f32 %v4206_v26, 0.0  ;;  %v10261_v26 = vld [vmem:[#allocation2 + $0x220] sm:$0xff] }
 0x2fe   : > { %1821 = vst.msk [vmem:[#allocation3 + $0x138] sm:$0xff] %vm1781_vm8, %v1668_v22  ;;  %v3588_v61 = vpop.permute.xlu1 %3587 }
 0x2ff   : > { %2449 = vrot.lane.b32.xlu0 %v10044_v19, %s12089_s25  ;;  %3744 = vst.msk [vmem:[#allocation3 + $0x120] sm:$0xff] %vm3707_vm13, %v3588_v61  ;;  %v4556_v60 = vsel %vm4493_vm15, %v4448_v41, -inf }
 0x300   : > { %1681 = vrot.lane.b32.xlu1 %v10058_v59, %s8230_s22  ;;  %v4447_v59 = vmax.f32 %v4201_v36, 0.0 }
 0x301   : > { %v3205_v15 = vpop.permute.xlu0 %3204 }
 0x302   : > { %3360 = vst.msk [vmem:[#allocation3 + $0x128] sm:$0xff] %vm3322_vm12, %v3205_v15  ;;  %v2053_v21 = vpop.permute.xlu1 %2052  ;;  %v7640_v49 = vpop.f32.mrb[22].mxu0  ;;  %v4553_v55 = vsel %vm4493_vm15, %v4447_v59, -inf  ;;  %v614_v59 = vld [vmem:[#allocation2 + $0x1f8] sm:$0xff] }
 0x303   : > { %1298 = vrot.lane.b32.xlu0 %v9970_v3, %s12090_s29  ;;  %2206 = vst.msk [vmem:[#allocation3 + $0x138] sm:$0xff] %vm2166_vm9, %v2053_v21  ;;  %v4226_v33 = vadd.f32 %v10071_v63, %v7640_v49  ;;  %v4220_v5 = vpop.f32.mrb[23].mxu0  ;;  %v613_v21 = vld [vmem:[#allocation2 + $0x1f0] sm:$0xff] }
 0x304   : > { %v4221_v3 = vadd.f32 %v10071_v63, %v4220_v5  ;;  %3218 = vrot.lane.b32.xlu1 %v10173_v13, %s8234_s30  ;;  %677 = vst.msk [vmem:[#allocation3 + $0x190] sm:$0xff] %vm384_vm0, %v613_v21  ;;  %678 = vst.msk [vmem:[#allocation3 + $0x198] sm:$0xff] %vm384_vm0, %v614_v59  ;;  %v10409_v59 = vld [vmem:[#allocation2 + $0x248] sm:$0xff] }
 0x305   : > { %v900_v37 = vpop.permute.xlu0 %899  ;;  %v4452_v44 = vmax.f32 %v4226_v33, 0.0  ;;  %v10283_v33 = vld [vmem:[#allocation2 + $0x221] sm:$0xff] }
 0x306   : > { %1052 = vst.msk [vmem:[#allocation3 + $0x140] sm:$0xff] %vm1011_vm6, %v900_v37  ;;  %v4451_v12 = vmax.f32 %v4221_v3, 0.0  ;;  %v3590_v52 = vpop.permute.xlu1 %3589  ;;  %v3808_v27 = vld [vmem:[#allocation3 + $0x120] sm:$0xff]  ;;  %v10281_v37 = vld [vmem:[#allocation2 + $0x21a] sm:$0xff] }
 0x307   : > { %2835 = vrot.lane.b32.xlu0 %v10175_v16, %s12091_s12  ;;  %v4557_v32 = vsel %vm4493_vm15, %v4452_v44, -inf  ;;  %3745 = vst.msk [vmem:[#allocation3 + $0x128] sm:$0xff] %vm3707_vm13, %v3590_v52  ;;  %7659 = vmatprep.mubr.msk.f32.mxu0 %vm3847_vm14, %v3808_v27  ;;  %v10299_v52 = vld [vmem:[#allocation2 + $0x222] sm:$0xff] }
 0x308   : > { %v4558_v1 = vmax.f32 %v4556_v60, %v4557_v32  ;;  %v4554_v18 = vsel %vm4493_vm15, %v4451_v12, -inf  ;;  %2066 = vrot.lane.b32.xlu1 %v10083_v29, %s12093_s24  ;;  %v494_v32 = vld [vmem:[%s8455_s14 + $0x1e0] sm:$0xff] }
 0x309   : > { %v2436_v45 = vpop.permute.xlu0 %2435  ;;  %v4555_v46 = vmax.f32 %v4553_v55, %v4554_v18  ;;  %559 = vst.msk [vmem:[#allocation2 + $0x281] sm:$0xff] %vm384_vm0, %v494_v32  ;;  %v10315_v55 = vld [vmem:[#allocation2 + $0x230] sm:$0xff] }
 0x30a   : > { %2590 = vst.msk [vmem:[#allocation3 + $0x130] sm:$0xff] %vm2551_vm10, %v2436_v45  ;;  %v4825_v8 = vrot.slane %v4558_v1, 1  ;;  %v1285_v35 = vpop.permute.xlu1 %1284 }
 0x30b   : > { %1683 = vrot.lane.b32.xlu0 %v10085_v54, %s8230_s22  ;;  %v4761_v58 = vrot.slane %v4555_v46, 1  ;;  %1437 = vst.msk [vmem:[#allocation3 + $0x140] sm:$0xff] %vm1396_vm7, %v1285_v35  ;;  %v492_v54 = vld [vmem:[%s8455_s14 + $0x1d0] sm:$0xff]  ;;  %v10333_v35 = vld [vmem:[#allocation2 + $0x238] sm:$0xff] }
 0x30c   : > { %v4841_v25 = vmax.f32 %v4558_v1, %v4825_v8  ;;  %3603 = vrot.lane.b32.xlu1 %v10197_v42, %s12092_s16  ;;  %557 = vst.msk [vmem:[#allocation2 + $0x269] sm:$0xff] %vm384_vm0, %v492_v54  ;;  %v10331_v8 = vld [vmem:[#allocation2 + $0x231] sm:$0xff] }
 0x30d   : > { %v902_v4 = vpop.permute.xlu0 %901  ;;  %v4777_v7 = vmax.f32 %v4555_v46, %v4761_v58  ;;  %v495_v46 = vld [vmem:[%s8455_s14 + $0x1e8] sm:$0xff] }
 0x30e   : > { %1053 = vst.msk [vmem:[#allocation3 + $0x148] sm:$0xff] %vm1011_vm6, %v902_v4  ;;  %v2822_v39 = vpop.permute.xlu1 %2821  ;;  %v3809_v53 = vld [vmem:[#allocation3 + $0x128] sm:$0xff]  ;;  %v615_v4 = vld [vmem:[#allocation2 + $0x208] sm:$0xff] }
 0x30f   : > { %3220 = vrot.lane.b32.xlu0 %v10199_v9, %s8234_s30  ;;  %4849 = vst.msk [vmem:[#allocation4 + $0x55] sm:$0x1] %vm4502_vm1, %v4841_v25  ;;  %4785 = vst.msk [vmem:[#allocation4 + $0x51] sm:$0x1] %vm4502_vm1, %v4777_v7  ;;  %7660 = vmatmul.mubr.msk.f32.gmra.mrb[36].mxu0 %vm3847_vm14, %v3809_v53  ;;  %v10353_v53 = vld [vmem:[#allocation2 + $0x232] sm:$0xff] }
 0x310   : > { %4857 = vst.msk [vmem:[#allocation4 + $0x54] sm:$0x4] %vm4660_vm2, %v4841_v25  ;;  %4793 = vst.msk [vmem:[#allocation4 + $0x50] sm:$0x4] %vm4660_vm2, %v4777_v7  ;;  %2068 = vrot.lane.b32.xlu1 %v10109_v47, %s12093_s24 }
 0x311   : > { %4865 = vst.msk [vmem:[#allocation4 + $0x53] sm:$0x10] %vm4669_vm3, %v4841_v25  ;;  %4801 = vst.msk [vmem:[#allocation4 + $0x4f] sm:$0x10] %vm4669_vm3, %v4777_v7  ;;  %v2438_v38 = vpop.permute.xlu0 %2437 }
 0x312   : > { %4873 = vst.msk [vmem:[#allocation4 + $0x52] sm:$0x40] %vm4678_vm5, %v4841_v25  ;;  %4809 = vst.msk [vmem:[#allocation4 + $0x4e] sm:$0x40] %vm4678_vm5, %v4777_v7  ;;  %v1670_v11 = vpop.permute.xlu1 %1669 }
 0x313   : > { %2976 = vst.msk [vmem:[#allocation3 + $0x130] sm:$0xff] %vm2937_vm11, %v2822_v39  ;;  %915 = vrot.lane.b32.xlu0 %v10002_v62, %s12088_s15 }
 0x314   : > { %2591 = vst.msk [vmem:[#allocation3 + $0x138] sm:$0xff] %vm2551_vm10, %v2438_v38  ;;  %3605 = vrot.lane.b32.xlu1 %v10226_v57, %s12092_s16  ;;  %v10355_v38 = vld [vmem:[#allocation2 + $0x239] sm:$0xff] }
 0x315   : > { %1822 = vst.msk [vmem:[#allocation3 + $0x140] sm:$0xff] %vm1781_vm8, %v1670_v11  ;;  %v1287_v28 = vpop.permute.xlu0 %1286  ;;  %v616_v11 = vld [vmem:[#allocation2 + $0x210] sm:$0xff] }
 0x316   : > { %1438 = vst.msk [vmem:[#allocation3 + $0x148] sm:$0xff] %vm1396_vm7, %v1287_v28  ;;  %v3207_v17 = vpop.permute.xlu1 %3206 }
 0x317   : > { %2451 = vrot.lane.b32.xlu0 %v10107_v50, %s12089_s25  ;;  %3361 = vst.msk [vmem:[#allocation3 + $0x130] sm:$0xff] %vm3322_vm12, %v3207_v17  ;;  %v496_v17 = vld [vmem:[%s8455_s14 + $0x1f0] sm:$0xff] }
 0x318   : > { %1300 = vrot.lane.b32.xlu1 %v10024_v34, %s12090_s29  ;;  %560 = vst.msk [vmem:[#allocation2 + $0x289] sm:$0xff] %vm384_vm0, %v495_v46  ;;  %679 = vst.msk [vmem:[#allocation3 + $0x1a0] sm:$0xff] %vm384_vm0, %v615_v4 }
 0x319   : > { %v10235_v56 = vld [vmem:[#allocation4 + $0x50] sm:$0xff]  ;;  %v2824_v62 = vpop.permute.xlu0 %2823  ;;  %680 = vst.msk [vmem:[#allocation3 + $0x1a8] sm:$0xff] %vm384_vm0, %v616_v11  ;;  %561 = vst.msk [vmem:[#allocation2 + $0x291] sm:$0xff] %vm384_vm0, %v496_v17 }
 0x31a   : > { %4902 = vst.msk [vmem:[#allocation5 + $0x38] sm:$0xff] %vm4493_vm15, %v10235_v56  ;;  %v2055_v22 = vpop.permute.xlu1 %2054 }
 0x31b   : > { %2977 = vst.msk [vmem:[#allocation3 + $0x138] sm:$0xff] %vm2937_vm11, %v2824_v62  ;;  %917 = vrot.lane.b32.xlu0 %v10026_v6, %s12088_s15  ;;  %v10259_v6 = vld [vmem:[#allocation2 + $0x219] sm:$0xff] }
 0x31c   : > { %2207 = vst.msk [vmem:[#allocation3 + $0x140] sm:$0xff] %vm2166_vm9, %v2055_v22  ;;  %2837 = vrot.lane.b32.xlu1 %v10245_v20, %s12091_s12 }
 0x31d   : > { %v1672_v51 = vpop.permute.xlu0 %1671 }
 0x31e   : > { %1823 = vst.msk [vmem:[#allocation3 + $0x148] sm:$0xff] %vm1781_vm8, %v1672_v51  ;;  %v3592_v61 = vpop.permute.xlu1 %3591  ;;  %v10373_v51 = vld [vmem:[#allocation2 + $0x23a] sm:$0xff] }
 0x31f   : > { %2453 = vrot.lane.b32.xlu0 %v10133_v43, %s12089_s25  ;;  %3746 = vst.msk [vmem:[#allocation3 + $0x130] sm:$0xff] %vm3707_vm13, %v3592_v61 }
 0x320   : > { %1685 = vrot.lane.b32.xlu1 %v10153_v48, %s8230_s22 }
 0x321   : > { %v3209_v34 = vpop.permute.xlu0 %3208 }
 0x322   : > { %3362 = vst.msk [vmem:[#allocation3 + $0x138] sm:$0xff] %vm3322_vm12, %v3209_v34  ;;  %v2057_v15 = vpop.permute.xlu1 %2056  ;;  %v10263_v36 = vpop.f32.mrb[24].mxu0 }
 0x323   : > { %1302 = vrot.lane.b32.xlu0 %v10044_v19, %s12090_s29  ;;  %2208 = vst.msk [vmem:[#allocation3 + $0x148] sm:$0xff] %vm2166_vm9, %v2057_v15  ;;  %v10266_v40 = vpop.f32.mrb[25].mxu0 }
 0x324   : > { %3222 = vrot.lane.b32.xlu1 %v10259_v6, %s8234_s30 }
 0x325   : > { %v904_v49 = vpop.permute.xlu0 %903 }
 0x326   : > { %1054 = vst.msk [vmem:[#allocation3 + $0x150] sm:$0xff] %vm1011_vm6, %v904_v49  ;;  %v3594_v19 = vpop.permute.xlu1 %3593  ;;  %v3810_v48 = vld [vmem:[#allocation3 + $0x130] sm:$0xff] }
 0x327   : > { %2839 = vrot.lane.b32.xlu0 %v10261_v26, %s12091_s12  ;;  %3747 = vst.msk [vmem:[#allocation3 + $0x138] sm:$0xff] %vm3707_vm13, %v3594_v19  ;;  %7662 = vmatprep.mubr.msk.f32.mxu0 %vm3847_vm14, %v3810_v48  ;;  %v497_v19 = vld [vmem:[%s8455_s14 + $0x1f8] sm:$0xff]  ;;  %s12106_s14 = smov 80  }
 0x328   : > { %2070 = vrot.lane.b32.xlu1 %v10173_v13, %s12093_s24  ;;  %562 = vst.msk [vmem:[#allocation2 + $0x299] sm:$0xff] %vm384_vm0, %v497_v19 }
 0x329   : > { %v2440_v41 = vpop.permute.xlu0 %2439 }
 0x32a   : > { %2592 = vst.msk [vmem:[#allocation3 + $0x140] sm:$0xff] %vm2551_vm10, %v2440_v41  ;;  %v1289_v5 = vpop.permute.xlu1 %1288  ;;  %v4231_v41 = vadd.f32 %v10071_v63, %v10266_v40 }
 0x32b   : > { %1687 = vrot.lane.b32.xlu0 %v10175_v16, %s8230_s22  ;;  %1439 = vst.msk [vmem:[#allocation3 + $0x150] sm:$0xff] %vm1396_vm7, %v1289_v5  ;;  %v10407_v5 = vld [vmem:[#allocation2 + $0x241] sm:$0xff] }
 0x32c   : > { %3607 = vrot.lane.b32.xlu1 %v10281_v37, %s12092_s16 }
 0x32d   : > { %v906_v3 = vpop.permute.xlu0 %905 }
 0x32e   : > { %1055 = vst.msk [vmem:[#allocation3 + $0x158] sm:$0xff] %vm1011_vm6, %v906_v3  ;;  %v2826_v16 = vpop.permute.xlu1 %2825  ;;  %v3811_v44 = vld [vmem:[#allocation3 + $0x138] sm:$0xff] }
 0x32f   : > { %3224 = vrot.lane.b32.xlu0 %v10283_v33, %s8234_s30  ;;  %2978 = vst.msk [vmem:[#allocation3 + $0x140] sm:$0xff] %vm2937_vm11, %v2826_v16  ;;  %7663 = vmatmul.mubr.msk.f32.gmra.mrb[38].mxu0 %vm3847_vm14, %v3811_v44  ;;  %v617_v16 = vld [vmem:[#allocation2 + $0x218] sm:$0xff] }
 0x330   : > { %2072 = vrot.lane.b32.xlu1 %v10199_v9, %s12093_s24  ;;  %681 = vst.msk [vmem:[#allocation3 + $0x1b0] sm:$0xff] %vm384_vm0, %v617_v16 }
 0x331   : > { %v2442_v12 = vpop.permute.xlu0 %2441 }
 0x332   : > { %2593 = vst.msk [vmem:[#allocation3 + $0x148] sm:$0xff] %vm2551_vm10, %v2442_v12  ;;  %v1674_v27 = vpop.permute.xlu1 %1673 }
 0x333   : > { %919 = vrot.lane.b32.xlu0 %v10083_v29, %s12088_s15  ;;  %1824 = vst.msk [vmem:[#allocation3 + $0x150] sm:$0xff] %vm1781_vm8, %v1674_v27 }
 0x334   : > { %3609 = vrot.lane.b32.xlu1 %v10299_v52, %s12092_s16 }
 0x335   : > { %v1291_v60 = vpop.permute.xlu0 %1290 }
 0x336   : > { %1440 = vst.msk [vmem:[#allocation3 + $0x158] sm:$0xff] %vm1396_vm7, %v1291_v60  ;;  %v3211_v45 = vpop.permute.xlu1 %3210  ;;  %v4453_v60 = vmax.f32 %v4231_v41, 0.0  ;;  %v10493_v41 = vld [vmem:[#allocation2 + $0x259] sm:$0xff] }
 0x337   : > { %2455 = vrot.lane.b32.xlu0 %v10197_v42, %s12089_s25  ;;  %3363 = vst.msk [vmem:[#allocation3 + $0x140] sm:$0xff] %vm3322_vm12, %v3211_v45 }
 0x338   : > { %1304 = vrot.lane.b32.xlu1 %v10107_v50, %s12090_s29 }
 0x339   : > { %v2828_v29 = vpop.permute.xlu0 %2827 }
 0x33a   : > { %2979 = vst.msk [vmem:[#allocation3 + $0x148] sm:$0xff] %vm2937_vm11, %v2828_v29  ;;  %v2059_v1 = vpop.permute.xlu1 %2058 }
 0x33b   : > { %921 = vrot.lane.b32.xlu0 %v10109_v47, %s12088_s15  ;;  %2209 = vst.msk [vmem:[#allocation3 + $0x150] sm:$0xff] %vm2166_vm9, %v2059_v1 }
 0x33c   : > { %2841 = vrot.lane.b32.xlu1 %v10315_v55, %s12091_s12 }
 0x33d   : > { %v1676_v18 = vpop.permute.xlu0 %1675 }
 0x33e   : > { %1825 = vst.msk [vmem:[#allocation3 + $0x158] sm:$0xff] %vm1781_vm8, %v1676_v18  ;;  %v3596_v50 = vpop.permute.xlu1 %3595 }
 0x33f   : > { %2457 = vrot.lane.b32.xlu0 %v10226_v57, %s12089_s25  ;;  %3748 = vst.msk [vmem:[#allocation3 + $0x140] sm:$0xff] %vm3707_vm13, %v3596_v50  ;;  %v4559_v50 = vsel %vm4493_vm15, %v4453_v60, -inf }
 0x340   : > { %1689 = vrot.lane.b32.xlu1 %v10245_v20, %s8230_s22 }
 0x341   : > { %v3213_v47 = vpop.permute.xlu0 %3212 }
 0x342   : > { %3364 = vst.msk [vmem:[#allocation3 + $0x148] sm:$0xff] %vm3322_vm12, %v3213_v47  ;;  %v2061_v10 = vpop.permute.xlu1 %2060  ;;  %v10335_v58 = vpop.f32.mrb[26].mxu0 }
 0x343   : > { %1306 = vrot.lane.b32.xlu0 %v10133_v43, %s12090_s29  ;;  %2210 = vst.msk [vmem:[#allocation3 + $0x158] sm:$0xff] %vm2166_vm9, %v2061_v10  ;;  %v10338_v54 = vpop.f32.mrb[27].mxu0 }
 0x344   : > { %3226 = vrot.lane.b32.xlu1 %v10331_v8, %s8234_s30 }
 0x345   : > { %v908_v25 = vpop.permute.xlu0 %907 }
 0x346   : > { %1056 = vst.msk [vmem:[#allocation3 + $0x160] sm:$0xff] %vm1011_vm6, %v908_v25  ;;  %v3598_v43 = vpop.permute.xlu1 %3597  ;;  %v3812_v7 = vld [vmem:[#allocation3 + $0x140] sm:$0xff]  ;;  %v10431_v25 = vld [vmem:[#allocation2 + $0x242] sm:$0xff] }
 0x347   : > { %2843 = vrot.lane.b32.xlu0 %v10333_v35, %s12091_s12  ;;  %3749 = vst.msk [vmem:[#allocation3 + $0x148] sm:$0xff] %vm3707_vm13, %v3598_v43  ;;  %7665 = vmatprep.mubr.msk.f32.mxu0 %vm3847_vm14, %v3812_v7  ;;  %v10433_v43 = vld [vmem:[#allocation2 + $0x249] sm:$0xff] }
 0x348   : > { %2074 = vrot.lane.b32.xlu1 %v10259_v6, %s12093_s24 }
 0x349   : > { %v2444_v39 = vpop.permute.xlu0 %2443 }
 0x34a   : > { %2594 = vst.msk [vmem:[#allocation3 + $0x150] sm:$0xff] %vm2551_vm10, %v2444_v39  ;;  %v1293_v2 = vpop.permute.xlu1 %1292 }
 0x34b   : > { %1691 = vrot.lane.b32.xlu0 %v10261_v26, %s8230_s22  ;;  %1441 = vst.msk [vmem:[#allocation3 + $0x160] sm:$0xff] %vm1396_vm7, %v1293_v2  ;;  %v618_v2 = vld [vmem:[#allocation2 + $0x220] sm:$0xff] }
 0x34c   : > { %3611 = vrot.lane.b32.xlu1 %v10353_v53, %s12092_s16  ;;  %682 = vst.msk [vmem:[#allocation3 + $0x1b8] sm:$0xff] %vm384_vm0, %v618_v2 }
 0x34d   : > { %v910_v28 = vpop.permute.xlu0 %909 }
 0x34e   : > { %1057 = vst.msk [vmem:[#allocation3 + $0x168] sm:$0xff] %vm1011_vm6, %v910_v28  ;;  %v2830_v62 = vpop.permute.xlu1 %2829  ;;  %v3813_v20 = vld [vmem:[#allocation3 + $0x148] sm:$0xff] }
 0x34f   : > { %3228 = vrot.lane.b32.xlu0 %v10355_v38, %s8234_s30  ;;  %2980 = vst.msk [vmem:[#allocation3 + $0x150] sm:$0xff] %vm2937_vm11, %v2830_v62  ;;  %7666 = vmatmul.mubr.msk.f32.gmra.mrb[40].mxu0 %vm3847_vm14, %v3813_v20 }
 0x350   : > { %2076 = vrot.lane.b32.xlu1 %v10283_v33, %s12093_s24 }
 0x351   : > { %v2446_v22 = vpop.permute.xlu0 %2445 }
 0x352   : > { %2595 = vst.msk [vmem:[#allocation3 + $0x158] sm:$0xff] %vm2551_vm10, %v2446_v22  ;;  %v1678_v61 = vpop.permute.xlu1 %1677 }
 0x353   : > { %923 = vrot.lane.b32.xlu0 %v10173_v13, %s12088_s15  ;;  %1826 = vst.msk [vmem:[#allocation3 + $0x160] sm:$0xff] %vm1781_vm8, %v1678_v61  ;;  %v10387_v13 = vld [vmem:[#allocation2 + $0x240] sm:$0xff]  ;;  %v10457_v61 = vld [vmem:[#allocation2 + $0x24a] sm:$0xff] }
 0x354   : > { %3613 = vrot.lane.b32.xlu1 %v10373_v51, %s12092_s16 }
 0x355   : > { %v1295_v34 = vpop.permute.xlu0 %1294 }
 0x356   : > { %1442 = vst.msk [vmem:[#allocation3 + $0x168] sm:$0xff] %vm1396_vm7, %v1295_v34  ;;  %v3215_v26 = vpop.permute.xlu1 %3214 }
 0x357   : > { %2459 = vrot.lane.b32.xlu0 %v10281_v37, %s12089_s25  ;;  %3365 = vst.msk [vmem:[#allocation3 + $0x150] sm:$0xff] %vm3322_vm12, %v3215_v26 }
 0x358   : > { %1308 = vrot.lane.b32.xlu1 %v10197_v42, %s12090_s29 }
 0x359   : > { %v2832_v15 = vpop.permute.xlu0 %2831 }
 0x35a   : > { %2981 = vst.msk [vmem:[#allocation3 + $0x158] sm:$0xff] %vm2937_vm11, %v2832_v15  ;;  %v2063_v21 = vpop.permute.xlu1 %2062 }
 0x35b   : > { %925 = vrot.lane.b32.xlu0 %v10199_v9, %s12088_s15  ;;  %2211 = vst.msk [vmem:[#allocation3 + $0x160] sm:$0xff] %vm2166_vm9, %v2063_v21  ;;  %v4236_v9 = vadd.f32 %v10071_v63, %v10263_v36 }
 0x35c   : > { %2845 = vrot.lane.b32.xlu1 %v10387_v13, %s12091_s12 }
 0x35d   : > { %v1680_v49 = vpop.permute.xlu0 %1679  ;;  %v4454_v44 = vmax.f32 %v4236_v9, 0.0 }
 0x35e   : > { %1827 = vst.msk [vmem:[#allocation3 + $0x168] sm:$0xff] %vm1781_vm8, %v1680_v49  ;;  %v3600_v42 = vpop.permute.xlu1 %3599  ;;  %v10475_v49 = vld [vmem:[#allocation2 + $0x258] sm:$0xff] }
 0x35f   : > { %2461 = vrot.lane.b32.xlu0 %v10299_v52, %s12089_s25  ;;  %3750 = vst.msk [vmem:[#allocation3 + $0x150] sm:$0xff] %vm3707_vm13, %v3600_v42  ;;  %v4562_v1 = vsel %vm4493_vm15, %v4454_v44, -inf }
 0x360   : > { %1693 = vrot.lane.b32.xlu1 %v10315_v55, %s8230_s22 }
 0x361   : > { %v3217_v48 = vpop.permute.xlu0 %3216 }
 0x362   : > { %3366 = vst.msk [vmem:[#allocation3 + $0x158] sm:$0xff] %vm3322_vm12, %v3217_v48  ;;  %v2065_v3 = vpop.permute.xlu1 %2064  ;;  %v7649_v36 = vpop.f32.mrb[28].mxu0  ;;  %v4241_v48 = vadd.f32 %v10071_v63, %v10338_v54 }
 0x363   : > { %1310 = vrot.lane.b32.xlu0 %v10226_v57, %s12090_s29  ;;  %2212 = vst.msk [vmem:[#allocation3 + $0x168] sm:$0xff] %vm2166_vm9, %v2065_v3  ;;  %v4256_v40 = vadd.f32 %v10071_v63, %v7649_v36  ;;  %v4250_v27 = vpop.f32.mrb[29].mxu0  ;;  %v10495_v3 = vld [vmem:[#allocation2 + $0x260] sm:$0xff] }
 0x364   : > { %v4251_v57 = vadd.f32 %v10071_v63, %v4250_v27  ;;  %3230 = vrot.lane.b32.xlu1 %v10407_v5, %s8234_s30 }
 0x365   : > { %v912_v12 = vpop.permute.xlu0 %911  ;;  %v4458_v32 = vmax.f32 %v4256_v40, 0.0  ;;  %v4455_v40 = vmax.f32 %v4241_v48, 0.0  ;;  %v10575_v48 = vld [vmem:[#allocation2 + $0x272] sm:$0xff] }
 0x366   : > { %1058 = vst.msk [vmem:[#allocation3 + $0x170] sm:$0xff] %vm1011_vm6, %v912_v12  ;;  %v4457_v45 = vmax.f32 %v4251_v57, 0.0  ;;  %v3602_v29 = vpop.permute.xlu1 %3601  ;;  %v3814_v55 = vld [vmem:[#allocation3 + $0x150] sm:$0xff] }
 0x367   : > { %2847 = vrot.lane.b32.xlu0 %v10409_v59, %s12091_s12  ;;  %v4563_v18 = vsel %vm4493_vm15, %v4458_v32, -inf  ;;  %3751 = vst.msk [vmem:[#allocation3 + $0x158] sm:$0xff] %vm3707_vm13, %v3602_v29  ;;  %7668 = vmatprep.mubr.msk.f32.mxu0 %vm3847_vm14, %v3814_v55 }
 0x368   : > { %v4564_v47 = vmax.f32 %v4562_v1, %v4563_v18  ;;  %v4560_v10 = vsel %vm4493_vm15, %v4457_v45, -inf  ;;  %2078 = vrot.lane.b32.xlu1 %v10331_v8, %s12093_s24 }
 0x369   : > { %v2448_v46 = vpop.permute.xlu0 %2447  ;;  %v4561_v4 = vmax.f32 %v4559_v50, %v4560_v10  ;;  %v10518_v50 = vld [vmem:[#allocation2 + $0x261] sm:$0xff] }
 0x36a   : > { %2596 = vst.msk [vmem:[#allocation3 + $0x160] sm:$0xff] %vm2551_vm10, %v2448_v46  ;;  %v4698_v7 = vrot.slane %v4564_v47, 1  ;;  %v1297_v39 = vpop.permute.xlu1 %1296  ;;  %v10516_v46 = vld [vmem:[#allocation2 + $0x25a] sm:$0xff] }
 0x36b   : > { %1695 = vrot.lane.b32.xlu0 %v10333_v35, %s8230_s22  ;;  %v4630_v11 = vrot.slane %v4561_v4, 1  ;;  %1443 = vst.msk [vmem:[#allocation3 + $0x170] sm:$0xff] %vm1396_vm7, %v1297_v39 }
 0x36c   : > { %v4714_v17 = vmax.f32 %v4564_v47, %v4698_v7  ;;  %3615 = vrot.lane.b32.xlu1 %v10431_v25, %s12092_s16 }
 0x36d   : > { %v914_v28 = vpop.permute.xlu0 %913  ;;  %v4646_v35 = vmax.f32 %v4561_v4, %v4630_v11 }
 0x36e   : > { %1059 = vst.msk [vmem:[#allocation3 + $0x178] sm:$0xff] %vm1011_vm6, %v914_v28  ;;  %v2834_v62 = vpop.permute.xlu1 %2833  ;;  %v3815_v20 = vld [vmem:[#allocation3 + $0x158] sm:$0xff] }
 0x36f   : > { %3232 = vrot.lane.b32.xlu0 %v10433_v43, %s8234_s30  ;;  %4722 = vst.msk [vmem:[#allocation4 + $0x65] sm:$0x1] %vm4502_vm1, %v4714_v17  ;;  %4655 = vst.msk [vmem:[#allocation4 + $0x61] sm:$0x1] %vm4502_vm1, %v4646_v35  ;;  %7669 = vmatmul.mubr.msk.f32.gmra.mrb[42].mxu0 %vm3847_vm14, %v3815_v20  ;;  %v10549_v20 = vld [vmem:[#allocation2 + $0x270] sm:$0xff] }
 0x370   : > { %4730 = vst.msk [vmem:[#allocation4 + $0x64] sm:$0x4] %vm4660_vm2, %v4714_v17  ;;  %4664 = vst.msk [vmem:[#allocation4 + $0x60] sm:$0x4] %vm4660_vm2, %v4646_v35  ;;  %2080 = vrot.lane.b32.xlu1 %v10355_v38, %s12093_s24 }
 0x371   : > { %4738 = vst.msk [vmem:[#allocation4 + $0x63] sm:$0x10] %vm4669_vm3, %v4714_v17  ;;  %4673 = vst.msk [vmem:[#allocation4 + $0x5f] sm:$0x10] %vm4669_vm3, %v4646_v35  ;;  %v2450_v22 = vpop.permute.xlu0 %2449 }
 0x372   : > { %4746 = vst.msk [vmem:[#allocation4 + $0x62] sm:$0x40] %vm4678_vm5, %v4714_v17  ;;  %4682 = vst.msk [vmem:[#allocation4 + $0x5e] sm:$0x40] %vm4678_vm5, %v4646_v35  ;;  %v1682_v34 = vpop.permute.xlu1 %1681  ;;  %v10541_v17 = vld [vmem:[#allocation2 + $0x262] sm:$0xff] }
 0x373   : > { %2982 = vst.msk [vmem:[#allocation3 + $0x160] sm:$0xff] %vm2937_vm11, %v2834_v62  ;;  %927 = vrot.lane.b32.xlu0 %v10259_v6, %s12088_s15 }
 0x374   : > { %2597 = vst.msk [vmem:[#allocation3 + $0x168] sm:$0xff] %vm2551_vm10, %v2450_v22  ;;  %3617 = vrot.lane.b32.xlu1 %v10457_v61, %s12092_s16  ;;  %v10551_v22 = vld [vmem:[#allocation2 + $0x268] sm:$0xff] }
 0x375   : > { %1828 = vst.msk [vmem:[#allocation3 + $0x170] sm:$0xff] %vm1781_vm8, %v1682_v34  ;;  %v1299_v26 = vpop.permute.xlu0 %1298  ;;  %v620_v34 = vld [vmem:[#allocation2 + $0x238] sm:$0xff] }
 0x376   : > { %1444 = vst.msk [vmem:[#allocation3 + $0x178] sm:$0xff] %vm1396_vm7, %v1299_v26  ;;  %v3219_v15 = vpop.permute.xlu1 %3218 }
 0x377   : > { %2463 = vrot.lane.b32.xlu0 %v10353_v53, %s12089_s25  ;;  %3367 = vst.msk [vmem:[#allocation3 + $0x160] sm:$0xff] %vm3322_vm12, %v3219_v15  ;;  %v619_v15 = vld [vmem:[#allocation2 + $0x230] sm:$0xff] }
 0x378   : > { %1312 = vrot.lane.b32.xlu1 %v10281_v37, %s12090_s29  ;;  %v4246_v37 = vadd.f32 %v10071_v63, %v10335_v58  ;;  %684 = vst.msk [vmem:[#allocation3 + $0x1c8] sm:$0xff] %vm384_vm0, %v620_v34  ;;  %683 = vst.msk [vmem:[#allocation3 + $0x1c0] sm:$0xff] %vm384_vm0, %v619_v15  ;;  %v10689_v15 = vld [vmem:[#allocation2 + $0x28a] sm:$0xff] }
 0x379   : > { %v10465_v21 = vld [vmem:[#allocation4 + $0x60] sm:$0xff]  ;;  %v2836_v6 = vpop.permute.xlu0 %2835 }
 0x37a   : > { %4903 = vst.msk [vmem:[#allocation5 + $0x40] sm:$0xff] %vm4493_vm15, %v10465_v21  ;;  %v2067_v19 = vpop.permute.xlu1 %2066  ;;  %v4456_v16 = vmax.f32 %v4246_v37, 0.0 }
 0x37b   : > { %2983 = vst.msk [vmem:[#allocation3 + $0x168] sm:$0xff] %vm2937_vm11, %v2836_v6  ;;  %929 = vrot.lane.b32.xlu0 %v10283_v33, %s12088_s15 }
 0x37c   : > { %2213 = vst.msk [vmem:[#allocation3 + $0x170] sm:$0xff] %vm2166_vm9, %v2067_v19  ;;  %2849 = vrot.lane.b32.xlu1 %v10475_v49, %s12091_s12  ;;  %v4568_v32 = vsel %vm4493_vm15, %v4456_v16, -inf }
 0x37d   : > { %v1684_v42 = vpop.permute.xlu0 %1683 }
 0x37e   : > { %1829 = vst.msk [vmem:[#allocation3 + $0x178] sm:$0xff] %vm1781_vm8, %v1684_v42  ;;  %v3604_v9 = vpop.permute.xlu1 %3603  ;;  %v10565_v42 = vld [vmem:[#allocation2 + $0x271] sm:$0xff] }
 0x37f   : > { %2465 = vrot.lane.b32.xlu0 %v10373_v51, %s12089_s25  ;;  %3752 = vst.msk [vmem:[#allocation3 + $0x160] sm:$0xff] %vm3707_vm13, %v3604_v9  ;;  %v10567_v9 = vld [vmem:[#allocation2 + $0x269] sm:$0xff] }
 0x380   : > { %1697 = vrot.lane.b32.xlu1 %v10387_v13, %s8230_s22 }
 0x381   : > { %v3221_v33 = vpop.permute.xlu0 %3220 }
 0x382   : > { %3368 = vst.msk [vmem:[#allocation3 + $0x168] sm:$0xff] %vm3322_vm12, %v3221_v33  ;;  %v2069_v36 = vpop.permute.xlu1 %2068  ;;  %v7652_v58 = vpop.f32.mrb[30].mxu0 }
 0x383   : > { %1314 = vrot.lane.b32.xlu0 %v10299_v52, %s12090_s29  ;;  %2214 = vst.msk [vmem:[#allocation3 + $0x178] sm:$0xff] %vm2166_vm9, %v2069_v36  ;;  %v4266_v54 = vadd.f32 %v10071_v63, %v7652_v58  ;;  %v4260_v12 = vpop.f32.mrb[31].mxu0  ;;  %v10577_v36 = vld [vmem:[#allocation2 + $0x26a] sm:$0xff] }
 0x384   : > { %v4261_v13 = vadd.f32 %v10071_v63, %v4260_v12  ;;  %3234 = vrot.lane.b32.xlu1 %v10493_v41, %s8234_s30  ;;  %v4565_v63 = vsel %vm4493_vm15, %v4455_v40, -inf }
 0x385   : > { %v916_v44 = vpop.permute.xlu0 %915  ;;  %v4460_v52 = vmax.f32 %v4266_v54, 0.0 }
 0x386   : > { %1060 = vst.msk [vmem:[#allocation3 + $0x180] sm:$0xff] %vm1011_vm6, %v916_v44  ;;  %v4459_v27 = vmax.f32 %v4261_v13, 0.0  ;;  %v3606_v60 = vpop.permute.xlu1 %3605  ;;  %v3816_v57 = vld [vmem:[#allocation3 + $0x160] sm:$0xff]  ;;  %v621_v44 = vld [vmem:[#allocation2 + $0x240] sm:$0xff] }
 0x387   : > { %2851 = vrot.lane.b32.xlu0 %v10495_v3, %s12091_s12  ;;  %v4569_v45 = vsel %vm4493_vm15, %v4460_v52, -inf  ;;  %3753 = vst.msk [vmem:[#allocation3 + $0x168] sm:$0xff] %vm3707_vm13, %v3606_v60  ;;  %7671 = vmatprep.mubr.msk.f32.mxu0 %vm3847_vm14, %v3816_v57 }
 0x388   : > { %v4570_v55 = vmax.f32 %v4568_v32, %v4569_v45  ;;  %v4566_v1 = vsel %vm4493_vm15, %v4459_v27, -inf  ;;  %2082 = vrot.lane.b32.xlu1 %v10407_v5, %s12093_s24  ;;  %685 = vst.msk [vmem:[#allocation3 + $0x1d0] sm:$0xff] %vm384_vm0, %v621_v44 }
 0x389   : > { %v2452_v29 = vpop.permute.xlu0 %2451  ;;  %v4567_v18 = vmax.f32 %v4565_v63, %v4566_v1 }
 0x38a   : > { %2598 = vst.msk [vmem:[#allocation3 + $0x170] sm:$0xff] %vm2551_vm10, %v2452_v29  ;;  %v4826_v47 = vrot.slane %v4570_v55, 1  ;;  %v1301_v10 = vpop.permute.xlu1 %1300 }
 0x38b   : > { %1699 = vrot.lane.b32.xlu0 %v10409_v59, %s8230_s22  ;;  %v4762_v4 = vrot.slane %v4567_v18, 1  ;;  %1445 = vst.msk [vmem:[#allocation3 + $0x180] sm:$0xff] %vm1396_vm7, %v1301_v10 }
 0x38c   : > { %v4842_v39 = vmax.f32 %v4570_v55, %v4826_v47  ;;  %3619 = vrot.lane.b32.xlu1 %v10516_v46, %s12092_s16 }
 0x38d   : > { %v918_v7 = vpop.permute.xlu0 %917  ;;  %v4778_v59 = vmax.f32 %v4567_v18, %v4762_v4  ;;  %v10651_v18 = vld [vmem:[#allocation2 + $0x288] sm:$0xff]  ;;  %v623_v4 = vld [vmem:[#allocation2 + $0x258] sm:$0xff] }
 0x38e   : > { %1061 = vst.msk [vmem:[#allocation3 + $0x188] sm:$0xff] %vm1011_vm6, %v918_v7  ;;  %v2838_v2 = vpop.permute.xlu1 %2837  ;;  %v3817_v11 = vld [vmem:[#allocation3 + $0x168] sm:$0xff] }
 0x38f   : > { %3236 = vrot.lane.b32.xlu0 %v10518_v50, %s8234_s30  ;;  %4850 = vst.msk [vmem:[#allocation4 + $0x6d] sm:$0x1] %vm4502_vm1, %v4842_v39  ;;  %4786 = vst.msk [vmem:[#allocation4 + $0x69] sm:$0x1] %vm4502_vm1, %v4778_v59  ;;  %7672 = vmatmul.mubr.msk.f32.gmra.mrb[44].mxu0 %vm3847_vm14, %v3817_v11  ;;  %v10671_v11 = vld [vmem:[#allocation2 + $0x282] sm:$0xff] }
 0x390   : > { %4858 = vst.msk [vmem:[#allocation4 + $0x6c] sm:$0x4] %vm4660_vm2, %v4842_v39  ;;  %4794 = vst.msk [vmem:[#allocation4 + $0x68] sm:$0x4] %vm4660_vm2, %v4778_v59  ;;  %2467 = vrot.lane.b32.xlu1 %v10431_v25, %s12089_s25 }
 0x391   : > { %4866 = vst.msk [vmem:[#allocation4 + $0x6b] sm:$0x10] %vm4669_vm3, %v4842_v39  ;;  %4802 = vst.msk [vmem:[#allocation4 + $0x67] sm:$0x10] %vm4669_vm3, %v4778_v59  ;;  %v2454_v28 = vpop.permute.xlu0 %2453 }
 0x392   : > { %4874 = vst.msk [vmem:[#allocation4 + $0x6a] sm:$0x40] %vm4678_vm5, %v4842_v39  ;;  %4810 = vst.msk [vmem:[#allocation4 + $0x66] sm:$0x40] %vm4678_vm5, %v4778_v59  ;;  %v1686_v35 = vpop.permute.xlu1 %1685 }
 0x393   : > { %2984 = vst.msk [vmem:[#allocation3 + $0x170] sm:$0xff] %vm2937_vm11, %v2838_v2  ;;  %2084 = vrot.lane.b32.xlu0 %v10433_v43, %s12093_s24 }
 0x394   : > { %2599 = vst.msk [vmem:[#allocation3 + $0x178] sm:$0xff] %vm2551_vm10, %v2454_v28  ;;  %2469 = vrot.lane.b32.xlu1 %v10457_v61, %s12089_s25  ;;  %v10673_v28 = vld [vmem:[#allocation2 + $0x289] sm:$0xff] }
 0x395   : > { %1830 = vst.msk [vmem:[#allocation3 + $0x180] sm:$0xff] %vm1781_vm8, %v1686_v35  ;;  %v1303_v62 = vpop.permute.xlu0 %1302 }
 0x396   : > { %1446 = vst.msk [vmem:[#allocation3 + $0x188] sm:$0xff] %vm1396_vm7, %v1303_v62  ;;  %v3223_v26 = vpop.permute.xlu1 %3222  ;;  %v624_v62 = vld [vmem:[#allocation2 + $0x260] sm:$0xff] }
 0x397   : > { %3621 = vrot.lane.b32.xlu0 %v10541_v17, %s12092_s16  ;;  %3369 = vst.msk [vmem:[#allocation3 + $0x170] sm:$0xff] %vm3322_vm12, %v3223_v26 }
 0x398   : > { %2855 = vrot.lane.b32.xlu1 %v10549_v20, %s12091_s12  ;;  %687 = vst.msk [vmem:[#allocation3 + $0x1e0] sm:$0xff] %vm384_vm0, %v623_v4  ;;  %688 = vst.msk [vmem:[#allocation3 + $0x1e8] sm:$0xff] %vm384_vm0, %v624_v62 }
 0x399   : > { %v10554_v6 = vld [vmem:[#allocation4 + $0x68] sm:$0xff]  ;;  %v2840_v19 = vpop.permute.xlu0 %2839 }
 0x39a   : > { %4904 = vst.msk [vmem:[#allocation5 + $0x48] sm:$0xff] %vm4493_vm15, %v10554_v6  ;;  %v2071_v37 = vpop.permute.xlu1 %2070 }
 0x39b   : > { %2985 = vst.msk [vmem:[#allocation3 + $0x178] sm:$0xff] %vm2937_vm11, %v2840_v19  ;;  %2853 = vrot.lane.b32.xlu0 %v10551_v22, %s12091_s12 }
 0x39c   : > { %2215 = vst.msk [vmem:[#allocation3 + $0x180] sm:$0xff] %vm2166_vm9, %v2071_v37  ;;  %3240 = vrot.lane.b32.xlu1 %v10565_v42, %s8234_s30 }
 0x39d   : > { %v1688_v33 = vpop.permute.xlu0 %1687 }
 0x39e   : > { %1831 = vst.msk [vmem:[#allocation3 + $0x188] sm:$0xff] %vm1781_vm8, %v1688_v33  ;;  %v3608_v58 = vpop.permute.xlu1 %3607 }
 0x39f   : > { %3238 = vrot.lane.b32.xlu0 %v10567_v9, %s8234_s30  ;;  %3754 = vst.msk [vmem:[#allocation3 + $0x170] sm:$0xff] %vm3707_vm13, %v3608_v58 }
 0x3a0   : > { %3625 = vrot.lane.b32.xlu1 %v10575_v48, %s12092_s16 }
 0x3a1   : > { %v3225_v16 = vpop.permute.xlu0 %3224 }
 0x3a2   : > { %3370 = vst.msk [vmem:[#allocation3 + $0x178] sm:$0xff] %vm3322_vm12, %v3225_v16  ;;  %v2073_v54 = vpop.permute.xlu1 %2072  ;;  %v10591_v12 = vpop.f32.mrb[32].mxu0 }
 0x3a3   : > { %3623 = vrot.lane.b32.xlu0 %v10577_v36, %s12092_s16  ;;  %2216 = vst.msk [vmem:[#allocation3 + $0x188] sm:$0xff] %vm2166_vm9, %v2073_v54  ;;  %v10595_v13 = vpop.f32.mrb[33].mxu0 }
 0x3a4   : > { %933 = vrot.lane.b32.xlu1 %v10355_v38, %s12088_s15  ;;  %v622_v38 = vld [vmem:[#allocation2 + $0x248] sm:$0xff] }
 0x3a5   : > { %v920_v40 = vpop.permute.xlu0 %919  ;;  %686 = vst.msk [vmem:[#allocation3 + $0x1d8] sm:$0xff] %vm384_vm0, %v622_v38  ;;  %v625_v38 = vld [vmem:[#allocation2 + $0x268] sm:$0xff] }
 0x3a6   : > { %1062 = vst.msk [vmem:[#allocation3 + $0x190] sm:$0xff] %vm1011_vm6, %v920_v40  ;;  %v3610_v52 = vpop.permute.xlu1 %3609  ;;  %v3818_v27 = vld [vmem:[#allocation3 + $0x170] sm:$0xff] }
 0x3a7   : > { %931 = vrot.lane.b32.xlu0 %v10331_v8, %s12088_s15  ;;  %3755 = vst.msk [vmem:[#allocation3 + $0x178] sm:$0xff] %vm3707_vm13, %v3610_v52  ;;  %7674 = vmatprep.mubr.msk.f32.mxu0 %vm3847_vm14, %v3818_v27  ;;  %v10726_v27 = vld [vmem:[#allocation2 + $0x291] sm:$0xff] }
 0x3a8   : > { %1318 = vrot.lane.b32.xlu1 %v10373_v51, %s12090_s29  ;;  %689 = vst.msk [vmem:[#allocation3 + $0x1f0] sm:$0xff] %vm384_vm0, %v625_v38 }
 0x3a9   : > { %v2456_v60 = vpop.permute.xlu0 %2455 }
 0x3aa   : > { %2600 = vst.msk [vmem:[#allocation3 + $0x180] sm:$0xff] %vm2551_vm10, %v2456_v60  ;;  %v1305_v57 = vpop.permute.xlu1 %1304  ;;  %v10728_v60 = vld [vmem:[#allocation2 + $0x298] sm:$0xff] }
 0x3ab   : > { %1316 = vrot.lane.b32.xlu0 %v10353_v53, %s12090_s29  ;;  %1447 = vst.msk [vmem:[#allocation3 + $0x190] sm:$0xff] %vm1396_vm7, %v1305_v57 }
 0x3ac   : > { %1703 = vrot.lane.b32.xlu1 %v10495_v3, %s8230_s22 }
 0x3ad   : > { %v922_v8 = vpop.permute.xlu0 %921 }
 0x3ae   : > { %1063 = vst.msk [vmem:[#allocation3 + $0x198] sm:$0xff] %vm1011_vm6, %v922_v8  ;;  %v2842_v32 = vpop.permute.xlu1 %2841  ;;  %v3819_v51 = vld [vmem:[#allocation3 + $0x178] sm:$0xff] }
 0x3af   : > { %1701 = vrot.lane.b32.xlu0 %v10475_v49, %s8230_s22  ;;  %2986 = vst.msk [vmem:[#allocation3 + $0x180] sm:$0xff] %vm2937_vm11, %v2842_v32  ;;  %7675 = vmatmul.mubr.msk.f32.gmra.mrb[46].mxu0 %vm3847_vm14, %v3819_v51 }
 0x3b0   : > { %935 = vrot.lane.b32.xlu1 %v10407_v5, %s12088_s15  ;;  %v10635_v5 = vld [vmem:[#allocation2 + $0x280] sm:$0xff] }
 0x3b1   : > { %v2458_v53 = vpop.permute.xlu0 %2457 }
 0x3b2   : > { %2601 = vst.msk [vmem:[#allocation3 + $0x188] sm:$0xff] %vm2551_vm10, %v2458_v53  ;;  %v1690_v45 = vpop.permute.xlu1 %1689 }
 0x3b3   : > { %2086 = vrot.lane.b32.xlu0 %v10493_v41, %s12093_s24  ;;  %1832 = vst.msk [vmem:[#allocation3 + $0x190] sm:$0xff] %vm1781_vm8, %v1690_v45 }
 0x3b4   : > { %2471 = vrot.lane.b32.xlu1 %v10516_v46, %s12089_s25 }
 0x3b5   : > { %v1307_v3 = vpop.permute.xlu0 %1306 }
 0x3b6   : > { %1448 = vst.msk [vmem:[#allocation3 + $0x198] sm:$0xff] %vm1396_vm7, %v1307_v3  ;;  %v3227_v49 = vpop.permute.xlu1 %3226 }
 0x3b7   : > { %2088 = vrot.lane.b32.xlu0 %v10518_v50, %s12093_s24  ;;  %3371 = vst.msk [vmem:[#allocation3 + $0x180] sm:$0xff] %vm3322_vm12, %v3227_v49 }
 0x3b8   : > { %1320 = vrot.lane.b32.xlu1 %v10431_v25, %s12090_s29 }
 0x3b9   : > { %v2844_v29 = vpop.permute.xlu0 %2843 }
 0x3ba   : > { %2987 = vst.msk [vmem:[#allocation3 + $0x188] sm:$0xff] %vm2937_vm11, %v2844_v29  ;;  %v2075_v63 = vpop.permute.xlu1 %2074 }
 0x3bb   : > { %937 = vrot.lane.b32.xlu0 %v10433_v43, %s12088_s15  ;;  %2217 = vst.msk [vmem:[#allocation3 + $0x190] sm:$0xff] %vm2166_vm9, %v2075_v63  ;;  %v10649_v43 = vld [vmem:[#allocation2 + $0x281] sm:$0xff] }
 0x3bc   : > { %2857 = vrot.lane.b32.xlu1 %v10635_v5, %s12091_s12 }
 0x3bd   : > { %v1692_v55 = vpop.permute.xlu0 %1691 }
 0x3be   : > { %1833 = vst.msk [vmem:[#allocation3 + $0x198] sm:$0xff] %vm1781_vm8, %v1692_v55  ;;  %v3612_v1 = vpop.permute.xlu1 %3611 }
 0x3bf   : > { %2473 = vrot.lane.b32.xlu0 %v10541_v17, %s12089_s25  ;;  %3756 = vst.msk [vmem:[#allocation3 + $0x180] sm:$0xff] %vm3707_vm13, %v3612_v1 }
 0x3c0   : > { %1705 = vrot.lane.b32.xlu1 %v10551_v22, %s8230_s22 }
 0x3c1   : > { %v3229_v25 = vpop.permute.xlu0 %3228 }
 0x3c2   : > { %3372 = vst.msk [vmem:[#allocation3 + $0x188] sm:$0xff] %vm3322_vm12, %v3229_v25  ;;  %v2077_v47 = vpop.permute.xlu1 %2076  ;;  %v10653_v10 = vpop.f32.mrb[34].mxu0 }
 0x3c3   : > { %1322 = vrot.lane.b32.xlu0 %v10457_v61, %s12090_s29  ;;  %2218 = vst.msk [vmem:[#allocation3 + $0x198] sm:$0xff] %vm2166_vm9, %v2077_v47  ;;  %v10656_v39 = vpop.f32.mrb[35].mxu0 }
 0x3c4   : > { %3242 = vrot.lane.b32.xlu1 %v10649_v43, %s8234_s30 }
 0x3c5   : > { %v924_v7 = vpop.permute.xlu0 %923 }
 0x3c6   : > { %1064 = vst.msk [vmem:[#allocation3 + $0x1a0] sm:$0xff] %vm1011_vm6, %v924_v7  ;;  %v3614_v61 = vpop.permute.xlu1 %3613  ;;  %v3820_v59 = vld [vmem:[#allocation3 + $0x180] sm:$0xff] }
 0x3c7   : > { %2859 = vrot.lane.b32.xlu0 %v10651_v18, %s12091_s12  ;;  %3757 = vst.msk [vmem:[#allocation3 + $0x188] sm:$0xff] %vm3707_vm13, %v3614_v61  ;;  %7677 = vmatprep.mubr.msk.f32.mxu0 %vm3847_vm14, %v3820_v59  ;;  %v10750_v7 = vld [vmem:[#allocation2 + $0x292] sm:$0xff] }
 0x3c8   : > { %2090 = vrot.lane.b32.xlu1 %v10567_v9, %s12093_s24  ;;  %v10752_v61 = vld [vmem:[#allocation2 + $0x299] sm:$0xff] }
 0x3c9   : > { %v2460_v2 = vpop.permute.xlu0 %2459 }
 0x3ca   : > { %2602 = vst.msk [vmem:[#allocation3 + $0x190] sm:$0xff] %vm2551_vm10, %v2460_v2  ;;  %v1309_v35 = vpop.permute.xlu1 %1308 }
 0x3cb   : > { %1707 = vrot.lane.b32.xlu0 %v10549_v20, %s8230_s22  ;;  %1449 = vst.msk [vmem:[#allocation3 + $0x1a0] sm:$0xff] %vm1396_vm7, %v1309_v35  ;;  %v626_v35 = vld [vmem:[#allocation2 + $0x270] sm:$0xff] }
 0x3cc   : > { %3627 = vrot.lane.b32.xlu1 %v10671_v11, %s12092_s16  ;;  %690 = vst.msk [vmem:[#allocation3 + $0x1f8] sm:$0xff] %vm384_vm0, %v626_v35  ;;  %vm5767_vm0 = vcmask 1045504  }
 0x3cd   : > { %v926_v22 = vpop.permute.xlu0 %925 }
 0x3ce   : > { %1065 = vst.msk [vmem:[#allocation3 + $0x1a8] sm:$0xff] %vm1011_vm6, %v926_v22  ;;  %v2846_v20 = vpop.permute.xlu1 %2845  ;;  %v3821_v34 = vld [vmem:[#allocation3 + $0x188] sm:$0xff] }
 0x3cf   : > { %3244 = vrot.lane.b32.xlu0 %v10673_v28, %s8234_s30  ;;  %2988 = vst.msk [vmem:[#allocation3 + $0x190] sm:$0xff] %vm2937_vm11, %v2846_v20  ;;  %7678 = vmatmul.mubr.msk.f32.gmra.mrb[48].mxu0 %vm3847_vm14, %v3821_v34 }
 0x3d0   : > { %2092 = vrot.lane.b32.xlu1 %v10565_v42, %s12093_s24 }
 0x3d1   : > { %v2462_v26 = vpop.permute.xlu0 %2461 }
 0x3d2   : > { %2603 = vst.msk [vmem:[#allocation3 + $0x198] sm:$0xff] %vm2551_vm10, %v2462_v26  ;;  %v1694_v19 = vpop.permute.xlu1 %1693 }
 0x3d3   : > { %939 = vrot.lane.b32.xlu0 %v10493_v41, %s12088_s15  ;;  %1834 = vst.msk [vmem:[#allocation3 + $0x1a0] sm:$0xff] %vm1781_vm8, %v1694_v19  ;;  %v10703_v41 = vld [vmem:[#allocation2 + $0x290] sm:$0xff]  ;;  %v10776_v19 = vld [vmem:[#allocation2 + $0x29a] sm:$0xff] }
 0x3d4   : > { %3629 = vrot.lane.b32.xlu1 %v10689_v15, %s12092_s16 }
 0x3d5   : > { %v1311_v37 = vpop.permute.xlu0 %1310 }
 0x3d6   : > { %1450 = vst.msk [vmem:[#allocation3 + $0x1a8] sm:$0xff] %vm1396_vm7, %v1311_v37  ;;  %v3231_v33 = vpop.permute.xlu1 %3230 }
 0x3d7   : > { %2475 = vrot.lane.b32.xlu0 %v10577_v36, %s12089_s25  ;;  %3373 = vst.msk [vmem:[#allocation3 + $0x190] sm:$0xff] %vm3322_vm12, %v3231_v33 }
 0x3d8   : > { %1324 = vrot.lane.b32.xlu1 %v10516_v46, %s12090_s29  ;;  %v10714_v46 = vld [vmem:[%s12052_s2] ss:$0 sm:$0xff] }
 0x3d9   : > { %v2848_v58 = vpop.permute.xlu0 %2847  ;;  %v4271_v52 = vadd.f32 %v10714_v46, %v10595_v13 }
 0x3da   : > { %2989 = vst.msk [vmem:[#allocation3 + $0x198] sm:$0xff] %vm2937_vm11, %v2848_v58  ;;  %v2079_v16 = vpop.permute.xlu1 %2078 }
 0x3db   : > { %941 = vrot.lane.b32.xlu0 %v10518_v50, %s12088_s15  ;;  %2219 = vst.msk [vmem:[#allocation3 + $0x1a0] sm:$0xff] %vm2166_vm9, %v2079_v16  ;;  %v4276_v50 = vadd.f32 %v10714_v46, %v10591_v12  ;;  %v4461_v53 = vmax.f32 %v4271_v52, 0.0 }
 0x3dc   : > { %2861 = vrot.lane.b32.xlu1 %v10703_v41, %s12091_s12 }
 0x3dd   : > { %v1696_v44 = vpop.permute.xlu0 %1695  ;;  %v4462_v8 = vmax.f32 %v4276_v50, 0.0  ;;  %v4571_v1 = vsel %vm4493_vm15, %v4461_v53, -inf  ;;  %v4286_v50 = vadd.f32 %v10714_v46, %v10653_v10 }
 0x3de   : > { %1835 = vst.msk [vmem:[#allocation3 + $0x1a8] sm:$0xff] %vm1781_vm8, %v1696_v44  ;;  %v3616_v54 = vpop.permute.xlu1 %3615 }
 0x3df   : > { %2477 = vrot.lane.b32.xlu0 %v10575_v48, %s12089_s25  ;;  %3758 = vst.msk [vmem:[#allocation3 + $0x190] sm:$0xff] %vm3707_vm13, %v3616_v54 }
 0x3e0   : > { %1709 = vrot.lane.b32.xlu1 %v10635_v5, %s8230_s22  ;;  %v4574_v5 = vsel %vm4493_vm15, %v4462_v8, -inf }
 0x3e1   : > { %v3233_v40 = vpop.permute.xlu0 %3232 }
 0x3e2   : > { %3374 = vst.msk [vmem:[#allocation3 + $0x198] sm:$0xff] %vm3322_vm12, %v3233_v40  ;;  %v2081_v57 = vpop.permute.xlu1 %2080  ;;  %v7661_v12 = vpop.f32.mrb[36].mxu0  ;;  %v3062_v40 = vld [vmem:[#allocation2 + $0x2a9] sm:$0xff] }
 0x3e3   : > { %1326 = vrot.lane.b32.xlu0 %v10541_v17, %s12090_s29  ;;  %2220 = vst.msk [vmem:[#allocation3 + $0x1a8] sm:$0xff] %vm2166_vm9, %v2081_v57  ;;  %v4296_v13 = vadd.f32 %v10714_v46, %v7661_v12  ;;  %v4290_v51 = vpop.f32.mrb[37].mxu0  ;;  %v4464_v12 = vmax.f32 %v4286_v50, 0.0  ;;  %v3449_v50 = vld [vmem:[#allocation2 + $0x2ba] sm:$0xff] }
 0x3e4   : > { %v4291_v17 = vadd.f32 %v10714_v46, %v4290_v51  ;;  %3246 = vrot.lane.b32.xlu1 %v10726_v27, %s8234_s30 }
 0x3e5   : > { %v928_v32 = vpop.permute.xlu0 %927  ;;  %v4466_v45 = vmax.f32 %v4296_v13, 0.0  ;;  %v4580_v53 = vsel %vm4493_vm15, %v4464_v12, -inf }
 0x3e6   : > { %1066 = vst.msk [vmem:[#allocation3 + $0x1b0] sm:$0xff] %vm1011_vm6, %v928_v32  ;;  %v4465_v3 = vmax.f32 %v4291_v17, 0.0  ;;  %v3618_v49 = vpop.permute.xlu1 %3617  ;;  %v3822_v29 = vld [vmem:[#allocation3 + $0x190] sm:$0xff] }
 0x3e7   : > { %2863 = vrot.lane.b32.xlu0 %v10728_v60, %s12091_s12  ;;  %v4575_v63 = vsel %vm4493_vm15, %v4466_v45, -inf  ;;  %3759 = vst.msk [vmem:[#allocation3 + $0x198] sm:$0xff] %vm3707_vm13, %v3618_v49  ;;  %7680 = vmatprep.mubr.msk.f32.mxu0 %vm3847_vm14, %v3822_v29 }
 0x3e8   : > { %v4576_v25 = vmax.f32 %v4574_v5, %v4575_v63  ;;  %v4572_v47 = vsel %vm4493_vm15, %v4465_v3, -inf  ;;  %2094 = vrot.lane.b32.xlu1 %v10649_v43, %s12093_s24  ;;  %v3447_v63 = vld [vmem:[#allocation2 + $0x2aa] sm:$0xff] }
 0x3e9   : > { %v2464_v55 = vpop.permute.xlu0 %2463  ;;  %v4573_v4 = vmax.f32 %v4571_v1, %v4572_v47 }
 0x3ea   : > { %2604 = vst.msk [vmem:[#allocation3 + $0x1a0] sm:$0xff] %vm2551_vm10, %v2464_v55  ;;  %v4699_v59 = vrot.slane %v4576_v25, 1  ;;  %v1313_v2 = vpop.permute.xlu1 %1312  ;;  %v3063_v55 = vld [vmem:[#allocation2 + $0x2b1] sm:$0xff] }
 0x3eb   : > { %1711 = vrot.lane.b32.xlu0 %v10651_v18, %s8230_s22  ;;  %v4631_v62 = vrot.slane %v4573_v4, 1  ;;  %1451 = vst.msk [vmem:[#allocation3 + $0x1b0] sm:$0xff] %vm1396_vm7, %v1313_v2 }
 0x3ec   : > { %v4715_v20 = vmax.f32 %v4576_v25, %v4699_v59  ;;  %3631 = vrot.lane.b32.xlu1 %v10750_v7, %s12092_s16 }
 0x3ed   : > { %v930_v22 = vpop.permute.xlu0 %929  ;;  %v4647_v43 = vmax.f32 %v4573_v4, %v4631_v62 }
 0x3ee   : > { %1067 = vst.msk [vmem:[#allocation3 + $0x1b8] sm:$0xff] %vm1011_vm6, %v930_v22  ;;  %v2850_v18 = vpop.permute.xlu1 %2849  ;;  %v3823_v34 = vld [vmem:[#allocation3 + $0x198] sm:$0xff]  ;;  %v3448_v22 = vld [vmem:[#allocation2 + $0x2b2] sm:$0xff] }
 0x3ef   : > { %3248 = vrot.lane.b32.xlu0 %v10752_v61, %s8234_s30  ;;  %4723 = vst.msk [vmem:[#allocation4 + $0x7d] sm:$0x1] %vm4502_vm1, %v4715_v20  ;;  %4656 = vst.msk [vmem:[#allocation4 + $0x79] sm:$0x1] %vm4502_vm1, %v4647_v43  ;;  %7681 = vmatmul.mubr.msk.f32.gmra.mrb[50].mxu0 %vm3847_vm14, %v3823_v34 }
 0x3f0   : > { %4731 = vst.msk [vmem:[#allocation4 + $0x7c] sm:$0x4] %vm4660_vm2, %v4715_v20  ;;  %4665 = vst.msk [vmem:[#allocation4 + $0x78] sm:$0x4] %vm4660_vm2, %v4647_v43  ;;  %2096 = vrot.lane.b32.xlu1 %v10673_v28, %s12093_s24  ;;  %v2677_v28 = vld [vmem:[#allocation2 + $0x2a8] sm:$0xff] }
 0x3f1   : > { %4739 = vst.msk [vmem:[#allocation4 + $0x7b] sm:$0x10] %vm4669_vm3, %v4715_v20  ;;  %4674 = vst.msk [vmem:[#allocation4 + $0x77] sm:$0x10] %vm4669_vm3, %v4647_v43  ;;  %v2466_v26 = vpop.permute.xlu0 %2465 }
 0x3f2   : > { %4747 = vst.msk [vmem:[#allocation4 + $0x7a] sm:$0x40] %vm4678_vm5, %v4715_v20  ;;  %4683 = vst.msk [vmem:[#allocation4 + $0x76] sm:$0x40] %vm4678_vm5, %v4647_v43  ;;  %v1698_v37 = vpop.permute.xlu1 %1697  ;;  %v2680_v43 = vld [vmem:[#allocation2 + $0x2c0] sm:$0xff] }
 0x3f3   : > { %2990 = vst.msk [vmem:[#allocation3 + $0x1a0] sm:$0xff] %vm2937_vm11, %v2850_v18  ;;  %943 = vrot.lane.b32.xlu0 %v10567_v9, %s12088_s15  ;;  %v4880_v18 = vld [vmem:[#allocation4 + $0x8] sm:$0xff] }
 0x3f4   : > { %2605 = vst.msk [vmem:[#allocation3 + $0x1a8] sm:$0xff] %vm2551_vm10, %v2466_v26  ;;  %3633 = vrot.lane.b32.xlu1 %v10776_v19, %s12092_s16  ;;  %v2679_v26 = vld [vmem:[#allocation2 + $0x2b8] sm:$0xff] }
 0x3f5   : > { %1836 = vst.msk [vmem:[#allocation3 + $0x1b0] sm:$0xff] %vm1781_vm8, %v1698_v37  ;;  %v1315_v33 = vpop.permute.xlu0 %1314  ;;  %v4879_v37 = vld [vmem:[#allocation4] sm:$0xff] }
 0x3f6   : > { %1452 = vst.msk [vmem:[#allocation3 + $0x1b8] sm:$0xff] %vm1396_vm7, %v1315_v33  ;;  %v3235_v58 = vpop.permute.xlu1 %3234 }
 0x3f7   : > { %2479 = vrot.lane.b32.xlu0 %v10671_v11, %s12089_s25  ;;  %3375 = vst.msk [vmem:[#allocation3 + $0x1a0] sm:$0xff] %vm3322_vm12, %v3235_v58  ;;  %v3064_v58 = vld [vmem:[#allocation2 + $0x2b9] sm:$0xff] }
 0x3f8   : > { %1328 = vrot.lane.b32.xlu1 %v10577_v36, %s12090_s29  ;;  %4896 = vst.msk [vmem:[#allocation5 + $0x8] sm:$0xff] %vm4493_vm15, %v4880_v18  ;;  %4895 = vst.msk [vmem:[#allocation5] sm:$0xff] %vm4493_vm15, %v4879_v37  ;;  %v5708_v18 = vld [vmem:[%s12053_s3 + $0x20] sm:$0xff] }
 0x3f9   : > { %v10784_v16 = vld [vmem:[#allocation4 + $0x78] sm:$0xff]  ;;  %v2852_v9 = vpop.permute.xlu0 %2851 }
 0x3fa   : > { %4905 = vst.msk [vmem:[#allocation5 + $0x50] sm:$0xff] %vm4493_vm15, %v10784_v16  ;;  %v2083_v44 = vpop.permute.xlu1 %2082 }
 0x3fb   : > { %2991 = vst.msk [vmem:[#allocation3 + $0x1a8] sm:$0xff] %vm2937_vm11, %v2852_v9  ;;  %945 = vrot.lane.b32.xlu0 %v10565_v42, %s12088_s15  ;;  %v4281_v42 = vadd.f32 %v10714_v46, %v10656_v39  ;;  %s8240_s15 = smov 48  }
 0x3fc   : > { %2221 = vst.msk [vmem:[#allocation3 + $0x1b0] sm:$0xff] %vm2166_vm9, %v2083_v44  ;;  %2865 = vrot.lane.b32.xlu1 %v2677_v28, %s12091_s12 }
 0x3fd   : > { %v1700_v11 = vpop.permute.xlu0 %1699  ;;  %v4463_v39 = vmax.f32 %v4281_v42, 0.0  ;;  %v4912_v42 = vld [vmem:[#allocation4 + $0x9] sm:$0xff] }
 0x3fe   : > { %1837 = vst.msk [vmem:[#allocation3 + $0x1b8] sm:$0xff] %vm1781_vm8, %v1700_v11  ;;  %v3620_v54 = vpop.permute.xlu1 %3619  ;;  %v3450_v11 = vld [vmem:[#allocation2 + $0x2c2] sm:$0xff] }
 0x3ff   : > { %2481 = vrot.lane.b32.xlu0 %v10689_v15, %s12089_s25  ;;  %3760 = vst.msk [vmem:[#allocation3 + $0x1a0] sm:$0xff] %vm3707_vm13, %v3620_v54  ;;  %v2678_v15 = vld [vmem:[#allocation2 + $0x2b0] sm:$0xff]  ;;  %v4577_v3 = vsel %vm4493_vm15, %v4463_v39, -inf }
 0x400   : > { %1713 = vrot.lane.b32.xlu1 %v10703_v41, %s8230_s22 }
 0x401   : > { %v3237_v36 = vpop.permute.xlu0 %3236 }
 0x402   : > { %3376 = vst.msk [vmem:[#allocation3 + $0x1a8] sm:$0xff] %vm3322_vm12, %v3237_v36  ;;  %v2468_v52 = vpop.permute.xlu1 %2467  ;;  %v7664_v57 = vpop.f32.mrb[38].mxu0 }
 0x403   : > { %1330 = vrot.lane.b32.xlu0 %v10575_v48, %s12090_s29  ;;  %2606 = vst.msk [vmem:[#allocation3 + $0x1b0] sm:$0xff] %vm2551_vm10, %v2468_v52  ;;  %v4306_v38 = vadd.f32 %v10714_v46, %v7664_v57  ;;  %v4300_v8 = vpop.f32.mrb[39].mxu0  ;;  %v4911_v52 = vld [vmem:[#allocation4 + $0x1] sm:$0xff] }
 0x404   : > { %v4301_v32 = vadd.f32 %v10714_v46, %v4300_v8  ;;  %3250 = vrot.lane.b32.xlu1 %v3062_v40, %s8234_s30  ;;  %v5008_v8 = vld [vmem:[#allocation4 + $0x2] sm:$0xff] }
 0x405   : > { %v2085_v10 = vpop.permute.xlu0 %2084  ;;  %v4468_v48 = vmax.f32 %v4306_v38, 0.0 }
 0x406   : > { %2222 = vst.msk [vmem:[#allocation3 + $0x1b8] sm:$0xff] %vm2166_vm9, %v2085_v10  ;;  %v4467_v41 = vmax.f32 %v4301_v32, 0.0  ;;  %v2470_v13 = vpop.permute.xlu1 %2469  ;;  %v3824_v51 = vld [vmem:[#allocation3 + $0x1a0] sm:$0xff]  ;;  %v5009_v10 = vld [vmem:[#allocation4 + $0xa] sm:$0xff] }
 0x407   : > { %2867 = vrot.lane.b32.xlu0 %v2678_v15, %s12091_s12  ;;  %v4581_v17 = vsel %vm4493_vm15, %v4468_v48, -inf  ;;  %2607 = vst.msk [vmem:[#allocation3 + $0x1b8] sm:$0xff] %vm2551_vm10, %v2470_v13  ;;  %7683 = vmatprep.mubr.msk.f32.mxu0 %vm3847_vm14, %v3824_v51  ;;  %v5202_v51 = vld [vmem:[#allocation4 + $0x19] sm:$0xff] }
 0x408   : > { %v4582_v49 = vmax.f32 %v4580_v53, %v4581_v17  ;;  %v4578_v29 = vsel %vm4493_vm15, %v4467_v41, -inf  ;;  %2098 = vrot.lane.b32.xlu1 %v10726_v27, %s12093_s24 }
 0x409   : > { %v3622_v45 = vpop.permute.xlu0 %3621  ;;  %v4579_v5 = vmax.f32 %v4577_v3, %v4578_v29 }
 0x40a   : > { %3761 = vst.msk [vmem:[#allocation3 + $0x1a8] sm:$0xff] %vm3707_vm13, %v3622_v45  ;;  %v4827_v1 = vrot.slane %v4582_v49, 1  ;;  %v2856_v25 = vpop.permute.xlu1 %2855  ;;  %v5299_v45 = vld [vmem:[#allocation4 + $0x1a] sm:$0xff] }
 0x40b   : > { %1715 = vrot.lane.b32.xlu0 %v10728_v60, %s8230_s22  ;;  %v4763_v47 = vrot.slane %v4579_v5, 1  ;;  %2993 = vst.msk [vmem:[#allocation3 + $0x1b8] sm:$0xff] %vm2937_vm11, %v2856_v25  ;;  %s12075_s22 = smov 30   ;;  %v5705_v25 = vld [vmem:[%s12053_s3 + $0x8] sm:$0xff] }
 0x40c   : > { %v4843_v59 = vmax.f32 %v4582_v49, %v4827_v1  ;;  %3635 = vrot.lane.b32.xlu1 %v3447_v63, %s12092_s16  ;;  %v5704_v1 = vld [vmem:[%s12053_s3] sm:$0xff] }
 0x40d   : > { %v2854_v4 = vpop.permute.xlu0 %2853  ;;  %v4779_v27 = vmax.f32 %v4579_v5, %v4763_v47  ;;  %v5300_v5 = vld [vmem:[#allocation4 + $0x22] sm:$0xff]  ;;  %v7926_v47 = vpack.c.bf16 %v5705_v25, %v5704_v1 }
 0x40e   : > { %2992 = vst.msk [vmem:[#allocation3 + $0x1b0] sm:$0xff] %vm2937_vm11, %v2854_v4  ;;  %v3241_v60 = vpop.permute.xlu1 %3240 }
 0x40f   : > { %3252 = vrot.lane.b32.xlu0 %v3063_v55, %s8234_s30  ;;  %4851 = vst.msk [vmem:[#allocation4 + $0x85] sm:$0x1] %vm4502_vm1, %v4843_v59  ;;  %4787 = vst.msk [vmem:[#allocation4 + $0x81] sm:$0x1] %vm4502_vm1, %v4779_v27  ;;  %7927 = vmatprep.subr.bf16.mxu1 %v7926_v47 }
 0x410   : > { %4859 = vst.msk [vmem:[#allocation4 + $0x84] sm:$0x4] %vm4660_vm2, %v4843_v59  ;;  %4795 = vst.msk [vmem:[#allocation4 + $0x80] sm:$0x4] %vm4660_vm2, %v4779_v27  ;;  %2483 = vrot.lane.b32.xlu1 %v10750_v7, %s12089_s25  ;;  %7929 = vmatpush3.bf16.msra.mxu1 %v7926_v47 }
 0x411   : > { %4867 = vst.msk [vmem:[#allocation4 + $0x83] sm:$0x10] %vm4669_vm3, %v4843_v59  ;;  %4803 = vst.msk [vmem:[#allocation4 + $0x7f] sm:$0x10] %vm4669_vm3, %v4779_v27  ;;  %v3239_v2 = vpop.permute.xlu0 %3238  ;;  %v3825_v35 = vld [vmem:[#allocation3 + $0x1a8] sm:$0xff] }
 0x412   : > { %4875 = vst.msk [vmem:[#allocation4 + $0x82] sm:$0x40] %vm4678_vm5, %v4843_v59  ;;  %4811 = vst.msk [vmem:[#allocation4 + $0x7e] sm:$0x40] %vm4678_vm5, %v4779_v27  ;;  %7684 = vmatmul.mubr.msk.f32.gmra.mrb[52].mxu0 %vm3847_vm14, %v3825_v35  ;;  %v3626_v62 = vpop.permute.xlu1 %3625  ;;  %v5706_v35 = vld [vmem:[%s12053_s3 + $0x10] sm:$0xff] }
 0x413   : > { %3378 = vst.msk [vmem:[#allocation3 + $0x1b8] sm:$0xff] %vm3322_vm12, %v3241_v60  ;;  %3377 = vst.msk [vmem:[#allocation3 + $0x1b0] sm:$0xff] %vm3322_vm12, %v3239_v2  ;;  %2100 = vrot.lane.b32.xlu0 %v10752_v61, %s12093_s24  ;;  %v5494_v2 = vld [vmem:[#allocation4 + $0x31] sm:$0xff] }
 0x414   : > { %3763 = vst.msk [vmem:[#allocation3 + $0x1b8] sm:$0xff] %vm3707_vm13, %v3626_v62  ;;  %2485 = vrot.lane.b32.xlu1 %v10776_v19, %s12089_s25  ;;  %v3065_v19 = vld [vmem:[#allocation2 + $0x2c1] sm:$0xff]  ;;  %s8247_s25 = smov 112  }
 0x415   : > { %v3624_v20 = vpop.permute.xlu0 %3623 }
 0x416   : > { %3762 = vst.msk [vmem:[#allocation3 + $0x1b0] sm:$0xff] %vm3707_vm13, %v3624_v20  ;;  %v934_v34 = vpop.permute.xlu1 %933 }
 0x417   : > { %3637 = vrot.lane.b32.xlu0 %v3448_v22, %s12092_s16  ;;  %1069 = vst.msk [vmem:[#allocation3 + $0x1c8] sm:$0xff] %vm1011_vm6, %v934_v34  ;;  %v5709_v34 = vld [vmem:[%s12053_s3 + $0x28] sm:$0xff] }
 0x418   : > { %2871 = vrot.lane.b32.xlu1 %v2680_v43, %s12091_s12 }
 0x419   : > { %v10851_v7 = vld [vmem:[#allocation4 + $0x80] sm:$0xff]  ;;  %v932_v61 = vpop.permute.xlu0 %931 }
 0x41a   : > { %4906 = vst.msk [vmem:[#allocation5 + $0x58] sm:$0xff] %vm4493_vm15, %v10851_v7  ;;  %v1319_v33 = vpop.permute.xlu1 %1318 }
 0x41b   : > { %1068 = vst.msk [vmem:[#allocation3 + $0x1c0] sm:$0xff] %vm1011_vm6, %v932_v61  ;;  %2869 = vrot.lane.b32.xlu0 %v2679_v26, %s12091_s12  ;;  %v3827_v9 = vld [vmem:[#allocation3 + $0x1b8] sm:$0xff]  ;;  %v7934_v26 = vpack.c.bf16 %v5709_v34, %v5708_v18 }
 0x41c   : > { %1454 = vst.msk [vmem:[#allocation3 + $0x1c8] sm:$0xff] %vm1396_vm7, %v1319_v33  ;;  %3256 = vrot.lane.b32.xlu1 %v3065_v19, %s8234_s30  ;;  %v5591_v19 = vld [vmem:[#allocation4 + $0x32] sm:$0xff] }
 0x41d   : > { %v1317_v28 = vpop.permute.xlu0 %1316  ;;  %v3826_v44 = vld [vmem:[#allocation3 + $0x1b0] sm:$0xff]  ;;  %v5495_v33 = vld [vmem:[#allocation4 + $0x39] sm:$0xff] }
 0x41e   : > { %1453 = vst.msk [vmem:[#allocation3 + $0x1c0] sm:$0xff] %vm1396_vm7, %v1317_v28  ;;  %7686 = vmatprep.mubr.msk.f32.mxu0 %vm3847_vm14, %v3826_v44  ;;  %v1704_v54 = vpop.permute.xlu1 %1703 }
 0x41f   : > { %3254 = vrot.lane.b32.xlu0 %v3064_v58, %s8234_s30  ;;  %7687 = vmatmul.mubr.msk.f32.gmra.mrb[54].mxu0 %vm3847_vm14, %v3827_v9  ;;  %1839 = vst.msk [vmem:[#allocation3 + $0x1c8] sm:$0xff] %vm1781_vm8, %v1704_v54  ;;  %s8238_s30 = smov 36   ;;  %v5710_v58 = vld [vmem:[%s12053_s3 + $0x30] sm:$0x3f] }
 0x420   : > { %3641 = vrot.lane.b32.xlu1 %v3450_v11, %s12092_s16  ;;  %v5592_v54 = vld [vmem:[#allocation4 + $0x3a] sm:$0xff] }
 0x421   : > { %v1702_v36 = vpop.permute.xlu0 %1701 }
 0x422   : > { %1838 = vst.msk [vmem:[#allocation3 + $0x1c0] sm:$0xff] %vm1781_vm8, %v1702_v36  ;;  %v936_v40 = vpop.permute.xlu1 %935  ;;  %v10870_v15 = vpop.f32.mrb[40].mxu0 }
 0x423   : > { %3639 = vrot.lane.b32.xlu0 %v3449_v50, %s12092_s16  ;;  %1070 = vst.msk [vmem:[#allocation3 + $0x1d0] sm:$0xff] %vm1011_vm6, %v936_v40  ;;  %v10873_v12 = vpop.f32.mrb[41].mxu0 }
 0x424   : > { %4945 = vrot.lane.b32.xlu1 %v4912_v42, %s12090_s29 }
 0x425   : > { %v2087_v57 = vpop.permute.xlu0 %2086 }
 0x426   : > { %2223 = vst.msk [vmem:[#allocation3 + $0x1c0] sm:$0xff] %vm2166_vm9, %v2087_v57  ;;  %v2472_v38 = vpop.permute.xlu1 %2471  ;;  %v4316_v57 = vadd.f32 %v10714_v46, %v10870_v15 }
 0x427   : > { %4943 = vrot.lane.b32.xlu0 %v4911_v52, %s12090_s29  ;;  %2608 = vst.msk [vmem:[#allocation3 + $0x1c0] sm:$0xff] %vm2551_vm10, %v2472_v38  ;;  %v4311_v38 = vadd.f32 %v10714_v46, %v10873_v12 }
 0x428   : > { %5042 = vrot.lane.b32.xlu1 %v5009_v10, %s12093_s24 }
 0x429   : > { %v2089_v39 = vpop.permute.xlu0 %2088 }
 0x42a   : > { %2224 = vst.msk [vmem:[#allocation3 + $0x1c8] sm:$0xff] %vm2166_vm9, %v2089_v39  ;;  %v1321_v32 = vpop.permute.xlu1 %1320 }
 0x42b   : > { %5040 = vrot.lane.b32.xlu0 %v5008_v8, %s12093_s24  ;;  %1455 = vst.msk [vmem:[#allocation3 + $0x1d0] sm:$0xff] %vm1396_vm7, %v1321_v32  ;;  %v4470_v32 = vmax.f32 %v4316_v57, 0.0 }
 0x42c   : > { %5139 = vrot.lane.b32.xlu1 %v9580_v24, %s12091_s12  ;;  %v5203_v24 = vld [vmem:[#allocation4 + $0x21] sm:$0xff] }
 0x42d   : > { %v938_v48 = vpop.permute.xlu0 %937 }
 0x42e   : > { %1071 = vst.msk [vmem:[#allocation3 + $0x1d8] sm:$0xff] %vm1011_vm6, %v938_v48  ;;  %v2858_v41 = vpop.permute.xlu1 %2857 }
 0x42f   : > { %5137 = vrot.lane.b32.xlu0 %v9490_v30, %s12091_s12  ;;  %2994 = vst.msk [vmem:[#allocation3 + $0x1c0] sm:$0xff] %vm2937_vm11, %v2858_v41 }
 0x430   : > { %4947 = vrot.lane.b32.xlu1 %v5202_v51, %s12090_s29 }
 0x431   : > { %v2474_v13 = vpop.permute.xlu0 %2473 }
 0x432   : > { %2609 = vst.msk [vmem:[#allocation3 + $0x1c8] sm:$0xff] %vm2551_vm10, %v2474_v13  ;;  %v1706_v53 = vpop.permute.xlu1 %1705  ;;  %v5496_v13 = vld [vmem:[#allocation4 + $0x49] sm:$0xff] }
 0x433   : > { %5234 = vrot.lane.b32.xlu0 %v5202_v51, %s12092_s16  ;;  %1840 = vst.msk [vmem:[#allocation3 + $0x1d0] sm:$0xff] %vm1781_vm8, %v1706_v53  ;;  %v4469_v51 = vmax.f32 %v4311_v38, 0.0 }
 0x434   : > { %5331 = vrot.lane.b32.xlu1 %v5299_v45, %s12075_s22 }
 0x435   : > { %v1323_v17 = vpop.permute.xlu0 %1322 }
 0x436   : > { %1456 = vst.msk [vmem:[#allocation3 + $0x1d8] sm:$0xff] %vm1396_vm7, %v1323_v17  ;;  %v3243_v30 = vpop.permute.xlu1 %3242 }
 0x437   : > { %5236 = vrot.lane.b32.xlu0 %v5203_v24, %s12092_s16  ;;  %3379 = vst.msk [vmem:[#allocation3 + $0x1c0] sm:$0xff] %vm3322_vm12, %v3243_v30 }
 0x438   : > { %5044 = vrot.lane.b32.xlu1 %v5299_v45, %s12093_s24 }
 0x439   : > { %v2860_v3 = vpop.permute.xlu0 %2859 }
 0x43a   : > { %2995 = vst.msk [vmem:[#allocation3 + $0x1c8] sm:$0xff] %vm2937_vm11, %v2860_v3  ;;  %v2091_v49 = vpop.permute.xlu1 %2090 }
 0x43b   : > { %4949 = vrot.lane.b32.xlu0 %v5203_v24, %s12090_s29  ;;  %2225 = vst.msk [vmem:[#allocation3 + $0x1d0] sm:$0xff] %vm2166_vm9, %v2091_v49  ;;  %v4586_v24 = vsel %vm4493_vm15, %v4470_v32, -inf  ;;  %v4583_v49 = vsel %vm4493_vm15, %v4469_v51, -inf  ;;  %v5595_v51 = vld [vmem:[#allocation4 + $0x62] sm:$0xff] }
 0x43c   : > { %5429 = vrot.lane.b32.xlu1 %v9814_v31, %s8238_s30 }
 0x43d   : > { %v1708_v29 = vpop.permute.xlu0 %1707 }
 0x43e   : > { %1841 = vst.msk [vmem:[#allocation3 + $0x1d8] sm:$0xff] %vm1781_vm8, %v1708_v29  ;;  %v3628_v63 = vpop.permute.xlu1 %3627 }
 0x43f   : > { %5333 = vrot.lane.b32.xlu0 %v5300_v5, %s12075_s22  ;;  %3764 = vst.msk [vmem:[#allocation3 + $0x1c0] sm:$0xff] %vm3707_vm13, %v3628_v63  ;;  %s8239_s22 = smov 42  }
 0x440   : > { %5141 = vrot.lane.b32.xlu1 %v9814_v31, %s12091_s12  ;;  %v5707_v31 = vld [vmem:[%s12053_s3 + $0x18] sm:$0xff] }
 0x441   : > { %v3245_v55 = vpop.permute.xlu0 %3244  ;;  %v7930_v62 = vpack.c.bf16 %v5707_v31, %v5706_v35 }
 0x442   : > { %3380 = vst.msk [vmem:[#allocation3 + $0x1c8] sm:$0xff] %vm3322_vm12, %v3245_v55  ;;  %v2093_v4 = vpop.permute.xlu1 %2092  ;;  %v10916_v59 = vpop.f32.mrb[42].mxu0 }
 0x443   : > { %5046 = vrot.lane.b32.xlu0 %v5300_v5, %s12093_s24  ;;  %2226 = vst.msk [vmem:[#allocation3 + $0x1d8] sm:$0xff] %vm2166_vm9, %v2093_v4  ;;  %v10919_v60 = vpop.f32.mrb[43].mxu0  ;;  %7931 = vmatprep.subr.bf16.mxu1 %v7930_v62  ;;  %v5593_v4 = vld [vmem:[#allocation4 + $0x4a] sm:$0xff] }
 0x444   : > { %5526 = vrot.lane.b32.xlu1 %v5494_v2, %s8239_s22  ;;  %7933 = vmatpush3.bf16.msra.mxu1 %v7930_v62 }
 0x445   : > { %v940_v27 = vpop.permute.xlu0 %939  ;;  %7935 = vmatprep.subr.bf16.mxu1 %v7934_v26 }
 0x446   : > { %1072 = vst.msk [vmem:[#allocation3 + $0x1e0] sm:$0xff] %vm1011_vm6, %v940_v27  ;;  %v3630_v22 = vpop.permute.xlu1 %3629  ;;  %v3828_v20 = vld [vmem:[#allocation3 + $0x1c0] sm:$0xff] }
 0x447   : > { %5431 = vrot.lane.b32.xlu0 %v9904_v14, %s8238_s30  ;;  %3765 = vst.msk [vmem:[#allocation3 + $0x1c8] sm:$0xff] %vm3707_vm13, %v3630_v22  ;;  %7689 = vmatprep.mubr.msk.f32.mxu0 %vm3847_vm14, %v3828_v20 }
 0x448   : > { %5238 = vrot.lane.b32.xlu1 %v5494_v2, %s12092_s16  ;;  %7937 = vmatpush3.bf16.msra.mxu1 %v7934_v26 }
 0x449   : > { %v2476_v43 = vpop.permute.xlu0 %2475  ;;  %7713 = vmatprep.subr.msk.mxu1 %vm5767_vm0, %v5710_v58 }
 0x44a   : > { %2610 = vst.msk [vmem:[#allocation3 + $0x1d0] sm:$0xff] %vm2551_vm10, %v2476_v43  ;;  %v1325_v61 = vpop.permute.xlu1 %1324  ;;  %v5594_v43 = vld [vmem:[#allocation4 + $0x52] sm:$0xff] }
 0x44b   : > { %5143 = vrot.lane.b32.xlu0 %v9904_v14, %s12091_s12  ;;  %1457 = vst.msk [vmem:[#allocation3 + $0x1e0] sm:$0xff] %vm1396_vm7, %v1325_v61 }
 0x44c   : > { %5623 = vrot.lane.b32.xlu1 %v5591_v19, %s8240_s15  ;;  %7714 = vmatpush3.msk.msra.mxu1 %vm5767_vm0, %v5710_v58  ;;  %vm5939_vm0 = vcmask 122880  }
 0x44d   : > { %v942_v37 = vpop.permute.xlu0 %941  ;;  %5941 = vst.msk [vmem:[#allocation6 + $0x10] sm:$0x1] %vm5939_vm0, %v8227_v0  ;;  %5942 = vst.msk [vmem:[#allocation6 + $0x20] sm:$0x1] %vm5939_vm0, %v8227_v0 }
 0x44e   : > { %1073 = vst.msk [vmem:[#allocation3 + $0x1e8] sm:$0xff] %vm1011_vm6, %v942_v37  ;;  %v2862_v14 = vpop.permute.xlu1 %2861  ;;  %v3829_v9 = vld [vmem:[#allocation3 + $0x1c8] sm:$0xff] }
 0x44f   : > { %5528 = vrot.lane.b32.xlu0 %v5495_v33, %s8239_s22  ;;  %2996 = vst.msk [vmem:[#allocation3 + $0x1d0] sm:$0xff] %vm2937_vm11, %v2862_v14  ;;  %7690 = vmatmul.mubr.msk.f32.gmra.mrb[56].mxu0 %vm3847_vm14, %v3829_v9  ;;  %v4321_v14 = vadd.f32 %v10714_v46, %v10919_v60 }
 0x450   : > { %5240 = vrot.lane.b32.xlu1 %v5495_v33, %s12092_s16  ;;  %5943 = vst.msk [vmem:[#allocation6 + $0x30] sm:$0x1] %vm5939_vm0, %v8227_v0  ;;  %5944 = vst.msk [vmem:[#allocation6 + $0x40] sm:$0x1] %vm5939_vm0, %v8227_v0 }
 0x451   : > { %v2478_v28 = vpop.permute.xlu0 %2477  ;;  %5947 = vst.msk [vmem:[#allocation6 + $0x19] sm:$0x1] %vm5939_vm0, %v8227_v0  ;;  %5948 = vst.msk [vmem:[#allocation6 + $0x29] sm:$0x1] %vm5939_vm0, %v8227_v0 }
 0x452   : > { %2611 = vst.msk [vmem:[#allocation3 + $0x1d8] sm:$0xff] %vm2551_vm10, %v2478_v28  ;;  %v1710_v44 = vpop.permute.xlu1 %1709 }
 0x453   : > { %4951 = vrot.lane.b32.xlu0 %v5494_v2, %s12090_s29  ;;  %1842 = vst.msk [vmem:[#allocation3 + $0x1e0] sm:$0xff] %vm1781_vm8, %v1710_v44  ;;  %v5497_v2 = vld [vmem:[#allocation4 + $0x51] sm:$0xff] }
 0x454   : > { %5625 = vrot.lane.b32.xlu1 %v5592_v54, %s8240_s15  ;;  %5949 = vst.msk [vmem:[#allocation6 + $0x39] sm:$0x1] %vm5939_vm0, %v8227_v0  ;;  %5950 = vst.msk [vmem:[#allocation6 + $0x49] sm:$0x1] %vm5939_vm0, %v8227_v0 }
 0x455   : > { %v1327_v11 = vpop.permute.xlu0 %1326 }
 0x456   : > { %1458 = vst.msk [vmem:[#allocation3 + $0x1e8] sm:$0xff] %vm1396_vm7, %v1327_v11  ;;  %v3247_v50 = vpop.permute.xlu1 %3246 }
 0x457   : > { %5335 = vrot.lane.b32.xlu0 %v5591_v19, %s12094_s13  ;;  %3381 = vst.msk [vmem:[#allocation3 + $0x1d0] sm:$0xff] %vm3322_vm12, %v3247_v50  ;;  %v5498_v50 = vld [vmem:[#allocation4 + $0x61] sm:$0xff] }
 0x458   : > { %5048 = vrot.lane.b32.xlu1 %v5591_v19, %s12093_s24 }
 0x459   : > { %v2864_v36 = vpop.permute.xlu0 %2863 }
 0x45a   : > { %2997 = vst.msk [vmem:[#allocation3 + $0x1d8] sm:$0xff] %vm2937_vm11, %v2864_v36  ;;  %v2095_v42 = vpop.permute.xlu1 %2094  ;;  %v4471_v36 = vmax.f32 %v4321_v14, 0.0 }
 0x45b   : > { %4953 = vrot.lane.b32.xlu0 %v5495_v33, %s12090_s29  ;;  %2227 = vst.msk [vmem:[#allocation3 + $0x1e0] sm:$0xff] %vm2166_vm9, %v2095_v42  ;;  %v4326_v33 = vadd.f32 %v10714_v46, %v10916_v59 }
 0x45c   : > { %5433 = vrot.lane.b32.xlu1 %v10143_v23, %s8238_s30 }
 0x45d   : > { %v1712_v40 = vpop.permute.xlu0 %1711  ;;  %v4472_v44 = vmax.f32 %v4326_v33, 0.0 }
 0x45e   : > { %1843 = vst.msk [vmem:[#allocation3 + $0x1e8] sm:$0xff] %vm1781_vm8, %v1712_v40  ;;  %v3632_v52 = vpop.permute.xlu1 %3631 }
 0x45f   : > { %5337 = vrot.lane.b32.xlu0 %v5592_v54, %s12094_s13  ;;  %3766 = vst.msk [vmem:[#allocation3 + $0x1d0] sm:$0xff] %vm3707_vm13, %v3632_v52  ;;  %v4592_v57 = vsel %vm4493_vm15, %v4472_v44, -inf }
 0x460   : > { %5145 = vrot.lane.b32.xlu1 %v10143_v23, %s12091_s12 }
 0x461   : > { %v3249_v10 = vpop.permute.xlu0 %3248 }
 0x462   : > { %3382 = vst.msk [vmem:[#allocation3 + $0x1d8] sm:$0xff] %vm3322_vm12, %v3249_v10  ;;  %v2097_v8 = vpop.permute.xlu1 %2096  ;;  %v7673_v39 = vpop.f32.mrb[44].mxu0 }
 0x463   : > { %5050 = vrot.lane.b32.xlu0 %v5592_v54, %s12093_s24  ;;  %2228 = vst.msk [vmem:[#allocation3 + $0x1e8] sm:$0xff] %vm2166_vm9, %v2097_v8  ;;  %v4336_v15 = vadd.f32 %v10714_v46, %v7673_v39  ;;  %v4330_v41 = vpop.f32.mrb[45].mxu0 }
 0x464   : > { %v4331_v12 = vadd.f32 %v10714_v46, %v4330_v41  ;;  %5530 = vrot.lane.b32.xlu1 %v5496_v13, %s8239_s22 }
 0x465   : > { %v944_v48 = vpop.permute.xlu0 %943  ;;  %v4474_v23 = vmax.f32 %v4336_v15, 0.0 }
 0x466   : > { %1074 = vst.msk [vmem:[#allocation3 + $0x1f0] sm:$0xff] %vm1011_vm6, %v944_v48  ;;  %v4473_v53 = vmax.f32 %v4331_v12, 0.0  ;;  %v3634_v17 = vpop.permute.xlu1 %3633  ;;  %v3830_v45 = vld [vmem:[#allocation3 + $0x1d0] sm:$0xff] }
 0x467   : > { %5435 = vrot.lane.b32.xlu0 %v10235_v56, %s8238_s30  ;;  %v4587_v30 = vsel %vm4493_vm15, %v4474_v23, -inf  ;;  %3767 = vst.msk [vmem:[#allocation3 + $0x1d8] sm:$0xff] %vm3707_vm13, %v3634_v17  ;;  %7692 = vmatprep.mubr.msk.f32.mxu0 %vm3847_vm14, %v3830_v45  ;;  %v5499_v23 = vld [vmem:[#allocation4 + $0x69] sm:$0xff] }
 0x468   : > { %v4588_v29 = vmax.f32 %v4586_v24, %v4587_v30  ;;  %v4584_v5 = vsel %vm4493_vm15, %v4473_v53, -inf  ;;  %5242 = vrot.lane.b32.xlu1 %v5496_v13, %s12092_s16 }
 0x469   : > { %v2480_v3 = vpop.permute.xlu0 %2479  ;;  %v4585_v63 = vmax.f32 %v4583_v49, %v4584_v5 }
 0x46a   : > { %2612 = vst.msk [vmem:[#allocation3 + $0x1e0] sm:$0xff] %vm2551_vm10, %v2480_v3  ;;  %v4700_v55 = vrot.slane %v4588_v29, 1  ;;  %v1329_v1 = vpop.permute.xlu1 %1328  ;;  %v5596_v3 = vld [vmem:[#allocation4 + $0x6a] sm:$0xff] }
 0x46b   : > { %5147 = vrot.lane.b32.xlu0 %v10235_v56, %s12091_s12  ;;  %v4632_v25 = vrot.slane %v4585_v63, 1  ;;  %1459 = vst.msk [vmem:[#allocation3 + $0x1f0] sm:$0xff] %vm1396_vm7, %v1329_v1 }
 0x46c   : > { %v4716_v27 = vmax.f32 %v4588_v29, %v4700_v55  ;;  %5627 = vrot.lane.b32.xlu1 %v5593_v4, %s8240_s15 }
 0x46d   : > { %v946_v47 = vpop.permute.xlu0 %945  ;;  %v4648_v35 = vmax.f32 %v4585_v63, %v4632_v25 }
 0x46e   : > { %1075 = vst.msk [vmem:[#allocation3 + $0x1f8] sm:$0xff] %vm1011_vm6, %v946_v47  ;;  %v2866_v56 = vpop.permute.xlu1 %2865  ;;  %v3831_v31 = vld [vmem:[#allocation3 + $0x1d8] sm:$0xff]  ;;  %vm5088_vm6 = vcmask 146528  }
 0x46f   : > { %5532 = vrot.lane.b32.xlu0 %v5497_v2, %s8239_s22  ;;  %4724 = vst.msk [vmem:[#allocation4 + $0x95] sm:$0x1] %vm4502_vm1, %v4716_v27  ;;  %4657 = vst.msk [vmem:[#allocation4 + $0x91] sm:$0x1] %vm4502_vm1, %v4648_v35  ;;  %7693 = vmatmul.mubr.msk.f32.gmra.mrb[58].mxu0 %vm3847_vm14, %v3831_v31  ;;  %v5500_v31 = vld [vmem:[#allocation4 + $0x79] sm:$0xff] }
 0x470   : > { %4732 = vst.msk [vmem:[#allocation4 + $0x94] sm:$0x4] %vm4660_vm2, %v4716_v27  ;;  %4666 = vst.msk [vmem:[#allocation4 + $0x90] sm:$0x4] %vm4660_vm2, %v4648_v35  ;;  %5244 = vrot.lane.b32.xlu1 %v5497_v2, %s12092_s16 }
 0x471   : > { %4740 = vst.msk [vmem:[#allocation4 + $0x93] sm:$0x10] %vm4669_vm3, %v4716_v27  ;;  %4675 = vst.msk [vmem:[#allocation4 + $0x8f] sm:$0x10] %vm4669_vm3, %v4648_v35  ;;  %v2482_v62 = vpop.permute.xlu0 %2481 }
 0x472   : > { %4748 = vst.msk [vmem:[#allocation4 + $0x92] sm:$0x40] %vm4678_vm5, %v4716_v27  ;;  %4684 = vst.msk [vmem:[#allocation4 + $0x8e] sm:$0x40] %vm4678_vm5, %v4648_v35  ;;  %v1714_v22 = vpop.permute.xlu1 %1713 }
 0x473   : > { %2998 = vst.msk [vmem:[#allocation3 + $0x1e0] sm:$0xff] %vm2937_vm11, %v2866_v56  ;;  %4955 = vrot.lane.b32.xlu0 %v5496_v13, %s12090_s29 }
 0x474   : > { %2613 = vst.msk [vmem:[#allocation3 + $0x1e8] sm:$0xff] %vm2551_vm10, %v2482_v62  ;;  %5629 = vrot.lane.b32.xlu1 %v5594_v43, %s8240_s15 }
 0x475   : > { %1844 = vst.msk [vmem:[#allocation3 + $0x1f0] sm:$0xff] %vm1781_vm8, %v1714_v22  ;;  %v1331_v20 = vpop.permute.xlu0 %1330 }
 0x476   : > { %1460 = vst.msk [vmem:[#allocation3 + $0x1f8] sm:$0xff] %vm1396_vm7, %v1331_v20  ;;  %v3251_v18 = vpop.permute.xlu1 %3250  ;;  %vm5185_vm7 = vcmask 195728  }
 0x477   : > { %5339 = vrot.lane.b32.xlu0 %v5593_v4, %s12094_s13  ;;  %3383 = vst.msk [vmem:[#allocation3 + $0x1e0] sm:$0xff] %vm3322_vm12, %v3251_v18  ;;  %v5501_v18 = vld [vmem:[#allocation4 + $0x81] sm:$0xff] }
 0x478   : > { %5052 = vrot.lane.b32.xlu1 %v5593_v4, %s12093_s24 }
 0x479   : > { %v11015_v34 = vld [vmem:[#allocation4 + $0x90] sm:$0xff]  ;;  %v2868_v26 = vpop.permute.xlu0 %2867 }
 0x47a   : > { %4907 = vst.msk [vmem:[#allocation5 + $0x60] sm:$0xff] %vm4493_vm15, %v11015_v34  ;;  %v2099_v61 = vpop.permute.xlu1 %2098 }
 0x47b   : > { %2999 = vst.msk [vmem:[#allocation3 + $0x1e8] sm:$0xff] %vm2937_vm11, %v2868_v26  ;;  %4957 = vrot.lane.b32.xlu0 %v5497_v2, %s12090_s29 }
 0x47c   : > { %2229 = vst.msk [vmem:[#allocation3 + $0x1f0] sm:$0xff] %vm2166_vm9, %v2099_v61  ;;  %5437 = vrot.lane.b32.xlu1 %v10465_v21, %s8238_s30 }
 0x47d   : > { %v1716_v37 = vpop.permute.xlu0 %1715 }
 0x47e   : > { %1845 = vst.msk [vmem:[#allocation3 + $0x1f8] sm:$0xff] %vm1781_vm8, %v1716_v37  ;;  %v3636_v19 = vpop.permute.xlu1 %3635  ;;  %vm5282_vm8 = vcmask 244928  }
 0x47f   : > { %5341 = vrot.lane.b32.xlu0 %v5594_v43, %s12094_s13  ;;  %3768 = vst.msk [vmem:[#allocation3 + $0x1e0] sm:$0xff] %vm3707_vm13, %v3636_v19  ;;  %v5598_v19 = vld [vmem:[#allocation4 + $0x82] sm:$0xff] }
 0x480   : > { %5149 = vrot.lane.b32.xlu1 %v10465_v21, %s12091_s12 }
 0x481   : > { %v3253_v58 = vpop.permute.xlu0 %3252 }
 0x482   : > { %3384 = vst.msk [vmem:[#allocation3 + $0x1e8] sm:$0xff] %vm3322_vm12, %v3253_v58  ;;  %v2484_v9 = vpop.permute.xlu1 %2483  ;;  %v7676_v28 = vpop.f32.mrb[46].mxu0 }
 0x483   : > { %5054 = vrot.lane.b32.xlu0 %v5594_v43, %s12093_s24  ;;  %2614 = vst.msk [vmem:[#allocation3 + $0x1f0] sm:$0xff] %vm2551_vm10, %v2484_v9  ;;  %v4346_v59 = vadd.f32 %v10714_v46, %v7676_v28  ;;  %v4340_v54 = vpop.f32.mrb[47].mxu0  ;;  %v5597_v43 = vld [vmem:[#allocation4 + $0x7a] sm:$0xff] }
 0x484   : > { %v4341_v60 = vadd.f32 %v10714_v46, %v4340_v54  ;;  %5534 = vrot.lane.b32.xlu1 %v5498_v50, %s8239_s22  ;;  %v4589_v46 = vsel %vm4493_vm15, %v4471_v36, -inf  ;;  %v11140_v36 = vld [vmem:[#allocation4 + $0x91] sm:$0xff] }
 0x485   : > { %v2101_v11 = vpop.permute.xlu0 %2100  ;;  %v4476_v21 = vmax.f32 %v4346_v59, 0.0 }
 0x486   : > { %2230 = vst.msk [vmem:[#allocation3 + $0x1f8] sm:$0xff] %vm2166_vm9, %v2101_v11  ;;  %v4475_v42 = vmax.f32 %v4341_v60, 0.0  ;;  %v2486_v40 = vpop.permute.xlu1 %2485  ;;  %v3832_v52 = vld [vmem:[#allocation3 + $0x1e0] sm:$0xff]  ;;  %vm5379_vm9 = vcmask 294128  }
 0x487   : > { %5439 = vrot.lane.b32.xlu0 %v10554_v6, %s8238_s30  ;;  %v4593_v10 = vsel %vm4493_vm15, %v4476_v21, -inf  ;;  %2615 = vst.msk [vmem:[#allocation3 + $0x1f8] sm:$0xff] %vm2551_vm10, %v2486_v40  ;;  %7695 = vmatprep.mubr.msk.f32.mxu0 %vm3847_vm14, %v3832_v52  ;;  %vm5477_vm10 = vcmask 343328  }
 0x488   : > { %v4594_v8 = vmax.f32 %v4592_v57, %v4593_v10  ;;  %v4590_v39 = vsel %vm4493_vm15, %v4475_v42, -inf  ;;  %5246 = vrot.lane.b32.xlu1 %v5498_v50, %s12092_s16 }
 0x489   : > { %v3638_v38 = vpop.permute.xlu0 %3637  ;;  %v4591_v32 = vmax.f32 %v4589_v46, %v4590_v39 }
 0x48a   : > { %3769 = vst.msk [vmem:[#allocation3 + $0x1e8] sm:$0xff] %vm3707_vm13, %v3638_v38  ;;  %v4828_v48 = vrot.slane %v4594_v8, 1  ;;  %v2872_v15 = vpop.permute.xlu1 %2871 }
 0x48b   : > { %5151 = vrot.lane.b32.xlu0 %v10554_v6, %s12091_s12  ;;  %v4764_v41 = vrot.slane %v4591_v32, 1  ;;  %3001 = vst.msk [vmem:[#allocation3 + $0x1f8] sm:$0xff] %vm2937_vm11, %v2872_v15 }
 0x48c   : > { %v4844_v12 = vmax.f32 %v4594_v8, %v4828_v48  ;;  %5631 = vrot.lane.b32.xlu1 %v5595_v51, %s8240_s15 }
 0x48d   : > { %v2870_v13 = vpop.permute.xlu0 %2869  ;;  %v4780_v53 = vmax.f32 %v4591_v32, %v4764_v41 }
 0x48e   : > { %3000 = vst.msk [vmem:[#allocation3 + $0x1f0] sm:$0xff] %vm2937_vm11, %v2870_v13  ;;  %v3257_v6 = vpop.permute.xlu1 %3256  ;;  %vm5574_vm11 = vcmask 392528  }
 0x48f   : > { %5536 = vrot.lane.b32.xlu0 %v5499_v23, %s8239_s22  ;;  %4852 = vst.msk [vmem:[#allocation4 + $0x9d] sm:$0x1] %vm4502_vm1, %v4844_v12  ;;  %4788 = vst.msk [vmem:[#allocation4 + $0x99] sm:$0x1] %vm4502_vm1, %v4780_v53 }
 0x490   : > { %4860 = vst.msk [vmem:[#allocation4 + $0x9c] sm:$0x4] %vm4660_vm2, %v4844_v12  ;;  %4796 = vst.msk [vmem:[#allocation4 + $0x98] sm:$0x4] %vm4660_vm2, %v4780_v53  ;;  %5248 = vrot.lane.b32.xlu1 %v5499_v23, %s12092_s16 }
 0x491   : > { %4868 = vst.msk [vmem:[#allocation4 + $0x9b] sm:$0x10] %vm4669_vm3, %v4844_v12  ;;  %4804 = vst.msk [vmem:[#allocation4 + $0x97] sm:$0x10] %vm4669_vm3, %v4780_v53  ;;  %v3255_v17 = vpop.permute.xlu0 %3254  ;;  %v3833_v45 = vld [vmem:[#allocation3 + $0x1e8] sm:$0xff] }
 0x492   : > { %4876 = vst.msk [vmem:[#allocation4 + $0x9a] sm:$0x40] %vm4678_vm5, %v4844_v12  ;;  %4812 = vst.msk [vmem:[#allocation4 + $0x96] sm:$0x40] %vm4678_vm5, %v4780_v53  ;;  %7696 = vmatmul.mubr.msk.f32.gmra.mrb[60].mxu0 %vm3847_vm14, %v3833_v45  ;;  %v3642_v24 = vpop.permute.xlu1 %3641 }
 0x493   : > { %3386 = vst.msk [vmem:[#allocation3 + $0x1f8] sm:$0xff] %vm3322_vm12, %v3257_v6  ;;  %3385 = vst.msk [vmem:[#allocation3 + $0x1f0] sm:$0xff] %vm3322_vm12, %v3255_v17  ;;  %4959 = vrot.lane.b32.xlu0 %v5498_v50, %s12090_s29  ;;  %vm5671_vm12 = vcmask 441728  }
 0x494   : > { %3771 = vst.msk [vmem:[#allocation3 + $0x1f8] sm:$0xff] %vm3707_vm13, %v3642_v24  ;;  %5633 = vrot.lane.b32.xlu1 %v5596_v3, %s8240_s15 }
 0x495   : > { %v3640_v30 = vpop.permute.xlu0 %3639 }
 0x496   : > { %3770 = vst.msk [vmem:[#allocation3 + $0x1f0] sm:$0xff] %vm3707_vm13, %v3640_v30  ;;  %v4946_v49 = vpop.permute.xlu1 %4945  ;;  %vm5718_vm13 = vcmask 441344   ;;  %v11155_v52 = vld [vmem:[#allocation4 + $0x92] sm:$0xff] }
 0x497   : > { %5343 = vrot.lane.b32.xlu0 %v5595_v51, %s12094_s13  ;;  %4993 = vst.msk [vmem:[#allocation5 + $0x8] sm:$0xff] %vm4991_vm4, %v4946_v49 }
 0x498   : > { %5056 = vrot.lane.b32.xlu1 %v5595_v51, %s12093_s24 }
 0x499   : > { %v11075_v29 = vld [vmem:[#allocation4 + $0x98] sm:$0xff]  ;;  %v4944_v5 = vpop.permute.xlu0 %4943 }
 0x49a   : > { %4908 = vst.msk [vmem:[#allocation5 + $0x68] sm:$0xff] %vm4493_vm15, %v11075_v29  ;;  %v5043_v63 = vpop.permute.xlu1 %5042  ;;  %v11158_v57 = vld [vmem:[#allocation4 + $0x99] sm:$0xff] }
 0x49b   : > { %4992 = vst.msk [vmem:[#allocation5] sm:$0xff] %vm4991_vm4, %v4944_v5  ;;  %4961 = vrot.lane.b32.xlu0 %v5499_v23, %s12090_s29  ;;  %v3835_v55 = vld [vmem:[#allocation3 + $0x1f8] sm:$0xff]  ;;  %v11187_v23 = vld [vmem:[%s12052_s2] ss:$0 sm:$0xff] }
 0x49c   : > { %5090 = vst.msk [vmem:[#allocation5 + $0x8] sm:$0xff] %vm5088_vm6, %v5043_v63  ;;  %5441 = vrot.lane.b32.xlu1 %v10784_v16, %s8238_s30  ;;  %v11172_v32 = vld [vmem:[#allocation4 + $0x9a] sm:$0xff] }
 0x49d   : > { %v5041_v1 = vpop.permute.xlu0 %5040  ;;  %v3834_v25 = vld [vmem:[#allocation3 + $0x1f0] sm:$0xff] }
 0x49e   : > { %5089 = vst.msk [vmem:[#allocation5] sm:$0xff] %vm5088_vm6, %v5041_v1  ;;  %7698 = vmatprep.mubr.msk.f32.mxu0 %vm3847_vm14, %v3834_v25  ;;  %v5140_v47 = vpop.permute.xlu1 %5139 }
 0x49f   : > { %7699 = vmatmul.mubr.msk.f32.gmra.mrb[62].mxu0 %vm3847_vm14, %v3835_v55  ;;  %5345 = vrot.lane.b32.xlu0 %v5596_v3, %s12094_s13  ;;  %5187 = vst.msk [vmem:[#allocation5 + $0x8] sm:$0xff] %vm5185_vm7, %v5140_v47  ;;  %vm12077_vm14 = vcmask 130048  }
 0x4a0   : > { %5153 = vrot.lane.b32.xlu1 %v10784_v16, %s12091_s12  ;;  %5933 = vst.msk [vmem:[#allocation6] sm:$0xff] %vm12077_vm14, %v8227_v0  ;;  %5937 = vst.msk [vmem:[#allocation6 + $0x50] sm:$0xff] %vm12077_vm14, %v8227_v0  ;;  %vm5934_vm14 = vcmask 123904  }
 0x4a1   : > { %v5138_v4 = vpop.permute.xlu0 %5137  ;;  %5940 = vst.msk [vmem:[#allocation6] sm:$0x1] %vm5939_vm0, %v8227_v0  ;;  %5945 = vst.msk [vmem:[#allocation6 + $0x50] sm:$0x1] %vm5939_vm0, %v8227_v0 }
 0x4a2   : > { %5186 = vst.msk [vmem:[#allocation5] sm:$0xff] %vm5185_vm7, %v5138_v4  ;;  %v11095_v27 = vpop.f32.mrb[48].mxu0  ;;  %v4948_v2 = vpop.permute.xlu1 %4947 }
 0x4a3   : > { %5058 = vrot.lane.b32.xlu0 %v5596_v3, %s12093_s24  ;;  %4994 = vst.msk [vmem:[#allocation5 + $0x10] sm:$0xff] %vm4991_vm4, %v4948_v2  ;;  %v11098_v56 = vpop.f32.mrb[49].mxu0  ;;  %v4356_v53 = vadd.f32 %v11187_v23, %v11095_v27 }
 0x4a4   : > { %5538 = vrot.lane.b32.xlu1 %v5500_v31, %s8239_s22  ;;  %v4351_v6 = vadd.f32 %v11187_v23, %v11098_v56  ;;  %5935 = vst.msk [vmem:[#allocation6 + $0x8] sm:$0x3] %vm5934_vm14, %v8227_v0  ;;  %5938 = vst.msk [vmem:[#allocation6 + $0x58] sm:$0x3] %vm5934_vm14, %v8227_v0  ;;  %vm6007_vm14 = vcmask 129030  }
 0x4a5   : > { %v5235_v35 = vpop.permute.xlu0 %5234  ;;  %v4478_v30 = vmax.f32 %v4356_v53, 0.0  ;;  %5946 = vst.msk [vmem:[#allocation6 + $0x9] sm:$0x1] %vm5939_vm0, %v8227_v0  ;;  %5951 = vst.msk [vmem:[#allocation6 + $0x59] sm:$0x1] %vm5939_vm0, %v8227_v0 }
 0x4a6   : > { %5283 = vst.msk [vmem:[#allocation5] sm:$0xff] %vm5282_vm8, %v5235_v35  ;;  %v5332_v16 = vpop.permute.xlu1 %5331 }
 0x4a7   : > { %5443 = vrot.lane.b32.xlu0 %v10851_v7, %s8238_s30  ;;  %5380 = vst.msk [vmem:[#allocation5] sm:$0xff] %vm5379_vm9, %v5332_v16  ;;  %v4598_v4 = vsel %vm4493_vm15, %v4478_v30, -inf }
 0x4a8   : > { %5250 = vrot.lane.b32.xlu1 %v5500_v31, %s12092_s16 }
 0x4a9   : > { %v5237_v62 = vpop.permute.xlu0 %5236 }
 0x4aa   : > { %5284 = vst.msk [vmem:[#allocation5 + $0x8] sm:$0xff] %vm5282_vm8, %v5237_v62  ;;  %v5045_v22 = vpop.permute.xlu1 %5044 }
 0x4ab   : > { %5155 = vrot.lane.b32.xlu0 %v10851_v7, %s12091_s12  ;;  %5091 = vst.msk [vmem:[#allocation5 + $0x10] sm:$0xff] %vm5088_vm6, %v5045_v22 }
 0x4ac   : > { %5635 = vrot.lane.b32.xlu1 %v5597_v43, %s8240_s15 }
 0x4ad   : > { %v4950_v20 = vpop.permute.xlu0 %4949 }
 0x4ae   : > { %4995 = vst.msk [vmem:[#allocation5 + $0x18] sm:$0xff] %vm4991_vm4, %v4950_v20  ;;  %v5430_v26 = vpop.permute.xlu1 %5429 }
 0x4af   : > { %5540 = vrot.lane.b32.xlu0 %v5501_v18, %s8239_s22  ;;  %5478 = vst.msk [vmem:[#allocation5] sm:$0xff] %vm5477_vm10, %v5430_v26 }
 0x4b0   : > { %5252 = vrot.lane.b32.xlu1 %v5501_v18, %s12092_s16 }
 0x4b1   : > { %v5334_v61 = vpop.permute.xlu0 %5333 }
 0x4b2   : > { %5381 = vst.msk [vmem:[#allocation5 + $0x8] sm:$0xff] %vm5379_vm9, %v5334_v61  ;;  %v5142_v7 = vpop.permute.xlu1 %5141 }
 0x4b3   : > { %4963 = vrot.lane.b32.xlu0 %v5500_v31, %s12090_s29  ;;  %5188 = vst.msk [vmem:[#allocation5 + $0x10] sm:$0xff] %vm5185_vm7, %v5142_v7 }
 0x4b4   : > { %5637 = vrot.lane.b32.xlu1 %v5598_v19, %s8240_s15 }
 0x4b5   : > { %v5047_v37 = vpop.permute.xlu0 %5046 }
 0x4b6   : > { %5092 = vst.msk [vmem:[#allocation5 + $0x18] sm:$0xff] %vm5088_vm6, %v5047_v37  ;;  %v5527_v33 = vpop.permute.xlu1 %5526 }
 0x4b7   : > { %5347 = vrot.lane.b32.xlu0 %v5597_v43, %s12094_s13  ;;  %5575 = vst.msk [vmem:[#allocation5] sm:$0xff] %vm5574_vm11, %v5527_v33 }
 0x4b8   : > { %5060 = vrot.lane.b32.xlu1 %v5597_v43, %s12093_s24 }
 0x4b9   : > { %v5432_v58 = vpop.permute.xlu0 %5431 }
 0x4ba   : > { %5479 = vst.msk [vmem:[#allocation5 + $0x8] sm:$0xff] %vm5477_vm10, %v5432_v58  ;;  %v5239_v14 = vpop.permute.xlu1 %5238 }
 0x4bb   : > { %4965 = vrot.lane.b32.xlu0 %v5501_v18, %s12090_s29  ;;  %5285 = vst.msk [vmem:[#allocation5 + $0x10] sm:$0xff] %vm5282_vm8, %v5239_v14 }
 0x4bc   : > { %5445 = vrot.lane.b32.xlu1 %v11015_v34, %s8238_s30 }
 0x4bd   : > { %v5144_v9 = vpop.permute.xlu0 %5143 }
 0x4be   : > { %5189 = vst.msk [vmem:[#allocation5 + $0x18] sm:$0xff] %vm5185_vm7, %v5144_v9  ;;  %v5624_v28 = vpop.permute.xlu1 %5623 }
 0x4bf   : > { %5349 = vrot.lane.b32.xlu0 %v5598_v19, %s12094_s13  ;;  %5672 = vst.msk [vmem:[#allocation5] sm:$0xff] %vm5671_vm12, %v5624_v28 }
 0x4c0   : > { %5157 = vrot.lane.b32.xlu1 %v11015_v34, %s12091_s12 }
 0x4c1   : > { %v5529_v44 = vpop.permute.xlu0 %5528 }
 0x4c2   : > { %5576 = vst.msk [vmem:[#allocation5 + $0x8] sm:$0xff] %vm5574_vm11, %v5529_v44  ;;  %v11135_v11 = vpop.f32.mrb[50].mxu0  ;;  %v5241_v59 = vpop.permute.xlu1 %5240 }
 0x4c3   : > { %5062 = vrot.lane.b32.xlu0 %v5598_v19, %s12093_s24  ;;  %5286 = vst.msk [vmem:[#allocation5 + $0x18] sm:$0xff] %vm5282_vm8, %v5241_v59  ;;  %v11138_v50 = vpop.f32.mrb[51].mxu0  ;;  %v4366_v43 = vadd.f32 %v11187_v23, %v11135_v11 }
 0x4c4   : > { %5542 = vrot.lane.b32.xlu1 %v11140_v36, %s8239_s22  ;;  %v4361_v26 = vadd.f32 %v11187_v23, %v11138_v50 }
 0x4c5   : > { %v4952_v54 = vpop.permute.xlu0 %4951  ;;  %v4480_v58 = vmax.f32 %v4366_v43, 0.0 }
 0x4c6   : > { %4996 = vst.msk [vmem:[#allocation5 + $0x20] sm:$0xff] %vm4991_vm4, %v4952_v54  ;;  %v5626_v34 = vpop.permute.xlu1 %5625  ;;  %v5688_v60 = vld [vmem:[#allocation5] sm:$0xff]  ;;  %v4479_v28 = vmax.f32 %v4361_v26, 0.0 }
 0x4c7   : > { %5447 = vrot.lane.b32.xlu0 %v11075_v29, %s8238_s30  ;;  %5673 = vst.msk [vmem:[#allocation5 + $0x8] sm:$0xff] %vm5671_vm12, %v5626_v34  ;;  %7715 = vmatprep.mubr.msk.f32.mxu1 %vm5718_vm13, %v5688_v60  ;;  %v4604_v34 = vsel %vm4493_vm15, %v4480_v58, -inf }
 0x4c8   : > { %5254 = vrot.lane.b32.xlu1 %v11140_v36, %s12092_s16 }
 0x4c9   : > { %v5336_v21 = vpop.permute.xlu0 %5335 }
 0x4ca   : > { %5382 = vst.msk [vmem:[#allocation5 + $0x10] sm:$0xff] %vm5379_vm9, %v5336_v21  ;;  %v5049_v42 = vpop.permute.xlu1 %5048  ;;  %v4601_v21 = vsel %vm4493_vm15, %v4479_v28, -inf }
 0x4cb   : > { %5159 = vrot.lane.b32.xlu0 %v11075_v29, %s12091_s12  ;;  %5093 = vst.msk [vmem:[#allocation5 + $0x20] sm:$0xff] %vm5088_vm6, %v5049_v42  ;;  %v4477_v29 = vmax.f32 %v4351_v6, 0.0 }
 0x4cc   : > { %5639 = vrot.lane.b32.xlu1 %v11155_v52, %s8240_s15 }
 0x4cd   : > { %v4954_v40 = vpop.permute.xlu0 %4953  ;;  %v4595_v2 = vsel %vm4493_vm15, %v4477_v29, -inf }
 0x4ce   : > { %4997 = vst.msk [vmem:[#allocation5 + $0x28] sm:$0xff] %vm4991_vm4, %v4954_v40  ;;  %v5434_v10 = vpop.permute.xlu1 %5433  ;;  %v5689_v38 = vld [vmem:[#allocation5 + $0x8] sm:$0xff] }
 0x4cf   : > { %5544 = vrot.lane.b32.xlu0 %v11158_v57, %s8239_s22  ;;  %5480 = vst.msk [vmem:[#allocation5 + $0x10] sm:$0xff] %vm5477_vm10, %v5434_v10  ;;  %7716 = vmatmul.mubr.msk.f32.vlgmr.msra.gmra.mrb[0].mxu1 %vm5718_vm13, %v5689_v38 }
 0x4d0   : > { %5351 = vrot.lane.b32.xlu1 %v11155_v52, %s12094_s13 }
 0x4d1   : > { %v5338_v46 = vpop.permute.xlu0 %5337 }
 0x4d2   : > { %5383 = vst.msk [vmem:[#allocation5 + $0x18] sm:$0xff] %vm5379_vm9, %v5338_v46  ;;  %v5146_v8 = vpop.permute.xlu1 %5145 }
 0x4d3   : > { %5256 = vrot.lane.b32.xlu0 %v11158_v57, %s12092_s16  ;;  %5190 = vst.msk [vmem:[#allocation5 + $0x20] sm:$0xff] %vm5185_vm7, %v5146_v8 }
 0x4d4   : > { %5353 = vrot.lane.b32.xlu1 %v11172_v32, %s12094_s13 }
 0x4d5   : > { %v5051_v39 = vpop.permute.xlu0 %5050 }
 0x4d6   : > { %5094 = vst.msk [vmem:[#allocation5 + $0x28] sm:$0xff] %vm5088_vm6, %v5051_v39  ;;  %v5531_v48 = vpop.permute.xlu1 %5530 }
 0x4d7   : > { %5641 = vrot.lane.b32.xlu0 %v11172_v32, %s8240_s15  ;;  %5577 = vst.msk [vmem:[#allocation5 + $0x10] sm:$0xff] %vm5574_vm11, %v5531_v48 }
 0x4d9   : > { %v5436_v15 = vpop.permute.xlu0 %5435 }
 0x4da   : > { %5481 = vst.msk [vmem:[#allocation5 + $0x18] sm:$0xff] %vm5477_vm10, %v5436_v15  ;;  %v5243_v41 = vpop.permute.xlu1 %5242 }
 0x4db   : > { %5287 = vst.msk [vmem:[#allocation5 + $0x20] sm:$0xff] %vm5282_vm8, %v5243_v41 }
 0x4dd   : > { %v5148_v13 = vpop.permute.xlu0 %5147 }
 0x4de   : > { %5191 = vst.msk [vmem:[#allocation5 + $0x28] sm:$0xff] %vm5185_vm7, %v5148_v13  ;;  %v5628_v51 = vpop.permute.xlu1 %5627 }
 0x4df   : > { %5674 = vst.msk [vmem:[#allocation5 + $0x10] sm:$0xff] %vm5671_vm12, %v5628_v51 }
 0x4e1   : > { %v5533_v12 = vpop.permute.xlu0 %5532 }
 0x4e2   : > { %5578 = vst.msk [vmem:[#allocation5 + $0x18] sm:$0xff] %vm5574_vm11, %v5533_v12  ;;  %v5245_v17 = vpop.permute.xlu1 %5244 }
 0x4e3   : > { %5288 = vst.msk [vmem:[#allocation5 + $0x28] sm:$0xff] %vm5282_vm8, %v5245_v17 }
 0x4e5   : > { %v7685_v45 = vpop.f32.mrb[52].mxu0  ;;  %v4956_v24 = vpop.permute.xlu0 %4955 }
 0x4e6   : > { %v4376_v3 = vadd.f32 %v11187_v23, %v7685_v45  ;;  %4998 = vst.msk [vmem:[#allocation5 + $0x30] sm:$0xff] %vm4991_vm4, %v4956_v24  ;;  %v4370_v49 = vpop.f32.mrb[53].mxu0  ;;  %v5630_v55 = vpop.permute.xlu1 %5629  ;;  %v5690_v1 = vld [vmem:[#allocation5 + $0x10] sm:$0xff] }
 0x4e7   : > { %v4371_v5 = vadd.f32 %v11187_v23, %v4370_v49  ;;  %5675 = vst.msk [vmem:[#allocation5 + $0x18] sm:$0xff] %vm5671_vm12, %v5630_v55  ;;  %7718 = vmatprep.mubr.msk.f32.mxu1 %vm5718_vm13, %v5690_v1 }
 0x4e8   : > { %v4482_v63 = vmax.f32 %v4376_v3, 0.0 }
 0x4e9   : > { %v4481_v25 = vmax.f32 %v4371_v5, 0.0  ;;  %v5340_v47 = vpop.permute.xlu0 %5339 }
 0x4ea   : > { %v4599_v27 = vsel %vm4493_vm15, %v4482_v63, -inf  ;;  %5384 = vst.msk [vmem:[#allocation5 + $0x20] sm:$0xff] %vm5379_vm9, %v5340_v47  ;;  %v5053_v16 = vpop.permute.xlu1 %5052 }
 0x4eb   : > { %v4600_v35 = vmax.f32 %v4598_v4, %v4599_v27  ;;  %v4596_v56 = vsel %vm4493_vm15, %v4481_v25, -inf  ;;  %5095 = vst.msk [vmem:[#allocation5 + $0x30] sm:$0xff] %vm5088_vm6, %v5053_v16 }
 0x4ec   : > { %v4597_v31 = vmax.f32 %v4595_v2, %v4596_v56 }
 0x4ed   : > { %v4701_v62 = vrot.slane %v4600_v35, 1  ;;  %v4958_v22 = vpop.permute.xlu0 %4957 }
 0x4ee   : > { %v4633_v20 = vrot.slane %v4597_v31, 1  ;;  %4999 = vst.msk [vmem:[#allocation5 + $0x38] sm:$0xff] %vm4991_vm4, %v4958_v22  ;;  %v5438_v7 = vpop.permute.xlu1 %5437  ;;  %v5691_v37 = vld [vmem:[#allocation5 + $0x18] sm:$0xff] }
 0x4ef   : > { %v4717_v18 = vmax.f32 %v4600_v35, %v4701_v62  ;;  %5482 = vst.msk [vmem:[#allocation5 + $0x20] sm:$0xff] %vm5477_vm10, %v5438_v7  ;;  %7719 = vmatmul.mubr.msk.f32.gmra.mrb[2].mxu1 %vm5718_vm13, %v5691_v37 }
 0x4f0   : > { %v4649_v61 = vmax.f32 %v4597_v31, %v4633_v20 }
 0x4f1   : > { %4725 = vst.msk [vmem:[#allocation4 + $0xad] sm:$0x1] %vm4502_vm1, %v4717_v18  ;;  %v5342_v19 = vpop.permute.xlu0 %5341 }
 0x4f2   : > { %4733 = vst.msk [vmem:[#allocation4 + $0xac] sm:$0x4] %vm4660_vm2, %v4717_v18  ;;  %4667 = vst.msk [vmem:[#allocation4 + $0xa8] sm:$0x4] %vm4660_vm2, %v4649_v61  ;;  %v7688_v33 = vpop.f32.mrb[54].mxu0  ;;  %v5150_v11 = vpop.permute.xlu1 %5149 }
 0x4f3   : > { %4741 = vst.msk [vmem:[#allocation4 + $0xab] sm:$0x10] %vm4669_vm3, %v4717_v18  ;;  %4676 = vst.msk [vmem:[#allocation4 + $0xa7] sm:$0x10] %vm4669_vm3, %v4649_v61  ;;  %v4386_v14 = vadd.f32 %v11187_v23, %v7688_v33  ;;  %v4380_v9 = vpop.f32.mrb[55].mxu0 }
 0x4f4   : > { %4749 = vst.msk [vmem:[#allocation4 + $0xaa] sm:$0x40] %vm4678_vm5, %v4717_v18  ;;  %4685 = vst.msk [vmem:[#allocation4 + $0xa6] sm:$0x40] %vm4678_vm5, %v4649_v61  ;;  %v4381_v44 = vadd.f32 %v11187_v23, %v4380_v9 }
 0x4f5   : > { %4658 = vst.msk [vmem:[#allocation4 + $0xa9] sm:$0x1] %vm4502_vm1, %v4649_v61  ;;  %v4484_v59 = vmax.f32 %v4386_v14, 0.0  ;;  %v5055_v54 = vpop.permute.xlu0 %5054 }
 0x4f6   : > { %5385 = vst.msk [vmem:[#allocation5 + $0x28] sm:$0xff] %vm5379_vm9, %v5342_v19  ;;  %v4483_v50 = vmax.f32 %v4381_v44, 0.0  ;;  %v5535_v10 = vpop.permute.xlu1 %5534 }
 0x4f7   : > { %5192 = vst.msk [vmem:[#allocation5 + $0x30] sm:$0xff] %vm5185_vm7, %v5150_v11  ;;  %v4605_v60 = vsel %vm4493_vm15, %v4484_v59, -inf }
 0x4f8   : > { %5096 = vst.msk [vmem:[#allocation5 + $0x38] sm:$0xff] %vm5088_vm6, %v5055_v54  ;;  %v4606_v42 = vmax.f32 %v4604_v34, %v4605_v60  ;;  %v4602_v40 = vsel %vm4493_vm15, %v4483_v50, -inf }
 0x4f9   : > { %v4603_v38 = vmax.f32 %v4601_v21, %v4602_v40  ;;  %v5440_v46 = vpop.permute.xlu0 %5439  ;;  %5579 = vst.msk [vmem:[#allocation5 + $0x20] sm:$0xff] %vm5574_vm11, %v5535_v10 }
 0x4fa   : > { %v4829_v39 = vrot.slane %v4606_v42, 1  ;;  %5483 = vst.msk [vmem:[#allocation5 + $0x28] sm:$0xff] %vm5477_vm10, %v5440_v46  ;;  %v5247_v41 = vpop.permute.xlu1 %5246 }
 0x4fb   : > { %v4765_v48 = vrot.slane %v4603_v38, 1  ;;  %5289 = vst.msk [vmem:[#allocation5 + $0x30] sm:$0xff] %vm5282_vm8, %v5247_v41 }
 0x4fc   : > { %v5407_v8 = vld [vmem:[#allocation4 + $0xa8] sm:$0xff]  ;;  %v4845_v15 = vmax.f32 %v4606_v42, %v4829_v39 }
 0x4fd   : > { %5449 = vrot.lane.b32.xlu0 %v5407_v8, %s8238_s30  ;;  %4909 = vst.msk [vmem:[#allocation5 + $0x70] sm:$0xff] %vm4493_vm15, %v5407_v8  ;;  %v4781_v13 = vmax.f32 %v4603_v38, %v4765_v48  ;;  %v5152_v51 = vpop.permute.xlu0 %5151  ;;  %v11235_v12 = vld [vmem:[#allocation4 + $0xa9] sm:$0xff] }
 0x4fe   : > { %4853 = vst.msk [vmem:[#allocation4 + $0xb5] sm:$0x1] %vm4502_vm1, %v4845_v15  ;;  %v5632_v53 = vpop.permute.xlu1 %5631 }
 0x4ff   : > { %4861 = vst.msk [vmem:[#allocation4 + $0xb4] sm:$0x4] %vm4660_vm2, %v4845_v15  ;;  %4797 = vst.msk [vmem:[#allocation4 + $0xb0] sm:$0x4] %vm4660_vm2, %v4781_v13 }
 0x500   : > { %4869 = vst.msk [vmem:[#allocation4 + $0xb3] sm:$0x10] %vm4669_vm3, %v4845_v15  ;;  %4805 = vst.msk [vmem:[#allocation4 + $0xaf] sm:$0x10] %vm4669_vm3, %v4781_v13 }
 0x501   : > { %4877 = vst.msk [vmem:[#allocation4 + $0xb2] sm:$0x40] %vm4678_vm5, %v4845_v15  ;;  %5546 = vrot.lane.b32.xlu0 %v11235_v12, %s8239_s22  ;;  %4813 = vst.msk [vmem:[#allocation4 + $0xae] sm:$0x40] %vm4678_vm5, %v4781_v13  ;;  %v5537_v6 = vpop.permute.xlu0 %5536 }
 0x502   : > { %5193 = vst.msk [vmem:[#allocation5 + $0x38] sm:$0xff] %vm5185_vm7, %v5152_v51  ;;  %v5249_v17 = vpop.permute.xlu1 %5248 }
 0x503   : > { %4789 = vst.msk [vmem:[#allocation4 + $0xb1] sm:$0x1] %vm4502_vm1, %v4781_v13 }
 0x504   : > { %5676 = vst.msk [vmem:[#allocation5 + $0x20] sm:$0xff] %vm5671_vm12, %v5632_v53 }
 0x505   : > { %5580 = vst.msk [vmem:[#allocation5 + $0x28] sm:$0xff] %vm5574_vm11, %v5537_v6  ;;  %v4960_v45 = vpop.permute.xlu0 %4959 }
 0x506   : > { %5290 = vst.msk [vmem:[#allocation5 + $0x38] sm:$0xff] %vm5282_vm8, %v5249_v17  ;;  %v5634_v3 = vpop.permute.xlu1 %5633 }
 0x507   : > { %5000 = vst.msk [vmem:[#allocation5 + $0x40] sm:$0xff] %vm4991_vm4, %v4960_v45 }
 0x508   : > { %5677 = vst.msk [vmem:[#allocation5 + $0x28] sm:$0xff] %vm5671_vm12, %v5634_v3  ;;  %v5602_v1 = vld [vmem:[#allocation4 + $0xb2] sm:$0xff] }
 0x509   : > { %v5344_v29 = vpop.permute.xlu0 %5343 }
 0x50a   : > { %v5601_v24 = vld [vmem:[#allocation4 + $0xaa] sm:$0xff]  ;;  %5386 = vst.msk [vmem:[#allocation5 + $0x30] sm:$0xff] %vm5379_vm9, %v5344_v29  ;;  %v5057_v63 = vpop.permute.xlu1 %5056 }
 0x50b   : > { %v5408_v30 = vld [vmem:[#allocation4 + $0xb0] sm:$0xff]  ;;  %5643 = vrot.lane.b32.xlu0 %v5601_v24, %s8240_s15  ;;  %5097 = vst.msk [vmem:[#allocation5 + $0x40] sm:$0xff] %vm5088_vm6, %v5057_v63 }
 0x50c   : > { %5451 = vrot.lane.b32.xlu1 %v5408_v30, %s8238_s30  ;;  %4910 = vst.msk [vmem:[#allocation5 + $0x78] sm:$0xff] %vm4493_vm15, %v5408_v30  ;;  %v5692_v49 = vld [vmem:[#allocation5 + $0x20] sm:$0xff] }
 0x50d   : > { %7721 = vmatprep.mubr.msk.f32.mxu1 %vm5718_vm13, %v5692_v49  ;;  %v5505_v5 = vld [vmem:[#allocation4 + $0xb1] sm:$0xff]  ;;  %v4962_v55 = vpop.permute.xlu0 %4961 }
 0x50e   : > { %5001 = vst.msk [vmem:[#allocation5 + $0x48] sm:$0xff] %vm4991_vm4, %v4962_v55  ;;  %v5442_v25 = vpop.permute.xlu1 %5441 }
 0x50f   : > { %4967 = vrot.lane.b32.xlu0 %v11140_v36, %s12090_s29  ;;  %v5693_v47 = vld [vmem:[#allocation5 + $0x28] sm:$0xff]  ;;  %5484 = vst.msk [vmem:[#allocation5 + $0x30] sm:$0xff] %vm5477_vm10, %v5442_v25 }
 0x510   : > { %5548 = vrot.lane.b32.xlu1 %v5505_v5, %s8239_s22  ;;  %7722 = vmatmul.mubr.msk.f32.gmra.mrb[4].mxu1 %vm5718_vm13, %v5693_v47 }
 0x511   : > { %v5346_v4 = vpop.permute.xlu0 %5345 }
 0x512   : > { %5387 = vst.msk [vmem:[#allocation5 + $0x38] sm:$0xff] %vm5379_vm9, %v5346_v4  ;;  %v5154_v36 = vpop.permute.xlu1 %5153 }
 0x513   : > { %5064 = vrot.lane.b32.xlu0 %v11155_v52, %s12093_s24  ;;  %5194 = vst.msk [vmem:[#allocation5 + $0x40] sm:$0xff] %vm5185_vm7, %v5154_v36 }
 0x514   : > { %5645 = vrot.lane.b32.xlu1 %v5602_v1, %s8240_s15 }
 0x515   : > { %v5059_v27 = vpop.permute.xlu0 %5058 }
 0x516   : > { %5098 = vst.msk [vmem:[#allocation5 + $0x48] sm:$0xff] %vm5088_vm6, %v5059_v27  ;;  %v5539_v52 = vpop.permute.xlu1 %5538 }
 0x517   : > { %5161 = vrot.lane.b32.xlu0 %v5407_v8, %s12091_s12  ;;  %5581 = vst.msk [vmem:[#allocation5 + $0x30] sm:$0xff] %vm5574_vm11, %v5539_v52 }
 0x518   : > { %4969 = vrot.lane.b32.xlu1 %v11158_v57, %s12090_s29 }
 0x519   : > { %v5444_v2 = vpop.permute.xlu0 %5443 }
 0x51a   : > { %5485 = vst.msk [vmem:[#allocation5 + $0x38] sm:$0xff] %vm5477_vm10, %v5444_v2  ;;  %v5251_v57 = vpop.permute.xlu1 %5250 }
 0x51b   : > { %5258 = vrot.lane.b32.xlu0 %v11235_v12, %s12092_s16  ;;  %5291 = vst.msk [vmem:[#allocation5 + $0x40] sm:$0xff] %vm5282_vm8, %v5251_v57 }
 0x51c   : > { %5066 = vrot.lane.b32.xlu1 %v11172_v32, %s12093_s24 }
 0x51d   : > { %v5156_v35 = vpop.permute.xlu0 %5155 }
 0x51e   : > { %5195 = vst.msk [vmem:[#allocation5 + $0x48] sm:$0xff] %vm5185_vm7, %v5156_v35  ;;  %v5636_v32 = vpop.permute.xlu1 %5635 }
 0x51f   : > { %5260 = vrot.lane.b32.xlu0 %v5505_v5, %s12092_s16  ;;  %5678 = vst.msk [vmem:[#allocation5 + $0x30] sm:$0xff] %vm5671_vm12, %v5636_v32 }
 0x520   : > { %5163 = vrot.lane.b32.xlu1 %v5408_v30, %s12091_s12 }
 0x521   : > { %v5541_v56 = vpop.permute.xlu0 %5540 }
 0x522   : > { %5582 = vst.msk [vmem:[#allocation5 + $0x38] sm:$0xff] %vm5574_vm11, %v5541_v56  ;;  %v11291_v31 = vpop.f32.mrb[56].mxu0  ;;  %v5253_v16 = vpop.permute.xlu1 %5252 }
 0x523   : > { %4973 = vrot.lane.b32.xlu0 %v5505_v5, %s12090_s29  ;;  %5292 = vst.msk [vmem:[#allocation5 + $0x48] sm:$0xff] %vm5282_vm8, %v5253_v16  ;;  %v11294_v22 = vpop.f32.mrb[57].mxu0  ;;  %v4396_v38 = vadd.f32 %v11187_v23, %v11291_v31 }
 0x524   : > { %4971 = vrot.lane.b32.xlu1 %v11235_v12, %s12090_s29  ;;  %v4391_v46 = vadd.f32 %v11187_v23, %v11294_v22  ;;  %s12080_s29 = smov 32  }
 0x525   : > { %v4964_v62 = vpop.permute.xlu0 %4963  ;;  %v4486_v39 = vmax.f32 %v4396_v38, 0.0 }
 0x526   : > { %5002 = vst.msk [vmem:[#allocation5 + $0x50] sm:$0xff] %vm4991_vm4, %v4964_v62  ;;  %v5638_v20 = vpop.permute.xlu1 %5637  ;;  %v5694_v43 = vld [vmem:[#allocation5 + $0x30] sm:$0xff]  ;;  %v4485_v41 = vmax.f32 %v4391_v46, 0.0 }
 0x527   : > { %5357 = vrot.lane.b32.xlu0 %v5602_v1, %s12094_s13  ;;  %5679 = vst.msk [vmem:[#allocation5 + $0x38] sm:$0xff] %vm5671_vm12, %v5638_v20  ;;  %7724 = vmatprep.mubr.msk.f32.mxu1 %vm5718_vm13, %v5694_v43  ;;  %v4610_v53 = vsel %vm4493_vm15, %v4486_v39, -inf  ;;  %v5412_v46 = vld [vmem:[#allocation4 + $0xe0] sm:$0xff] }
 0x528   : > { %5355 = vrot.lane.b32.xlu1 %v5601_v24, %s12094_s13  ;;  %v4607_v17 = vsel %vm4493_vm15, %v4485_v41, -inf }
 0x529   : > { %v5348_v18 = vpop.permute.xlu0 %5347 }
 0x52a   : > { %5388 = vst.msk [vmem:[#allocation5 + $0x40] sm:$0xff] %vm5379_vm9, %v5348_v18  ;;  %v5061_v26 = vpop.permute.xlu1 %5060 }
 0x52b   : > { %5070 = vrot.lane.b32.xlu0 %v5602_v1, %s12093_s24  ;;  %5099 = vst.msk [vmem:[#allocation5 + $0x50] sm:$0xff] %vm5088_vm6, %v5061_v26 }
 0x52c   : > { %5068 = vrot.lane.b32.xlu1 %v5601_v24, %s12093_s24 }
 0x52d   : > { %v4966_v61 = vpop.permute.xlu0 %4965 }
 0x52e   : > { %5003 = vst.msk [vmem:[#allocation5 + $0x58] sm:$0xff] %vm4991_vm4, %v4966_v61  ;;  %v5446_v7 = vpop.permute.xlu1 %5445  ;;  %v5695_v37 = vld [vmem:[#allocation5 + $0x38] sm:$0xff] }
 0x52f   : > { %5486 = vst.msk [vmem:[#allocation5 + $0x40] sm:$0xff] %vm5477_vm10, %v5446_v7  ;;  %7725 = vmatmul.mubr.msk.f32.gmra.mrb[6].mxu1 %vm5718_vm13, %v5695_v37 }
 0x531   : > { %v5350_v19 = vpop.permute.xlu0 %5349 }
 0x532   : > { %5389 = vst.msk [vmem:[#allocation5 + $0x48] sm:$0xff] %vm5379_vm9, %v5350_v19  ;;  %v5158_v33 = vpop.permute.xlu1 %5157 }
 0x533   : > { %5196 = vst.msk [vmem:[#allocation5 + $0x50] sm:$0xff] %vm5185_vm7, %v5158_v33 }
 0x535   : > { %v5063_v58 = vpop.permute.xlu0 %5062 }
 0x536   : > { %5100 = vst.msk [vmem:[#allocation5 + $0x58] sm:$0xff] %vm5088_vm6, %v5063_v58  ;;  %v5543_v14 = vpop.permute.xlu1 %5542 }
 0x537   : > { %5583 = vst.msk [vmem:[#allocation5 + $0x40] sm:$0xff] %vm5574_vm11, %v5543_v14 }
 0x539   : > { %v5448_v9 = vpop.permute.xlu0 %5447 }
 0x53a   : > { %5487 = vst.msk [vmem:[#allocation5 + $0x48] sm:$0xff] %vm5477_vm10, %v5448_v9  ;;  %v5255_v28 = vpop.permute.xlu1 %5254 }
 0x53b   : > { %5293 = vst.msk [vmem:[#allocation5 + $0x50] sm:$0xff] %vm5282_vm8, %v5255_v28 }
 0x53d   : > { %v5160_v44 = vpop.permute.xlu0 %5159 }
 0x53e   : > { %5197 = vst.msk [vmem:[#allocation5 + $0x58] sm:$0xff] %vm5185_vm7, %v5160_v44  ;;  %v5640_v11 = vpop.permute.xlu1 %5639 }
 0x53f   : > { %5680 = vst.msk [vmem:[#allocation5 + $0x40] sm:$0xff] %vm5671_vm12, %v5640_v11 }
 0x541   : > { %v5545_v59 = vpop.permute.xlu0 %5544 }
 0x542   : > { %5584 = vst.msk [vmem:[#allocation5 + $0x48] sm:$0xff] %vm5574_vm11, %v5545_v59  ;;  %v7694_v54 = vpop.f32.mrb[58].mxu0  ;;  %v5352_v50 = vpop.permute.xlu1 %5351 }
 0x543   : > { %5390 = vst.msk [vmem:[#allocation5 + $0x50] sm:$0xff] %vm5379_vm9, %v5352_v50  ;;  %v4400_v60 = vpop.f32.mrb[59].mxu0  ;;  %v4406_v5 = vadd.f32 %v11187_v23, %v7694_v54 }
 0x544   : > { %v4401_v55 = vadd.f32 %v11187_v23, %v4400_v60 }
 0x545   : > { %v5257_v34 = vpop.permute.xlu0 %5256  ;;  %v4488_v4 = vmax.f32 %v4406_v5, 0.0 }
 0x546   : > { %5294 = vst.msk [vmem:[#allocation5 + $0x58] sm:$0xff] %vm5282_vm8, %v5257_v34  ;;  %v5354_v21 = vpop.permute.xlu1 %5353  ;;  %v5696_v42 = vld [vmem:[#allocation5 + $0x40] sm:$0xff]  ;;  %v4487_v52 = vmax.f32 %v4401_v55, 0.0 }
 0x547   : > { %5391 = vst.msk [vmem:[#allocation5 + $0x58] sm:$0xff] %vm5379_vm9, %v5354_v21  ;;  %7727 = vmatprep.mubr.msk.f32.mxu1 %vm5718_vm13, %v5696_v42  ;;  %v4616_v32 = vsel %vm4493_vm15, %v4488_v4, -inf }
 0x548   : > { %v4613_v31 = vsel %vm4493_vm15, %v4487_v52, -inf }
 0x549   : > { %v5642_v40 = vpop.permute.xlu0 %5641 }
 0x54a   : > { %5681 = vst.msk [vmem:[#allocation5 + $0x48] sm:$0xff] %vm5671_vm12, %v5642_v40 }
 0x551   : > { %v5697_v10 = vld [vmem:[#allocation5 + $0x48] sm:$0xff] }
 0x552   : > { %7728 = vmatmul.mubr.msk.f32.gmra.mrb[8].mxu1 %vm5718_vm13, %v5697_v10 }
 0x565   : > { %v7697_v8 = vpop.f32.mrb[60].mxu0 }
 0x566   : > { %v4416_v48 = vadd.f32 %v11187_v23, %v7697_v8  ;;  %v4410_v15 = vpop.f32.mrb[61].mxu0 }
 0x567   : > { %v4411_v13 = vadd.f32 %v11187_v23, %v4410_v15  ;;  %v5411_v15 = vld [vmem:[#allocation4 + $0xd8] sm:$0xff] }
 0x568   : > { %v4490_v51 = vmax.f32 %v4416_v48, 0.0  ;;  %v5509_v48 = vld [vmem:[#allocation4 + $0xe1] sm:$0xff] }
 0x569   : > { %v4489_v12 = vmax.f32 %v4411_v13, 0.0 }
 0x56a   : > { %v4611_v6 = vsel %vm4493_vm15, %v4490_v51, -inf  ;;  %v5606_v51 = vld [vmem:[#allocation4 + $0xe2] sm:$0xff] }
 0x56b   : > { %v4612_v45 = vmax.f32 %v4610_v53, %v4611_v6  ;;  %v4608_v24 = vsel %vm4493_vm15, %v4489_v12, -inf  ;;  %v5508_v12 = vld [vmem:[#allocation4 + $0xd9] sm:$0xff] }
 0x56c   : > { %v4609_v30 = vmax.f32 %v4607_v17, %v4608_v24  ;;  %v6077_v53 = vld [vmem:[#allocation6 + $0x2] sm:$0xff]  ;;  %v5605_v6 = vld [vmem:[#allocation4 + $0xda] sm:$0xff] }
 0x56d   : > { %v4702_v49 = vrot.slane %v4612_v45, 1 }
 0x56e   : > { %v4634_v29 = vrot.slane %v4609_v30, 1 }
 0x56f   : > { %v5450_v3 = vpop.permute.xlu0 %5449  ;;  %v4718_v63 = vmax.f32 %v4612_v45, %v4702_v49  ;;  %v6052_v45 = vld [vmem:[#allocation6 + $0x1] sm:$0xff] }
 0x570   : > { %5488 = vst.msk [vmem:[#allocation5 + $0x50] sm:$0xff] %vm5477_vm10, %v5450_v3  ;;  %v4650_v1 = vmax.f32 %v4609_v30, %v4634_v29  ;;  %v6044_v30 = vld [vmem:[#allocation6] sm:$0xff] }
 0x571   : > { %4726 = vst.msk [vmem:[#allocation4 + $0xc5] sm:$0x1] %vm4502_vm1, %v4718_v63  ;;  %v11431_v3 = vld [vmem:[%s12054_s4] ss:$0 sm:$0xff] }
 0x572   : > { %4734 = vst.msk [vmem:[#allocation4 + $0xc4] sm:$0x4] %vm4660_vm2, %v4718_v63  ;;  %4668 = vst.msk [vmem:[#allocation4 + $0xc0] sm:$0x4] %vm4660_vm2, %v4650_v1  ;;  %v7700_v47 = vpop.f32.mrb[62].mxu0 }
 0x573   : > { %v5547_v25 = vpop.permute.xlu0 %5546  ;;  %4742 = vst.msk [vmem:[#allocation4 + $0xc3] sm:$0x10] %vm4669_vm3, %v4718_v63  ;;  %4677 = vst.msk [vmem:[#allocation4 + $0xbf] sm:$0x10] %vm4669_vm3, %v4650_v1  ;;  %v4426_v36 = vadd.f32 %v11187_v23, %v7700_v47  ;;  %v4420_v27 = vpop.f32.mrb[63].mxu0 }
 0x574   : > { %4750 = vst.msk [vmem:[#allocation4 + $0xc2] sm:$0x40] %vm4678_vm5, %v4718_v63  ;;  %4686 = vst.msk [vmem:[#allocation4 + $0xbe] sm:$0x40] %vm4678_vm5, %v4650_v1  ;;  %v4421_v2 = vadd.f32 %v11187_v23, %v4420_v27 }
 0x575   : > { %5585 = vst.msk [vmem:[#allocation5 + $0x50] sm:$0xff] %vm5574_vm11, %v5547_v25  ;;  %v4492_v57 = vmax.f32 %v4426_v36, 0.0 }
 0x576   : > { %4659 = vst.msk [vmem:[#allocation4 + $0xc1] sm:$0x1] %vm4502_vm1, %v4650_v1  ;;  %v4491_v35 = vmax.f32 %v4421_v2, 0.0 }
 0x577   : > { %v4617_v56 = vsel %vm4493_vm15, %v4492_v57, -inf }
 0x578   : > { %v4618_v16 = vmax.f32 %v4616_v32, %v4617_v56  ;;  %v4614_v62 = vsel %vm4493_vm15, %v4491_v35, -inf  ;;  %vm12095_vm15 = vcmask 130048  }
 0x579   : > { %v4615_v22 = vmax.f32 %v4613_v31, %v4614_v62  ;;  %6048 = vst.msk [vmem:[#allocation7] sm:$0xff] %vm12095_vm15, %v6044_v30 }
 0x57a   : > { %v4830_v26 = vrot.slane %v4618_v16, 1 }
 0x57b   : > { %v4766_v23 = vrot.slane %v4615_v22, 1 }
 0x57c   : > { %v4846_v61 = vmax.f32 %v4618_v16, %v4830_v26 }
 0x57d   : > { %v5644_v20 = vpop.permute.xlu0 %5643  ;;  %v5409_v18 = vld [vmem:[#allocation4 + $0xc0] sm:$0xff]  ;;  %v4782_v7 = vmax.f32 %v4615_v22, %v4766_v23 }
 0x57e   : > { %v5452_v43 = vpop.permute.xlu1 %5451  ;;  %5682 = vst.msk [vmem:[#allocation5 + $0x50] sm:$0xff] %vm5671_vm12, %v5644_v20  ;;  %5453 = vrot.lane.b32.xlu1 %v5409_v18, %s8238_s30  ;;  %v5506_v14 = vld [vmem:[#allocation4 + $0xc1] sm:$0xff] }
 0x57f   : > { %5489 = vst.msk [vmem:[#allocation5 + $0x58] sm:$0xff] %vm5477_vm10, %v5452_v43 }
 0x580   : > { %4854 = vst.msk [vmem:[#allocation4 + $0xcd] sm:$0x1] %vm4502_vm1, %v4846_v61  ;;  %4790 = vst.msk [vmem:[#allocation4 + $0xc9] sm:$0x1] %vm4502_vm1, %v4782_v7 }
 0x581   : > { %v4968_v37 = vpop.permute.xlu0 %4967  ;;  %4862 = vst.msk [vmem:[#allocation4 + $0xcc] sm:$0x4] %vm4660_vm2, %v4846_v61  ;;  %4798 = vst.msk [vmem:[#allocation4 + $0xc8] sm:$0x4] %vm4660_vm2, %v4782_v7 }
 0x582   : > { %v5549_v19 = vpop.permute.xlu1 %5548  ;;  %4870 = vst.msk [vmem:[#allocation4 + $0xcb] sm:$0x10] %vm4669_vm3, %v4846_v61  ;;  %5165 = vrot.lane.b32.xlu1 %v5409_v18, %s12091_s12  ;;  %4806 = vst.msk [vmem:[#allocation4 + $0xc7] sm:$0x10] %vm4669_vm3, %v4782_v7 }
 0x583   : > { %4878 = vst.msk [vmem:[#allocation4 + $0xca] sm:$0x40] %vm4678_vm5, %v4846_v61  ;;  %4814 = vst.msk [vmem:[#allocation4 + $0xc6] sm:$0x40] %vm4678_vm5, %v4782_v7  ;;  %v6244_v7 = vld [vmem:[%s12055_s5] sm:$0xff] }
 0x584   : > { %5004 = vst.msk [vmem:[#allocation5 + $0x60] sm:$0xff] %vm4991_vm4, %v4968_v37  ;;  %vm12096_vm1 = vmmov %vm12095_vm15  ;;  %v6245_v37 = vld [vmem:[%s12055_s5 + $0x8] sm:$0xff] }
 0x585   : > { %5586 = vst.msk [vmem:[#allocation5 + $0x58] sm:$0xff] %vm5574_vm11, %v5549_v19  ;;  %v5065_v33 = vpop.permute.xlu0 %5064  ;;  %v5698_v9 = vld [vmem:[#allocation5 + $0x50] sm:$0xff]  ;;  %vm12097_vm2 = vmmov %vm12096_vm1  ;;  %v8245_v19 = vmov 0.0|0.0  }
 0x586   : > { %v5646_v58 = vpop.permute.xlu1 %5645  ;;  %5101 = vst.msk [vmem:[#allocation5 + $0x60] sm:$0xff] %vm5088_vm6, %v5065_v33  ;;  %5550 = vrot.lane.b32.xlu1 %v5506_v14, %s8239_s22  ;;  %7730 = vmatprep.mubr.msk.f32.mxu1 %vm5718_vm13, %v5698_v9  ;;  %vm12098_vm3 = vmmov %vm12096_vm1  ;;  %v7939_v33 = vpack.c.bf16 %v6245_v37, %v6244_v7  ;;  %v6247_v9 = vld [vmem:[%s12055_s5 + $0x18] sm:$0xff]  ;;  %v6260_v7 = vld [vmem:[%s12055_s5 + $0x80] sm:$0xff] }
 0x587   : > { %5683 = vst.msk [vmem:[#allocation5 + $0x58] sm:$0xff] %vm5671_vm12, %v5646_v58  ;;  %v5603_v50 = vld [vmem:[#allocation4 + $0xc2] sm:$0xff]  ;;  %vm12099_vm5 = vmmov %vm12096_vm1  ;;  %7938 = vmatprep.subr.bf16.mxu0 %v8245_v19  ;;  %7965 = vmatprep.subr.bf16.mxu1 %v8245_v19  ;;  %v6261_v37 = vld [vmem:[%s12055_s5 + $0x88] sm:$0xff] }
 0x588   : > { %vm12100_vm15 = vmmov %vm12096_vm1  ;;  %7940 = vmatpush1.bf16.msra.mxu0 %v7939_v33 }
 0x589   : > { %v5162_v28 = vpop.permute.xlu0 %5161  ;;  %7941 = vmatprep.subr.bf16.mxu0 %v8245_v19 }
 0x58a   : > { %v4970_v44 = vpop.permute.xlu1 %4969  ;;  %5198 = vst.msk [vmem:[#allocation5 + $0x60] sm:$0xff] %vm5185_vm7, %v5162_v28  ;;  %5262 = vrot.lane.b32.xlu1 %v5506_v14, %s12092_s16  ;;  %v5410_v11 = vld [vmem:[#allocation4 + $0xc8] sm:$0xff]  ;;  %v6246_v14 = vld [vmem:[%s12055_s5 + $0x10] sm:$0xff] }
 0x58b   : > { %5005 = vst.msk [vmem:[#allocation5 + $0x68] sm:$0xff] %vm4991_vm4, %v4970_v44  ;;  %5455 = vrot.lane.b32.xlu0 %v5410_v11, %s8238_s30  ;;  %v5507_v42 = vld [vmem:[#allocation4 + $0xc9] sm:$0xff]  ;;  %v7942_v28 = vpack.c.bf16 %v6247_v9, %v6246_v14 }
 0x58c   : > { %v5314_v38 = vld [vmem:[#allocation4 + $0xca] sm:$0xff] }
 0x58d   : > { %v5259_v59 = vpop.permute.xlu0 %5258  ;;  %7943 = vmatpush1.bf16.msra.mxu0 %v7942_v28 }
 0x58e   : > { %v5067_v54 = vpop.permute.xlu1 %5066  ;;  %v5699_v34 = vld [vmem:[#allocation5 + $0x58] sm:$0xff]  ;;  %5295 = vst.msk [vmem:[#allocation5 + $0x60] sm:$0xff] %vm5282_vm8, %v5259_v59  ;;  %5647 = vrot.lane.b32.xlu1 %v5603_v50, %s8240_s15  ;;  %7944 = vmatprep.subr.bf16.mxu0 %v8245_v19  ;;  %v6248_v59 = vld [vmem:[%s12055_s5 + $0x20] sm:$0xff] }
 0x58f   : > { %5102 = vst.msk [vmem:[#allocation5 + $0x68] sm:$0xff] %vm5088_vm6, %v5067_v54  ;;  %7731 = vmatmul.mubr.msk.f32.gmra.mrb[10].mxu1 %vm5718_vm13, %v5699_v34  ;;  %5167 = vrot.lane.b32.xlu0 %v5410_v11, %s12091_s12  ;;  %s12078_s12 = smov 16   ;;  %v6249_v54 = vld [vmem:[%s12055_s5 + $0x28] sm:$0xff] }
 0x591   : > { %v5261_v60 = vpop.permute.xlu0 %5260 }
 0x592   : > { %v5164_v21 = vpop.permute.xlu1 %5163  ;;  %5359 = vrot.lane.b32.xlu1 %v5603_v50, %s12094_s13  ;;  %v7945_v50 = vpack.c.bf16 %v6249_v54, %v6248_v59 }
 0x593   : > { %5199 = vst.msk [vmem:[#allocation5 + $0x68] sm:$0xff] %vm5185_vm7, %v5164_v21  ;;  %5552 = vrot.lane.b32.xlu0 %v5507_v42, %s8239_s22  ;;  %v6250_v21 = vld [vmem:[%s12055_s5 + $0x30] sm:$0xff] }
 0x594   : > { %5296 = vst.msk [vmem:[#allocation5 + $0x68] sm:$0xff] %vm5282_vm8, %v5261_v60  ;;  %7946 = vmatpush1.bf16.msra.mxu0 %v7945_v50 }
 0x595   : > { %v4974_v40 = vpop.permute.xlu0 %4973  ;;  %7947 = vmatprep.subr.bf16.mxu0 %v8245_v19 }
 0x596   : > { %v4972_v10 = vpop.permute.xlu1 %4971  ;;  %5007 = vst.msk [vmem:[#allocation5 + $0x78] sm:$0xff] %vm4991_vm4, %v4974_v40  ;;  %5361 = vrot.lane.b32.xlu1 %v5314_v38, %s12094_s13  ;;  %s8246_s13 = smov 96  }
 0x597   : > { %5006 = vst.msk [vmem:[#allocation5 + $0x70] sm:$0xff] %vm4991_vm4, %v4972_v10  ;;  %5264 = vrot.lane.b32.xlu0 %v5507_v42, %s12092_s16  ;;  %vm5997_vm4 = vcmask 124930   ;;  %v6251_v42 = vld [vmem:[%s12055_s5 + $0x38] sm:$0xff]  ;;  %s12113_s16 = smov 32  }
 0x598   : > { %v7948_v40 = vpack.c.bf16 %v6251_v42, %v6250_v21 }
 0x599   : > { %v5358_v8 = vpop.permute.xlu0 %5357 }
 0x59a   : > { %v5356_v39 = vpop.permute.xlu1 %5355  ;;  %5393 = vst.msk [vmem:[#allocation5 + $0x68] sm:$0xff] %vm5379_vm9, %v5358_v8  ;;  %5459 = vrot.lane.b32.xlu1 %v5412_v46, %s8238_s30  ;;  %7949 = vmatpush1.bf16.msra.mxu0 %v7948_v40 }
 0x59b   : > { %5392 = vst.msk [vmem:[#allocation5 + $0x60] sm:$0xff] %vm5379_vm9, %v5356_v39  ;;  %5649 = vrot.lane.b32.xlu0 %v5314_v38, %s8240_s15  ;;  %7950 = vmatprep.subr.bf16.mxu0 %v8245_v19  ;;  %v6252_v39 = vld [vmem:[%s12055_s5 + $0x40] sm:$0xff] }
 0x59d   : > { %v5071_v41 = vpop.permute.xlu0 %5070 }
 0x59e   : > { %v5069_v13 = vpop.permute.xlu1 %5068  ;;  %5104 = vst.msk [vmem:[#allocation5 + $0x78] sm:$0xff] %vm5088_vm6, %v5071_v41  ;;  %5556 = vrot.lane.b32.xlu1 %v5509_v48, %s8239_s22  ;;  %v6253_v48 = vld [vmem:[%s12055_s5 + $0x48] sm:$0xff] }
 0x59f   : > { %5103 = vst.msk [vmem:[#allocation5 + $0x70] sm:$0xff] %vm5088_vm6, %v5069_v13  ;;  %5457 = vrot.lane.b32.xlu0 %v5411_v15, %s8238_s30  ;;  %vm6002_vm6 = vcmask 126980   ;;  %s12082_s30 = smov 80   ;;  %v6254_v15 = vld [vmem:[%s12055_s5 + $0x50] sm:$0xff]  ;;  %v7951_v41 = vpack.c.bf16 %v6253_v48, %v6252_v39  ;;  %v6255_v13 = vld [vmem:[%s12055_s5 + $0x58] sm:$0xff] }
 0x5a0   : > { %v7954_v30 = vpack.c.bf16 %v6255_v13, %v6254_v15 }
 0x5a1   : > { %7952 = vmatpush1.bf16.msra.mxu0 %v7951_v41 }
 0x5a2   : > { %5653 = vrot.lane.b32.xlu1 %v5606_v51, %s8240_s15  ;;  %v7717_v17 = vpop.f32.mrb[0].mxu1  ;;  %7953 = vmatprep.subr.bf16.mxu0 %v8245_v19 }
 0x5a3   : > { %5554 = vrot.lane.b32.xlu0 %v5508_v12, %s8239_s22  ;;  %v5837_v24 = vpop.f32.mrb[1].mxu1  ;;  %v5843_v49 = vadd.f32 %v7717_v17, %v11431_v3  ;;  %s8243_s22 = smov 64  }
 0x5a4   : > { %v5838_v29 = vadd.f32 %v11431_v3, %v5837_v24 }
 0x5a5   : > { %v5917_v63 = vmax.f32 %v5843_v49, 0.0  ;;  %7955 = vmatpush1.bf16.msra.mxu0 %v7954_v30 }
 0x5a6   : > { %6085 = vrot.lane.b32.xlu1 %v6077_v53, %s12080_s29  ;;  %v5916_v25 = vmax.f32 %v5838_v29, 0.0  ;;  %7956 = vmatprep.subr.bf16.mxu0 %v8245_v19 }
 0x5a7   : > { %5651 = vrot.lane.b32.xlu0 %v5605_v6, %s8240_s15  ;;  %v5955_v27 = vsel %vm12096_vm1, %v5917_v63, -inf }
 0x5a8   : > { %v5952_v2 = vsel %vm12098_vm3, %v5916_v25, -inf  ;;  %vm12105_vm3 = vmmov %vm12096_vm1 }
 0x5ab   : > { %6060 = vrot.lane.b32.xlu0 %v6052_v45, %s12078_s12 }
 0x5c2   : > { %v7720_v5 = vpop.f32.mrb[2].mxu1 }
 0x5c3   : > { %v5853_v55 = vadd.f32 %v7720_v5, %v11431_v3  ;;  %v5847_v1 = vpop.f32.mrb[3].mxu1 }
 0x5c4   : > { %v5848_v47 = vadd.f32 %v11431_v3, %v5847_v1 }
 0x5c5   : > { %v5919_v4 = vmax.f32 %v5853_v55, 0.0 }
 0x5c6   : > { %v5918_v36 = vmax.f32 %v5848_v47, 0.0 }
 0x5c7   : > { %v5956_v52 = vsel %vm12097_vm2, %v5919_v4, -inf  ;;  %vm12102_vm2 = vmmov %vm12096_vm1 }
 0x5c8   : > { %v5957_v57 = vmax.f32 %v5955_v27, %v5956_v52  ;;  %v5953_v35 = vsel %vm12099_vm5, %v5918_v36, -inf  ;;  %vm6122_vm5 = vcmask 523648  }
 0x5c9   : > { %v5954_v32 = vmax.f32 %v5952_v2, %v5953_v35  ;;  %v6256_v35 = vld [vmem:[%s12055_s5 + $0x60] sm:$0xff] }
 0x5ca   : > { %v6016_v56 = vrot.slane %v5957_v57, 1 }
 0x5cb   : > { %v5980_v31 = vrot.slane %v5954_v32, 1 }
 0x5cc   : > { %v6024_v16 = vmax.f32 %v5957_v57, %v6016_v56 }
 0x5cd   : > { %v5988_v62 = vmax.f32 %v5954_v32, %v5980_v31  ;;  %v6257_v32 = vld [vmem:[%s12055_s5 + $0x68] sm:$0xff] }
 0x5ce   : > { %6028 = vst.msk [vmem:[#allocation6 + $0x15] sm:$0x1] %vm5939_vm0, %v6024_v16 }
 0x5cf   : > { %6032 = vst.msk [vmem:[#allocation6 + $0x14] sm:$0x4] %vm5997_vm4, %v6024_v16  ;;  %5998 = vst.msk [vmem:[#allocation6 + $0x10] sm:$0x4] %vm5997_vm4, %v5988_v62 }
 0x5d0   : > { %6036 = vst.msk [vmem:[#allocation6 + $0x13] sm:$0x10] %vm6002_vm6, %v6024_v16  ;;  %6003 = vst.msk [vmem:[#allocation6 + $0xf] sm:$0x10] %vm6002_vm6, %v5988_v62 }
 0x5d1   : > { %6040 = vst.msk [vmem:[#allocation6 + $0x12] sm:$0x40] %vm6007_vm14, %v6024_v16  ;;  %6008 = vst.msk [vmem:[#allocation6 + $0xe] sm:$0x40] %vm6007_vm14, %v5988_v62  ;;  %v7957_v16 = vpack.c.bf16 %v6257_v32, %v6256_v35 }
 0x5d2   : > { %5993 = vst.msk [vmem:[#allocation6 + $0x11] sm:$0x1] %vm5939_vm0, %v5988_v62 }
 0x5d3   : > { %7958 = vmatpush1.bf16.msra.mxu0 %v7957_v16 }
 0x5d4   : > { %7959 = vmatprep.subr.bf16.mxu0 %v8245_v19 }
 0x5d8   : > { %v6152_v43 = vld [vmem:[#allocation6 + $0x12] sm:$0xff] }
 0x5d9   : > { %v6127_v22 = vld [vmem:[#allocation6 + $0x11] sm:$0xff] }
 0x5da   : > { %v6102_v20 = vld [vmem:[#allocation6 + $0x10] sm:$0xff]  ;;  %6135 = vrot.lane.b32.xlu1 %v6127_v22, %s8243_s22 }
 0x5db   : > { %6110 = vrot.lane.b32.xlu0 %v6102_v20, %s8240_s15  ;;  %6049 = vst.msk [vmem:[#allocation7 + $0x10] sm:$0xff] %vm12100_vm15, %v6102_v20  ;;  %vm6147_vm15 = vcmask 654848  }
 0x5de   : > { %6160 = vrot.lane.b32.xlu1 %v6152_v43, %s12082_s30 }
 0x5df   : > { %6062 = vrot.lane.b32.xlu0 %v6127_v22, %s12078_s12 }
 0x5e3   : > { %6087 = vrot.lane.b32.xlu0 %v6152_v43, %s12080_s29  ;;  %v7723_v18 = vpop.f32.mrb[4].mxu1  ;;  %v6258_v43 = vld [vmem:[%s12055_s5 + $0x70] sm:$0xff]  ;;  %s12114_s29 = smov 16  }
 0x5e4   : > { %v5857_v26 = vpop.f32.mrb[5].mxu1  ;;  %v5863_v38 = vadd.f32 %v7723_v18, %v11431_v3  ;;  %v6259_v18 = vld [vmem:[%s12055_s5 + $0x78] sm:$0xff] }
 0x5e5   : > { %v5858_v8 = vadd.f32 %v11431_v3, %v5857_v26 }
 0x5e6   : > { %v5921_v6 = vmax.f32 %v5863_v38, 0.0 }
 0x5e7   : > { %v5920_v49 = vmax.f32 %v5858_v8, 0.0 }
 0x5e9   : > { %v5958_v4 = vsel %vm12102_vm2, %v5920_v49, -inf  ;;  %vm12109_vm2 = vmmov %vm12096_vm1 }
 0x5f0   : > { %v5454_v23 = vpop.permute.xlu1 %5453 }
 0x5f1   : > { %5490 = vst.msk [vmem:[#allocation5 + $0x60] sm:$0xff] %vm5477_vm10, %v5454_v23 }
 0x5f4   : > { %v5166_v61 = vpop.permute.xlu1 %5165 }
 0x5f5   : > { %5200 = vst.msk [vmem:[#allocation5 + $0x70] sm:$0xff] %vm5185_vm7, %v5166_v61  ;;  %v7960_v61 = vpack.c.bf16 %v6259_v18, %v6258_v43 }
 0x5f7   : > { %7961 = vmatpush1.bf16.msra.mxu0 %v7960_v61 }
 0x5f8   : > { %v5551_v58 = vpop.permute.xlu1 %5550  ;;  %7962 = vmatprep.subr.bf16.mxu0 %v8245_v19 }
 0x5f9   : > { %5587 = vst.msk [vmem:[#allocation5 + $0x60] sm:$0xff] %vm5574_vm11, %v5551_v58  ;;  %v7963_v58 = vpack.c.bf16 %v6261_v37, %v6260_v7 }
 0x5fb   : > { %7964 = vmatpush1.bf16.msra.mxu0 %v7963_v58 }
 0x5fc   : > { %v5263_v44 = vpop.permute.xlu1 %5262  ;;  %8069 = vmatprep.subr.bf16.mxu0 %v8245_v19 }
 0x5fd   : > { %5297 = vst.msk [vmem:[#allocation5 + $0x70] sm:$0xff] %vm5282_vm8, %v5263_v44  ;;  %v5456_v11 = vpop.permute.xlu0 %5455 }
 0x5fe   : > { %5491 = vst.msk [vmem:[#allocation5 + $0x68] sm:$0xff] %vm5477_vm10, %v5456_v11 }
 0x600   : > { %v5648_v34 = vpop.permute.xlu1 %5647 }
 0x601   : > { %5684 = vst.msk [vmem:[#allocation5 + $0x60] sm:$0xff] %vm5671_vm12, %v5648_v34  ;;  %v5168_v60 = vpop.permute.xlu0 %5167 }
 0x602   : > { %5201 = vst.msk [vmem:[#allocation5 + $0x78] sm:$0xff] %vm5185_vm7, %v5168_v60  ;;  %v7726_v12 = vpop.f32.mrb[6].mxu1  ;;  %vm12101_vm7 = vmmov %vm12096_vm1 }
 0x603   : > { %v5873_v45 = vadd.f32 %v7726_v12, %v11431_v3  ;;  %v5867_v24 = vpop.f32.mrb[7].mxu1  ;;  %v5961_v1 = vsel %vm12101_vm7, %v5921_v6, -inf  ;;  %vm6172_vm7 = vcmask 786048  }
 0x604   : > { %v5360_v10 = vpop.permute.xlu1 %5359  ;;  %v5868_v29 = vadd.f32 %v11431_v3, %v5867_v24 }
 0x605   : > { %5394 = vst.msk [vmem:[#allocation5 + $0x70] sm:$0xff] %vm5379_vm9, %v5360_v10  ;;  %v5553_v46 = vpop.permute.xlu0 %5552  ;;  %v5923_v5 = vmax.f32 %v5873_v45, 0.0 }
 0x606   : > { %5588 = vst.msk [vmem:[#allocation5 + $0x68] sm:$0xff] %vm5574_vm11, %v5553_v46  ;;  %v5922_v63 = vmax.f32 %v5868_v29, 0.0 }
 0x607   : > { %v5962_v25 = vsel %vm12096_vm1, %v5923_v5, -inf }
 0x608   : > { %v5362_v51 = vpop.permute.xlu1 %5361  ;;  %v5700_v53 = vld [vmem:[#allocation5 + $0x60] sm:$0xff]  ;;  %v5963_v36 = vmax.f32 %v5961_v1, %v5962_v25 }
 0x609   : > { %v5265_v17 = vpop.permute.xlu0 %5264  ;;  %7733 = vmatprep.mubr.msk.f32.mxu1 %vm5718_vm13, %v5700_v53 }
 0x60a   : > { %5298 = vst.msk [vmem:[#allocation5 + $0x78] sm:$0xff] %vm5282_vm8, %v5265_v17  ;;  %vm12103_vm8 = vmmov %vm12096_vm1  ;;  %v6017_v2 = vrot.slane %v5963_v36, 1 }
 0x60b   : > { %5395 = vst.msk [vmem:[#allocation5 + $0x78] sm:$0xff] %vm5379_vm9, %v5362_v51  ;;  %v5959_v27 = vsel %vm12103_vm8, %v5922_v63, -inf  ;;  %vm6072_vm9 = vcmask 261248   ;;  %vm12110_vm8 = vmmov %vm12096_vm1 }
 0x60c   : > { %v5460_v55 = vpop.permute.xlu1 %5459  ;;  %v5960_v52 = vmax.f32 %v5958_v4, %v5959_v27  ;;  %v6025_v62 = vmax.f32 %v5963_v36, %v6017_v2 }
 0x60d   : > { %v5650_v47 = vpop.permute.xlu0 %5649  ;;  %5493 = vst.msk [vmem:[#allocation5 + $0x78] sm:$0xff] %vm5477_vm10, %v5460_v55 }
 0x60e   : > { %5685 = vst.msk [vmem:[#allocation5 + $0x68] sm:$0xff] %vm5671_vm12, %v5650_v47  ;;  %v5981_v56 = vrot.slane %v5960_v52, 1 }
 0x60f   : > { %6029 = vst.msk [vmem:[#allocation6 + $0x25] sm:$0x1] %vm5939_vm0, %v6025_v62 }
 0x610   : > { %v5557_v57 = vpop.permute.xlu1 %5556  ;;  %v5989_v22 = vmax.f32 %v5960_v52, %v5981_v56  ;;  %6033 = vst.msk [vmem:[#allocation6 + $0x24] sm:$0x4] %vm5997_vm4, %v6025_v62 }
 0x611   : > { %v5458_v31 = vpop.permute.xlu0 %5457  ;;  %5590 = vst.msk [vmem:[#allocation5 + $0x78] sm:$0xff] %vm5574_vm11, %v5557_v57 }
 0x612   : > { %5492 = vst.msk [vmem:[#allocation5 + $0x70] sm:$0xff] %vm5477_vm10, %v5458_v31  ;;  %vm6097_vm10 = vcmask 392448  }
 0x613   : > { %6037 = vst.msk [vmem:[#allocation6 + $0x23] sm:$0x10] %vm6002_vm6, %v6025_v62  ;;  %6004 = vst.msk [vmem:[#allocation6 + $0x1f] sm:$0x10] %vm6002_vm6, %v5989_v22 }
 0x614   : > { %6041 = vst.msk [vmem:[#allocation6 + $0x22] sm:$0x40] %vm6007_vm14, %v6025_v62  ;;  %v5654_v20 = vpop.permute.xlu1 %5653  ;;  %6009 = vst.msk [vmem:[#allocation6 + $0x1e] sm:$0x40] %vm6007_vm14, %v5989_v22 }
 0x615   : > { %5994 = vst.msk [vmem:[#allocation6 + $0x21] sm:$0x1] %vm5939_vm0, %v5989_v22  ;;  %v5555_v26 = vpop.permute.xlu0 %5554  ;;  %v5701_v23 = vld [vmem:[#allocation5 + $0x68] sm:$0xff] }
 0x616   : > { %5999 = vst.msk [vmem:[#allocation6 + $0x20] sm:$0x4] %vm5997_vm4, %v5989_v22  ;;  %7734 = vmatmul.mubr.msk.f32.gmra.mrb[12].mxu1 %vm5718_vm13, %v5701_v23 }
 0x617   : > { %5687 = vst.msk [vmem:[#allocation5 + $0x78] sm:$0xff] %vm5671_vm12, %v5654_v20 }
 0x618   : > { %5589 = vst.msk [vmem:[#allocation5 + $0x70] sm:$0xff] %vm5574_vm11, %v5555_v26  ;;  %vm12104_vm11 = vmmov %vm12096_vm1  ;;  %v6086_v44 = vpop.permute.xlu1 %6085 }
 0x619   : > { %v5652_v33 = vpop.permute.xlu0 %5651 }
 0x61a   : > { %5686 = vst.msk [vmem:[#allocation5 + $0x70] sm:$0xff] %vm5671_vm12, %v5652_v33  ;;  %vm12107_vm12 = vmmov %vm12096_vm1 }
 0x61d   : > { %v6178_v14 = vld [vmem:[#allocation6 + $0x20] sm:$0xff]  ;;  %v6061_v28 = vpop.permute.xlu0 %6060 }
 0x61e   : > { %6186 = vrot.lane.b32.xlu1 %v6178_v14, %s8246_s13  ;;  %6112 = vrot.lane.b32.xlu0 %v6178_v14, %s8240_s15  ;;  %v11558_v9 = vld [vmem:[#allocation6 + $0x22] sm:$0xff]  ;;  %6050 = vst.msk [vmem:[#allocation7 + $0x20] sm:$0xff] %vm12104_vm11, %v6178_v14  ;;  %v5703_v59 = vld [vmem:[#allocation5 + $0x78] sm:$0xff]  ;;  %vm12111_vm11 = vmmov %vm12096_vm1 }
 0x61f   : > { %6232 = vst.msk [vmem:[#allocation7 + $0x8] sm:$0xff] %vm12105_vm3, %v11558_v9  ;;  %v6203_v11 = vld [vmem:[#allocation6 + $0x21] sm:$0xff]  ;;  %vm12112_vm3 = vmmov %vm12096_vm1 }
 0x620   : > { %6073 = vst.msk [vmem:[#allocation7] sm:$0xff] %vm6072_vm9, %v6061_v28 }
 0x621   : > { %6098 = vst.msk [vmem:[#allocation7] sm:$0xff] %vm6097_vm10, %v6086_v44  ;;  %v5702_v54 = vld [vmem:[#allocation5 + $0x70] sm:$0xff] }
 0x622   : > { %6211 = vrot.lane.b32.xlu1 %v6203_v11, %s8247_s25  ;;  %6137 = vrot.lane.b32.xlu0 %v6203_v11, %s8243_s22 }
 0x623   : > { %7736 = vmatprep.mubr.msk.f32.mxu1 %vm5718_vm13, %v5702_v54 }
 0x624   : > { %7737 = vmatmul.mubr.msk.f32.gmra.mrb[14].mxu1 %vm5718_vm13, %v5703_v59  ;;  %vm12108_vm13 = vmmov %vm12096_vm1 }
 0x625   : > { %v7729_v34 = vpop.f32.mrb[8].mxu1 }
 0x626   : > { %v6237_v50 = vld [vmem:[#allocation7 + $0x8] sm:$0xff]  ;;  %6162 = vrot.lane.b32.xlu1 %v11558_v9, %s12106_s14  ;;  %v5877_v60 = vpop.f32.mrb[9].mxu1  ;;  %v5883_v46 = vadd.f32 %v7729_v34, %v11431_v3 }
 0x627   : > { %7340 = vmatprep.mubr.msk.f32.mxu0 %vm12107_vm12, %v6237_v50  ;;  %v5878_v8 = vadd.f32 %v11431_v3, %v5877_v60  ;;  %vm6198_vm12 = vcmask 917248  }
 0x628   : > { %v5925_v48 = vmax.f32 %v5883_v46, 0.0 }
 0x629   : > { %v5924_v13 = vmax.f32 %v5878_v8, 0.0 }
 0x62a   : > { %v5967_v6 = vsel %vm12108_vm13, %v5925_v48, -inf  ;;  %vm6223_vm13 = vcmask 1048448  }
 0x62b   : > { %v5964_v45 = vsel %vm12109_vm2, %v5924_v13, -inf  ;;  %vm12115_vm2 = vmmov %vm12096_vm1  ;;  %v6206_v13 = vld [vmem:[#allocation6 + $0x51] sm:$0xff] }
 0x64c   : > { %v6136_v21 = vpop.permute.xlu1 %6135 }
 0x64d   : > { %v6111_v42 = vpop.permute.xlu0 %6110 }
 0x64e   : > { %6123 = vst.msk [vmem:[#allocation7] sm:$0xff] %vm6122_vm5, %v6111_v42 }
 0x64f   : > { %6148 = vst.msk [vmem:[#allocation7] sm:$0xff] %vm6147_vm15, %v6136_v21 }
 0x650   : > { %v6161_v40 = vpop.permute.xlu1 %6160 }
 0x651   : > { %v6063_v10 = vpop.permute.xlu0 %6062  ;;  %6173 = vst.msk [vmem:[#allocation7] sm:$0xff] %vm6172_vm7, %v6161_v40 }
 0x652   : > { %6074 = vst.msk [vmem:[#allocation7 + $0x10] sm:$0xff] %vm6072_vm9, %v6063_v10 }
 0x655   : > { %v6088_v38 = vpop.permute.xlu0 %6087 }
 0x656   : > { %6099 = vst.msk [vmem:[#allocation7 + $0x10] sm:$0xff] %vm6097_vm10, %v6088_v38 }
 0x662   : > { %v7732_v39 = vpop.f32.mrb[10].mxu1 }
 0x663   : > { %v5893_v15 = vadd.f32 %v7732_v39, %v11431_v3  ;;  %v5887_v41 = vpop.f32.mrb[11].mxu1 }
 0x664   : > { %v5888_v51 = vadd.f32 %v11431_v3, %v5887_v41 }
 0x665   : > { %v5927_v12 = vmax.f32 %v5893_v15, 0.0  ;;  %v6181_v15 = vld [vmem:[#allocation6 + $0x50] sm:$0xff] }
 0x666   : > { %v5926_v53 = vmax.f32 %v5888_v51, 0.0  ;;  %v6400_v51 = vld [vmem:[%s12057_s7] sm:$0xff] }
 0x667   : > { %v5968_v17 = vsel %vm12096_vm1, %v5927_v12, -inf  ;;  %v6401_v12 = vld [vmem:[%s12057_s7 + $0x8] sm:$0xff] }
 0x668   : > { %v5969_v24 = vmax.f32 %v5967_v6, %v5968_v17  ;;  %v5965_v30 = vsel %vm12110_vm8, %v5926_v53, -inf  ;;  %vm12116_vm8 = vmmov %vm12096_vm1  ;;  %v7966_v53 = vpack.c.bf16 %v6401_v12, %v6400_v51  ;;  %v6402_v6 = vld [vmem:[%s12057_s7 + $0x10] sm:$0xff]  ;;  %v6403_v17 = vld [vmem:[%s12057_s7 + $0x18] sm:$0xff] }
 0x669   : > { %v5966_v49 = vmax.f32 %v5964_v45, %v5965_v30  ;;  %v7969_v45 = vpack.c.bf16 %v6403_v17, %v6402_v6  ;;  %v6405_v30 = vld [vmem:[%s12057_s7 + $0x28] sm:$0xff]  ;;  %v7366_v12 = vld [vmem:[%s12057_s7 + $0xc0] sm:$0xff] }
 0x66a   : > { %v6018_v29 = vrot.slane %v5969_v24, 1  ;;  %7967 = vmatpush3.bf16.msra.mxu1 %v7966_v53  ;;  %v7367_v53 = vld [vmem:[%s12057_s7 + $0xc8] sm:$0xff] }
 0x66b   : > { %v5982_v5 = vrot.slane %v5966_v49, 1  ;;  %7968 = vmatprep.subr.bf16.mxu1 %v8245_v19  ;;  %v8005_v6 = vpack.c.bf16 %v7367_v53, %v7366_v12  ;;  %v7390_v12 = vld [vmem:[%s12057_s7 + $0x160] sm:$0xff]  ;;  %v7391_v53 = vld [vmem:[%s12057_s7 + $0x168] sm:$0xff] }
 0x66c   : > { %v6026_v63 = vmax.f32 %v5969_v24, %v6018_v29  ;;  %v6404_v24 = vld [vmem:[%s12057_s7 + $0x20] sm:$0xff]  ;;  %v6406_v29 = vld [vmem:[%s12057_s7 + $0x30] sm:$0xff] }
 0x66d   : > { %v5990_v55 = vmax.f32 %v5966_v49, %v5982_v5  ;;  %v7972_v49 = vpack.c.bf16 %v6405_v30, %v6404_v24  ;;  %v6407_v5 = vld [vmem:[%s12057_s7 + $0x38] sm:$0xf] }
 0x66e   : > { %6030 = vst.msk [vmem:[#allocation6 + $0x35] sm:$0x1] %vm5939_vm0, %v6026_v63  ;;  %7970 = vmatpush3.bf16.msra.mxu1 %v7969_v45  ;;  %v7368_v45 = vld [vmem:[%s12057_s7 + $0xd0] sm:$0xff]  ;;  %v7369_v24 = vld [vmem:[%s12057_s7 + $0xd8] sm:$0xff] }
 0x66f   : > { %6034 = vst.msk [vmem:[#allocation6 + $0x34] sm:$0x4] %vm5997_vm4, %v6026_v63  ;;  %6000 = vst.msk [vmem:[#allocation6 + $0x30] sm:$0x4] %vm5997_vm4, %v5990_v55  ;;  %7971 = vmatprep.subr.bf16.mxu1 %v8245_v19  ;;  %v8008_v30 = vpack.c.bf16 %v7369_v24, %v7368_v45  ;;  %v7393_v45 = vld [vmem:[%s12057_s7 + $0x178] sm:$0xf] }
 0x670   : > { %6038 = vst.msk [vmem:[#allocation6 + $0x33] sm:$0x10] %vm6002_vm6, %v6026_v63  ;;  %6005 = vst.msk [vmem:[#allocation6 + $0x2f] sm:$0x10] %vm6002_vm6, %v5990_v55 }
 0x671   : > { %6042 = vst.msk [vmem:[#allocation6 + $0x32] sm:$0x40] %vm6007_vm14, %v6026_v63  ;;  %6010 = vst.msk [vmem:[#allocation6 + $0x2e] sm:$0x40] %vm6007_vm14, %v5990_v55  ;;  %v7975_v63 = vpack.c.bf16 %v6407_v5, %v6406_v29  ;;  %v7371_v29 = vld [vmem:[%s12057_s7 + $0xe8] sm:$0xff] }
 0x672   : > { %5995 = vst.msk [vmem:[#allocation6 + $0x31] sm:$0x1] %vm5939_vm0, %v5990_v55  ;;  %7973 = vmatpush3.bf16.msra.mxu1 %v7972_v49  ;;  %v7370_v49 = vld [vmem:[%s12057_s7 + $0xe0] sm:$0xff] }
 0x673   : > { %7974 = vmatprep.subr.bf16.mxu1 %v8245_v19  ;;  %v8011_v5 = vpack.c.bf16 %v7371_v29, %v7370_v49  ;;  %v7397_v49 = vld [vmem:[%s12057_s7 + $0x188] sm:$0xff] }
 0x678   : > { %v6154_v47 = vld [vmem:[#allocation6 + $0x32] sm:$0xff] }
 0x679   : > { %v6204_v1 = vld [vmem:[#allocation6 + $0x31] sm:$0xff]  ;;  %6233 = vst.msk [vmem:[#allocation7 + $0x18] sm:$0xff] %vm12111_vm11, %v6154_v47  ;;  %vm12117_vm11 = vmmov %vm12096_vm1 }
 0x67a   : > { %v6179_v25 = vld [vmem:[#allocation6 + $0x30] sm:$0xff]  ;;  %6213 = vrot.lane.b32.xlu1 %v6204_v1, %s8247_s25 }
 0x67b   : > { %6188 = vrot.lane.b32.xlu0 %v6179_v25, %s8246_s13  ;;  %6051 = vst.msk [vmem:[#allocation7 + $0x30] sm:$0xff] %vm12112_vm3, %v6179_v25  ;;  %vm12120_vm3 = vmmov %vm12096_vm1 }
 0x67e   : > { %6089 = vrot.lane.b32.xlu1 %v11558_v9, %s12113_s16 }
 0x67f   : > { %6064 = vrot.lane.b32.xlu0 %v6203_v11, %s12114_s29 }
 0x680   : > { %v6239_v35 = vld [vmem:[#allocation7 + $0x18] sm:$0xff] }
 0x682   : > { %6139 = vrot.lane.b32.xlu1 %v6204_v1, %s8243_s22 }
 0x683   : > { %6114 = vrot.lane.b32.xlu0 %v6179_v25, %s8240_s15 }
 0x686   : > { %6164 = vrot.lane.b32.xlu1 %v6154_v47, %s12106_s14 }
 0x687   : > { %6066 = vrot.lane.b32.xlu0 %v6204_v1, %s12114_s29 }
 0x68b   : > { %6091 = vrot.lane.b32.xlu0 %v6154_v47, %s12113_s16  ;;  %s7418_s16 = sshll.u32 %s8331_s21, 4  ;;  %s8249_s21 = smov [#allocation9]  }
 0x68c   : > { %s12008_s12 = scalar_lea.hbm %s12061_s11, %s7418_s16 }
 0x690   : > { %v6187_v4 = vpop.permute.xlu1 %6186  ;;  %v6113_v36 = vpop.permute.xlu0 %6112 }
 0x691   : > { %6199 = vst.msk [vmem:[#allocation7] sm:$0xff] %vm6198_vm12, %v6187_v4 }
 0x692   : > { %6124 = vst.msk [vmem:[#allocation7 + $0x10] sm:$0xff] %vm6122_vm5, %v6113_v36 }
 0x694   : > { %v6212_v27 = vpop.permute.xlu1 %6211  ;;  %v6138_v52 = vpop.permute.xlu0 %6137 }
 0x695   : > { %6224 = vst.msk [vmem:[#allocation7] sm:$0xff] %vm6223_vm13, %v6212_v27 }
 0x696   : > { %6149 = vst.msk [vmem:[#allocation7 + $0x10] sm:$0xff] %vm6147_vm15, %v6138_v52 }
 0x698   : > { %v6163_v2 = vpop.permute.xlu1 %6162 }
 0x699   : > { %6174 = vst.msk [vmem:[#allocation7 + $0x10] sm:$0xff] %vm6172_vm7, %v6163_v2 }
 0x69c   : > { %v6236_v57 = vld [vmem:[#allocation7] sm:$0xff] }
 0x69d   : > { %6346 = vmatmul.mubr.f32.vlgmr.msra.gmra.mrb[64].mxu0 %v6236_v57 }
 0x69e   : > { %7341 = vmatprep.mubr.msk.f32.mxu0 %vm12096_vm1, %v6239_v35 }
 0x6e9   : > { %v7735_v31 = vpop.f32.mrb[12].mxu1 }
 0x6ea   : > { %v5897_v16 = vpop.f32.mrb[13].mxu1  ;;  %v5903_v26 = vadd.f32 %v7735_v31, %v11431_v3  ;;  %v11697_v31 = vld [vmem:[%s12056_s6] ss:$0 sm:$0xff] }
 0x6eb   : > { %v5898_v23 = vadd.f32 %v11431_v3, %v5897_v16 }
 0x6ec   : > { %v6214_v32 = vpop.permute.xlu1 %6213  ;;  %v5929_v33 = vmax.f32 %v5903_v26, 0.0 }
 0x6ed   : > { %v6189_v56 = vpop.permute.xlu0 %6188  ;;  %v5928_v9 = vmax.f32 %v5898_v23, 0.0 }
 0x6ee   : > { %6200 = vst.msk [vmem:[#allocation7 + $0x10] sm:$0xff] %vm6198_vm12, %v6189_v56  ;;  %v5973_v54 = vsel %vm12115_vm2, %v5929_v33, -inf  ;;  %v7346_v33 = vld [vmem:[%s12057_s7 + $0x40] sm:$0xff] }
 0x6ef   : > { %6225 = vst.msk [vmem:[#allocation7 + $0x10] sm:$0xff] %vm6223_vm13, %v6214_v32  ;;  %v5970_v34 = vsel %vm12117_vm11, %v5928_v9, -inf  ;;  %v7348_v9 = vld [vmem:[%s12057_s7 + $0x50] sm:$0xff]  ;;  %vm7179_vm11 = vcmask 8192  }
 0x6f0   : > { %v6090_v62 = vpop.permute.xlu1 %6089 }
 0x6f1   : > { %v6065_v22 = vpop.permute.xlu0 %6064 }
 0x6f2   : > { %6075 = vst.msk [vmem:[#allocation7 + $0x20] sm:$0xff] %vm6072_vm9, %v6065_v22 }
 0x6f3   : > { %6100 = vst.msk [vmem:[#allocation7 + $0x20] sm:$0xff] %vm6097_vm10, %v6090_v62 }
 0x6f4   : > { %v6140_v20 = vpop.permute.xlu1 %6139 }
 0x6f5   : > { %v6115_v43 = vpop.permute.xlu0 %6114 }
 0x6f6   : > { %6125 = vst.msk [vmem:[#allocation7 + $0x20] sm:$0xff] %vm6122_vm5, %v6115_v43  ;;  %v6238_v18 = vld [vmem:[#allocation7 + $0x10] sm:$0xff] }
 0x6f7   : > { %6150 = vst.msk [vmem:[#allocation7 + $0x20] sm:$0xff] %vm6147_vm15, %v6140_v20  ;;  %6351 = vmatmul.mubr.f32.gmra.mrb[66].mxu0 %v6238_v18  ;;  %v7738_v37 = vpop.f32.mrb[14].mxu1 }
 0x6f8   : > { %v6165_v61 = vpop.permute.xlu1 %6164  ;;  %v5913_v58 = vadd.f32 %v7738_v37, %v11431_v3  ;;  %v5907_v14 = vpop.f32.mrb[15].mxu1 }
 0x6f9   : > { %v6067_v7 = vpop.permute.xlu0 %6066  ;;  %6175 = vst.msk [vmem:[#allocation7 + $0x20] sm:$0xff] %vm6172_vm7, %v6165_v61  ;;  %v5908_v28 = vadd.f32 %v11431_v3, %v5907_v14  ;;  %v6231_v3 = vld [vmem:[#allocation6 + $0x52] sm:$0xff] }
 0x6fa   : > { %6076 = vst.msk [vmem:[#allocation7 + $0x30] sm:$0xff] %vm6072_vm9, %v6067_v7  ;;  %v5931_v11 = vmax.f32 %v5913_v58, 0.0  ;;  %vm12118_vm9 = vmmov %vm12096_vm1  ;;  %v7347_v58 = vld [vmem:[%s12057_s7 + $0x48] sm:$0xff] }
 0x6fb   : > { %v5930_v59 = vmax.f32 %v5908_v28, 0.0  ;;  %v7979_v14 = vpack.c.bf16 %v7347_v58, %v7346_v33  ;;  %v7349_v28 = vld [vmem:[%s12057_s7 + $0x58] sm:$0xff]  ;;  %v7095_v58 = vld [vmem:[%s12059_s9 + $0x30] sm:$0xff] }
 0x6fc   : > { %v5974_v50 = vsel %vm12116_vm8, %v5931_v11, -inf  ;;  %v7982_v11 = vpack.c.bf16 %v7349_v28, %v7348_v9  ;;  %v7097_v28 = vld [vmem:[%s12059_s9 + $0x40] sm:$0xff]  ;;  %vm7101_vm8 = vcmask 687104  }
 0x6fd   : > { %v6092_v44 = vpop.permute.xlu0 %6091  ;;  %v5975_v60 = vmax.f32 %v5973_v54, %v5974_v50  ;;  %v5971_v21 = vsel %vm12118_vm9, %v5930_v59, -inf  ;;  %v7350_v59 = vld [vmem:[%s12057_s7 + $0x60] sm:$0xff]  ;;  %v7351_v54 = vld [vmem:[%s12057_s7 + $0x68] sm:$0xff] }
 0x6fe   : > { %6101 = vst.msk [vmem:[#allocation7 + $0x30] sm:$0xff] %vm6097_vm10, %v6092_v44  ;;  %v5972_v42 = vmax.f32 %v5970_v34, %v5971_v21  ;;  %vm12119_vm10 = vmmov %vm12096_vm1  ;;  %v7985_v50 = vpack.c.bf16 %v7351_v54, %v7350_v59  ;;  %v7352_v34 = vld [vmem:[%s12057_s7 + $0x70] sm:$0xff] }
 0x6ff   : > { %v6019_v40 = vrot.slane %v5975_v60, 1  ;;  %6235 = vst.msk [vmem:[#allocation7 + $0x38] sm:$0xff] %vm12119_vm10, %v6231_v3  ;;  %v7359_v3 = vld [vmem:[%s12057_s7 + $0x98] sm:$0xff] }
 0x700   : > { %v5983_v10 = vrot.slane %v5972_v42, 1 }
 0x701   : > { %v6027_v38 = vmax.f32 %v5975_v60, %v6019_v40  ;;  %v7353_v60 = vld [vmem:[%s12057_s7 + $0x78] sm:$0xf]  ;;  %v7357_v40 = vld [vmem:[%s12057_s7 + $0x88] sm:$0xff] }
 0x702   : > { %v5991_v46 = vmax.f32 %v5972_v42, %v5983_v10  ;;  %v7988_v21 = vpack.c.bf16 %v7353_v60, %v7352_v34  ;;  %v7356_v42 = vld [vmem:[%s12057_s7 + $0x80] sm:$0xff] }
 0x703   : > { %6031 = vst.msk [vmem:[#allocation6 + $0x45] sm:$0x1] %vm5939_vm0, %v6027_v38  ;;  %v7992_v10 = vpack.c.bf16 %v7357_v40, %v7356_v42 }
 0x704   : > { %6035 = vst.msk [vmem:[#allocation6 + $0x44] sm:$0x4] %vm5997_vm4, %v6027_v38  ;;  %6001 = vst.msk [vmem:[#allocation6 + $0x40] sm:$0x4] %vm5997_vm4, %v5991_v46  ;;  %vm6411_vm4 = vcmask 1043456  }
 0x705   : > { %6039 = vst.msk [vmem:[#allocation6 + $0x43] sm:$0x10] %vm6002_vm6, %v6027_v38  ;;  %6006 = vst.msk [vmem:[#allocation6 + $0x3f] sm:$0x10] %vm6002_vm6, %v5991_v46  ;;  %vm12122_vm6 = vmmov 1  }
 0x706   : > { %6043 = vst.msk [vmem:[#allocation6 + $0x42] sm:$0x40] %vm6007_vm14, %v6027_v38  ;;  %6011 = vst.msk [vmem:[#allocation6 + $0x3e] sm:$0x40] %vm6007_vm14, %v5991_v46  ;;  %v6243_v57 = vld [vmem:[#allocation7 + $0x38] sm:$0xff] }
 0x707   : > { %5996 = vst.msk [vmem:[#allocation6 + $0x41] sm:$0x1] %vm5939_vm0, %v5991_v46  ;;  %vm12121_vm0 = vmmov %vm12096_vm1  ;;  %vm8248_vm1 = vmmov 0   ;;  %v7358_v46 = vld [vmem:[%s12057_s7 + $0x90] sm:$0xff] }
 0x708   : > { %vm11674_vm14 = vmpackc.low %vm6411_vm4, %vm12122_vm6  ;;  %7755 = vmatprep.mubr.msk.f32.mxu1 %vm8248_vm1, %v8227_v0 }
 0x709   : > { %7977 = vmatpush3.bf16.msk.msra.mxu1 %vm11674_vm14, %v7975_v63  ;;  %vm12125_vm2 = vmmov %vm12121_vm0  ;;  %v7372_v63 = vld [vmem:[%s12057_s7 + $0xf0] sm:$0xff] }
 0x70a   : > { %7978 = vmatprep.subr.bf16.mxu1 %v8245_v19 }
 0x70d   : > { %v6155_v39 = vld [vmem:[#allocation6 + $0x42] sm:$0xff] }
 0x70e   : > { %v6180_v8 = vld [vmem:[#allocation6 + $0x40] sm:$0xff]  ;;  %6234 = vst.msk [vmem:[#allocation7 + $0x28] sm:$0xff] %vm12120_vm3, %v6155_v39 }
 0x70f   : > { %6190 = vrot.lane.b32.xlu1 %v6180_v8, %s8246_s13  ;;  %6116 = vrot.lane.b32.xlu0 %v6180_v8, %s8240_s15  ;;  %v6205_v48 = vld [vmem:[#allocation6 + $0x41] sm:$0xff]  ;;  %v7995_v8 = vpack.c.bf16 %v7359_v3, %v7358_v46 }
 0x713   : > { %6215 = vrot.lane.b32.xlu1 %v6205_v48, %s8247_s25  ;;  %6141 = vrot.lane.b32.xlu0 %v6205_v48, %s8243_s22  ;;  %v7361_v48 = vld [vmem:[%s12057_s7 + $0xa8] sm:$0xff]  ;;  %s377_s22 = sand.u32 1, %s8217_s18  }
 0x714   : > { %s7182_s24 = scalar_lea.sflag [#allocation10], %s377_s22 }
 0x715   : > { %v6241_v41 = vld [vmem:[#allocation7 + $0x28] sm:$0xff] }
 0x716   : > { %7342 = vmatprep.mubr.msk.f32.mxu0 %vm12121_vm0, %v6241_v41  ;;  %v7362_v41 = vld [vmem:[%s12057_s7 + $0xb0] sm:$0xff] }
 0x717   : > { %6166 = vrot.lane.b32.xlu1 %v6155_v39, %s12106_s14  ;;  %6192 = vrot.lane.b32.xlu0 %v6181_v15, %s8246_s13  ;;  %v7360_v39 = vld [vmem:[%s12057_s7 + $0xa0] sm:$0xff]  ;;  %s8167_s13 = sshll.u32 %s8249_s21, 4  ;;  %s8168_s13 = int_to_ptr.vmem [resolvable:$false] %s8167_s13 }
 0x718   : > { %v7998_v15 = vpack.c.bf16 %v7361_v48, %v7360_v39  ;;  %v7387_v39 = vld [vmem:[%s12057_s7 + $0x148] sm:$0xff]  ;;  %s8169_s0 = scalar_lea.vmem %s8168_s13, 32 }
 0x71b   : > { %6217 = vrot.lane.b32.xlu1 %v6206_v13, %s8247_s25  ;;  %v7363_v13 = vld [vmem:[%s12057_s7 + $0xb8] sm:$0xf]  ;;  %s378_s25 = scalar_lea.vmem [#allocation9], %s377_s22 }
 0x71c   : > { %v8001_v51 = vpack.c.bf16 %v7363_v13, %v7362_v41  ;;  %v7389_v41 = vld [vmem:[%s12057_s7 + $0x158] sm:$0xff]  ;;  %s7194_s29 = sshll.u32 %s378_s25, 4  ;;  %s12010_s29 = int_to_ptr.vmem [resolvable:$true] %s7194_s29 }
 0x71d   : > { %s8163_s14 = scalar_lea.vmem %s12010_s29, 16  ;;  %p8170_p0 = scmp.lt.s32.totalorder %s12010_s29, %s8168_s13 }
 0x71e   : > { %p8164_p11 = scmp.ne.s32.totalorder %s12010_s29, %s8163_s14  ;;  %p8171_p1 = scmp.lt.s32.totalorder %s8169_s0, %s8163_s14 }
 0x720   : > { %p8165_p12 = pnand %p8164_p11, %p8348_p5  ;;  %p8172_p2 = por %p8171_p1, %p8170_p0 }
 0x722   : > { %p8166_p13 = pneg %p8165_p12 }
 0x724   : > { %p8173_p3 = pnand %p8172_p2, %p8166_p13 }
 0x770   : > { %v6347_v1 = vpop.f32.mrb[64].mxu0 }
 0x771   : > { %v6349_v25 = vpop.f32.mrb[65].mxu0  ;;  %v6348_v16 = vadd.f32 %v11697_v31, %v6347_v1  ;;  %v7373_v1 = vld [vmem:[%s12057_s7 + $0xf8] sm:$0xf] }
 0x772   : > { %v8014_v25 = vpack.c.bf16 %v7373_v1, %v7372_v63  ;;  %v7398_v63 = vld [vmem:[%s12057_s7 + $0x190] sm:$0xff]  ;;  %v7399_v1 = vld [vmem:[%s12057_s7 + $0x198] sm:$0xff] }
 0x773   : > { %v6366_v22 = vmax.f32 %v6348_v16, 0.0  ;;  %v7382_v16 = vld [vmem:[%s12057_s7 + $0x130] sm:$0xff] }
 0x781   : > { %v6191_v47 = vpop.permute.xlu1 %6190  ;;  %v6117_v4 = vpop.permute.xlu0 %6116 }
 0x782   : > { %6201 = vst.msk [vmem:[#allocation7 + $0x20] sm:$0xff] %vm6198_vm12, %v6191_v47  ;;  %v7376_v47 = vld [vmem:[%s12057_s7 + $0x100] sm:$0xff] }
 0x783   : > { %6126 = vst.msk [vmem:[#allocation7 + $0x30] sm:$0xff] %vm6122_vm5, %v6117_v4  ;;  %vm6370_vm5 = vcmask 490496   ;;  %v7377_v4 = vld [vmem:[%s12057_s7 + $0x108] sm:$0xff] }
 0x784   : > { %v6371_v26 = vsel %vm6370_vm5, %v6366_v22, -inf }
 0x785   : > { %v6216_v36 = vpop.permute.xlu1 %6215  ;;  %v6142_v27 = vpop.permute.xlu0 %6141 }
 0x786   : > { %6226 = vst.msk [vmem:[#allocation7 + $0x20] sm:$0xff] %vm6223_vm13, %v6216_v36  ;;  %v8018_v36 = vpack.c.bf16 %v7377_v4, %v7376_v47  ;;  %v7400_v47 = vld [vmem:[%s12057_s7 + $0x1a0] sm:$0xff]  ;;  %v7401_v4 = vld [vmem:[%s12057_s7 + $0x1a8] sm:$0xff] }
 0x787   : > { %6151 = vst.msk [vmem:[#allocation7 + $0x30] sm:$0xff] %vm6147_vm15, %v6142_v27  ;;  %vm6385_vm15 = vcmask 483328  }
 0x789   : > { %v6167_v52 = vpop.permute.xlu1 %6166  ;;  %v6193_v2 = vpop.permute.xlu0 %6192 }
 0x78a   : > { %6176 = vst.msk [vmem:[#allocation7 + $0x30] sm:$0xff] %vm6172_vm7, %v6167_v52  ;;  %vm6388_vm7 = vcmask 485378   ;;  %v7378_v52 = vld [vmem:[%s12057_s7 + $0x110] sm:$0xff] }
 0x78b   : > { %6202 = vst.msk [vmem:[#allocation7 + $0x30] sm:$0xff] %vm6198_vm12, %v6193_v2  ;;  %vm6391_vm12 = vcmask 487428   ;;  %v7379_v2 = vld [vmem:[%s12057_s7 + $0x118] sm:$0xff] }
 0x78d   : > { %v6218_v35 = vpop.permute.xlu1 %6217  ;;  %v6240_v32 = vld [vmem:[#allocation7 + $0x20] sm:$0xff] }
 0x78e   : > { %6227 = vst.msk [vmem:[#allocation7 + $0x30] sm:$0xff] %vm6223_vm13, %v6218_v35  ;;  %6356 = vmatmul.mubr.f32.gmra.mrb[68].mxu0 %v6240_v32  ;;  %vm6394_vm13 = vcmask 489478   ;;  %v7380_v35 = vld [vmem:[%s12057_s7 + $0x120] sm:$0xff]  ;;  %v7381_v32 = vld [vmem:[%s12057_s7 + $0x128] sm:$0xff] }
 0x78f   : > { %7343 = vmatprep.mubr.msk.f32.mxu0 %vm12125_vm2, %v6243_v57  ;;  %v8021_v57 = vpack.c.bf16 %v7379_v2, %v7378_v52  ;;  %v7403_v52 = vld [vmem:[%s12057_s7 + $0x1b8] sm:$0xf] }
 0x795   : > { %v6242_v56 = vld [vmem:[#allocation7 + $0x30] sm:$0xff] }
 0x796   : > { %6361 = vmatmul.mubr.f32.gmra.mrb[70].mxu0 %v6242_v56  ;;  %v8024_v56 = vpack.c.bf16 %v7381_v32, %v7380_v35  ;;  %v7407_v35 = vld [vmem:[%s12057_s7 + $0x1c8] sm:$0xff] }
 0x797   : > { %7913 = vmatprep.mubr.msk.f32.mxu0 %vm8248_vm1, %v8227_v0 }
 0x7ca   : > { %v6352_v62 = vpop.f32.mrb[66].mxu0 }
 0x7cb   : > { %v6353_v20 = vadd.f32 %v11697_v31, %v6352_v62  ;;  %v6354_v43 = vpop.f32.mrb[67].mxu0  ;;  %v7383_v62 = vld [vmem:[%s12057_s7 + $0x138] sm:$0xf] }
 0x7cc   : > { %v8027_v22 = vpack.c.bf16 %v7383_v62, %v7382_v16  ;;  %v7090_v43 = vld [vmem:[%s12059_s9 + $0x8] sm:$0xff]  ;;  %v7408_v16 = vld [vmem:[%s12057_s7 + $0x1d0] sm:$0xff]  ;;  %v7409_v62 = vld [vmem:[%s12057_s7 + $0x1d8] sm:$0xff] }
 0x7cd   : > { %v6367_v18 = vmax.f32 %v6353_v20, 0.0  ;;  %v7089_v20 = vld [vmem:[%s12059_s9] sm:$0xff] }
 0x7cf   : > { %v6372_v23 = vsel %vm6370_vm5, %v6367_v18, -inf  ;;  %v7091_v18 = vld [vmem:[%s12059_s9 + $0x10] sm:$0xff] }
 0x7d0   : > { %v6373_v61 = vmax.f32 %v6371_v26, %v6372_v23  ;;  %v8070_v26 = vpack.c.bf16 %v7090_v43, %v7089_v20  ;;  %v7092_v23 = vld [vmem:[%s12059_s9 + $0x18] sm:$0xff]  ;;  %v7410_v20 = vld [vmem:[%s12057_s7 + $0x1e0] sm:$0xff]  ;;  %v7411_v43 = vld [vmem:[%s12057_s7 + $0x1e8] sm:$0xff] }
 0x7d2   : > { %v6379_v7 = vrot.slane %v6373_v61, 1  ;;  %8071 = vmatpush3.bf16.msra.mxu0 %v8070_v26  ;;  %v7412_v26 = vld [vmem:[%s12057_s7 + $0x1f0] sm:$0xff] }
 0x7d3   : > { %8072 = vmatprep.subr.bf16.mxu0 %v8245_v19 }
 0x7d4   : > { %v6383_v37 = vmax.f32 %v6373_v61, %v6379_v7  ;;  %v8073_v61 = vpack.c.bf16 %v7092_v23, %v7091_v18  ;;  %v7093_v7 = vld [vmem:[%s12059_s9 + $0x20] sm:$0xff]  ;;  %v8063_v18 = vpack.c.bf16 %v7411_v43, %v7410_v20 }
 0x7d6   : > { %6386 = vst.msk [vmem:[#allocation8] sm:$0x1] %vm6385_vm15, %v6383_v37  ;;  %8074 = vmatpush3.bf16.msra.mxu0 %v8073_v61 }
 0x7d7   : > { %6389 = vst.msk [vmem:[#allocation8 - $0x1] sm:$0x4] %vm6388_vm7, %v6383_v37  ;;  %8075 = vmatprep.subr.bf16.mxu0 %v8245_v19 }
 0x7d8   : > { %6392 = vst.msk [vmem:[#allocation8 - $0x2] sm:$0x10] %vm6391_vm12, %v6383_v37 }
 0x7d9   : > { %6395 = vst.msk [vmem:[#allocation8 - $0x3] sm:$0x40] %vm6394_vm13, %v6383_v37  ;;  %v7094_v37 = vld [vmem:[%s12059_s9 + $0x28] sm:$0xff] }
 0x7da   : > { %v8076_v33 = vpack.c.bf16 %v7094_v37, %v7093_v7  ;;  %v7099_v7 = vld [vmem:[%s12059_s9 + $0x50] sm:$0xf]  ;;  %v6399_v37 = vld [vmem:[%s12058_s8] sm:$0x1] }
 0x7dc   : > { %8077 = vmatpush3.bf16.msra.mxu0 %v8076_v33 }
 0x7dd   : > { %8078 = vmatprep.subr.bf16.mxu0 %v8245_v19 }
 0x7e0   : > { %v11719_v44 = vld [vmem:[#allocation8] sm:$0xf] }
 0x7e1   : > { %7756 = vmatmul.mubr.msk.f32.vlgmr.msra.gmra.mrb[16].mxu1 %vm6370_vm5, %v11719_v44  ;;  %v6495_v38 = vrot.slane %v11719_v44, 1  ;;  %v6581_v17 = vrot.slane %v11719_v44, 2  ;;  %v6667_v27 = vrot.slane %v11719_v44, 3  ;;  %v7098_v44 = vld [vmem:[%s12059_s9 + $0x48] sm:$0xff] }
 0x7e2   : > { %7980 = vmatpush3.bf16.msra.mxu1 %v7979_v14  ;;  %7774 = vmatprep.mubr.msk.f32.mxu1 %vm8248_vm1, %v8227_v0  ;;  %v7096_v14 = vld [vmem:[%s12059_s9 + $0x38] sm:$0xff] }
 0x7e3   : > { %7981 = vmatprep.subr.bf16.mxu1 %v8245_v19  ;;  %v8079_v9 = vpack.c.bf16 %v7096_v14, %v7095_v58  ;;  %v7100_v14 = vld [vmem:[%s12060_s10] sm:$0x1] }
 0x7e5   : > { %8080 = vmatpush3.bf16.msra.mxu0 %v8079_v9 }
 0x7e6   : > { %7983 = vmatpush3.bf16.msra.mxu1 %v7982_v11  ;;  %v8082_v11 = vpack.c.bf16 %v7098_v44, %v7097_v28  ;;  %8081 = vmatprep.subr.bf16.mxu0 %v8245_v19 }
 0x7e7   : > { %7984 = vmatprep.subr.bf16.mxu1 %v8245_v19 }
 0x7e9   : > { %8083 = vmatpush3.bf16.msra.mxu0 %v8082_v11 }
 0x7ea   : > { %7986 = vmatpush3.bf16.msra.mxu1 %v7985_v50  ;;  %7911 = vmatprep.subr.mxu0 %v8227_v0 }
 0x7eb   : > { %7987 = vmatprep.subr.bf16.mxu1 %v8245_v19 }
 0x7ed   : > { %7912 = vmatpush3.msk.msra.mxu0 %vm6411_vm4, %v7099_v7 }
 0x7ee   : > { %7990 = vmatpush3.bf16.msk.msra.mxu1 %vm11674_vm14, %v7988_v21 }
 0x7ef   : > { %7991 = vmatprep.subr.bf16.mxu1 %v8245_v19 }
 0x7f1   : > { %7775 = vmatmul.mubr.msk.f32.vlgmr.msra.gmra.mrb[16].mxu1 %vm6370_vm5, %v6495_v38 }
 0x7f2   : > { %7993 = vmatpush3.bf16.msra.mxu1 %v7992_v10  ;;  %7793 = vmatprep.mubr.msk.f32.mxu1 %vm8248_vm1, %v8227_v0 }
 0x7f3   : > { %7994 = vmatprep.subr.bf16.mxu1 %v8245_v19 }
 0x7f6   : > { %7996 = vmatpush3.bf16.msra.mxu1 %v7995_v8 }
 0x7f7   : > { %7997 = vmatprep.subr.bf16.mxu1 %v8245_v19 }
 0x7fa   : > { %7999 = vmatpush3.bf16.msra.mxu1 %v7998_v15  ;;  %v7388_v15 = vld [vmem:[%s12057_s7 + $0x150] sm:$0xff] }
 0x7fb   : > { %8000 = vmatprep.subr.bf16.mxu1 %v8245_v19 }
 0x7fe   : > { %8003 = vmatpush3.bf16.msk.msra.mxu1 %vm11674_vm14, %v8001_v51  ;;  %v8034_v51 = vpack.c.bf16 %v7389_v41, %v7388_v15 }
 0x7ff   : > { %8004 = vmatprep.subr.bf16.mxu1 %v8245_v19 }
 0x801   : > { %7794 = vmatmul.mubr.msk.f32.vlgmr.msra.gmra.mrb[16].mxu1 %vm6370_vm5, %v6581_v17  ;;  %v7392_v17 = vld [vmem:[%s12057_s7 + $0x170] sm:$0xff] }
 0x802   : > { %8006 = vmatpush3.bf16.msra.mxu1 %v8005_v6  ;;  %7812 = vmatprep.mubr.msk.f32.mxu1 %vm8248_vm1, %v8227_v0  ;;  %v8037_v6 = vpack.c.bf16 %v7391_v53, %v7390_v12  ;;  %v8040_v24 = vpack.c.bf16 %v7393_v45, %v7392_v17 }
 0x803   : > { %8007 = vmatprep.subr.bf16.mxu1 %v8245_v19 }
 0x806   : > { %8009 = vmatpush3.bf16.msra.mxu1 %v8008_v30  ;;  %v7396_v30 = vld [vmem:[%s12057_s7 + $0x180] sm:$0xff] }
 0x807   : > { %8010 = vmatprep.subr.bf16.mxu1 %v8245_v19  ;;  %v8044_v29 = vpack.c.bf16 %v7397_v49, %v7396_v30 }
 0x80a   : > { %8012 = vmatpush3.bf16.msra.mxu1 %v8011_v5 }
 0x80b   : > { %8013 = vmatprep.subr.bf16.mxu1 %v8245_v19 }
 0x80e   : > { %8016 = vmatpush3.bf16.msk.msra.mxu1 %vm11674_vm14, %v8014_v25  ;;  %v8047_v25 = vpack.c.bf16 %v7399_v1, %v7398_v63 }
 0x80f   : > { %8017 = vmatprep.subr.bf16.mxu1 %v8245_v19 }
 0x811   : > { %7813 = vmatmul.mubr.msk.f32.vlgmr.msra.gmra.mrb[16].mxu1 %vm6370_vm5, %v6667_v27  ;;  %v7402_v27 = vld [vmem:[%s12057_s7 + $0x1b0] sm:$0xff] }
 0x812   : > { %8019 = vmatpush3.bf16.msra.mxu1 %v8018_v36  ;;  %7831 = vmatprep.mubr.msk.f32.mxu1 %vm8248_vm1, %v8227_v0  ;;  %v8050_v36 = vpack.c.bf16 %v7401_v4, %v7400_v47  ;;  %v8053_v2 = vpack.c.bf16 %v7403_v52, %v7402_v27 }
 0x813   : > { %8020 = vmatprep.subr.bf16.mxu1 %v8245_v19 }
 0x816   : > { %8022 = vmatpush3.bf16.msra.mxu1 %v8021_v57  ;;  %v7406_v57 = vld [vmem:[%s12057_s7 + $0x1c0] sm:$0xff] }
 0x817   : > { %8023 = vmatprep.subr.bf16.mxu1 %v8245_v19  ;;  %v8057_v32 = vpack.c.bf16 %v7407_v35, %v7406_v57 }
 0x81a   : > { %8025 = vmatpush3.bf16.msra.mxu1 %v8024_v56 }
 0x81b   : > { %8026 = vmatprep.subr.bf16.mxu1 %v8245_v19 }
 0x81e   : > { %8029 = vmatpush3.bf16.msk.msra.mxu1 %vm11674_vm14, %v8027_v22  ;;  %v8060_v22 = vpack.c.bf16 %v7409_v62, %v7408_v16 }
 0x81f   : > { %8030 = vmatprep.subr.bf16.mxu1 %v8245_v19 }
 0x861   : > { %v6357_v59 = vpop.f32.mrb[68].mxu0 }
 0x862   : > { %v6359_v54 = vpop.f32.mrb[69].mxu0  ;;  %v6358_v50 = vadd.f32 %v11697_v31, %v6357_v59 }
 0x864   : > { %v6368_v60 = vmax.f32 %v6358_v50, 0.0 }
 0x866   : > { %v6374_v10 = vsel %vm6370_vm5, %v6368_v60, -inf }
 0x869   : > { %v6362_v34 = vpop.f32.mrb[70].mxu0 }
 0x86a   : > { %v6363_v21 = vadd.f32 %v11697_v31, %v6362_v34  ;;  %v6364_v42 = vpop.f32.mrb[71].mxu0  ;;  %v7386_v31 = vld [vmem:[%s12057_s7 + $0x140] sm:$0xff] }
 0x86b   : > { %v8031_v48 = vpack.c.bf16 %v7387_v39, %v7386_v31 }
 0x86c   : > { %v6369_v40 = vmax.f32 %v6363_v21, 0.0 }
 0x86e   : > { %v6375_v38 = vsel %vm6370_vm5, %v6369_v40, -inf }
 0x86f   : > { %v6376_v46 = vmax.f32 %v6374_v10, %v6375_v38 }
 0x871   : > { %v6380_v3 = vrot.slane %v6376_v46, 1 }
 0x873   : > { %v6384_v8 = vmax.f32 %v6376_v46, %v6380_v3 }
 0x875   : > { %6387 = vst.msk [vmem:[#allocation8 + $0x4] sm:$0x1] %vm6385_vm15, %v6384_v8 }
 0x876   : > { %6390 = vst.msk [vmem:[#allocation8 + $0x3] sm:$0x4] %vm6388_vm7, %v6384_v8 }
 0x877   : > { %6393 = vst.msk [vmem:[#allocation8 + $0x2] sm:$0x10] %vm6391_vm12, %v6384_v8 }
 0x878   : > { %6396 = vst.msk [vmem:[#allocation8 + $0x1] sm:$0x40] %vm6394_vm13, %v6384_v8 }
 0x87f   : > { %v11900_v13 = vld [vmem:[#allocation8 + $0x4] sm:$0xf] }
 0x880   : > { %7832 = vmatmul.mubr.msk.f32.vlgmr.msra.gmra.mrb[16].mxu1 %vm6370_vm5, %v11900_v13  ;;  %v6839_v5 = vrot.slane %v11900_v13, 1  ;;  %v6925_v56 = vrot.slane %v11900_v13, 2  ;;  %v7011_v61 = vrot.slane %v11900_v13, 3 }
 0x881   : > { %8032 = vmatpush3.bf16.msra.mxu1 %v8031_v48  ;;  %7850 = vmatprep.mubr.msk.f32.mxu1 %vm8248_vm1, %v8227_v0 }
 0x882   : > { %8033 = vmatprep.subr.bf16.mxu1 %v8245_v19 }
 0x885   : > { %8035 = vmatpush3.bf16.msra.mxu1 %v8034_v51 }
 0x886   : > { %8036 = vmatprep.subr.bf16.mxu1 %v8245_v19 }
 0x889   : > { %8038 = vmatpush3.bf16.msra.mxu1 %v8037_v6 }
 0x88a   : > { %8039 = vmatprep.subr.bf16.mxu1 %v8245_v19 }
 0x88d   : > { %8042 = vmatpush3.bf16.msk.msra.mxu1 %vm11674_vm14, %v8040_v24 }
 0x88e   : > { %8043 = vmatprep.subr.bf16.mxu1 %v8245_v19 }
 0x890   : > { %7851 = vmatmul.mubr.msk.f32.vlgmr.msra.gmra.mrb[16].mxu1 %vm6370_vm5, %v6839_v5 }
 0x891   : > { %8045 = vmatpush3.bf16.msra.mxu1 %v8044_v29  ;;  %7869 = vmatprep.mubr.msk.f32.mxu1 %vm8248_vm1, %v8227_v0 }
 0x892   : > { %8046 = vmatprep.subr.bf16.mxu1 %v8245_v19 }
 0x895   : > { %8048 = vmatpush3.bf16.msra.mxu1 %v8047_v25 }
 0x896   : > { %8049 = vmatprep.subr.bf16.mxu1 %v8245_v19 }
 0x899   : > { %8051 = vmatpush3.bf16.msra.mxu1 %v8050_v36 }
 0x89a   : > { %8052 = vmatprep.subr.bf16.mxu1 %v8245_v19 }
 0x89d   : > { %8055 = vmatpush3.bf16.msk.msra.mxu1 %vm11674_vm14, %v8053_v2 }
 0x89e   : > { %8056 = vmatprep.subr.bf16.mxu1 %v8245_v19 }
 0x8a0   : > { %7870 = vmatmul.mubr.msk.f32.vlgmr.msra.gmra.mrb[16].mxu1 %vm6370_vm5, %v6925_v56 }
 0x8a1   : > { %8058 = vmatpush3.bf16.msra.mxu1 %v8057_v32  ;;  %7888 = vmatprep.mubr.msk.f32.mxu1 %vm8248_vm1, %v8227_v0  ;;  %v7413_v0 = vld [vmem:[%s12057_s7 + $0x1f8] sm:$0xf] }
 0x8a2   : > { %8059 = vmatprep.subr.bf16.mxu1 %v8245_v19  ;;  %v8066_v23 = vpack.c.bf16 %v7413_v0, %v7412_v26 }
 0x8a5   : > { %8061 = vmatpush3.bf16.msra.mxu1 %v8060_v22 }
 0x8a6   : > { %8062 = vmatprep.subr.bf16.mxu1 %v8245_v19 }
 0x8a9   : > { %8064 = vmatpush3.bf16.msra.mxu1 %v8063_v18 }
 0x8aa   : > { %8065 = vmatprep.subr.bf16.mxu1 %v8245_v19 }
 0x8ad   : > { %8068 = vmatpush3.bf16.msk.msra.mxu1 %vm11674_vm14, %v8066_v23 }
 0x8b0   : > { %7889 = vmatmul.mubr.msk.f32.vlgmr.msra.gmra.mrb[16].mxu1 %vm6370_vm5, %v7011_v61 }
 0x983   : > { %v7083_v33 = vpop.f32.mrb[16].mxu1 }
 0x984   : > { %v8084_v19 = vadd.f32 %v7083_v33, %v6399_v37  ;;  %v7890_v58 = vpop.f32.mrb[17].mxu1 }
 0x986   : > { %v7088_v55 = vmax.f32 %v8084_v19, 0.0 }
 0x988   : > { %7914 = vmatmul.mubr.msk.f32.vlgmr.msra.gmra.mrb[72].mxu0 %vm7101_vm8, %v7088_v55 }
 0xa5b   : > { %v7174_v9 = vpop.f32.mrb[72].mxu0 }
 0xa5c   : > { %v7175_v28 = vadd.f32 %v7174_v9, %v7100_v14  ;;  %v7915_v44 = vpop.f32.mrb[73].mxu0 }
 0xa5e   : > { %v7178_v11 = vmax.f32 %v7175_v28, 0.0 }
 0xa60   : > { %7180 = vst.msk [vmem:[%s378_s25] sm:$0x1] %vm7179_vm11, %v7178_v11 }
 0xa61   : > { %8176 = shalt.err (!%p8173_p3)
}
 0xa62   : > { %s8177_s22 = scalar_lea.hbm %s12008_s12, 16  ;;  %s8181_s30 = scalar_lea.hbm %s12061_s11, 32 }
 0xa63   : > { %p8178_p4 = scmp.ne.s32.totalorder %s12008_s12, %s8177_s22  ;;  %p8182_p9 = scmp.lt.u32.totalorder %s12008_s12, %s12061_s11 }
 0xa64   : > { %p8183_p10 = scmp.lt.u32.totalorder %s8181_s30, %s8177_s22  ;;  %p8185_p12 = scmp.lt.u32.totalorder %s8177_s22, %s12008_s12 }
 0xa65   : > { %p8179_p7 = pnand %p8178_p4, %p8348_p5 }
 0xa66   : > { %p8184_p11 = por %p8183_p10, %p8182_p9 }
 0xa67   : > { %p8180_p8 = pneg %p8179_p7 }
 0xa68   : > { %p8186_p13 = por %p8185_p12, %p8184_p11 }
 0xa6a   : > { %p8187_p0 = pnand %p8186_p13, %p8180_p8 }
 0xa6c   : > { %8190 = shalt.err (!%p8187_p0)
}
 0xa6d   : > { %8099 = dma.vmem_to_hbm [thread:$0]  (%p8348_p5), %s12010_s29, 16, %s12008_s12, %s7182_s24  }
 0xa6e PF: > { %p8105_p1 = scmp.ge.s32.totalorder %s8225_s20, 2  ;;  %s7206_s0 = sand.u32 1, %s8213_s17  }
 0xa6f   : > { %s7207_s14 = scalar_lea.sflag [#allocation10], %s7206_s0 }
 0xa70   : > { %p8102_p2 = pnand %p8105_p1, %p8352_p6 }
 0xa72   : > { %8208 = dma.done.wait (!%p8102_p2), %s7207_s14, 16  }
 0xa73   : > { %8210 = vsyncadd (!%p8102_p2), %s7207_s14, 4294967280  ;;  %p21_p3 = scmp.ge.s32.totalorder %s8335_s23, 4   ;;  %s12126_s17 = smov %s8217_s18 }
 0xa74   : > { %s12127_s18 = smov %s8221_s19  ;;  %s12128_s19 = smov %s8346_s26 }
 0xa75   : > { %s12129_s20 = smov %s8335_s23  ;;  %23 = sbr.rel (!%p21_p3) target bundleno = 5 (0x5), region = 115 }
 0xa7c   :  { %7211 = vsyncpa [#allocation10], 1 }
 0xa7d   :  { %7213 = vsyncpa [#allocation10 + $0x1], 1 }

</bundles_post_ra>
